<compile_context>
chip_gen: v7x
topology: tpu7x:2x2x1
jax: 0.10.0
libtpu: 0.0.40
codegen_flags: <defaults>
</compile_context>

<pallas_src>
import math

import jax
import jax.numpy as jnp
from jax import lax
from jax.experimental import pallas as pl
from jax.experimental.pallas import tpu as pltpu


def _vwe_kernel(x_ref, w_ref, corr_ref, hist_ref, ycnt_ref):
    # x_ref:    (1, C, HW)  float32   (raw, un-normalized features for this batch)
    # w_ref:    (K, C)      float32   (already L2-normalized on the host)
    # corr_ref: (1, K, HW)  float32
    # hist_ref: (1, K, 1)   float32
    # ycnt_ref: (1, K, 1)   int32
    x = x_ref[0]            # (C, HW)
    wn = w_ref[...]         # (K, C)

    eps = jnp.float32(1e-12)  # F.normalize eps

    # MXU matmul on the RAW x; fold the x L2-normalization into a per-pixel
    # (per column) scale afterwards — avoids materializing a normalized copy of x.
    s = lax.dot_general(
        wn, x,
        dimension_numbers=(((1,), (0,)), ((), ())),
        preferred_element_type=jnp.float32,
    )                                                        # (K, HW)

    sumsq = jnp.sum(x * x, axis=0, keepdims=True)            # (1, HW)
    inv_norm = lax.rsqrt(jnp.maximum(sumsq, eps * eps))      # (1, HW)  EUP rsqrt
    scores = s * inv_norm                                    # (K, HW)  cosine scores

    K, HW = scores.shape

    # First-occurrence argmax over K, computed on pre-softmax scores (softmax is
    # monotone per pixel so the argmax is identical), then per-word pixel counts.
    smax = jnp.max(scores, axis=0, keepdims=True)            # (1, HW)
    iota = lax.broadcasted_iota(jnp.int32, (K, HW), 0)       # (K, HW)
    first_idx = jnp.min(
        jnp.where(scores == smax, iota, jnp.int32(K)), axis=0, keepdims=True
    )                                                        # (1, HW)
    onehot = (iota == first_idx).astype(jnp.int32)           # (K, HW)
    ycnt_ref[0] = jnp.sum(onehot, axis=1, keepdims=True)     # (K, 1)

    # Softmax over K (axis 0); approx reciprocal goes to the EUP slot.
    e = jnp.exp(scores - smax)                               # (K, HW)
    denom = jnp.sum(e, axis=0, keepdims=True)                # (1, HW)
    corr = e * pl.reciprocal(denom, approx=True)             # (K, HW)

    corr_ref[0] = corr
    hist_ref[0] = jnp.sum(corr, axis=1, keepdims=True)       # (K, 1)


def vwe_forward(x_nchw, centroid):
    """x_nchw: (N, C, H, W) float32, centroid: (K, C, 1, 1) float32."""
    N, C, H, W = x_nchw.shape
    K = centroid.shape[0]
    HW = H * W

    # Zero-copy views — no NCHW<->NHWC transposes on the host any more.
    x = x_nchw.reshape(N, C, HW)
    w = centroid.reshape(K, C)

    # Hoist the centroid L2-normalization out of the kernel (it is identical
    # for every grid step).
    w_nrm = jnp.sqrt(jnp.sum(w * w, axis=1, keepdims=True))
    wn = w / jnp.maximum(w_nrm, jnp.float32(1e-12))

    out_shapes = (
        jax.ShapeDtypeStruct((N, K, HW), jnp.float32),   # corr
        jax.ShapeDtypeStruct((N, K, 1), jnp.float32),    # hist
        jax.ShapeDtypeStruct((N, K, 1), jnp.int32),      # y_count
    )

    corr, hist, ycnt = pl.pallas_call(
        _vwe_kernel,
        out_shape=out_shapes,
        grid_spec=pltpu.PrefetchScalarGridSpec(
            num_scalar_prefetch=0,
            grid=(N,),
            in_specs=[
                pl.BlockSpec((1, C, HW), lambda n: (n, 0, 0)),
                pl.BlockSpec((K, C), lambda n: (0, 0)),
            ],
            out_specs=[
                pl.BlockSpec((1, K, HW), lambda n: (n, 0, 0)),
                pl.BlockSpec((1, K, 1), lambda n: (n, 0, 0)),
                pl.BlockSpec((1, K, 1), lambda n: (n, 0, 0)),
            ],
        ),
        compiler_params=pltpu.CompilerParams(
            # Batch steps are independent -> megacore-shardable (2 TCs on v7x).
            dimension_semantics=("parallel",),
        ),
    )(x, wn)

    # Pure reshapes back to the PyTorch output shapes (no transposes).
    x_corr = corr.reshape(N, K, H, W)       # (N, K, H, W)
    x_hist = hist.reshape(N, K, 1, 1)       # (N, K, 1, 1)
    y_word = ycnt.reshape(N, K) > 0         # (N, K) bool
    return x_corr, x_hist, y_word


def init_centroid(key, k_words=256, channels=2048):
    # kaiming_normal_ with a=sqrt(5), mode='fan_in':
    # gain = sqrt(2 / (1 + a^2)) = sqrt(1/3), std = gain / sqrt(fan_in)
    fan_in = channels  # kernel is 1x1
    std = math.sqrt(1.0 / 3.0) / math.sqrt(fan_in)
    return std * jax.random.normal(key, (k_words, channels, 1, 1), dtype=jnp.float32)


if __name__ == "__main__":
    N, C, H, W = 2, 2048, 8, 8   # C fixed to 2048 by the module
    K = 256

    key = jax.random.PRNGKey(0)
    kx, kw = jax.random.split(key)
    x = jax.random.normal(kx, (N, C, H, W), dtype=jnp.float32)
    centroid = init_centroid(kw, k_words=K, channels=C)

    x_corr, x_hist, y_word = jax.jit(vwe_forward)(x, centroid)
    jax.block_until_ready((x_corr, x_hist, y_word))

    assert x_corr.shape == (N, K, H, W)
    assert x_hist.shape == (N, K, 1, 1)
    assert y_word.shape == (N, K) and y_word.dtype == jnp.bool_

    # Lightweight pure-JAX reference sanity check (loose tolerance: approx
    # reciprocal / rsqrt-based normalization differ at ~1e-6 relative level).
    def _ref(x_, w_):
        xr = x_.reshape(N, C, H * W)
        wr = w_.reshape(K, C)
        xr = xr / jnp.maximum(jnp.sqrt(jnp.sum(xr * xr, 1, keepdims=True)), 1e-12)
        wr = wr / jnp.maximum(jnp.sqrt(jnp.sum(wr * wr, 1, keepdims=True)), 1e-12)
        s = jnp.einsum("ncp,kc->nkp", xr, wr)
        c = jax.nn.softmax(s, axis=1)
        return c.reshape(N, K, H, W), jnp.sum(c, axis=2).reshape(N, K, 1, 1)

    rc, rh = _ref(x, centroid)
    assert float(jnp.max(jnp.abs(x_corr - rc))) < 5e-3
    assert float(jnp.max(jnp.abs(x_hist - rh))) < 5e-2

    print("KERNEL_OK")
</pallas_src>

<mosaic_0001>
module attributes {stable_mosaic.version = 11 : i64} {
  func.func @_vwe_kernel(%arg0: i32, %arg1: memref<1x2048x64xf32, #tpu.memory_space<vmem>>, %arg2: memref<256x2048xf32, #tpu.memory_space<vmem>>, %arg3: memref<1x256x64xf32, #tpu.memory_space<vmem>>, %arg4: memref<1x256x1xf32, #tpu.memory_space<vmem>>, %arg5: memref<1x256x1xi32, #tpu.memory_space<vmem>>) attributes {dimension_semantics = [#tpu.dimension_semantics<parallel>], iteration_bounds = array<i64: 2>, scalar_prefetch = 0 : i64, scratch_operands = 0 : i64, tpu.core_type = #tpu.core_type<tc>, window_params = [{transform_indices = @transform_0, window_bounds = array<i64: 1, 2048, 64>}, {pipeline_mode = #tpu.pipeline_mode<synchronous>, transform_indices = @transform_1, window_bounds = array<i64: 256, 2048>}, {transform_indices = @transform_2, window_bounds = array<i64: 1, 256, 64>}, {transform_indices = @transform_3, window_bounds = array<i64: 1, 256, 1>}, {transform_indices = @transform_4, window_bounds = array<i64: 1, 256, 1>}]} {
    %c0 = arith.constant 0 : index
    %c0_0 = arith.constant 0 : index
    %c0_1 = arith.constant 0 : index
    %0 = vector.load %arg1[%c0, %c0_0, %c0_1] : memref<1x2048x64xf32, #tpu.memory_space<vmem>>, vector<1x2048x64xf32>
    %1 = vector.shape_cast %0 : vector<1x2048x64xf32> to vector<2048x64xf32>
    %c0_2 = arith.constant 0 : index
    %c0_3 = arith.constant 0 : index
    %2 = vector.load %arg2[%c0_2, %c0_3] : memref<256x2048xf32, #tpu.memory_space<vmem>>, vector<256x2048xf32>
    %cst = arith.constant dense<0.000000e+00> : vector<256x64xf32>
    %3 = tpu.matmul %2, %1, %cst {dimension_numbers = #tpu.dot_dimension_numbers<[1], [0], [0], [1], [0, 0, 1, 1], [], []>} : vector<256x2048xf32>, vector<2048x64xf32>, vector<256x64xf32> -> vector<256x64xf32>
    %4 = arith.mulf %1, %1 : vector<2048x64xf32>
    %cst_4 = arith.constant dense<0.000000e+00> : vector<64xf32>
    %5 = vector.multi_reduction <add>, %4, %cst_4 [0] : vector<2048x64xf32> to vector<64xf32>
    %6 = vector.shape_cast %5 : vector<64xf32> to vector<1x64xf32>
    %cst_5 = arith.constant 9.99999996E-13 : f32
    %cst_6 = arith.constant 9.99999996E-13 : f32
    %7 = arith.mulf %cst_5, %cst_6 : f32
    %8 = vector.broadcast %7 : f32 to vector<1x64xf32>
    %9 = arith.maximumf %6, %8 : vector<1x64xf32>
    %10 = math.rsqrt %9 : vector<1x64xf32>
    %11 = vector.broadcast %10 : vector<1x64xf32> to vector<256x64xf32>
    %12 = arith.mulf %3, %11 : vector<256x64xf32>
    %cst_7 = arith.constant dense<0xFF800000> : vector<64xf32>
    %13 = vector.multi_reduction <maximumf>, %12, %cst_7 [0] : vector<256x64xf32> to vector<64xf32>
    %14 = vector.shape_cast %13 : vector<64xf32> to vector<1x64xf32>
    %15 = tpu.iota {dimensions = array<i32: 0>} : vector<256x64xi32>
    %16 = vector.broadcast %14 : vector<1x64xf32> to vector<256x64xf32>
    %17 = arith.cmpf oeq, %12, %16 : vector<256x64xf32>
    %c256_i32 = arith.constant 256 : i32
    %18 = vector.broadcast %c256_i32 : i32 to vector<256x64xi32>
    %19 = arith.select %17, %15, %18 : vector<256x64xi1>, vector<256x64xi32>
    %cst_8 = arith.constant dense<2147483647> : vector<64xi32>
    %20 = vector.multi_reduction <minsi>, %19, %cst_8 [0] : vector<256x64xi32> to vector<64xi32>
    %21 = vector.shape_cast %20 : vector<64xi32> to vector<1x64xi32>
    %22 = vector.broadcast %21 : vector<1x64xi32> to vector<256x64xi32>
    %23 = arith.cmpi eq, %15, %22 : vector<256x64xi32>
    %24 = arith.extui %23 : vector<256x64xi1> to vector<256x64xi32>
    %cst_9 = arith.constant dense<0> : vector<256xi32>
    %25 = vector.multi_reduction <add>, %24, %cst_9 [1] : vector<256x64xi32> to vector<256xi32>
    %26 = vector.shape_cast %25 : vector<256xi32> to vector<256x1xi32>
    %c0_10 = arith.constant 0 : index
    %c0_11 = arith.constant 0 : index
    %c0_12 = arith.constant 0 : index
    %27 = vector.load %arg5[%c0_10, %c0_11, %c0_12] : memref<1x256x1xi32, #tpu.memory_space<vmem>>, vector<1x256x1xi32>
    %28 = vector.shape_cast %27 : vector<1x256x1xi32> to vector<256x1xi32>
    %29 = vector.shape_cast %26 : vector<256x1xi32> to vector<1x256x1xi32>
    tpu.vector_store %arg5[%c0_10, %c0_11, %c0_12], %29 {strides = array<i32>} : memref<1x256x1xi32, #tpu.memory_space<vmem>>, vector<1x256x1xi32>,
    %30 = vector.broadcast %14 : vector<1x64xf32> to vector<256x64xf32>
    %31 = arith.subf %12, %30 : vector<256x64xf32>
    %32 = math.exp %31 : vector<256x64xf32>
    %cst_13 = arith.constant dense<0.000000e+00> : vector<64xf32>
    %33 = vector.multi_reduction <add>, %32, %cst_13 [0] : vector<256x64xf32> to vector<64xf32>
    %34 = vector.shape_cast %33 : vector<64xf32> to vector<1x64xf32>
    %35 = tpu.reciprocal %34 {approx = true} : vector<1x64xf32> -> vector<1x64xf32>
    %36 = vector.broadcast %35 : vector<1x64xf32> to vector<256x64xf32>
    %37 = arith.mulf %32, %36 : vector<256x64xf32>
    %c0_14 = arith.constant 0 : index
    %c0_15 = arith.constant 0 : index
    %c0_16 = arith.constant 0 : index
    %38 = vector.load %arg3[%c0_14, %c0_15, %c0_16] : memref<1x256x64xf32, #tpu.memory_space<vmem>>, vector<1x256x64xf32>
    %39 = vector.shape_cast %38 : vector<1x256x64xf32> to vector<256x64xf32>
    %40 = vector.shape_cast %37 : vector<256x64xf32> to vector<1x256x64xf32>
    tpu.vector_store %arg3[%c0_14, %c0_15, %c0_16], %40 {strides = array<i32>} : memref<1x256x64xf32, #tpu.memory_space<vmem>>, vector<1x256x64xf32>,
    %cst_17 = arith.constant dense<0.000000e+00> : vector<256xf32>
    %41 = vector.multi_reduction <add>, %37, %cst_17 [1] : vector<256x64xf32> to vector<256xf32>
    %42 = vector.shape_cast %41 : vector<256xf32> to vector<256x1xf32>
    %c0_18 = arith.constant 0 : index
    %c0_19 = arith.constant 0 : index
    %c0_20 = arith.constant 0 : index
    %43 = vector.load %arg4[%c0_18, %c0_19, %c0_20] : memref<1x256x1xf32, #tpu.memory_space<vmem>>, vector<1x256x1xf32>
    %44 = vector.shape_cast %43 : vector<1x256x1xf32> to vector<256x1xf32>
    %45 = vector.shape_cast %42 : vector<256x1xf32> to vector<1x256x1xf32>
    tpu.vector_store %arg4[%c0_18, %c0_19, %c0_20], %45 {strides = array<i32>} : memref<1x256x1xf32, #tpu.memory_space<vmem>>, vector<1x256x1xf32>,
    return
  }
  func.func @transform_0(%arg0: i32) -> (i32, i32, i32) {
    %c0_i32 = arith.constant 0 : i32
    %c0_i32_0 = arith.constant 0 : i32
    %c0_i32_1 = arith.constant 0 : i32
    return %arg0, %c0_i32, %c0_i32_0 : i32, i32, i32
  }
  func.func @transform_1(%arg0: i32) -> (i32, i32) {
    %c0_i32 = arith.constant 0 : i32
    %c0_i32_0 = arith.constant 0 : i32
    %c0_i32_1 = arith.constant 0 : i32
    return %c0_i32, %c0_i32_0 : i32, i32
  }
  func.func @transform_2(%arg0: i32) -> (i32, i32, i32) {
    %c0_i32 = arith.constant 0 : i32
    %c0_i32_0 = arith.constant 0 : i32
    %c0_i32_1 = arith.constant 0 : i32
    return %arg0, %c0_i32, %c0_i32_0 : i32, i32, i32
  }
  func.func @transform_3(%arg0: i32) -> (i32, i32, i32) {
    %c0_i32 = arith.constant 0 : i32
    %c0_i32_0 = arith.constant 0 : i32
    %c0_i32_1 = arith.constant 0 : i32
    return %arg0, %c0_i32, %c0_i32_0 : i32, i32, i32
  }
  func.func @transform_4(%arg0: i32) -> (i32, i32, i32) {
    %c0_i32 = arith.constant 0 : i32
    %c0_i32_0 = arith.constant 0 : i32
    %c0_i32_1 = arith.constant 0 : i32
    return %arg0, %c0_i32, %c0_i32_0 : i32, i32, i32
  }
}

</mosaic_0001>

<bundles_post_ra>
// kernel: vwe_forward.1
= control target key start
LH: loop header
LB: loop body
LE: loop exit
PB: predicated region body
PF: predicated region fallthrough
CT: control target
= control target key end

     0   :  { %s5920_s15 = smov 0   ;;  %s10113_s0 = inlined_call_operand.vmem [shape: f32[2,2048,64], index: 0, kind: input, shape index: {}]   ;;  %s10114_s1 = inlined_call_operand.vmem [shape: f32[256,2048], index: 1, kind: input, shape index: {}]   ;;  %s10115_s2 = inlined_call_operand.vmem [shape: f32[2,256,64], index: 2, kind: output, shape index: {0}]   ;;  %s10116_s3 = inlined_call_operand.vmem [shape: f32[2,256,1], index: 3, kind: output, shape index: {1}]   ;;  %s10117_s4 = inlined_call_operand.vmem [shape: s32[2,256,1], index: 4, kind: output, shape index: {2}]  }
   0x1 LB: > { %s4860_s16 = sadd.s32 4294967295, %s5891_s15   ;;  %p4864_p0 = scmp.ge.s32.totalorder %s5891_s15, 1  ;;  %s5891_s15 = sphi %s5920_s15, %s15_s15  }
   0x2   : > { %p167_p1 = scmp.lt.s32.totalorder %s5891_s15, 3 }
   0x4   : > { %p168_p2 = pnand %p4864_p0, %p167_p1 }
   0x6   : > { %171 = sbr.rel (%p168_p2) target bundleno = 1281 (0x501), region = 28 }
   0xd   : > { %p203_p3 = scmp.lt.s32.totalorder %s4860_s16, 1  ;;  %v480_v0 = vld [vmem:[%s10114_s1 + $0x8] sm:$0xff]  ;;  %v5893_v2 = vmov 0.0|0.0   ;;  %vm10118_vm0 = vcmask 523264  }
   0xe   : > { %v488_v1 = vld [vmem:[%s10114_s1 + $0x48] sm:$0xff]  ;;  %4879 = vmatprep.subr.bf16.mxu1 %v5893_v2  ;;  %5071 = vmatprep.subr.bf16.mxu0 %v5893_v2 }
   0xf   : > { %s10360_s16 = smov (!%p203_p3, %s4860_s16), 1  ;;  %1055 = vmatprep.mubr.f32.mxu1 %v480_v0  ;;  %1955 = vmatprep.mubr.f32.mxu0 %v488_v1 }
  0x10   : > { %s4875_s21 = sshll.u32 %s10360_s16, 11  ;;  %s9632_s20 = sshll.u32 %s10360_s16, 8 }
  0x11   : > { %s5942_s24 = scalar_lea.vmem %s10113_s0, %s4875_s21  ;;  %s9642_s23 = scalar_lea.vmem %s10115_s2, %s9632_s20 }
  0x12   : > { %v223_v3 = vld [vmem:[%s5942_s24] sm:$0xff]  ;;  %v224_v4 = vld [vmem:[%s5942_s24 + $0x8] sm:$0xff]  ;;  %v225_v10 = vld [vmem:[%s5942_s24 + $0x10] sm:$0xff]  ;;  %s9934_s26 = scalar_lea.vmem %s10117_s4, %s9632_s20  ;;  %s10040_s29 = scalar_lea.vmem %s10116_s3, %s9632_s20 }
  0x13   : > { %v351_v5 = vld [vmem:[%s5942_s24 + $0x400] sm:$0xff]  ;;  %v4880_v6 = vpack.c.bf16 %v224_v4, %v223_v3  ;;  %v2791_v7 = vmul.f32 %v223_v3, %v223_v3  ;;  %v2792_v8 = vmul.f32 %v224_v4, %v224_v4  ;;  %v352_v9 = vld [vmem:[%s5942_s24 + $0x408] sm:$0xff]  ;;  %v226_v11 = vld [vmem:[%s5942_s24 + $0x18] sm:$0xff]  ;;  %v2793_v13 = vmul.f32 %v225_v10, %v225_v10 }
  0x14   : > { %v5072_v12 = vpack.c.bf16 %v352_v9, %v351_v5  ;;  %v353_v14 = vld [vmem:[%s5942_s24 + $0x410] sm:$0xff]  ;;  %v354_v15 = vld [vmem:[%s5942_s24 + $0x418] sm:$0xff]  ;;  %v4883_v18 = vpack.c.bf16 %v226_v11, %v225_v10  ;;  %v2794_v19 = vmul.f32 %v226_v11, %v226_v11  ;;  %v227_v23 = vld [vmem:[%s5942_s24 + $0x20] sm:$0xff] }
  0x15   : > { %4881 = vmatpush1.bf16.msra.mxu1 %v4880_v6  ;;  %v3048_v16 = vsel %vm10118_vm0, %v2791_v7, 0.0  ;;  %v3049_v17 = vsel %vm10118_vm0, %v2792_v8, 0.0  ;;  %v3051_v21 = vsel %vm10118_vm0, %v2793_v13, 0.0  ;;  %v5075_v22 = vpack.c.bf16 %v354_v15, %v353_v14  ;;  %v228_v24 = vld [vmem:[%s5942_s24 + $0x28] sm:$0xff]  ;;  %v355_v26 = vld [vmem:[%s5942_s24 + $0x420] sm:$0xff]  ;;  %v229_v35 = vld [vmem:[%s5942_s24 + $0x30] sm:$0xff] }
  0x16   : > { %v3050_v20 = vadd.f32 %v3049_v17, %v3048_v16  ;;  %5073 = vmatpush1.bf16.msra.mxu0 %v5072_v12  ;;  %4882 = vmatprep.subr.bf16.mxu1 %v5893_v2  ;;  %v3053_v25 = vsel %vm10118_vm0, %v2794_v19, 0.0  ;;  %v356_v27 = vld [vmem:[%s5942_s24 + $0x428] sm:$0xff]  ;;  %v2795_v29 = vmul.f32 %v227_v23, %v227_v23  ;;  %v2796_v30 = vmul.f32 %v228_v24, %v228_v24  ;;  %v230_v36 = vld [vmem:[%s5942_s24 + $0x38] sm:$0xff]  ;;  %v357_v40 = vld [vmem:[%s5942_s24 + $0x430] sm:$0xff] }
  0x17   : > { %5074 = vmatprep.subr.bf16.mxu0 %v5893_v2  ;;  %v4886_v31 = vpack.c.bf16 %v228_v24, %v227_v23  ;;  %v5078_v34 = vpack.c.bf16 %v356_v27, %v355_v26  ;;  %v2797_v38 = vmul.f32 %v229_v35, %v229_v35  ;;  %v2798_v39 = vmul.f32 %v230_v36, %v230_v36  ;;  %v358_v41 = vld [vmem:[%s5942_s24 + $0x438] sm:$0xff]  ;;  %v231_v43 = vld [vmem:[%s5942_s24 + $0x40] sm:$0xff]  ;;  %v232_v49 = vld [vmem:[%s5942_s24 + $0x48] sm:$0xff] }
  0x18   : > { %v3052_v28 = vadd.f32 %v3051_v21, %v3050_v20  ;;  %v3055_v33 = vsel %vm10118_vm0, %v2795_v29, 0.0  ;;  %v3057_v37 = vsel %vm10118_vm0, %v2796_v30, 0.0  ;;  %v4889_v44 = vpack.c.bf16 %v230_v36, %v229_v35  ;;  %v359_v52 = vld [vmem:[%s5942_s24 + $0x440] sm:$0xff]  ;;  %v360_v53 = vld [vmem:[%s5942_s24 + $0x448] sm:$0xff]  ;;  %v233_v55 = vld [vmem:[%s5942_s24 + $0x50] sm:$0xff] }
  0x19   : > { %4884 = vmatpush1.bf16.msra.mxu1 %v4883_v18  ;;  %v3059_v45 = vsel %vm10118_vm0, %v2797_v38, 0.0  ;;  %v2799_v46 = vmul.f32 %v231_v43, %v231_v43  ;;  %v5081_v48 = vpack.c.bf16 %v358_v41, %v357_v40  ;;  %v3061_v50 = vsel %vm10118_vm0, %v2798_v39, 0.0  ;;  %v234_v61 = vld [vmem:[%s5942_s24 + $0x58] sm:$0xff]  ;;  %v361_v0 = vld [vmem:[%s5942_s24 + $0x450] sm:$0xff]  ;;  %v235_v4 = vld [vmem:[%s5942_s24 + $0x60] sm:$0xff] }
  0x1a   : > { %v3054_v32 = vadd.f32 %v3053_v25, %v3052_v28  ;;  %5076 = vmatpush1.bf16.msra.mxu0 %v5075_v22  ;;  %4885 = vmatprep.subr.bf16.mxu1 %v5893_v2  ;;  %v2800_v51 = vmul.f32 %v232_v49, %v232_v49  ;;  %v4892_v56 = vpack.c.bf16 %v232_v49, %v231_v43  ;;  %v362_v1 = vld [vmem:[%s5942_s24 + $0x458] sm:$0xff]  ;;  %v236_v10 = vld [vmem:[%s5942_s24 + $0x68] sm:$0xff]  ;;  %v363_v13 = vld [vmem:[%s5942_s24 + $0x460] sm:$0xff] }
  0x1b   : > { %5077 = vmatprep.subr.bf16.mxu0 %v5893_v2  ;;  %v3063_v57 = vsel %vm10118_vm0, %v2799_v46, 0.0  ;;  %v2801_v58 = vmul.f32 %v233_v55, %v233_v55  ;;  %v5084_v60 = vpack.c.bf16 %v360_v53, %v359_v52  ;;  %v2802_v63 = vmul.f32 %v234_v61, %v234_v61  ;;  %v364_v14 = vld [vmem:[%s5942_s24 + $0x468] sm:$0xff]  ;;  %v237_v16 = vld [vmem:[%s5942_s24 + $0x70] sm:$0xff]  ;;  %v238_v22 = vld [vmem:[%s5942_s24 + $0x78] sm:$0xff] }
  0x1c   : > { %v3056_v42 = vadd.f32 %v3055_v33, %v3054_v32  ;;  %v3065_v62 = vsel %vm10118_vm0, %v2800_v51, 0.0  ;;  %v4895_v5 = vpack.c.bf16 %v234_v61, %v233_v55  ;;  %v2803_v7 = vmul.f32 %v235_v4, %v235_v4  ;;  %v365_v25 = vld [vmem:[%s5942_s24 + $0x470] sm:$0xff]  ;;  %v366_v26 = vld [vmem:[%s5942_s24 + $0x478] sm:$0xff]  ;;  %v239_v28 = vld [vmem:[%s5942_s24 + $0x80] sm:$0xff] }
  0x1d   : > { %4887 = vmatpush1.bf16.msra.mxu1 %v4886_v31  ;;  %v3067_v6 = vsel %vm10118_vm0, %v2801_v58, 0.0  ;;  %v5087_v9 = vpack.c.bf16 %v362_v1, %v361_v0  ;;  %v3069_v11 = vsel %vm10118_vm0, %v2802_v63, 0.0  ;;  %v2804_v12 = vmul.f32 %v236_v10, %v236_v10  ;;  %v368_v38 = vld [vmem:[%s5942_s24 + $0x488] sm:$0xff]  ;;  %v241_v40 = vld [vmem:[%s5942_s24 + $0x90] sm:$0xff]  ;;  %v242_v46 = vld [vmem:[%s5942_s24 + $0x98] sm:$0xff] }
  0x1e   : > { %v3058_v47 = vadd.f32 %v3057_v37, %v3056_v42  ;;  %5079 = vmatpush1.bf16.msra.mxu0 %v5078_v34  ;;  %4888 = vmatprep.subr.bf16.mxu1 %v5893_v2  ;;  %v4898_v17 = vpack.c.bf16 %v236_v10, %v235_v4  ;;  %v3071_v18 = vsel %vm10118_vm0, %v2803_v7, 0.0  ;;  %v2805_v19 = vmul.f32 %v237_v16, %v237_v16  ;;  %v240_v34 = vld [vmem:[%s5942_s24 + $0x88] sm:$0xff]  ;;  %v367_v37 = vld [vmem:[%s5942_s24 + $0x480] sm:$0xff]  ;;  %v369_v49 = vld [vmem:[%s5942_s24 + $0x490] sm:$0xff] }
  0x1f   : > { %5080 = vmatprep.subr.bf16.mxu0 %v5893_v2  ;;  %v5090_v21 = vpack.c.bf16 %v364_v14, %v363_v13  ;;  %v3073_v23 = vsel %vm10118_vm0, %v2804_v12, 0.0  ;;  %v2806_v24 = vmul.f32 %v238_v22, %v238_v22  ;;  %v4901_v29 = vpack.c.bf16 %v238_v22, %v237_v16  ;;  %v243_v52 = vld [vmem:[%s5942_s24 + $0xa0] sm:$0xff]  ;;  %v244_v58 = vld [vmem:[%s5942_s24 + $0xa8] sm:$0xff]  ;;  %v245_v0 = vld [vmem:[%s5942_s24 + $0xb0] sm:$0xff] }
  0x20   : > { %v3060_v54 = vadd.f32 %v3059_v45, %v3058_v47  ;;  %v3075_v30 = vsel %vm10118_vm0, %v2805_v19, 0.0  ;;  %v2807_v31 = vmul.f32 %v239_v28, %v239_v28  ;;  %v5093_v33 = vpack.c.bf16 %v366_v26, %v365_v25  ;;  %v371_v61 = vld [vmem:[%s5942_s24 + $0x4a0] sm:$0xff]  ;;  %v246_v7 = vld [vmem:[%s5942_s24 + $0xb8] sm:$0xff]  ;;  %v373_v10 = vld [vmem:[%s5942_s24 + $0x4b0] sm:$0xff] }
  0x21   : > { %4890 = vmatpush1.bf16.msra.mxu1 %v4889_v44  ;;  %v3077_v35 = vsel %vm10118_vm0, %v2806_v24, 0.0  ;;  %v2808_v36 = vmul.f32 %v240_v34, %v240_v34  ;;  %v4904_v41 = vpack.c.bf16 %v240_v34, %v239_v28  ;;  %v2809_v43 = vmul.f32 %v241_v40, %v241_v40  ;;  %v247_v13 = vld [vmem:[%s5942_s24 + $0xc0] sm:$0xff]  ;;  %v248_v19 = vld [vmem:[%s5942_s24 + $0xc8] sm:$0xff]  ;;  %v249_v25 = vld [vmem:[%s5942_s24 + $0xd0] sm:$0xff] }
  0x22   : > { %v3062_v59 = vadd.f32 %v3061_v50, %v3060_v54  ;;  %5082 = vmatpush1.bf16.msra.mxu0 %v5081_v48  ;;  %4891 = vmatprep.subr.bf16.mxu1 %v5893_v2  ;;  %v3079_v42 = vsel %vm10118_vm0, %v2807_v31, 0.0  ;;  %v5096_v45 = vpack.c.bf16 %v368_v38, %v367_v37  ;;  %v2810_v48 = vmul.f32 %v242_v46, %v242_v46  ;;  %v370_v50 = vld [vmem:[%s5942_s24 + $0x498] sm:$0xff]  ;;  %v375_v22 = vld [vmem:[%s5942_s24 + $0x4c0] sm:$0xff]  ;;  %v377_v34 = vld [vmem:[%s5942_s24 + $0x4d0] sm:$0xff] }
  0x23   : > { %5083 = vmatprep.subr.bf16.mxu0 %v5893_v2  ;;  %v3081_v47 = vsel %vm10118_vm0, %v2808_v36, 0.0  ;;  %v4907_v53 = vpack.c.bf16 %v242_v46, %v241_v40  ;;  %v3083_v54 = vsel %vm10118_vm0, %v2809_v43, 0.0  ;;  %v2811_v55 = vmul.f32 %v243_v52, %v243_v52  ;;  %v250_v31 = vld [vmem:[%s5942_s24 + $0xd8] sm:$0xff]  ;;  %v251_v37 = vld [vmem:[%s5942_s24 + $0xe0] sm:$0xff]  ;;  %v252_v43 = vld [vmem:[%s5942_s24 + $0xe8] sm:$0xff] }
  0x24   : > { %v3064_v3 = vadd.f32 %v3063_v57, %v3062_v59  ;;  %v5099_v57 = vpack.c.bf16 %v370_v50, %v369_v49  ;;  %v3085_v59 = vsel %vm10118_vm0, %v2810_v48, 0.0  ;;  %v4910_v1 = vpack.c.bf16 %v244_v58, %v243_v52  ;;  %v379_v46 = vld [vmem:[%s5942_s24 + $0x4e0] sm:$0xff] }
  0x25   : > { %4893 = vmatpush1.bf16.msra.mxu1 %v4892_v56  ;;  %v2813_v4 = vmul.f32 %v245_v0, %v245_v0  ;;  %v4913_v14 = vpack.c.bf16 %v246_v7, %v245_v0  ;;  %v2815_v16 = vmul.f32 %v247_v13, %v247_v13  ;;  %v4916_v26 = vpack.c.bf16 %v248_v19, %v247_v13  ;;  %v6077_v0 = vld [vmem:[%s5942_s24 + $0x100] sm:$0xff] }
  0x26   : > { %v3066_v8 = vadd.f32 %v3065_v62, %v3064_v3  ;;  %5085 = vmatpush1.bf16.msra.mxu0 %v5084_v60  ;;  %4894 = vmatprep.subr.bf16.mxu1 %v5893_v2  ;;  %v2812_v60 = vmul.f32 %v244_v58, %v244_v58  ;;  %v372_v62 = vld [vmem:[%s5942_s24 + $0x4a8] sm:$0xff]  ;;  %v3087_v3 = vsel %vm10118_vm0, %v2811_v55, 0.0  ;;  %v2817_v28 = vmul.f32 %v249_v25, %v249_v25 }
  0x27   : > { %5086 = vmatprep.subr.bf16.mxu0 %v5893_v2  ;;  %v4919_v38 = vpack.c.bf16 %v250_v31, %v249_v25  ;;  %v2819_v40 = vmul.f32 %v251_v37, %v251_v37  ;;  %v4922_v49 = vpack.c.bf16 %v252_v43, %v251_v37 }
  0x28   : > { %v3068_v15 = vadd.f32 %v3067_v6, %v3066_v8  ;;  %v5102_v6 = vpack.c.bf16 %v372_v62, %v371_v61  ;;  %v3089_v8 = vsel %vm10118_vm0, %v2812_v60, 0.0  ;;  %v496_v60 = vld [vmem:[%s10114_s1 + $0x88] sm:$0xff] }
  0x29   : > { %4896 = vmatpush1.bf16.msra.mxu1 %v4895_v5  ;;  %v3103_v50 = vsel %vm10118_vm0, %v2819_v40, 0.0 }
  0x2a   : > { %v3070_v20 = vadd.f32 %v3069_v11, %v3068_v15  ;;  %5088 = vmatpush1.bf16.msra.mxu0 %v5087_v9  ;;  %4897 = vmatprep.subr.bf16.mxu1 %v5893_v2  ;;  %v2814_v9 = vmul.f32 %v246_v7, %v246_v7  ;;  %v374_v11 = vld [vmem:[%s5942_s24 + $0x4b8] sm:$0xff]  ;;  %v3091_v15 = vsel %vm10118_vm0, %v2813_v4, 0.0 }
  0x2b   : > { %5089 = vmatprep.subr.bf16.mxu0 %v5893_v2 }
  0x2c   : > { %v3072_v27 = vadd.f32 %v3071_v18, %v3070_v20  ;;  %v5105_v18 = vpack.c.bf16 %v374_v11, %v373_v10  ;;  %v3093_v20 = vsel %vm10118_vm0, %v2814_v9, 0.0  ;;  %v6095_v9 = vld [vmem:[%s5942_s24 + $0x110] sm:$0xff]  ;;  %v528_v11 = vld [vmem:[%s10114_s1 + $0x188] sm:$0xff] }
  0x2d   : > { %4899 = vmatpush1.bf16.msra.mxu1 %v4898_v17 }
  0x2e   : > { %v3074_v32 = vadd.f32 %v3073_v23, %v3072_v27  ;;  %5091 = vmatpush1.bf16.msra.mxu0 %v5090_v21  ;;  %4900 = vmatprep.subr.bf16.mxu1 %v5893_v2  ;;  %v2816_v21 = vmul.f32 %v248_v19, %v248_v19  ;;  %v376_v23 = vld [vmem:[%s5942_s24 + $0x4c8] sm:$0xff]  ;;  %v3095_v27 = vsel %vm10118_vm0, %v2815_v16, 0.0  ;;  %v6113_v19 = vld [vmem:[%s5942_s24 + $0x120] sm:$0xff] }
  0x2f   : > { %5092 = vmatprep.subr.bf16.mxu0 %v5893_v2 }
  0x30   : > { %v3076_v39 = vadd.f32 %v3075_v30, %v3074_v32  ;;  %v5108_v30 = vpack.c.bf16 %v376_v23, %v375_v22  ;;  %v3097_v32 = vsel %vm10118_vm0, %v2816_v21, 0.0  ;;  %v544_v21 = vld [vmem:[%s10114_s1 + $0x208] sm:$0xff]  ;;  %v2827_v22 = vmul.f32 %v6113_v19, %v6113_v19 }
  0x31   : > { %4902 = vmatpush1.bf16.msra.mxu1 %v4901_v29 }
  0x32   : > { %v3078_v44 = vadd.f32 %v3077_v35, %v3076_v39  ;;  %5094 = vmatpush1.bf16.msra.mxu0 %v5093_v33  ;;  %4903 = vmatprep.subr.bf16.mxu1 %v5893_v2  ;;  %v2818_v33 = vmul.f32 %v250_v31, %v250_v31  ;;  %v378_v35 = vld [vmem:[%s5942_s24 + $0x4d8] sm:$0xff]  ;;  %v3099_v39 = vsel %vm10118_vm0, %v2817_v28, 0.0  ;;  %v543_v28 = vld [vmem:[%s10114_s1 + $0x200] sm:$0xff]  ;;  %v560_v31 = vld [vmem:[%s10114_s1 + $0x288] sm:$0xff] }
  0x33   : > { %5095 = vmatprep.subr.bf16.mxu0 %v5893_v2 }
  0x34   : > { %v3080_v51 = vadd.f32 %v3079_v42, %v3078_v44  ;;  %v5111_v42 = vpack.c.bf16 %v378_v35, %v377_v34  ;;  %v3101_v44 = vsel %vm10118_vm0, %v2818_v33, 0.0  ;;  %v3119_v33 = vsel %vm10118_vm0, %v2827_v22, 0.0  ;;  %v6140_v34 = vld [vmem:[%s5942_s24 + $0x138] sm:$0xff] }
  0x35   : > { %4905 = vmatpush1.bf16.msra.mxu1 %v4904_v41 }
  0x36   : > { %v3082_v56 = vadd.f32 %v3081_v47, %v3080_v51  ;;  %5097 = vmatpush1.bf16.msra.mxu0 %v5096_v45  ;;  %4906 = vmatprep.subr.bf16.mxu1 %v5893_v2  ;;  %v2820_v45 = vmul.f32 %v252_v43, %v252_v43  ;;  %v380_v47 = vld [vmem:[%s5942_s24 + $0x4e8] sm:$0xff] }
  0x37   : > { %5098 = vmatprep.subr.bf16.mxu0 %v5893_v2  ;;  %v5114_v52 = vpack.c.bf16 %v380_v47, %v379_v46 }
  0x38   : > { %v3084_v63 = vadd.f32 %v3083_v54, %v3082_v56  ;;  %v254_v54 = vld [vmem:[%s5942_s24 + $0xf8] sm:$0xff]  ;;  %v3105_v55 = vsel %vm10118_vm0, %v2820_v45, 0.0 }
  0x39   : > { %4908 = vmatpush1.bf16.msra.mxu1 %v4907_v53  ;;  %v253_v53 = vld [vmem:[%s5942_s24 + $0xf0] sm:$0xff]  ;;  %v2822_v62 = vmul.f32 %v254_v54, %v254_v54 }
  0x3a   : > { %v3086_v5 = vadd.f32 %v3085_v59, %v3084_v63  ;;  %5100 = vmatpush1.bf16.msra.mxu0 %v5099_v57  ;;  %4909 = vmatprep.subr.bf16.mxu1 %v5893_v2  ;;  %v4925_v57 = vpack.c.bf16 %v254_v54, %v253_v53  ;;  %v479_v59 = vld [vmem:[%s10114_s1] sm:$0xff]  ;;  %v2821_v61 = vmul.f32 %v253_v53, %v253_v53  ;;  %v381_v54 = vld [vmem:[%s5942_s24 + $0x4f0] sm:$0xff] }
  0x3b   : > { %5101 = vmatprep.subr.bf16.mxu0 %v5893_v2  ;;  %v495_v63 = vld [vmem:[%s10114_s1 + $0x80] sm:$0xff]  ;;  %v3109_v7 = vsel %vm10118_vm0, %v2822_v62, 0.0 }
  0x3c   : > { %v3088_v12 = vadd.f32 %v3087_v3, %v3086_v5  ;;  %v2823_v3 = vmul.f32 %v6077_v0, %v6077_v0  ;;  %v3107_v4 = vsel %vm10118_vm0, %v2821_v61, 0.0  ;;  %v6086_v5 = vld [vmem:[%s5942_s24 + $0x108] sm:$0xff]  ;;  %v591_v62 = vld [vmem:[%s10114_s1 + $0x380] sm:$0xff] }
  0x3d   : > { %4911 = vmatpush1.bf16.msra.mxu1 %v4910_v1  ;;  %v512_v1 = vld [vmem:[%s10114_s1 + $0x108] sm:$0xff] }
  0x3e   : > { %v3090_v17 = vadd.f32 %v3089_v8, %v3088_v12  ;;  %5103 = vmatpush1.bf16.msra.mxu0 %v5102_v6  ;;  %4912 = vmatprep.subr.bf16.mxu1 %v5893_v2  ;;  %v2824_v6 = vmul.f32 %v6086_v5, %v6086_v5  ;;  %v511_v8 = vld [vmem:[%s10114_s1 + $0x100] sm:$0xff]  ;;  %v2825_v12 = vmul.f32 %v6095_v9, %v6095_v9  ;;  %v3111_v13 = vsel %vm10118_vm0, %v2823_v3, 0.0  ;;  %v384_v61 = vld [vmem:[%s5942_s24 + $0x508] sm:$0xff] }
  0x3f   : > { %5104 = vmatprep.subr.bf16.mxu0 %v5893_v2 }
  0x40   : > { %v3092_v24 = vadd.f32 %v3091_v15, %v3090_v17  ;;  %v3113_v17 = vsel %vm10118_vm0, %v2824_v6, 0.0  ;;  %v3115_v23 = vsel %vm10118_vm0, %v2825_v12, 0.0  ;;  %v487_v12 = vld [vmem:[%s10114_s1 + $0x40] sm:$0xff] }
  0x41   : > { %4914 = vmatpush1.bf16.msra.mxu1 %v4913_v14  ;;  %v6104_v14 = vld [vmem:[%s5942_s24 + $0x118] sm:$0xff] }
  0x42   : > { %v3094_v29 = vadd.f32 %v3093_v20, %v3092_v24  ;;  %5106 = vmatpush1.bf16.msra.mxu0 %v5105_v18  ;;  %4915 = vmatprep.subr.bf16.mxu1 %v5893_v2  ;;  %v2826_v16 = vmul.f32 %v6104_v14, %v6104_v14  ;;  %v527_v18 = vld [vmem:[%s10114_s1 + $0x180] sm:$0xff]  ;;  %v6122_v24 = vld [vmem:[%s5942_s24 + $0x128] sm:$0xff] }
  0x43   : > { %5107 = vmatprep.subr.bf16.mxu0 %v5893_v2 }
  0x44   : > { %v3096_v36 = vadd.f32 %v3095_v27, %v3094_v29  ;;  %v3117_v27 = vsel %vm10118_vm0, %v2826_v16, 0.0  ;;  %v6131_v29 = vld [vmem:[%s5942_s24 + $0x130] sm:$0xff]  ;;  %v4931_v16 = vpack.c.bf16 %v6104_v14, %v6095_v9  ;;  %v607_v9 = vld [vmem:[%s10114_s1 + $0x400] sm:$0xff]  ;;  %v6227_v14 = vld [vmem:[%s5942_s24 + $0x178] sm:$0xff] }
  0x45   : > { %4917 = vmatpush1.bf16.msra.mxu1 %v4916_v26  ;;  %v2828_v26 = vmul.f32 %v6122_v24, %v6122_v24 }
  0x46   : > { %v3098_v41 = vadd.f32 %v3097_v32, %v3096_v36  ;;  %5109 = vmatpush1.bf16.msra.mxu0 %v5108_v30  ;;  %4918 = vmatprep.subr.bf16.mxu1 %v5893_v2  ;;  %v2829_v32 = vmul.f32 %v6131_v29, %v6131_v29  ;;  %v2830_v36 = vmul.f32 %v6140_v34, %v6140_v34 }
  0x47   : > { %5110 = vmatprep.subr.bf16.mxu0 %v5893_v2  ;;  %v3121_v37 = vsel %vm10118_vm0, %v2828_v26, 0.0  ;;  %v503_v26 = vld [vmem:[%s10114_s1 + $0xc0] sm:$0xff] }
  0x48   : > { %v3100_v48 = vadd.f32 %v3099_v39, %v3098_v41  ;;  %v6149_v39 = vld [vmem:[%s5942_s24 + $0x140] sm:$0xff]  ;;  %v576_v41 = vld [vmem:[%s10114_s1 + $0x308] sm:$0xff]  ;;  %v3123_v43 = vsel %vm10118_vm0, %v2829_v32, 0.0  ;;  %v3125_v47 = vsel %vm10118_vm0, %v2830_v36, 0.0 }
  0x49   : > { %4920 = vmatpush1.bf16.msra.mxu1 %v4919_v38  ;;  %v559_v38 = vld [vmem:[%s10114_s1 + $0x280] sm:$0xff]  ;;  %v520_v32 = vld [vmem:[%s10114_s1 + $0x148] sm:$0xff] }
  0x4a   : > { %v3102_v51 = vadd.f32 %v3101_v44, %v3100_v48  ;;  %5112 = vmatpush1.bf16.msra.mxu0 %v5111_v42  ;;  %4921 = vmatprep.subr.bf16.mxu1 %v5893_v2  ;;  %v2831_v42 = vmul.f32 %v6149_v39, %v6149_v39  ;;  %v6158_v44 = vld [vmem:[%s5942_s24 + $0x148] sm:$0xff]  ;;  %v575_v48 = vld [vmem:[%s10114_s1 + $0x300] sm:$0xff] }
  0x4b   : > { %5113 = vmatprep.subr.bf16.mxu0 %v5893_v2  ;;  %v2832_v46 = vmul.f32 %v6158_v44, %v6158_v44  ;;  %v388_v36 = vld [vmem:[%s5942_s24 + $0x528] sm:$0xff] }
  0x4c   : > { %v3104_v56 = vadd.f32 %v3103_v50, %v3102_v51  ;;  %v592_v51 = vld [vmem:[%s10114_s1 + $0x388] sm:$0xff]  ;;  %v3127_v53 = vsel %vm10118_vm0, %v2831_v42, 0.0 }
  0x4d   : > { %4923 = vmatpush1.bf16.msra.mxu1 %v4922_v49  ;;  %v6167_v49 = vld [vmem:[%s5942_s24 + $0x150] sm:$0xff] }
  0x4e   : > { %v3106_v58 = vadd.f32 %v3105_v55, %v3104_v56  ;;  %5115 = vmatpush1.bf16.msra.mxu0 %v5114_v52  ;;  %4924 = vmatprep.subr.bf16.mxu1 %v5893_v2  ;;  %v2833_v52 = vmul.f32 %v6167_v49, %v6167_v49  ;;  %v382_v55 = vld [vmem:[%s5942_s24 + $0x4f8] sm:$0xff] }
  0x4f   : > { %5116 = vmatprep.subr.bf16.mxu0 %v5893_v2  ;;  %v6178_v56 = vld [vmem:[%s5942_s24 + $0x158] sm:$0xff]  ;;  %v5117_v3 = vpack.c.bf16 %v382_v55, %v381_v54  ;;  %v6277_v54 = vld [vmem:[%s5942_s24 + $0x190] sm:$0xff] }
  0x50   : > { %v3108_v10 = vadd.f32 %v3107_v4, %v3106_v58  ;;  %v2834_v58 = vmul.f32 %v6178_v56, %v6178_v56  ;;  %v3131_v6 = vsel %vm10118_vm0, %v2833_v52, 0.0  ;;  %v389_v52 = vld [vmem:[%s5942_s24 + $0x530] sm:$0xff] }
  0x51   : > { %4926 = vmatpush1.bf16.msra.mxu1 %v4925_v57 }
  0x52   : > { %4927 = vmatprep.subr.bf16.mxu1 %v5893_v2  ;;  %v3110_v15 = vadd.f32 %v3109_v7, %v3108_v10  ;;  %v4928_v7 = vpack.c.bf16 %v6086_v5, %v6077_v0  ;;  %v6200_v10 = vld [vmem:[%s5942_s24 + $0x168] sm:$0xff]  ;;  %5118 = vmatpush1.bf16.msra.mxu0 %v5117_v3  ;;  %v3133_v0 = vsel %vm10118_vm0, %v2834_v58, 0.0 }
  0x53   : > { %5119 = vmatprep.subr.bf16.mxu0 %v5893_v2  ;;  %v504_v5 = vld [vmem:[%s10114_s1 + $0xc8] sm:$0xff] }
  0x54   : > { %1056 = vmatmul.mubr.f32.vlgmr.msra.gmra.mrb[0].mxu1 %v479_v59  ;;  %v3112_v20 = vadd.f32 %v3111_v13, %v3110_v15  ;;  %v3129_v59 = vsel %vm10118_vm0, %v2832_v46, 0.0  ;;  %v2836_v15 = vmul.f32 %v6200_v10, %v6200_v10  ;;  %v640_v46 = vld [vmem:[%s10114_s1 + $0x508] sm:$0xff] }
  0x55   : > { %1060 = vmatprep.mubr.f32.mxu1 %v496_v60  ;;  %v383_v60 = vld [vmem:[%s5942_s24 + $0x500] sm:$0xff]  ;;  %4929 = vmatpush1.bf16.msra.mxu1 %v4928_v7 }
  0x56   : > { %v3114_v25 = vadd.f32 %v3113_v17, %v3112_v20  ;;  %v5120_v13 = vpack.c.bf16 %v384_v61, %v383_v60  ;;  %v385_v17 = vld [vmem:[%s5942_s24 + $0x510] sm:$0xff]  ;;  %4930 = vmatprep.subr.bf16.mxu1 %v5893_v2  ;;  %1956 = vmatmul.mubr.f32.vlgmr.msra.gmra.mrb[0].mxu0 %v487_v12  ;;  %v535_v60 = vld [vmem:[%s10114_s1 + $0x1c0] sm:$0xff] }
  0x57   : > { %v6217_v20 = vld [vmem:[%s5942_s24 + $0x170] sm:$0xff]  ;;  %1960 = vmatprep.mubr.f32.mxu0 %v504_v5  ;;  %v391_v7 = vld [vmem:[%s5942_s24 + $0x540] sm:$0xff] }
  0x58   : > { %1061 = vmatmul.mubr.f32.gmra.mrb[2].mxu1 %v495_v63  ;;  %v3116_v30 = vadd.f32 %v3115_v23, %v3114_v25  ;;  %v6189_v63 = vld [vmem:[%s5942_s24 + $0x160] sm:$0xff]  ;;  %v2837_v22 = vmul.f32 %v6217_v20, %v6217_v20  ;;  %5121 = vmatpush1.bf16.msra.mxu0 %v5120_v13 }
  0x59   : > { %1065 = vmatprep.mubr.f32.mxu1 %v512_v1  ;;  %v2835_v4 = vmul.f32 %v6189_v63, %v6189_v63  ;;  %5122 = vmatprep.subr.bf16.mxu0 %v5893_v2  ;;  %v551_v5 = vld [vmem:[%s10114_s1 + $0x240] sm:$0xff] }
  0x5a   : > { %v3118_v35 = vadd.f32 %v3117_v27, %v3116_v30  ;;  %v2838_v30 = vmul.f32 %v6227_v14, %v6227_v14  ;;  %4932 = vmatpush1.bf16.msra.mxu1 %v4931_v16  ;;  %1961 = vmatmul.mubr.f32.gmra.mrb[2].mxu0 %v503_v26  ;;  %v6337_v26 = vld [vmem:[%s5942_s24 + $0x1b0] sm:$0xff] }
  0x5b   : > { %v3135_v23 = vsel %vm10118_vm0, %v2835_v4, 0.0  ;;  %4933 = vmatprep.subr.bf16.mxu1 %v5893_v2  ;;  %1965 = vmatprep.mubr.f32.mxu0 %v520_v32  ;;  %v552_v4 = vld [vmem:[%s10114_s1 + $0x248] sm:$0xff]  ;;  %v567_v32 = vld [vmem:[%s10114_s1 + $0x2c0] sm:$0xff] }
  0x5c   : > { %1066 = vmatmul.mubr.f32.gmra.mrb[4].mxu1 %v511_v8  ;;  %v3120_v40 = vadd.f32 %v3119_v33, %v3118_v35  ;;  %v608_v8 = vld [vmem:[%s10114_s1 + $0x408] sm:$0xff]  ;;  %v4934_v33 = vpack.c.bf16 %v6122_v24, %v6113_v19  ;;  %v387_v35 = vld [vmem:[%s5942_s24 + $0x520] sm:$0xff] }
  0x5d   : > { %1070 = vmatprep.mubr.f32.mxu1 %v528_v11  ;;  %v623_v19 = vld [vmem:[%s10114_s1 + $0x480] sm:$0xff]  ;;  %v6257_v24 = vld [vmem:[%s5942_s24 + $0x188] sm:$0xff] }
  0x5e   : > { %v3122_v45 = vadd.f32 %v3121_v37, %v3120_v40  ;;  %v6247_v37 = vld [vmem:[%s5942_s24 + $0x180] sm:$0xff]  ;;  %4935 = vmatpush1.bf16.msra.mxu1 %v4934_v33 }
  0x5f   : > { %v2839_v40 = vmul.f32 %v6247_v37, %v6247_v37  ;;  %4936 = vmatprep.subr.bf16.mxu1 %v5893_v2 }
  0x60   : > { %1071 = vmatmul.mubr.f32.gmra.mrb[6].mxu1 %v527_v18  ;;  %v3124_v50 = vadd.f32 %v3123_v43, %v3122_v45  ;;  %v386_v18 = vld [vmem:[%s5942_s24 + $0x518] sm:$0xff]  ;;  %v519_v43 = vld [vmem:[%s10114_s1 + $0x140] sm:$0xff]  ;;  %v5126_v45 = vpack.c.bf16 %v388_v36, %v387_v35  ;;  %v688_v35 = vld [vmem:[%s10114_s1 + $0x688] sm:$0xff] }
  0x61   : > { %1075 = vmatprep.mubr.f32.mxu1 %v544_v21  ;;  %v5123_v27 = vpack.c.bf16 %v386_v18, %v385_v17  ;;  %v3143_v58 = vsel %vm10118_vm0, %v2839_v40, 0.0  ;;  %1966 = vmatmul.mubr.f32.gmra.mrb[4].mxu0 %v519_v43  ;;  %v672_v17 = vld [vmem:[%s10114_s1 + $0x608] sm:$0xff]  ;;  %v6367_v43 = vld [vmem:[%s5942_s24 + $0x1c0] sm:$0xff] }
  0x62   : > { %v3126_v57 = vadd.f32 %v3125_v47, %v3124_v50  ;;  %v2840_v47 = vmul.f32 %v6257_v24, %v6257_v24  ;;  %v536_v50 = vld [vmem:[%s10114_s1 + $0x1c8] sm:$0xff] }
  0x63   : > { %5124 = vmatpush1.bf16.msra.mxu0 %v5123_v27  ;;  %1970 = vmatprep.mubr.f32.mxu0 %v536_v50  ;;  %v584_v40 = vld [vmem:[%s10114_s1 + $0x348] sm:$0xff]  ;;  %v583_v50 = vld [vmem:[%s10114_s1 + $0x340] sm:$0xff] }
  0x64   : > { %1076 = vmatmul.mubr.f32.gmra.mrb[8].mxu1 %v543_v28  ;;  %v3128_v1 = vadd.f32 %v3127_v53, %v3126_v57  ;;  %v624_v28 = vld [vmem:[%s10114_s1 + $0x488] sm:$0xff]  ;;  %5125 = vmatprep.subr.bf16.mxu0 %v5893_v2  ;;  %v390_v53 = vld [vmem:[%s5942_s24 + $0x538] sm:$0xff]  ;;  %v2841_v57 = vmul.f32 %v6277_v54, %v6277_v54  ;;  %v3145_v3 = vsel %vm10118_vm0, %v2840_v47, 0.0 }
  0x65   : > { %1080 = vmatprep.mubr.f32.mxu1 %v560_v31  ;;  %v3137_v31 = vsel %vm10118_vm0, %v2836_v15, 0.0  ;;  %v5129_v61 = vpack.c.bf16 %v390_v53, %v389_v52  ;;  %1971 = vmatmul.mubr.f32.gmra.mrb[6].mxu0 %v535_v60  ;;  %v704_v52 = vld [vmem:[%s10114_s1 + $0x708] sm:$0xff]  ;;  %v6397_v60 = vld [vmem:[%s5942_s24 + $0x1d0] sm:$0xff] }
  0x66   : > { %v3130_v11 = vadd.f32 %v3129_v59, %v3128_v1  ;;  %v3147_v15 = vsel %vm10118_vm0, %v2841_v57, 0.0  ;;  %1975 = vmatprep.mubr.f32.mxu0 %v552_v4  ;;  %v600_v57 = vld [vmem:[%s10114_s1 + $0x3c8] sm:$0xff]  ;;  %v599_v4 = vld [vmem:[%s10114_s1 + $0x3c0] sm:$0xff] }
  0x67   : > { %5127 = vmatpush1.bf16.msra.mxu0 %v5126_v45 }
  0x68   : > { %1081 = vmatmul.mubr.f32.gmra.mrb[10].mxu1 %v559_v38  ;;  %v3132_v21 = vadd.f32 %v3131_v6, %v3130_v11  ;;  %5128 = vmatprep.subr.bf16.mxu0 %v5893_v2  ;;  %v4940_v6 = vpack.c.bf16 %v6158_v44, %v6149_v39  ;;  %v6307_v11 = vld [vmem:[%s5942_s24 + $0x1a0] sm:$0xff]  ;;  %v6317_v44 = vld [vmem:[%s5942_s24 + $0x1a8] sm:$0xff] }
  0x69   : > { %1085 = vmatprep.mubr.f32.mxu1 %v576_v41  ;;  %v3139_v41 = vsel %vm10118_vm0, %v2837_v22, 0.0  ;;  %v2843_v13 = vmul.f32 %v6307_v11, %v6307_v11  ;;  %v655_v39 = vld [vmem:[%s10114_s1 + $0x580] sm:$0xff]  ;;  %v2844_v18 = vmul.f32 %v6317_v44, %v6317_v44  ;;  %v568_v22 = vld [vmem:[%s10114_s1 + $0x2c8] sm:$0xff]  ;;  %1976 = vmatmul.mubr.f32.gmra.mrb[8].mxu0 %v551_v5 }
  0x6a   : > { %v3134_v25 = vadd.f32 %v3133_v0, %v3132_v21  ;;  %1980 = vmatprep.mubr.f32.mxu0 %v568_v22  ;;  %v6427_v5 = vld [vmem:[%s5942_s24 + $0x1e0] sm:$0xff] }
  0x6b   : > { %5130 = vmatpush1.bf16.msra.mxu0 %v5129_v61  ;;  %v615_v22 = vld [vmem:[%s10114_s1 + $0x440] sm:$0xff] }
  0x6c   : > { %1086 = vmatmul.mubr.f32.gmra.mrb[12].mxu1 %v575_v48  ;;  %v3136_v38 = vadd.f32 %v3135_v23, %v3134_v25  ;;  %v3141_v48 = vsel %vm10118_vm0, %v2838_v30, 0.0  ;;  %5131 = vmatprep.subr.bf16.mxu0 %v5893_v2  ;;  %v4943_v23 = vpack.c.bf16 %v6178_v56, %v6167_v49  ;;  %v394_v25 = vld [vmem:[%s5942_s24 + $0x558] sm:$0xff]  ;;  %v3151_v30 = vsel %vm10118_vm0, %v2843_v13, 0.0  ;;  %v671_v49 = vld [vmem:[%s10114_s1 + $0x600] sm:$0xff]  ;;  %v616_v13 = vld [vmem:[%s10114_s1 + $0x448] sm:$0xff] }
  0x6d   : > { %1090 = vmatprep.mubr.f32.mxu1 %v592_v51  ;;  %v4937_v51 = vpack.c.bf16 %v6140_v34, %v6131_v29  ;;  %v639_v29 = vld [vmem:[%s10114_s1 + $0x500] sm:$0xff]  ;;  %v6287_v34 = vld [vmem:[%s5942_s24 + $0x198] sm:$0xff]  ;;  %1981 = vmatmul.mubr.f32.gmra.mrb[10].mxu0 %v567_v32  ;;  %v6457_v32 = vld [vmem:[%s5942_s24 + $0x1f0] sm:$0xff] }
  0x6e   : > { %v3138_v42 = vadd.f32 %v3137_v31, %v3136_v38  ;;  %v2842_v1 = vmul.f32 %v6287_v34, %v6287_v34  ;;  %v6347_v56 = vld [vmem:[%s5942_s24 + $0x1b8] sm:$0xff]  ;;  %v3153_v38 = vsel %vm10118_vm0, %v2844_v18, 0.0  ;;  %1985 = vmatprep.mubr.f32.mxu0 %v584_v40 }
  0x6f   : > { %4938 = vmatpush1.bf16.msra.mxu1 %v4937_v51  ;;  %v2846_v36 = vmul.f32 %v6347_v56, %v6347_v56 }
  0x70   : > { %1091 = vmatmul.mubr.f32.gmra.mrb[14].mxu1 %v591_v62  ;;  %v3140_v55 = vadd.f32 %v3139_v41, %v3138_v42  ;;  %v656_v62 = vld [vmem:[%s10114_s1 + $0x588] sm:$0xff]  ;;  %4939 = vmatprep.subr.bf16.mxu1 %v5893_v2  ;;  %v3149_v21 = vsel %vm10118_vm0, %v2842_v1, 0.0  ;;  %v4946_v41 = vpack.c.bf16 %v6200_v10, %v6189_v63  ;;  %v687_v63 = vld [vmem:[%s10114_s1 + $0x680] sm:$0xff] }
  0x71   : > { %1095 = vmatprep.mubr.f32.mxu1 %v608_v8  ;;  %v392_v8 = vld [vmem:[%s5942_s24 + $0x548] sm:$0xff]  ;;  %1986 = vmatmul.mubr.f32.gmra.mrb[12].mxu0 %v583_v50 }
  0x72   : > { %v3142_v59 = vadd.f32 %v3141_v48, %v3140_v55  ;;  %v5132_v16 = vpack.c.bf16 %v392_v8, %v391_v7  ;;  %v396_v42 = vld [vmem:[%s5942_s24 + $0x568] sm:$0xff]  ;;  %v3157_v55 = vsel %vm10118_vm0, %v2846_v36, 0.0  ;;  %1990 = vmatprep.mubr.f32.mxu0 %v600_v57  ;;  %v2853_v36 = vmul.f32 %v6457_v32, %v6457_v32 }
  0x73   : > { %4941 = vmatpush1.bf16.msra.mxu1 %v4940_v6  ;;  %v6377_v10 = vld [vmem:[%s5942_s24 + $0x1c8] sm:$0xff] }
  0x74   : > { %1096 = vmatmul.mubr.f32.gmra.mrb[16].mxu1 %v607_v9  ;;  %v3144_v12 = vadd.f32 %v3143_v58, %v3142_v59  ;;  %v393_v9 = vld [vmem:[%s5942_s24 + $0x550] sm:$0xff]  ;;  %4942 = vmatprep.subr.bf16.mxu1 %v5893_v2  ;;  %v2848_v53 = vmul.f32 %v6377_v10, %v6377_v10  ;;  %v4949_v58 = vpack.c.bf16 %v6227_v14, %v6217_v20  ;;  %v398_v59 = vld [vmem:[%s5942_s24 + $0x578] sm:$0xff]  ;;  %v703_v20 = vld [vmem:[%s10114_s1 + $0x700] sm:$0xff] }
  0x75   : > { %1100 = vmatprep.mubr.f32.mxu1 %v624_v28  ;;  %v2845_v28 = vmul.f32 %v6337_v26, %v6337_v26  ;;  %5133 = vmatpush1.bf16.msra.mxu0 %v5132_v16  ;;  %v5135_v33 = vpack.c.bf16 %v394_v25, %v393_v9  ;;  %v6407_v14 = vld [vmem:[%s5942_s24 + $0x1d8] sm:$0xff]  ;;  %v720_v7 = vld [vmem:[%s10114_s1 + $0x788] sm:$0xff] }
  0x76   : > { %v3146_v0 = vadd.f32 %v3145_v3, %v3144_v12  ;;  %5134 = vmatprep.subr.bf16.mxu0 %v5893_v2  ;;  %v2850_v8 = vmul.f32 %v6407_v14, %v6407_v14  ;;  %v3161_v12 = vsel %vm10118_vm0, %v2848_v53, 0.0  ;;  %1991 = vmatmul.mubr.f32.gmra.mrb[14].mxu0 %v599_v4  ;;  %v404_v50 = vld [vmem:[%s5942_s24 + $0x5a8] sm:$0xff]  ;;  %v406_v4 = vld [vmem:[%s5942_s24 + $0x5b8] sm:$0xff] }
  0x77   : > { %4944 = vmatpush1.bf16.msra.mxu1 %v4943_v23  ;;  %v3155_v47 = vsel %vm10118_vm0, %v2845_v28, 0.0  ;;  %1995 = vmatprep.mubr.f32.mxu0 %v616_v13  ;;  %v736_v23 = vld [vmem:[%s10114_s1 + $0x808] sm:$0xff] }
  0x78   : > { %1101 = vmatmul.mubr.f32.gmra.mrb[18].mxu1 %v623_v19  ;;  %v3148_v27 = vadd.f32 %v3147_v15, %v3146_v0  ;;  %v395_v19 = vld [vmem:[%s5942_s24 + $0x560] sm:$0xff]  ;;  %4945 = vmatprep.subr.bf16.mxu1 %v5893_v2  ;;  %v4952_v15 = vpack.c.bf16 %v6257_v24, %v6247_v37  ;;  %v400_v0 = vld [vmem:[%s5942_s24 + $0x588] sm:$0xff] }
  0x79   : > { %1105 = vmatprep.mubr.f32.mxu1 %v640_v46  ;;  %v2847_v46 = vmul.f32 %v6367_v43, %v6367_v43  ;;  %5136 = vmatpush1.bf16.msra.mxu0 %v5135_v33  ;;  %v5138_v51 = vpack.c.bf16 %v396_v42, %v395_v19  ;;  %v719_v37 = vld [vmem:[%s10114_s1 + $0x780] sm:$0xff]  ;;  %v6437_v24 = vld [vmem:[%s5942_s24 + $0x1e8] sm:$0xff] }
  0x7a   : > { %v3150_v31 = vadd.f32 %v3149_v21, %v3148_v27  ;;  %5137 = vmatprep.subr.bf16.mxu0 %v5893_v2  ;;  %v2852_v25 = vmul.f32 %v6437_v24, %v6437_v24  ;;  %v3165_v27 = vsel %vm10118_vm0, %v2850_v8, 0.0  ;;  %v632_v28 = vld [vmem:[%s10114_s1 + $0x4c8] sm:$0xff]  ;;  %1996 = vmatmul.mubr.f32.gmra.mrb[16].mxu0 %v615_v22 }
  0x7b   : > { %4947 = vmatpush1.bf16.msra.mxu1 %v4946_v41  ;;  %v3159_v1 = vsel %vm10118_vm0, %v2847_v46, 0.0  ;;  %2000 = vmatprep.mubr.f32.mxu0 %v632_v28  ;;  %v631_v41 = vld [vmem:[%s10114_s1 + $0x4c0] sm:$0xff]  ;;  %v752_v19 = vld [vmem:[%s10114_s1 + $0x888] sm:$0xff] }
  0x7c   : > { %1106 = vmatmul.mubr.f32.gmra.mrb[20].mxu1 %v639_v29  ;;  %v3152_v45 = vadd.f32 %v3151_v30, %v3150_v31  ;;  %v397_v29 = vld [vmem:[%s5942_s24 + $0x570] sm:$0xff]  ;;  %4948 = vmatprep.subr.bf16.mxu1 %v5893_v2  ;;  %v4955_v30 = vpack.c.bf16 %v6287_v34, %v6277_v54  ;;  %v402_v31 = vld [vmem:[%s5942_s24 + $0x598] sm:$0xff]  ;;  %v735_v54 = vld [vmem:[%s10114_s1 + $0x800] sm:$0xff]  ;;  %v3169_v46 = vsel %vm10118_vm0, %v2852_v25, 0.0 }
  0x7d   : > { %1110 = vmatprep.mubr.f32.mxu1 %v656_v62  ;;  %v2849_v62 = vmul.f32 %v6397_v60, %v6397_v60  ;;  %5139 = vmatpush1.bf16.msra.mxu0 %v5138_v51  ;;  %v5141_v6 = vpack.c.bf16 %v398_v59, %v397_v29  ;;  %v6470_v34 = vld [vmem:[%s5942_s24 + $0x200] sm:$0xff]  ;;  %v6490_v51 = vld [vmem:[%s5942_s24 + $0x208] sm:$0xff] }
  0x7e   : > { %v3154_v48 = vadd.f32 %v3153_v38, %v3152_v45  ;;  %5140 = vmatprep.subr.bf16.mxu0 %v5893_v2  ;;  %v2855_v53 = vmul.f32 %v6470_v34, %v6470_v34  ;;  %2001 = vmatmul.mubr.f32.gmra.mrb[18].mxu0 %v631_v41  ;;  %v768_v29 = vld [vmem:[%s10114_s1 + $0x908] sm:$0xff]  ;;  %v410_v41 = vld [vmem:[%s5942_s24 + $0x5d8] sm:$0xff] }
  0x7f   : > { %4950 = vmatpush1.bf16.msra.mxu1 %v4949_v58  ;;  %v3163_v18 = vsel %vm10118_vm0, %v2849_v62, 0.0  ;;  %v647_v58 = vld [vmem:[%s10114_s1 + $0x540] sm:$0xff]  ;;  %v408_v22 = vld [vmem:[%s5942_s24 + $0x5c8] sm:$0xff] }
  0x80   : > { %1111 = vmatmul.mubr.f32.gmra.mrb[22].mxu1 %v655_v39  ;;  %v3156_v61 = vadd.f32 %v3155_v47, %v3154_v48  ;;  %v399_v39 = vld [vmem:[%s5942_s24 + $0x580] sm:$0xff]  ;;  %4951 = vmatprep.subr.bf16.mxu1 %v5893_v2  ;;  %v648_v47 = vld [vmem:[%s10114_s1 + $0x548] sm:$0xff] }
  0x81   : > { %1115 = vmatprep.mubr.f32.mxu1 %v672_v17  ;;  %v2851_v17 = vmul.f32 %v6427_v5, %v6427_v5  ;;  %5142 = vmatpush1.bf16.msra.mxu0 %v5141_v6  ;;  %v5144_v9 = vpack.c.bf16 %v400_v0, %v399_v39  ;;  %v403_v48 = vld [vmem:[%s5942_s24 + $0x5a0] sm:$0xff]  ;;  %v6520_v6 = vld [vmem:[%s5942_s24 + $0x218] sm:$0xff]  ;;  %v784_v39 = vld [vmem:[%s10114_s1 + $0x988] sm:$0xff] }
  0x82   : > { %v3158_v3 = vadd.f32 %v3157_v55, %v3156_v61  ;;  %5143 = vmatprep.subr.bf16.mxu0 %v5893_v2  ;;  %v3171_v55 = vsel %vm10118_vm0, %v2853_v36, 0.0  ;;  %2005 = vmatprep.mubr.f32.mxu0 %v648_v47  ;;  %v5150_v59 = vpack.c.bf16 %v404_v50, %v403_v48  ;;  %v2856_v61 = vmul.f32 %v6490_v51, %v6490_v51  ;;  %v816_v48 = vld [vmem:[%s10114_s1 + $0xa88] sm:$0xff] }
  0x83   : > { %4953 = vmatpush1.bf16.msra.mxu1 %v4952_v15  ;;  %v3167_v38 = vsel %vm10118_vm0, %v2851_v17, 0.0  ;;  %2006 = vmatmul.mubr.f32.gmra.mrb[20].mxu0 %v647_v58  ;;  %v663_v15 = vld [vmem:[%s10114_s1 + $0x5c0] sm:$0xff]  ;;  %v412_v58 = vld [vmem:[%s5942_s24 + $0x5e8] sm:$0xff] }
  0x84   : > { %1116 = vmatmul.mubr.f32.gmra.mrb[24].mxu1 %v671_v49  ;;  %v3160_v16 = vadd.f32 %v3159_v1, %v3158_v3  ;;  %v401_v49 = vld [vmem:[%s5942_s24 + $0x590] sm:$0xff]  ;;  %4954 = vmatprep.subr.bf16.mxu1 %v5893_v2  ;;  %v664_v1 = vld [vmem:[%s10114_s1 + $0x5c8] sm:$0xff]  ;;  %v3177_v17 = vsel %vm10118_vm0, %v2856_v61, 0.0 }
  0x85   : > { %1120 = vmatprep.mubr.f32.mxu1 %v688_v35  ;;  %v6461_v35 = vld [vmem:[%s5942_s24 + $0x1f8] sm:$0xff]  ;;  %5145 = vmatpush1.bf16.msra.mxu0 %v5144_v9  ;;  %v5147_v42 = vpack.c.bf16 %v402_v31, %v401_v49  ;;  %v405_v3 = vld [vmem:[%s5942_s24 + $0x5b0] sm:$0xff]  ;;  %v800_v49 = vld [vmem:[%s10114_s1 + $0xa08] sm:$0xff] }
  0x86   : > { %v3162_v21 = vadd.f32 %v3161_v12, %v3160_v16  ;;  %v2854_v45 = vmul.f32 %v6461_v35, %v6461_v35  ;;  %5146 = vmatprep.subr.bf16.mxu0 %v5893_v2  ;;  %v3175_v12 = vsel %vm10118_vm0, %v2855_v53, 0.0  ;;  %2010 = vmatprep.mubr.f32.mxu0 %v664_v1  ;;  %v5153_v0 = vpack.c.bf16 %v406_v4, %v405_v3  ;;  %v832_v3 = vld [vmem:[%s10114_s1 + $0xb08] sm:$0xff] }
  0x87   : > { %4956 = vmatpush1.bf16.msra.mxu1 %v4955_v30  ;;  %v2858_v16 = vmul.f32 %v6520_v6, %v6520_v6  ;;  %2011 = vmatmul.mubr.f32.gmra.mrb[22].mxu0 %v663_v15  ;;  %v679_v30 = vld [vmem:[%s10114_s1 + $0x640] sm:$0xff]  ;;  %v414_v15 = vld [vmem:[%s5942_s24 + $0x5f8] sm:$0xff] }
  0x88   : > { %1121 = vmatmul.mubr.f32.gmra.mrb[26].mxu1 %v687_v63  ;;  %v3164_v33 = vadd.f32 %v3163_v18, %v3162_v21  ;;  %v4958_v63 = vpack.c.bf16 %v6317_v44, %v6307_v11  ;;  %4957 = vmatprep.subr.bf16.mxu1 %v5893_v2  ;;  %v751_v11 = vld [vmem:[%s10114_s1 + $0x880] sm:$0xff]  ;;  %v6500_v44 = vld [vmem:[%s5942_s24 + $0x210] sm:$0xff]  ;;  %v3173_v62 = vsel %vm10118_vm0, %v2854_v45, 0.0  ;;  %v680_v18 = vld [vmem:[%s10114_s1 + $0x648] sm:$0xff] }
  0x89   : > { %1125 = vmatprep.mubr.f32.mxu1 %v704_v52  ;;  %5148 = vmatpush1.bf16.msra.mxu0 %v5147_v42  ;;  %v2857_v8 = vmul.f32 %v6500_v44, %v6500_v44  ;;  %v407_v21 = vld [vmem:[%s5942_s24 + $0x5c0] sm:$0xff]  ;;  %v3181_v36 = vsel %vm10118_vm0, %v2858_v16, 0.0 }
  0x8a   : > { %v3166_v40 = vadd.f32 %v3165_v27, %v3164_v33  ;;  %5149 = vmatprep.subr.bf16.mxu0 %v5893_v2  ;;  %2015 = vmatprep.mubr.f32.mxu0 %v680_v18  ;;  %v5156_v31 = vpack.c.bf16 %v408_v22, %v407_v21  ;;  %v848_v21 = vld [vmem:[%s10114_s1 + $0xb88] sm:$0xff] }
  0x8b   : > { %4959 = vmatpush1.bf16.msra.mxu1 %v4958_v63  ;;  %v3179_v27 = vsel %vm10118_vm0, %v2857_v8, 0.0  ;;  %2016 = vmatmul.mubr.f32.gmra.mrb[24].mxu0 %v679_v30  ;;  %v695_v63 = vld [vmem:[%s10114_s1 + $0x6c0] sm:$0xff] }
  0x8c   : > { %1126 = vmatmul.mubr.f32.gmra.mrb[28].mxu1 %v703_v20  ;;  %v3168_v52 = vadd.f32 %v3167_v38, %v3166_v40  ;;  %v4961_v20 = vpack.c.bf16 %v6347_v56, %v6337_v26  ;;  %4960 = vmatprep.subr.bf16.mxu1 %v5893_v2  ;;  %v767_v26 = vld [vmem:[%s10114_s1 + $0x900] sm:$0xff]  ;;  %v696_v38 = vld [vmem:[%s10114_s1 + $0x6c8] sm:$0xff]  ;;  %v409_v40 = vld [vmem:[%s5942_s24 + $0x5d0] sm:$0xff] }
  0x8d   : > { %1130 = vmatprep.mubr.f32.mxu1 %v720_v7  ;;  %v6530_v56 = vld [vmem:[%s5942_s24 + $0x220] sm:$0xff]  ;;  %5151 = vmatpush1.bf16.msra.mxu0 %v5150_v59  ;;  %v5159_v50 = vpack.c.bf16 %v410_v41, %v409_v40 }
  0x8e   : > { %v3170_v57 = vadd.f32 %v3169_v46, %v3168_v52  ;;  %5152 = vmatprep.subr.bf16.mxu0 %v5893_v2  ;;  %v2859_v25 = vmul.f32 %v6530_v56, %v6530_v56  ;;  %2020 = vmatprep.mubr.f32.mxu0 %v696_v38  ;;  %v743_v38 = vld [vmem:[%s10114_s1 + $0x840] sm:$0xff] }
  0x8f   : > { %4962 = vmatpush1.bf16.msra.mxu1 %v4961_v20  ;;  %2021 = vmatmul.mubr.f32.gmra.mrb[26].mxu0 %v695_v63  ;;  %v711_v20 = vld [vmem:[%s10114_s1 + $0x740] sm:$0xff] }
  0x90   : > { %1131 = vmatmul.mubr.f32.gmra.mrb[30].mxu1 %v719_v37  ;;  %v3172_v7 = vadd.f32 %v3171_v55, %v3170_v57  ;;  %v4964_v37 = vpack.c.bf16 %v6377_v10, %v6367_v43  ;;  %4963 = vmatprep.subr.bf16.mxu1 %v5893_v2  ;;  %v783_v43 = vld [vmem:[%s10114_s1 + $0x980] sm:$0xff]  ;;  %v6560_v10 = vld [vmem:[%s5942_s24 + $0x230] sm:$0xff]  ;;  %v3183_v46 = vsel %vm10118_vm0, %v2859_v25, 0.0  ;;  %v712_v55 = vld [vmem:[%s10114_s1 + $0x748] sm:$0xff] }
  0x91   : > { %1135 = vmatprep.mubr.f32.mxu1 %v736_v23  ;;  %v6550_v23 = vld [vmem:[%s5942_s24 + $0x228] sm:$0xff]  ;;  %5154 = vmatpush1.bf16.msra.mxu0 %v5153_v0  ;;  %v2861_v45 = vmul.f32 %v6560_v10, %v6560_v10  ;;  %v411_v57 = vld [vmem:[%s5942_s24 + $0x5e0] sm:$0xff] }
  0x92   : > { %v3174_v13 = vadd.f32 %v3173_v62, %v3172_v7  ;;  %v2860_v33 = vmul.f32 %v6550_v23, %v6550_v23  ;;  %5155 = vmatprep.subr.bf16.mxu0 %v5893_v2  ;;  %2025 = vmatprep.mubr.f32.mxu0 %v712_v55  ;;  %v5162_v4 = vpack.c.bf16 %v412_v58, %v411_v57  ;;  %v863_v63 = vld [vmem:[%s10114_s1 + $0xc00] sm:$0xff]  ;;  %v776_v57 = vld [vmem:[%s10114_s1 + $0x948] sm:$0xff] }
  0x93   : > { %4965 = vmatpush1.bf16.msra.mxu1 %v4964_v37  ;;  %v3187_v62 = vsel %vm10118_vm0, %v2861_v45, 0.0  ;;  %2026 = vmatmul.mubr.f32.gmra.mrb[28].mxu0 %v711_v20  ;;  %v727_v37 = vld [vmem:[%s10114_s1 + $0x7c0] sm:$0xff]  ;;  %v6692_v45 = vld [vmem:[%s5942_s24 + $0x278] sm:$0xff]  ;;  %v6716_v58 = vld [vmem:[%s5942_s24 + $0x288] sm:$0xff] }
  0x94   : > { %1136 = vmatmul.mubr.f32.gmra.mrb[32].mxu1 %v735_v54  ;;  %v3176_v9 = vadd.f32 %v3175_v12, %v3174_v13  ;;  %v4967_v54 = vpack.c.bf16 %v6407_v14, %v6397_v60  ;;  %4966 = vmatprep.subr.bf16.mxu1 %v5893_v2  ;;  %v799_v60 = vld [vmem:[%s10114_s1 + $0xa00] sm:$0xff]  ;;  %v3185_v53 = vsel %vm10118_vm0, %v2860_v33, 0.0  ;;  %v728_v12 = vld [vmem:[%s10114_s1 + $0x7c8] sm:$0xff]  ;;  %v413_v13 = vld [vmem:[%s5942_s24 + $0x5f0] sm:$0xff]  ;;  %v2870_v55 = vmul.f32 %v6692_v45, %v6692_v45 }
  0x95   : > { %1140 = vmatprep.mubr.f32.mxu1 %v752_v19  ;;  %v6580_v19 = vld [vmem:[%s5942_s24 + $0x238] sm:$0xff]  ;;  %v6590_v14 = vld [vmem:[%s5942_s24 + $0x240] sm:$0xff]  ;;  %5157 = vmatpush1.bf16.msra.mxu0 %v5156_v31  ;;  %v5165_v22 = vpack.c.bf16 %v414_v15, %v413_v13  ;;  %v6676_v33 = vld [vmem:[%s5942_s24 + $0x270] sm:$0xff] }
  0x96   : > { %v3178_v28 = vadd.f32 %v3177_v17, %v3176_v9  ;;  %v2862_v52 = vmul.f32 %v6580_v19, %v6580_v19  ;;  %5158 = vmatprep.subr.bf16.mxu0 %v5893_v2  ;;  %v2863_v61 = vmul.f32 %v6590_v14, %v6590_v14  ;;  %2030 = vmatprep.mubr.f32.mxu0 %v728_v12  ;;  %v847_v31 = vld [vmem:[%s10114_s1 + $0xb80] sm:$0xff]  ;;  %v792_v12 = vld [vmem:[%s10114_s1 + $0x9c8] sm:$0xff] }
  0x97   : > { %4968 = vmatpush1.bf16.msra.mxu1 %v4967_v54  ;;  %2031 = vmatmul.mubr.f32.gmra.mrb[30].mxu0 %v727_v37  ;;  %v864_v54 = vld [vmem:[%s10114_s1 + $0xc08] sm:$0xff] }
  0x98   : > { %1141 = vmatmul.mubr.f32.gmra.mrb[34].mxu1 %v751_v11  ;;  %v3180_v42 = vadd.f32 %v3179_v27, %v3178_v28  ;;  %v4970_v11 = vpack.c.bf16 %v6437_v24, %v6427_v5  ;;  %4969 = vmatprep.subr.bf16.mxu1 %v5893_v2  ;;  %v815_v5 = vld [vmem:[%s10114_s1 + $0xa80] sm:$0xff]  ;;  %v6620_v24 = vld [vmem:[%s5942_s24 + $0x250] sm:$0xff]  ;;  %v3189_v8 = vsel %vm10118_vm0, %v2862_v52, 0.0  ;;  %v3191_v17 = vsel %vm10118_vm0, %v2863_v61, 0.0  ;;  %v744_v27 = vld [vmem:[%s10114_s1 + $0x848] sm:$0xff] }
  0x99   : > { %1145 = vmatprep.mubr.f32.mxu1 %v768_v29  ;;  %v6610_v29 = vld [vmem:[%s5942_s24 + $0x248] sm:$0xff]  ;;  %5160 = vmatpush1.bf16.msra.mxu0 %v5159_v50  ;;  %v2865_v16 = vmul.f32 %v6620_v24, %v6620_v24  ;;  %v759_v52 = vld [vmem:[%s10114_s1 + $0x8c0] sm:$0xff] }
  0x9a   : > { %v3182_v47 = vadd.f32 %v3181_v36, %v3180_v42  ;;  %v2864_v7 = vmul.f32 %v6610_v29, %v6610_v29  ;;  %5161 = vmatprep.subr.bf16.mxu0 %v5893_v2  ;;  %2035 = vmatprep.mubr.f32.mxu0 %v744_v27  ;;  %v760_v42 = vld [vmem:[%s10114_s1 + $0x8c8] sm:$0xff] }
  0x9b   : > { %4971 = vmatpush1.bf16.msra.mxu1 %v4970_v11  ;;  %2036 = vmatmul.mubr.f32.gmra.mrb[32].mxu0 %v743_v38  ;;  %v912_v37 = vld [vmem:[%s10114_s1 + $0xd88] sm:$0xff]  ;;  %v807_v38 = vld [vmem:[%s10114_s1 + $0xa40] sm:$0xff] }
  0x9c   : > { %1146 = vmatmul.mubr.f32.gmra.mrb[36].mxu1 %v767_v26  ;;  %v3184_v59 = vadd.f32 %v3183_v46, %v3182_v47  ;;  %v4973_v26 = vpack.c.bf16 %v6461_v35, %v6457_v32  ;;  %4972 = vmatprep.subr.bf16.mxu1 %v5893_v2  ;;  %v831_v32 = vld [vmem:[%s10114_s1 + $0xb00] sm:$0xff]  ;;  %v3193_v25 = vsel %vm10118_vm0, %v2864_v7, 0.0  ;;  %v2872_v7 = vmul.f32 %v6716_v58, %v6716_v58 }
  0x9d   : > { %1150 = vmatprep.mubr.f32.mxu1 %v784_v39  ;;  %v6640_v39 = vld [vmem:[%s5942_s24 + $0x258] sm:$0xff]  ;;  %v6650_v35 = vld [vmem:[%s5942_s24 + $0x260] sm:$0xff]  ;;  %5163 = vmatpush1.bf16.msra.mxu0 %v5162_v4  ;;  %v896_v4 = vld [vmem:[%s10114_s1 + $0xd08] sm:$0xff] }
  0x9e   : > { %v3186_v1 = vadd.f32 %v3185_v53, %v3184_v59  ;;  %v2866_v9 = vmul.f32 %v6640_v39, %v6640_v39  ;;  %5164 = vmatprep.subr.bf16.mxu0 %v5893_v2  ;;  %v2867_v30 = vmul.f32 %v6650_v35, %v6650_v35  ;;  %2040 = vmatprep.mubr.f32.mxu0 %v760_v42  ;;  %v880_v53 = vld [vmem:[%s10114_s1 + $0xc88] sm:$0xff] }
  0x9f   : > { %4974 = vmatpush1.bf16.msra.mxu1 %v4973_v26  ;;  %2041 = vmatmul.mubr.f32.gmra.mrb[34].mxu0 %v759_v52  ;;  %v6740_v26 = vld [vmem:[%s5942_s24 + $0x298] sm:$0xff]  ;;  %v824_v42 = vld [vmem:[%s10114_s1 + $0xac8] sm:$0xff]  ;;  %v6797_v52 = vld [vmem:[%s5942_s24 + $0x2c0] sm:$0xff] }
  0xa0   : > { %1151 = vmatmul.mubr.f32.gmra.mrb[38].mxu1 %v783_v43  ;;  %v3188_v0 = vadd.f32 %v3187_v62, %v3186_v1  ;;  %v6666_v43 = vld [vmem:[%s5942_s24 + $0x268] sm:$0xff]  ;;  %4975 = vmatprep.subr.bf16.mxu1 %v5893_v2  ;;  %v3197_v41 = vsel %vm10118_vm0, %v2866_v9, 0.0  ;;  %v3199_v47 = vsel %vm10118_vm0, %v2867_v30, 0.0  ;;  %v6725_v1 = vld [vmem:[%s5942_s24 + $0x290] sm:$0xff] }
  0xa1   : > { %1155 = vmatprep.mubr.f32.mxu1 %v800_v49  ;;  %v3195_v49 = vsel %vm10118_vm0, %v2865_v16, 0.0  ;;  %5166 = vmatpush1.bf16.msra.mxu0 %v5165_v22  ;;  %v2868_v40 = vmul.f32 %v6666_v43, %v6666_v43  ;;  %v2873_v15 = vmul.f32 %v6725_v1, %v6725_v1  ;;  %v895_v16 = vld [vmem:[%s10114_s1 + $0xd00] sm:$0xff]  ;;  %v3209_v22 = vsel %vm10118_vm0, %v2872_v7, 0.0  ;;  %v808_v9 = vld [vmem:[%s10114_s1 + $0xa48] sm:$0xff]  ;;  %v6821_v7 = vld [vmem:[%s5942_s24 + $0x2d0] sm:$0xff] }
  0xa2   : > { %v3190_v18 = vadd.f32 %v3189_v8, %v3188_v0  ;;  %5167 = vmatprep.subr.bf16.mxu0 %v5893_v2  ;;  %2045 = vmatprep.mubr.f32.mxu0 %v776_v57  ;;  %v3205_v8 = vsel %vm10118_vm0, %v2870_v55, 0.0  ;;  %v823_v55 = vld [vmem:[%s10114_s1 + $0xac0] sm:$0xff] }
  0xa3   : > { %v3201_v11 = vsel %vm10118_vm0, %v2868_v40, 0.0  ;;  %v3211_v30 = vsel %vm10118_vm0, %v2873_v15, 0.0 }
  0xa4   : > { %1156 = vmatmul.mubr.f32.gmra.mrb[40].mxu1 %v799_v60  ;;  %v3192_v28 = vadd.f32 %v3191_v17, %v3190_v18  ;;  %v2869_v60 = vmul.f32 %v6676_v33, %v6676_v33  ;;  %v6749_v17 = vld [vmem:[%s5942_s24 + $0x2a0] sm:$0xff] }
  0xa5   : > { %1160 = vmatprep.mubr.f32.mxu1 %v816_v48  ;;  %v6701_v48 = vld [vmem:[%s5942_s24 + $0x280] sm:$0xff] }
  0xa6   : > { %v3194_v36 = vadd.f32 %v3193_v25, %v3192_v28  ;;  %v2871_v61 = vmul.f32 %v6701_v48, %v6701_v48  ;;  %v3203_v62 = vsel %vm10118_vm0, %v2869_v60, 0.0  ;;  %v791_v18 = vld [vmem:[%s10114_s1 + $0x9c0] sm:$0xff]  ;;  %v6764_v25 = vld [vmem:[%s5942_s24 + $0x2a8] sm:$0xff]  ;;  %v2875_v28 = vmul.f32 %v6749_v17, %v6749_v17 }
  0xa7   : > { %v2876_v40 = vmul.f32 %v6764_v25, %v6764_v25 }
  0xa8   : > { %1161 = vmatmul.mubr.f32.gmra.mrb[42].mxu1 %v815_v5  ;;  %v3196_v46 = vadd.f32 %v3195_v49, %v3194_v36  ;;  %v879_v5 = vld [vmem:[%s10114_s1 + $0xc80] sm:$0xff]  ;;  %v3207_v0 = vsel %vm10118_vm0, %v2871_v61, 0.0  ;;  %v840_v61 = vld [vmem:[%s10114_s1 + $0xb48] sm:$0xff] }
  0xa9   : > { %1165 = vmatprep.mubr.f32.mxu1 %v832_v3  ;;  %v775_v3 = vld [vmem:[%s10114_s1 + $0x940] sm:$0xff] }
  0xaa   : > { %v3198_v50 = vadd.f32 %v3197_v41, %v3196_v46  ;;  %2046 = vmatmul.mubr.f32.gmra.mrb[36].mxu0 %v775_v3  ;;  %v911_v49 = vld [vmem:[%s10114_s1 + $0xd80] sm:$0xff]  ;;  %v6788_v46 = vld [vmem:[%s5942_s24 + $0x2b8] sm:$0xff] }
  0xab   : > { %2050 = vmatprep.mubr.f32.mxu0 %v792_v12  ;;  %v2878_v57 = vmul.f32 %v6788_v46, %v6788_v46  ;;  %v839_v12 = vld [vmem:[%s10114_s1 + $0xb40] sm:$0xff] }
  0xac   : > { %1166 = vmatmul.mubr.f32.gmra.mrb[44].mxu1 %v831_v32  ;;  %v3200_v59 = vadd.f32 %v3199_v47, %v3198_v50  ;;  %v927_v50 = vld [vmem:[%s10114_s1 + $0xe00] sm:$0xff] }
  0xad   : > { %1170 = vmatprep.mubr.f32.mxu1 %v848_v21  ;;  %v2874_v21 = vmul.f32 %v6740_v26, %v6740_v26 }
  0xae   : > { %v3202_v20 = vadd.f32 %v3201_v11, %v3200_v59  ;;  %2051 = vmatmul.mubr.f32.gmra.mrb[38].mxu0 %v791_v18  ;;  %v944_v11 = vld [vmem:[%s10114_s1 + $0xe88] sm:$0xff]  ;;  %v3217_v59 = vsel %vm10118_vm0, %v2876_v40, 0.0 }
  0xaf   : > { %2055 = vmatprep.mubr.f32.mxu0 %v808_v9  ;;  %v3213_v41 = vsel %vm10118_vm0, %v2874_v21, 0.0  ;;  %v6845_v9 = vld [vmem:[%s5942_s24 + $0x2e0] sm:$0xff] }
  0xb0   : > { %1171 = vmatmul.mubr.f32.gmra.mrb[46].mxu1 %v847_v31  ;;  %v3204_v13 = vadd.f32 %v3203_v62, %v3202_v20  ;;  %v6773_v31 = vld [vmem:[%s5942_s24 + $0x2b0] sm:$0xff]  ;;  %v6812_v62 = vld [vmem:[%s5942_s24 + $0x2c8] sm:$0xff]  ;;  %v2879_v20 = vmul.f32 %v6797_v52, %v6797_v52 }
  0xb1   : > { %1175 = vmatprep.mubr.f32.mxu1 %v864_v54  ;;  %v928_v54 = vld [vmem:[%s10114_s1 + $0xe08] sm:$0xff]  ;;  %v2877_v47 = vmul.f32 %v6773_v31, %v6773_v31  ;;  %v2880_v15 = vmul.f32 %v6812_v62, %v6812_v62 }
  0xb2   : > { %v3206_v32 = vadd.f32 %v3205_v8, %v3204_v13  ;;  %2056 = vmatmul.mubr.f32.gmra.mrb[40].mxu0 %v807_v38  ;;  %v960_v13 = vld [vmem:[%s10114_s1 + $0xf08] sm:$0xff]  ;;  %v3223_v21 = vsel %vm10118_vm0, %v2879_v20, 0.0 }
  0xb3   : > { %2060 = vmatprep.mubr.f32.mxu0 %v824_v42  ;;  %v3219_v3 = vsel %vm10118_vm0, %v2877_v47, 0.0  ;;  %v872_v38 = vld [vmem:[%s10114_s1 + $0xc48] sm:$0xff]  ;;  %v6869_v47 = vld [vmem:[%s5942_s24 + $0x2f0] sm:$0xff] }
  0xb4   : > { %1176 = vmatmul.mubr.f32.gmra.mrb[48].mxu1 %v863_v63  ;;  %v3208_v27 = vadd.f32 %v3207_v0, %v3206_v32  ;;  %v3215_v63 = vsel %vm10118_vm0, %v2875_v28, 0.0  ;;  %v3221_v0 = vsel %vm10118_vm0, %v2878_v57, 0.0  ;;  %v6836_v32 = vld [vmem:[%s5942_s24 + $0x2d8] sm:$0xff]  ;;  %v855_v28 = vld [vmem:[%s10114_s1 + $0xbc0] sm:$0xff]  ;;  %v888_v57 = vld [vmem:[%s10114_s1 + $0xcc8] sm:$0xff] }
  0xb5   : > { %1180 = vmatprep.mubr.f32.mxu1 %v880_v53 }
  0xb6   : > { %v3210_v36 = vadd.f32 %v3209_v22, %v3208_v27  ;;  %2061 = vmatmul.mubr.f32.gmra.mrb[42].mxu0 %v823_v55  ;;  %v959_v22 = vld [vmem:[%s10114_s1 + $0xf00] sm:$0xff] }
  0xb7   : > { %2065 = vmatprep.mubr.f32.mxu0 %v840_v61 }
  0xb8   : > { %1181 = vmatmul.mubr.f32.gmra.mrb[50].mxu1 %v879_v5  ;;  %v3212_v60 = vadd.f32 %v3211_v30, %v3210_v36  ;;  %v976_v30 = vld [vmem:[%s10114_s1 + $0xf88] sm:$0xff]  ;;  %v3225_v36 = vsel %vm10118_vm0, %v2880_v15, 0.0 }
  0xb9   : > { %1185 = vmatprep.mubr.f32.mxu1 %v896_v4  ;;  %v943_v4 = vld [vmem:[%s10114_s1 + $0xe80] sm:$0xff] }
  0xba   : > { %v3214_v53 = vadd.f32 %v3213_v41, %v3212_v60  ;;  %2066 = vmatmul.mubr.f32.gmra.mrb[44].mxu0 %v839_v12  ;;  %v2883_v41 = vmul.f32 %v6845_v9, %v6845_v9  ;;  %v975_v60 = vld [vmem:[%s10114_s1 + $0xf80] sm:$0xff] }
  0xbc   : > { %1186 = vmatmul.mubr.f32.gmra.mrb[52].mxu1 %v895_v16  ;;  %v3216_v5 = vadd.f32 %v3215_v63, %v3214_v53  ;;  %v856_v16 = vld [vmem:[%s10114_s1 + $0xbc8] sm:$0xff]  ;;  %v482_v53 = vld [vmem:[%s10114_s1 + $0x18] sm:$0xff]  ;;  %v3231_v20 = vsel %vm10118_vm0, %v2883_v41, 0.0 }
  0xbd   : > { %1190 = vmatprep.mubr.f32.mxu1 %v912_v37  ;;  %v2881_v37 = vmul.f32 %v6821_v7, %v6821_v7  ;;  %2070 = vmatprep.mubr.f32.mxu0 %v856_v16  ;;  %v904_v16 = vld [vmem:[%s10114_s1 + $0xd48] sm:$0xff] }
  0xbe   : > { %v3218_v8 = vadd.f32 %v3217_v59, %v3216_v5  ;;  %2071 = vmatmul.mubr.f32.gmra.mrb[46].mxu0 %v855_v28  ;;  %v6884_v59 = vld [vmem:[%s5942_s24 + $0x2f8] sm:$0xff]  ;;  %v2885_v5 = vmul.f32 %v6869_v47, %v6869_v47  ;;  %v920_v41 = vld [vmem:[%s10114_s1 + $0xdc8] sm:$0xff] }
  0xbf   : > { %v3227_v42 = vsel %vm10118_vm0, %v2881_v37, 0.0  ;;  %2075 = vmatprep.mubr.f32.mxu0 %v872_v38  ;;  %v2886_v15 = vmul.f32 %v6884_v59, %v6884_v59 }
  0xc0   : > { %1191 = vmatmul.mubr.f32.gmra.mrb[54].mxu1 %v911_v49  ;;  %v3220_v18 = vadd.f32 %v3219_v3, %v3218_v8  ;;  %v2882_v49 = vmul.f32 %v6836_v32, %v6836_v32  ;;  %v481_v3 = vld [vmem:[%s10114_s1 + $0x10] sm:$0xff]  ;;  %v319_v8 = vld [vmem:[%s5942_s24 + $0x300] sm:$0xff] }
  0xc1   : > { %1195 = vmatprep.mubr.f32.mxu1 %v928_v54  ;;  %v6860_v54 = vld [vmem:[%s5942_s24 + $0x2e8] sm:$0xff]  ;;  %v2887_v37 = vmul.f32 %v319_v8, %v319_v8 }
  0xc2   : > { %v3222_v27 = vadd.f32 %v3221_v0, %v3220_v18  ;;  %v2884_v55 = vmul.f32 %v6860_v54, %v6860_v54 }
  0xc4   : > { %1196 = vmatmul.mubr.f32.gmra.mrb[56].mxu1 %v927_v50  ;;  %v3224_v40 = vadd.f32 %v3223_v21, %v3222_v27  ;;  %v871_v50 = vld [vmem:[%s10114_s1 + $0xc40] sm:$0xff]  ;;  %v3233_v0 = vsel %vm10118_vm0, %v2884_v55, 0.0  ;;  %v3235_v21 = vsel %vm10118_vm0, %v2885_v5, 0.0  ;;  %v321_v27 = vld [vmem:[%s5942_s24 + $0x310] sm:$0xff] }
  0xc5   : > { %1200 = vmatprep.mubr.f32.mxu1 %v944_v11  ;;  %v3229_v11 = vsel %vm10118_vm0, %v2882_v49, 0.0  ;;  %2076 = vmatmul.mubr.f32.gmra.mrb[48].mxu0 %v871_v50  ;;  %v514_v49 = vld [vmem:[%s10114_s1 + $0x118] sm:$0xff]  ;;  %v3239_v50 = vsel %vm10118_vm0, %v2887_v37, 0.0  ;;  %v919_v55 = vld [vmem:[%s10114_s1 + $0xdc0] sm:$0xff] }
  0xc6   : > { %v3226_v63 = vadd.f32 %v3225_v36, %v3224_v40  ;;  %2080 = vmatprep.mubr.f32.mxu0 %v888_v57  ;;  %v4979_v36 = vpack.c.bf16 %v6520_v6, %v6500_v44  ;;  %v3237_v40 = vsel %vm10118_vm0, %v2886_v15, 0.0  ;;  %v513_v44 = vld [vmem:[%s10114_s1 + $0x110] sm:$0xff]  ;;  %v323_v6 = vld [vmem:[%s5942_s24 + $0x320] sm:$0xff]  ;;  %v4982_v57 = vpack.c.bf16 %v6550_v23, %v6530_v56  ;;  %v326_v37 = vld [vmem:[%s5942_s24 + $0x338] sm:$0xff] }
  0xc7   : > { %v2891_v8 = vmul.f32 %v323_v6, %v323_v6  ;;  %v529_v56 = vld [vmem:[%s10114_s1 + $0x190] sm:$0xff]  ;;  %v935_v15 = vld [vmem:[%s10114_s1 + $0xe40] sm:$0xff] }
  0xc8   : > { %1201 = vmatmul.mubr.f32.gmra.mrb[58].mxu1 %v943_v4  ;;  %v3228_v61 = vadd.f32 %v3227_v42, %v3226_v63  ;;  %v4976_v4 = vpack.c.bf16 %v6490_v51, %v6470_v34  ;;  %v498_v34 = vld [vmem:[%s10114_s1 + $0x98] sm:$0xff]  ;;  %v320_v51 = vld [vmem:[%s5942_s24 + $0x308] sm:$0xff]  ;;  %v2889_v63 = vmul.f32 %v321_v27, %v321_v27  ;;  %v325_v23 = vld [vmem:[%s5942_s24 + $0x330] sm:$0xff] }
  0xc9   : > { %1205 = vmatprep.mubr.f32.mxu1 %v960_v13  ;;  %v887_v13 = vld [vmem:[%s10114_s1 + $0xcc0] sm:$0xff]  ;;  %v2888_v38 = vmul.f32 %v320_v51, %v320_v51  ;;  %v322_v42 = vld [vmem:[%s5942_s24 + $0x318] sm:$0xff]  ;;  %v3247_v27 = vsel %vm10118_vm0, %v2891_v8, 0.0 }
  0xca   : > { %v3230_v12 = vadd.f32 %v3229_v11, %v3228_v61  ;;  %2081 = vmatmul.mubr.f32.gmra.mrb[50].mxu0 %v887_v13  ;;  %v530_v11 = vld [vmem:[%s10114_s1 + $0x198] sm:$0xff]  ;;  %v2890_v61 = vmul.f32 %v322_v42, %v322_v42  ;;  %v328_v42 = vld [vmem:[%s5942_s24 + $0x348] sm:$0xff]  ;;  %v967_v6 = vld [vmem:[%s10114_s1 + $0xf40] sm:$0xff] }
  0xcb   : > { %2085 = vmatprep.mubr.f32.mxu0 %v904_v16  ;;  %v3241_v5 = vsel %vm10118_vm0, %v2888_v38, 0.0  ;;  %v4985_v16 = vpack.c.bf16 %v6580_v19, %v6560_v10  ;;  %v545_v10 = vld [vmem:[%s10114_s1 + $0x210] sm:$0xff]  ;;  %v327_v19 = vld [vmem:[%s5942_s24 + $0x340] sm:$0xff]  ;;  %v2894_v38 = vmul.f32 %v326_v37, %v326_v37 }
  0xcc   : > { %1206 = vmatmul.mubr.f32.gmra.mrb[60].mxu1 %v959_v22  ;;  %v3232_v18 = vadd.f32 %v3231_v20, %v3230_v12  ;;  %v497_v22 = vld [vmem:[%s10114_s1 + $0x90] sm:$0xff]  ;;  %v936_v20 = vld [vmem:[%s10114_s1 + $0xe48] sm:$0xff]  ;;  %v3243_v12 = vsel %vm10118_vm0, %v2889_v63, 0.0  ;;  %v3245_v51 = vsel %vm10118_vm0, %v2890_v61, 0.0  ;;  %v2895_v63 = vmul.f32 %v327_v19, %v327_v19  ;;  %v610_v19 = vld [vmem:[%s10114_s1 + $0x418] sm:$0xff] }
  0xcd   : > { %1210 = vmatprep.mubr.f32.mxu1 %v976_v30  ;;  %v903_v30 = vld [vmem:[%s10114_s1 + $0xd40] sm:$0xff]  ;;  %v984_v61 = vld [vmem:[%s10114_s1 + $0xfc8] sm:$0xff] }
  0xce   : > { %v3234_v28 = vadd.f32 %v3233_v0, %v3232_v18  ;;  %2086 = vmatmul.mubr.f32.gmra.mrb[52].mxu0 %v903_v30  ;;  %v546_v0 = vld [vmem:[%s10114_s1 + $0x218] sm:$0xff]  ;;  %v952_v18 = vld [vmem:[%s10114_s1 + $0xec8] sm:$0xff]  ;;  %v951_v30 = vld [vmem:[%s10114_s1 + $0xec0] sm:$0xff] }
  0xcf   : > { %2090 = vmatprep.mubr.f32.mxu0 %v920_v41  ;;  %v968_v41 = vld [vmem:[%s10114_s1 + $0xf48] sm:$0xff] }
  0xd0   : > { %1211 = vmatmul.mubr.f32.gmra.mrb[62].mxu1 %v975_v60  ;;  %v3236_v60 = vadd.f32 %v3235_v21, %v3234_v28 }
  0xd1   : > { %1280 = vmatprep.mubr.f32.mxu1 %v482_v53 }
  0xd2   : > { %v3238_v53 = vadd.f32 %v3237_v40, %v3236_v60  ;;  %2091 = vmatmul.mubr.f32.gmra.mrb[54].mxu0 %v919_v55  ;;  %v4991_v55 = vpack.c.bf16 %v6640_v39, %v6620_v24  ;;  %v577_v24 = vld [vmem:[%s10114_s1 + $0x310] sm:$0xff]  ;;  %v331_v39 = vld [vmem:[%s5942_s24 + $0x360] sm:$0xff] }
  0xd3   : > { %2095 = vmatprep.mubr.f32.mxu0 %v936_v20  ;;  %v2899_v37 = vmul.f32 %v331_v39, %v331_v39  ;;  %v337_v39 = vld [vmem:[%s5942_s24 + $0x390] sm:$0xff] }
  0xd4   : > { %1281 = vmatmul.mubr.f32.vlgmr.msra.gmra.mrb[0].mxu1 %v481_v3  ;;  %v324_v3 = vld [vmem:[%s5942_s24 + $0x328] sm:$0xff] }
  0xd5   : > { %4977 = vmatpush1.bf16.msra.mxu1 %v4976_v4  ;;  %1285 = vmatprep.mubr.f32.mxu1 %v498_v34  ;;  %v3240_v4 = vadd.f32 %v3239_v50, %v3238_v53  ;;  %v2892_v34 = vmul.f32 %v324_v3, %v324_v3  ;;  %v578_v53 = vld [vmem:[%s10114_s1 + $0x318] sm:$0xff] }
  0xd6   : > { %4978 = vmatprep.subr.bf16.mxu1 %v5893_v2  ;;  %2096 = vmatmul.mubr.f32.gmra.mrb[56].mxu0 %v935_v15 }
  0xd7   : > { %v3242_v13 = vadd.f32 %v3241_v5, %v3240_v4  ;;  %2100 = vmatprep.mubr.f32.mxu0 %v952_v18  ;;  %v3249_v40 = vsel %vm10118_vm0, %v2892_v34, 0.0  ;;  %v330_v5 = vld [vmem:[%s5942_s24 + $0x358] sm:$0xff]  ;;  %v3255_v4 = vsel %vm10118_vm0, %v2895_v63, 0.0  ;;  %v416_v34 = vld [vmem:[%s5942_s24 + $0x608] sm:$0xff]  ;;  %v3263_v63 = vsel %vm10118_vm0, %v2899_v37, 0.0 }
  0xd8   : > { %1286 = vmatmul.mubr.f32.gmra.mrb[2].mxu1 %v497_v22  ;;  %v2893_v22 = vmul.f32 %v325_v23, %v325_v23  ;;  %v4994_v23 = vpack.c.bf16 %v6666_v43, %v6650_v35  ;;  %v593_v35 = vld [vmem:[%s10114_s1 + $0x390] sm:$0xff] }
  0xd9   : > { %1290 = vmatprep.mubr.f32.mxu1 %v514_v49  ;;  %4980 = vmatpush1.bf16.msra.mxu1 %v4979_v36  ;;  %v3244_v21 = vadd.f32 %v3243_v12, %v3242_v13  ;;  %v562_v49 = vld [vmem:[%s10114_s1 + $0x298] sm:$0xff]  ;;  %v4988_v36 = vpack.c.bf16 %v6610_v29, %v6590_v14  ;;  %v561_v14 = vld [vmem:[%s10114_s1 + $0x290] sm:$0xff]  ;;  %v983_v12 = vld [vmem:[%s10114_s1 + $0xfc0] sm:$0xff]  ;;  %v2898_v13 = vmul.f32 %v330_v5, %v330_v5 }
  0xda   : > { %4981 = vmatprep.subr.bf16.mxu1 %v5893_v2  ;;  %v3251_v50 = vsel %vm10118_vm0, %v2893_v22, 0.0  ;;  %2101 = vmatmul.mubr.f32.gmra.mrb[58].mxu0 %v951_v30  ;;  %v329_v29 = vld [vmem:[%s5942_s24 + $0x350] sm:$0xff]  ;;  %v336_v5 = vld [vmem:[%s5942_s24 + $0x388] sm:$0xff] }
  0xdb   : > { %v3246_v28 = vadd.f32 %v3245_v51, %v3244_v21  ;;  %2105 = vmatprep.mubr.f32.mxu0 %v968_v41  ;;  %v2897_v3 = vmul.f32 %v329_v29, %v329_v29  ;;  %v332_v51 = vld [vmem:[%s5942_s24 + $0x368] sm:$0xff]  ;;  %v333_v43 = vld [vmem:[%s5942_s24 + $0x370] sm:$0xff]  ;;  %v3261_v30 = vsel %vm10118_vm0, %v2898_v13, 0.0  ;;  %v334_v41 = vld [vmem:[%s5942_s24 + $0x378] sm:$0xff] }
  0xdc   : > { %1291 = vmatmul.mubr.f32.gmra.mrb[4].mxu1 %v513_v44  ;;  %v538_v13 = vld [vmem:[%s10114_s1 + $0x1d8] sm:$0xff] }
  0xdd   : > { %1295 = vmatprep.mubr.f32.mxu1 %v530_v11  ;;  %4983 = vmatpush1.bf16.msra.mxu1 %v4982_v57  ;;  %v3248_v60 = vadd.f32 %v3247_v27, %v3246_v28  ;;  %v2896_v11 = vmul.f32 %v328_v42, %v328_v42  ;;  %v3253_v57 = vsel %vm10118_vm0, %v2894_v38, 0.0  ;;  %v3259_v21 = vsel %vm10118_vm0, %v2897_v3, 0.0  ;;  %v489_v27 = vld [vmem:[%s10114_s1 + $0x50] sm:$0xff]  ;;  %v418_v38 = vld [vmem:[%s5942_s24 + $0x618] sm:$0xff] }
  0xde   : > { %4984 = vmatprep.subr.bf16.mxu1 %v5893_v2  ;;  %2106 = vmatmul.mubr.f32.gmra.mrb[60].mxu0 %v967_v6  ;;  %v2900_v28 = vmul.f32 %v332_v51, %v332_v51  ;;  %v2902_v6 = vmul.f32 %v334_v41, %v334_v41 }
  0xdf   : > { %v3250_v44 = vadd.f32 %v3249_v40, %v3248_v60  ;;  %2110 = vmatprep.mubr.f32.mxu0 %v984_v61  ;;  %v3257_v15 = vsel %vm10118_vm0, %v2896_v11, 0.0  ;;  %v4997_v40 = vpack.c.bf16 %v6692_v45, %v6676_v33  ;;  %v2901_v60 = vmul.f32 %v333_v43, %v333_v43  ;;  %v505_v33 = vld [vmem:[%s10114_s1 + $0xd0] sm:$0xff]  ;;  %v419_v11 = vld [vmem:[%s5942_s24 + $0x620] sm:$0xff] }
  0xe0   : > { %1296 = vmatmul.mubr.f32.gmra.mrb[6].mxu1 %v529_v56  ;;  %v594_v56 = vld [vmem:[%s10114_s1 + $0x398] sm:$0xff]  ;;  %v5000_v61 = vpack.c.bf16 %v6716_v58, %v6701_v48  ;;  %v521_v48 = vld [vmem:[%s10114_s1 + $0x150] sm:$0xff] }
  0xe1   : > { %1300 = vmatprep.mubr.f32.mxu1 %v546_v0  ;;  %4986 = vmatpush1.bf16.msra.mxu1 %v4985_v16  ;;  %v3252_v20 = vadd.f32 %v3251_v50, %v3250_v44  ;;  %v490_v0 = vld [vmem:[%s10114_s1 + $0x58] sm:$0xff]  ;;  %v415_v16 = vld [vmem:[%s5942_s24 + $0x600] sm:$0xff]  ;;  %v609_v50 = vld [vmem:[%s10114_s1 + $0x410] sm:$0xff] }
  0xe2   : > { %4987 = vmatprep.subr.bf16.mxu1 %v5893_v2  ;;  %2111 = vmatmul.mubr.f32.gmra.mrb[62].mxu0 %v983_v12  ;;  %v626_v44 = vld [vmem:[%s10114_s1 + $0x498] sm:$0xff] }
  0xe3   : > { %v3254_v8 = vadd.f32 %v3253_v57, %v3252_v20  ;;  %2180 = vmatprep.mubr.f32.mxu0 %v490_v0  ;;  %v420_v57 = vld [vmem:[%s5942_s24 + $0x628] sm:$0xff]  ;;  %v642_v12 = vld [vmem:[%s10114_s1 + $0x518] sm:$0xff] }
  0xe4   : > { %1301 = vmatmul.mubr.f32.gmra.mrb[8].mxu1 %v545_v10  ;;  %v5168_v10 = vpack.c.bf16 %v416_v34, %v415_v16  ;;  %v5174_v58 = vpack.c.bf16 %v420_v57, %v419_v11  ;;  %v422_v0 = vld [vmem:[%s5942_s24 + $0x638] sm:$0xff]  ;;  %v5003_v16 = vpack.c.bf16 %v6740_v26, %v6725_v1  ;;  %v537_v1 = vld [vmem:[%s10114_s1 + $0x1d0] sm:$0xff] }
  0xe5   : > { %1305 = vmatprep.mubr.f32.mxu1 %v562_v49  ;;  %4989 = vmatpush1.bf16.msra.mxu1 %v4988_v36  ;;  %v3256_v18 = vadd.f32 %v3255_v4, %v3254_v8  ;;  %v506_v49 = vld [vmem:[%s10114_s1 + $0xd8] sm:$0xff]  ;;  %v417_v36 = vld [vmem:[%s5942_s24 + $0x610] sm:$0xff]  ;;  %v3267_v4 = vsel %vm10118_vm0, %v2901_v60, 0.0 }
  0xe6   : > { %4990 = vmatprep.subr.bf16.mxu1 %v5893_v2  ;;  %2181 = vmatmul.mubr.f32.vlgmr.msra.gmra.mrb[0].mxu0 %v489_v27  ;;  %v5171_v45 = vpack.c.bf16 %v418_v38, %v417_v36  ;;  %v338_v34 = vld [vmem:[%s5942_s24 + $0x398] sm:$0xff]  ;;  %v340_v36 = vld [vmem:[%s5942_s24 + $0x3a8] sm:$0xff]  ;;  %v341_v60 = vld [vmem:[%s5942_s24 + $0x3b0] sm:$0xff] }
  0xe7   : > { %v3258_v22 = vadd.f32 %v3257_v15, %v3256_v18  ;;  %5169 = vmatpush1.bf16.msra.mxu0 %v5168_v10  ;;  %2185 = vmatprep.mubr.f32.mxu0 %v506_v49  ;;  %v421_v15 = vld [vmem:[%s5942_s24 + $0x630] sm:$0xff]  ;;  %v2905_v18 = vmul.f32 %v337_v39, %v337_v39  ;;  %v2906_v27 = vmul.f32 %v338_v34, %v338_v34  ;;  %v586_v39 = vld [vmem:[%s10114_s1 + $0x358] sm:$0xff] }
  0xe8   : > { %1306 = vmatmul.mubr.f32.gmra.mrb[10].mxu1 %v561_v14  ;;  %v335_v14 = vld [vmem:[%s5942_s24 + $0x380] sm:$0xff]  ;;  %5170 = vmatprep.subr.bf16.mxu0 %v5893_v2  ;;  %v5177_v26 = vpack.c.bf16 %v422_v0, %v421_v15  ;;  %v5006_v49 = vpack.c.bf16 %v6764_v25, %v6749_v17  ;;  %v553_v17 = vld [vmem:[%s10114_s1 + $0x250] sm:$0xff]  ;;  %v2909_v11 = vmul.f32 %v341_v60, %v341_v60  ;;  %v706_v34 = vld [vmem:[%s10114_s1 + $0x718] sm:$0xff] }
  0xe9   : > { %1310 = vmatprep.mubr.f32.mxu1 %v578_v53  ;;  %4992 = vmatpush1.bf16.msra.mxu1 %v4991_v55  ;;  %v3260_v42 = vadd.f32 %v3259_v21, %v3258_v22  ;;  %v3265_v53 = vsel %vm10118_vm0, %v2900_v28, 0.0  ;;  %v522_v55 = vld [vmem:[%s10114_s1 + $0x158] sm:$0xff]  ;;  %v2903_v3 = vmul.f32 %v335_v14, %v335_v14  ;;  %v641_v21 = vld [vmem:[%s10114_s1 + $0x510] sm:$0xff]  ;;  %v423_v28 = vld [vmem:[%s5942_s24 + $0x640] sm:$0xff]  ;;  %v3275_v41 = vsel %vm10118_vm0, %v2905_v18, 0.0 }
  0xea   : > { %4993 = vmatprep.subr.bf16.mxu1 %v5893_v2  ;;  %2186 = vmatmul.mubr.f32.gmra.mrb[2].mxu0 %v505_v33  ;;  %v658_v22 = vld [vmem:[%s10114_s1 + $0x598] sm:$0xff]  ;;  %v2908_v14 = vmul.f32 %v340_v36, %v340_v36  ;;  %v689_v15 = vld [vmem:[%s10114_s1 + $0x690] sm:$0xff]  ;;  %v348_v60 = vld [vmem:[%s5942_s24 + $0x3e8] sm:$0xff] }
  0xeb   : > { %v3262_v29 = vadd.f32 %v3261_v30, %v3260_v42  ;;  %2190 = vmatprep.mubr.f32.mxu0 %v522_v55  ;;  %5172 = vmatpush1.bf16.msra.mxu0 %v5171_v45  ;;  %v3271_v37 = vsel %vm10118_vm0, %v2903_v3, 0.0  ;;  %v424_v30 = vld [vmem:[%s5942_s24 + $0x648] sm:$0xff]  ;;  %v657_v42 = vld [vmem:[%s10114_s1 + $0x590] sm:$0xff]  ;;  %v570_v33 = vld [vmem:[%s10114_s1 + $0x2d8] sm:$0xff] }
  0xec   : > { %1311 = vmatmul.mubr.f32.gmra.mrb[12].mxu1 %v577_v24  ;;  %v625_v24 = vld [vmem:[%s10114_s1 + $0x490] sm:$0xff]  ;;  %5173 = vmatprep.subr.bf16.mxu0 %v5893_v2  ;;  %v5180_v25 = vpack.c.bf16 %v424_v30, %v423_v28  ;;  %v690_v3 = vld [vmem:[%s10114_s1 + $0x698] sm:$0xff] }
  0xed   : > { %1315 = vmatprep.mubr.f32.mxu1 %v594_v56  ;;  %4995 = vmatpush1.bf16.msra.mxu1 %v4994_v23  ;;  %v3264_v20 = vadd.f32 %v3263_v63, %v3262_v29  ;;  %v2904_v56 = vmul.f32 %v336_v5, %v336_v5  ;;  %v3269_v23 = vsel %vm10118_vm0, %v2902_v6, 0.0  ;;  %v3277_v29 = vsel %vm10118_vm0, %v2906_v27, 0.0  ;;  %v425_v45 = vld [vmem:[%s5942_s24 + $0x650] sm:$0xff]  ;;  %v343_v5 = vld [vmem:[%s5942_s24 + $0x3c0] sm:$0xff]  ;;  %v722_v30 = vld [vmem:[%s10114_s1 + $0x798] sm:$0xff] }
  0xee   : > { %4996 = vmatprep.subr.bf16.mxu1 %v5893_v2  ;;  %2191 = vmatmul.mubr.f32.gmra.mrb[4].mxu0 %v521_v48  ;;  %v5009_v6 = vpack.c.bf16 %v6788_v46, %v6773_v31  ;;  %v569_v31 = vld [vmem:[%s10114_s1 + $0x2d0] sm:$0xff]  ;;  %v428_v48 = vld [vmem:[%s5942_s24 + $0x668] sm:$0xff] }
  0xef   : > { %v3266_v8 = vadd.f32 %v3265_v53, %v3264_v20  ;;  %2195 = vmatprep.mubr.f32.mxu0 %v538_v13  ;;  %5175 = vmatpush1.bf16.msra.mxu0 %v5174_v58  ;;  %v3273_v10 = vsel %vm10118_vm0, %v2904_v56, 0.0  ;;  %v342_v53 = vld [vmem:[%s5942_s24 + $0x3b8] sm:$0xff]  ;;  %v5012_v58 = vpack.c.bf16 %v6812_v62, %v6797_v52  ;;  %v3283_v13 = vsel %vm10118_vm0, %v2909_v11, 0.0  ;;  %v345_v0 = vld [vmem:[%s5942_s24 + $0x3d0] sm:$0xff] }
  0xf0   : > { %1316 = vmatmul.mubr.f32.gmra.mrb[14].mxu1 %v593_v35  ;;  %v339_v35 = vld [vmem:[%s5942_s24 + $0x3a0] sm:$0xff]  ;;  %5176 = vmatprep.subr.bf16.mxu0 %v5893_v2  ;;  %v585_v52 = vld [vmem:[%s10114_s1 + $0x350] sm:$0xff]  ;;  %v5021_v11 = vpack.c.bf16 %v6884_v59, %v6869_v47  ;;  %v754_v59 = vld [vmem:[%s10114_s1 + $0x898] sm:$0xff] }
  0xf1   : > { %1320 = vmatprep.mubr.f32.mxu1 %v610_v19  ;;  %4998 = vmatpush1.bf16.msra.mxu1 %v4997_v40  ;;  %v3268_v51 = vadd.f32 %v3267_v4, %v3266_v8  ;;  %v554_v19 = vld [vmem:[%s10114_s1 + $0x258] sm:$0xff]  ;;  %v2907_v40 = vmul.f32 %v339_v35, %v339_v35  ;;  %v2910_v4 = vmul.f32 %v342_v53, %v342_v53  ;;  %v427_v8 = vld [vmem:[%s5942_s24 + $0x660] sm:$0xff]  ;;  %v433_v53 = vld [vmem:[%s5942_s24 + $0x690] sm:$0xff] }
  0xf2   : > { %4999 = vmatprep.subr.bf16.mxu1 %v5893_v2  ;;  %2196 = vmatmul.mubr.f32.gmra.mrb[6].mxu0 %v537_v1  ;;  %v5186_v62 = vpack.c.bf16 %v428_v48, %v427_v8  ;;  %v430_v35 = vld [vmem:[%s5942_s24 + $0x678] sm:$0xff]  ;;  %v633_v47 = vld [vmem:[%s10114_s1 + $0x4d0] sm:$0xff]  ;;  %v435_v8 = vld [vmem:[%s5942_s24 + $0x6a0] sm:$0xff] }
  0xf3   : > { %v3270_v43 = vadd.f32 %v3269_v23, %v3268_v51  ;;  %2200 = vmatprep.mubr.f32.mxu0 %v554_v19  ;;  %5178 = vmatpush1.bf16.msra.mxu0 %v5177_v26  ;;  %v3279_v57 = vsel %vm10118_vm0, %v2907_v40, 0.0  ;;  %v2911_v23 = vmul.f32 %v343_v5, %v343_v5  ;;  %v3285_v18 = vsel %vm10118_vm0, %v2910_v4, 0.0  ;;  %v346_v1 = vld [vmem:[%s5942_s24 + $0x3d8] sm:$0xff]  ;;  %v347_v19 = vld [vmem:[%s5942_s24 + $0x3e0] sm:$0xff]  ;;  %v436_v48 = vld [vmem:[%s5942_s24 + $0x6a8] sm:$0xff] }
  0xf4   : > { %1321 = vmatmul.mubr.f32.gmra.mrb[16].mxu1 %v609_v50  ;;  %v674_v50 = vld [vmem:[%s10114_s1 + $0x618] sm:$0xff]  ;;  %5179 = vmatprep.subr.bf16.mxu0 %v5893_v2  ;;  %v431_v40 = vld [vmem:[%s5942_s24 + $0x680] sm:$0xff] }
  0xf5   : > { %1325 = vmatprep.mubr.f32.mxu1 %v626_v44  ;;  %5001 = vmatpush1.bf16.msra.mxu1 %v5000_v61  ;;  %v3272_v38 = vadd.f32 %v3271_v37, %v3270_v43  ;;  %v426_v44 = vld [vmem:[%s5942_s24 + $0x658] sm:$0xff]  ;;  %v673_v61 = vld [vmem:[%s10114_s1 + $0x610] sm:$0xff]  ;;  %v5015_v43 = vpack.c.bf16 %v6836_v32, %v6821_v7  ;;  %v3287_v27 = vsel %vm10118_vm0, %v2911_v23, 0.0 }
  0xf6   : > { %5002 = vmatprep.subr.bf16.mxu1 %v5893_v2  ;;  %2201 = vmatmul.mubr.f32.gmra.mrb[8].mxu0 %v553_v17  ;;  %v5183_v46 = vpack.c.bf16 %v426_v44, %v425_v45  ;;  %v602_v37 = vld [vmem:[%s10114_s1 + $0x3d8] sm:$0xff]  ;;  %v601_v7 = vld [vmem:[%s10114_s1 + $0x3d0] sm:$0xff]  ;;  %v2915_v17 = vmul.f32 %v347_v19, %v347_v19  ;;  %v2916_v45 = vmul.f32 %v348_v60, %v348_v60 }
  0xf7   : > { %v3274_v63 = vadd.f32 %v3273_v10, %v3272_v38  ;;  %2205 = vmatprep.mubr.f32.mxu0 %v570_v33  ;;  %5181 = vmatpush1.bf16.msra.mxu0 %v5180_v25  ;;  %v705_v10 = vld [vmem:[%s10114_s1 + $0x710] sm:$0xff]  ;;  %v618_v38 = vld [vmem:[%s10114_s1 + $0x458] sm:$0xff] }
  0xf8   : > { %1326 = vmatmul.mubr.f32.gmra.mrb[18].mxu1 %v625_v24  ;;  %v3281_v24 = vsel %vm10118_vm0, %v2908_v14, 0.0  ;;  %5182 = vmatprep.subr.bf16.mxu0 %v5893_v2  ;;  %v349_v14 = vld [vmem:[%s5942_s24 + $0x3f0] sm:$0xff]  ;;  %v786_v19 = vld [vmem:[%s10114_s1 + $0x998] sm:$0xff] }
  0xf9   : > { %1330 = vmatprep.mubr.f32.mxu1 %v642_v12  ;;  %5004 = vmatpush1.bf16.msra.mxu1 %v5003_v16  ;;  %v3276_v55 = vadd.f32 %v3275_v41, %v3274_v63  ;;  %v344_v12 = vld [vmem:[%s5942_s24 + $0x3c8] sm:$0xff]  ;;  %v2917_v5 = vmul.f32 %v349_v14, %v349_v14 }
  0xfa   : > { %5005 = vmatprep.subr.bf16.mxu1 %v5893_v2  ;;  %2206 = vmatmul.mubr.f32.gmra.mrb[10].mxu0 %v569_v31  ;;  %v2912_v51 = vmul.f32 %v344_v12, %v344_v12  ;;  %v432_v41 = vld [vmem:[%s5942_s24 + $0x688] sm:$0xff]  ;;  %v737_v31 = vld [vmem:[%s10114_s1 + $0x810] sm:$0xff]  ;;  %v5757_v12 = vld [vmem:[%s5942_s24 + $0x400] sm:$0xff] }
  0xfb   : > { %v3278_v20 = vadd.f32 %v3277_v29, %v3276_v55  ;;  %2210 = vmatprep.mubr.f32.mxu0 %v586_v39  ;;  %5184 = vmatpush1.bf16.msra.mxu0 %v5183_v46  ;;  %v5192_v33 = vpack.c.bf16 %v432_v41, %v431_v40  ;;  %v434_v55 = vld [vmem:[%s5942_s24 + $0x698] sm:$0xff]  ;;  %v3299_v23 = vsel %vm10118_vm0, %v2917_v5, 0.0  ;;  %v697_v5 = vld [vmem:[%s10114_s1 + $0x6d0] sm:$0xff] }
  0xfc   : > { %1331 = vmatmul.mubr.f32.gmra.mrb[20].mxu1 %v641_v21  ;;  %5185 = vmatprep.subr.bf16.mxu0 %v5893_v2  ;;  %v429_v21 = vld [vmem:[%s5942_s24 + $0x670] sm:$0xff]  ;;  %v3289_v36 = vsel %vm10118_vm0, %v2912_v51, 0.0  ;;  %v650_v39 = vld [vmem:[%s10114_s1 + $0x558] sm:$0xff] }
  0xfd   : > { %1335 = vmatprep.mubr.f32.mxu1 %v658_v22  ;;  %5007 = vmatpush1.bf16.msra.mxu1 %v5006_v49  ;;  %v3280_v56 = vadd.f32 %v3279_v57, %v3278_v20  ;;  %v2913_v22 = vmul.f32 %v345_v0, %v345_v0  ;;  %v5189_v32 = vpack.c.bf16 %v430_v35, %v429_v21  ;;  %v350_v57 = vld [vmem:[%s5942_s24 + $0x3f8] sm:$0xff]  ;;  %v3295_v20 = vsel %vm10118_vm0, %v2915_v17, 0.0  ;;  %v649_v0 = vld [vmem:[%s10114_s1 + $0x550] sm:$0xff] }
  0xfe   : > { %5008 = vmatprep.subr.bf16.mxu1 %v5893_v2  ;;  %2211 = vmatmul.mubr.f32.gmra.mrb[12].mxu0 %v585_v52  ;;  %v2914_v49 = vmul.f32 %v346_v1, %v346_v1  ;;  %v2918_v4 = vmul.f32 %v350_v57, %v350_v57  ;;  %v5198_v52 = vpack.c.bf16 %v436_v48, %v435_v8  ;;  %v438_v21 = vld [vmem:[%s5942_s24 + $0x6b8] sm:$0xff]  ;;  %v5759_v1 = vld [vmem:[%s5942_s24 + $0x410] sm:$0xff]  ;;  %v5765_v48 = vld [vmem:[%s5942_s24 + $0x440] sm:$0xff] }
  0xff   : > { %v3282_v16 = vadd.f32 %v3281_v24, %v3280_v56  ;;  %2215 = vmatprep.mubr.f32.mxu0 %v602_v37  ;;  %5187 = vmatpush1.bf16.msra.mxu0 %v5186_v62  ;;  %v3291_v25 = vsel %vm10118_vm0, %v2913_v22, 0.0  ;;  %v3297_v24 = vsel %vm10118_vm0, %v2916_v45, 0.0  ;;  %v2919_v56 = vmul.f32 %v5757_v12, %v5757_v12  ;;  %v5758_v62 = vld [vmem:[%s5942_s24 + $0x408] sm:$0xff]  ;;  %v437_v37 = vld [vmem:[%s5942_s24 + $0x6b0] sm:$0xff] }
 0x100   : > { %1336 = vmatmul.mubr.f32.gmra.mrb[22].mxu1 %v657_v42  ;;  %5188 = vmatprep.subr.bf16.mxu0 %v5893_v2  ;;  %v5018_v42 = vpack.c.bf16 %v6860_v54, %v6845_v9  ;;  %v617_v9 = vld [vmem:[%s10114_s1 + $0x450] sm:$0xff]  ;;  %v738_v54 = vld [vmem:[%s10114_s1 + $0x818] sm:$0xff]  ;;  %v3293_v44 = vsel %vm10118_vm0, %v2914_v49, 0.0  ;;  %v3301_v51 = vsel %vm10118_vm0, %v2918_v4, 0.0  ;;  %v443_v4 = vld [vmem:[%s5942_s24 + $0x6e0] sm:$0xff] }
 0x101   : > { %1340 = vmatprep.mubr.f32.mxu1 %v674_v50  ;;  %5010 = vmatpush1.bf16.msra.mxu1 %v5009_v6  ;;  %v3284_v26 = vadd.f32 %v3283_v13, %v3282_v16  ;;  %v721_v50 = vld [vmem:[%s10114_s1 + $0x790] sm:$0xff]  ;;  %v634_v6 = vld [vmem:[%s10114_s1 + $0x4d8] sm:$0xff] }
 0x102   : > { %5011 = vmatprep.subr.bf16.mxu1 %v5893_v2  ;;  %2216 = vmatmul.mubr.f32.gmra.mrb[14].mxu0 %v601_v7  ;;  %v753_v13 = vld [vmem:[%s10114_s1 + $0x890] sm:$0xff]  ;;  %v770_v16 = vld [vmem:[%s10114_s1 + $0x918] sm:$0xff] }
 0x103   : > { %v3286_v28 = vadd.f32 %v3285_v18, %v3284_v26  ;;  %2220 = vmatprep.mubr.f32.mxu0 %v618_v38  ;;  %5190 = vmatpush1.bf16.msra.mxu0 %v5189_v32  ;;  %v666_v18 = vld [vmem:[%s10114_s1 + $0x5d8] sm:$0xff]  ;;  %v2921_v26 = vmul.f32 %v5759_v1, %v5759_v1  ;;  %v769_v22 = vld [vmem:[%s10114_s1 + $0x910] sm:$0xff]  ;;  %v440_v38 = vld [vmem:[%s5942_s24 + $0x6c8] sm:$0xff] }
 0x104   : > { %1341 = vmatmul.mubr.f32.gmra.mrb[24].mxu1 %v673_v61  ;;  %5191 = vmatprep.subr.bf16.mxu0 %v5893_v2  ;;  %v5760_v32 = vld [vmem:[%s5942_s24 + $0x418] sm:$0xff]  ;;  %v441_v45 = vld [vmem:[%s5942_s24 + $0x6d0] sm:$0xff] }
 0x105   : > { %1345 = vmatprep.mubr.f32.mxu1 %v690_v3  ;;  %5013 = vmatpush1.bf16.msra.mxu1 %v5012_v58  ;;  %v3288_v63 = vadd.f32 %v3287_v27, %v3286_v28  ;;  %v5195_v3 = vpack.c.bf16 %v434_v55, %v433_v53  ;;  %v5201_v28 = vpack.c.bf16 %v438_v21, %v437_v37  ;;  %v682_v49 = vld [vmem:[%s10114_s1 + $0x658] sm:$0xff]  ;;  %v3307_v41 = vsel %vm10118_vm0, %v2921_v26, 0.0  ;;  %v5763_v55 = vld [vmem:[%s5942_s24 + $0x430] sm:$0xff] }
 0x106   : > { %5014 = vmatprep.subr.bf16.mxu1 %v5893_v2  ;;  %2221 = vmatmul.mubr.f32.gmra.mrb[16].mxu0 %v617_v9  ;;  %v5762_v9 = vld [vmem:[%s5942_s24 + $0x428] sm:$0xff]  ;;  %v801_v57 = vld [vmem:[%s10114_s1 + $0xa10] sm:$0xff] }
 0x107   : > { %v3290_v29 = vadd.f32 %v3289_v36, %v3288_v63  ;;  %2225 = vmatprep.mubr.f32.mxu0 %v634_v6  ;;  %5193 = vmatpush1.bf16.msra.mxu0 %v5192_v33  ;;  %v439_v36 = vld [vmem:[%s5942_s24 + $0x6c0] sm:$0xff]  ;;  %v785_v63 = vld [vmem:[%s10114_s1 + $0x990] sm:$0xff]  ;;  %v698_v33 = vld [vmem:[%s10114_s1 + $0x6d8] sm:$0xff] }
 0x108   : > { %1346 = vmatmul.mubr.f32.gmra.mrb[26].mxu1 %v689_v15  ;;  %5194 = vmatprep.subr.bf16.mxu0 %v5893_v2  ;;  %v5204_v14 = vpack.c.bf16 %v440_v38, %v439_v36  ;;  %v817_v12 = vld [vmem:[%s10114_s1 + $0xa90] sm:$0xff] }
 0x109   : > { %1350 = vmatprep.mubr.f32.mxu1 %v706_v34  ;;  %5016 = vmatpush1.bf16.msra.mxu1 %v5015_v43  ;;  %v3292_v61 = vadd.f32 %v3291_v25, %v3290_v29  ;;  %v2920_v34 = vmul.f32 %v5758_v62, %v5758_v62  ;;  %v3303_v43 = vsel %vm10118_vm0, %v2919_v56, 0.0  ;;  %v681_v25 = vld [vmem:[%s10114_s1 + $0x650] sm:$0xff]  ;;  %v730_v62 = vld [vmem:[%s10114_s1 + $0x7d8] sm:$0xff] }
 0x10a   : > { %5017 = vmatprep.subr.bf16.mxu1 %v5893_v2  ;;  %2226 = vmatmul.mubr.f32.gmra.mrb[18].mxu0 %v633_v47  ;;  %v5764_v47 = vld [vmem:[%s5942_s24 + $0x438] sm:$0xff]  ;;  %v5767_v21 = vld [vmem:[%s5942_s24 + $0x450] sm:$0xff] }
 0x10b   : > { %v3294_v46 = vadd.f32 %v3293_v44, %v3292_v61  ;;  %2230 = vmatprep.mubr.f32.mxu0 %v650_v39  ;;  %5196 = vmatpush1.bf16.msra.mxu0 %v5195_v3  ;;  %v3305_v7 = vsel %vm10118_vm0, %v2920_v34, 0.0  ;;  %v442_v44 = vld [vmem:[%s5942_s24 + $0x6d8] sm:$0xff]  ;;  %v445_v34 = vld [vmem:[%s5942_s24 + $0x6f0] sm:$0xff] }
 0x10c   : > { %1351 = vmatmul.mubr.f32.gmra.mrb[28].mxu1 %v705_v10  ;;  %5197 = vmatprep.subr.bf16.mxu0 %v5893_v2  ;;  %v665_v10 = vld [vmem:[%s10114_s1 + $0x5d0] sm:$0xff]  ;;  %v714_v3 = vld [vmem:[%s10114_s1 + $0x758] sm:$0xff] }
 0x10d   : > { %1355 = vmatprep.mubr.f32.mxu1 %v722_v30  ;;  %5019 = vmatpush1.bf16.msra.mxu1 %v5018_v42  ;;  %v3296_v58 = vadd.f32 %v3295_v20, %v3294_v46  ;;  %v2922_v30 = vmul.f32 %v5760_v32, %v5760_v32  ;;  %v5761_v42 = vld [vmem:[%s5942_s24 + $0x420] sm:$0xff]  ;;  %v818_v20 = vld [vmem:[%s10114_s1 + $0xa98] sm:$0xff]  ;;  %v729_v26 = vld [vmem:[%s10114_s1 + $0x7d0] sm:$0xff] }
 0x10e   : > { %5020 = vmatprep.subr.bf16.mxu1 %v5893_v2  ;;  %2231 = vmatmul.mubr.f32.gmra.mrb[20].mxu0 %v649_v0  ;;  %v2923_v60 = vmul.f32 %v5761_v42, %v5761_v42  ;;  %v849_v38 = vld [vmem:[%s10114_s1 + $0xb90] sm:$0xff]  ;;  %v866_v42 = vld [vmem:[%s10114_s1 + $0xc18] sm:$0xff] }
 0x10f   : > { %v3298_v15 = vadd.f32 %v3297_v24, %v3296_v58  ;;  %2235 = vmatprep.mubr.f32.mxu0 %v666_v18  ;;  %5199 = vmatpush1.bf16.msra.mxu0 %v5198_v52  ;;  %v3309_v29 = vsel %vm10118_vm0, %v2922_v30, 0.0  ;;  %v444_v24 = vld [vmem:[%s5942_s24 + $0x6e8] sm:$0xff]  ;;  %v2927_v58 = vmul.f32 %v5765_v48, %v5765_v48 }
 0x110   : > { %1356 = vmatmul.mubr.f32.gmra.mrb[30].mxu1 %v721_v50  ;;  %5200 = vmatprep.subr.bf16.mxu0 %v5893_v2  ;;  %v802_v50 = vld [vmem:[%s10114_s1 + $0xa18] sm:$0xff]  ;;  %v3311_v53 = vsel %vm10118_vm0, %v2923_v60, 0.0 }
 0x111   : > { %1360 = vmatprep.mubr.f32.mxu1 %v738_v54  ;;  %5022 = vmatpush1.bf16.msra.mxu1 %v5021_v11  ;;  %v3300_v35 = vadd.f32 %v3299_v23, %v3298_v15  ;;  %v2924_v54 = vmul.f32 %v5762_v9, %v5762_v9  ;;  %v2925_v11 = vmul.f32 %v5763_v55, %v5763_v55  ;;  %v713_v23 = vld [vmem:[%s10114_s1 + $0x750] sm:$0xff]  ;;  %v3319_v37 = vsel %vm10118_vm0, %v2927_v58, 0.0 }
 0x112   : > { %5023 = vmatprep.subr.bf16.mxu1 %v5893_v2  ;;  %2236 = vmatmul.mubr.f32.gmra.mrb[22].mxu0 %v665_v10  ;;  %v5210_v15 = vpack.c.bf16 %v444_v24, %v443_v4  ;;  %v5774_v4 = vld [vmem:[%s5942_s24 + $0x488] sm:$0xff]  ;;  %v5775_v58 = vld [vmem:[%s5942_s24 + $0x490] sm:$0xff] }
 0x113   : > { %v3302_v27 = vadd.f32 %v3301_v51, %v3300_v35  ;;  %2240 = vmatprep.mubr.f32.mxu0 %v682_v49  ;;  %5202 = vmatpush1.bf16.msra.mxu0 %v5201_v28  ;;  %v3313_v46 = vsel %vm10118_vm0, %v2924_v54, 0.0  ;;  %v3315_v8 = vsel %vm10118_vm0, %v2925_v11, 0.0  ;;  %v446_v51 = vld [vmem:[%s5942_s24 + $0x6f8] sm:$0xff]  ;;  %v2929_v35 = vmul.f32 %v5767_v21, %v5767_v21  ;;  %v5769_v49 = vld [vmem:[%s5942_s24 + $0x460] sm:$0xff]  ;;  %v865_v54 = vld [vmem:[%s10114_s1 + $0xc10] sm:$0xff] }
 0x114   : > { %1361 = vmatmul.mubr.f32.gmra.mrb[32].mxu1 %v737_v31  ;;  %5203 = vmatprep.subr.bf16.mxu0 %v5893_v2  ;;  %v5207_v31 = vpack.c.bf16 %v442_v44, %v441_v45  ;;  %v2931_v36 = vmul.f32 %v5769_v49, %v5769_v49  ;;  %v761_v45 = vld [vmem:[%s10114_s1 + $0x8d0] sm:$0xff]  ;;  %v882_v44 = vld [vmem:[%s10114_s1 + $0xc98] sm:$0xff]  ;;  %v2936_v24 = vmul.f32 %v5774_v4, %v5774_v4 }
 0x115   : > { %1365 = vmatprep.mubr.f32.mxu1 %v754_v59  ;;  %v3304_v40 = vadd.f32 %v3303_v43, %v3302_v27  ;;  %v2926_v59 = vmul.f32 %v5764_v47, %v5764_v47  ;;  %v833_v43 = vld [vmem:[%s10114_s1 + $0xb10] sm:$0xff]  ;;  %v5213_v27 = vpack.c.bf16 %v446_v51, %v445_v34  ;;  %v3323_v30 = vsel %vm10118_vm0, %v2929_v35, 0.0  ;;  %v778_v11 = vld [vmem:[%s10114_s1 + $0x958] sm:$0xff] }
 0x116   : > { %2241 = vmatmul.mubr.f32.gmra.mrb[24].mxu0 %v681_v25  ;;  %v762_v25 = vld [vmem:[%s10114_s1 + $0x8d8] sm:$0xff]  ;;  %v777_v47 = vld [vmem:[%s10114_s1 + $0x950] sm:$0xff] }
 0x117   : > { %v3306_v17 = vadd.f32 %v3305_v7, %v3304_v40  ;;  %2245 = vmatprep.mubr.f32.mxu0 %v698_v33  ;;  %5205 = vmatpush1.bf16.msra.mxu0 %v5204_v14  ;;  %v3317_v0 = vsel %vm10118_vm0, %v2926_v59, 0.0  ;;  %v746_v7 = vld [vmem:[%s10114_s1 + $0x858] sm:$0xff]  ;;  %v3327_v14 = vsel %vm10118_vm0, %v2931_v36, 0.0  ;;  %v913_v21 = vld [vmem:[%s10114_s1 + $0xd90] sm:$0xff] }
 0x118   : > { %1366 = vmatmul.mubr.f32.gmra.mrb[34].mxu1 %v753_v13  ;;  %5206 = vmatprep.subr.bf16.mxu0 %v5893_v2  ;;  %v834_v13 = vld [vmem:[%s10114_s1 + $0xb18] sm:$0xff]  ;;  %v825_v36 = vld [vmem:[%s10114_s1 + $0xad0] sm:$0xff] }
 0x119   : > { %1370 = vmatprep.mubr.f32.mxu1 %v770_v16  ;;  %v3308_v6 = vadd.f32 %v3307_v41, %v3306_v17  ;;  %v5766_v16 = vld [vmem:[%s5942_s24 + $0x448] sm:$0xff]  ;;  %v745_v41 = vld [vmem:[%s10114_s1 + $0x850] sm:$0xff]  ;;  %v898_v59 = vld [vmem:[%s10114_s1 + $0xd18] sm:$0xff] }
 0x11a   : > { %2246 = vmatmul.mubr.f32.gmra.mrb[26].mxu0 %v697_v5  ;;  %v2928_v52 = vmul.f32 %v5766_v16, %v5766_v16  ;;  %v5773_v5 = vld [vmem:[%s5942_s24 + $0x480] sm:$0xff]  ;;  %v5776_v16 = vld [vmem:[%s5942_s24 + $0x498] sm:$0xff] }
 0x11b   : > { %v3310_v61 = vadd.f32 %v3309_v29, %v3308_v6  ;;  %2250 = vmatprep.mubr.f32.mxu0 %v714_v3  ;;  %5208 = vmatpush1.bf16.msra.mxu0 %v5207_v31  ;;  %v5771_v29 = vld [vmem:[%s5942_s24 + $0x470] sm:$0xff] }
 0x11c   : > { %1371 = vmatmul.mubr.f32.gmra.mrb[36].mxu1 %v769_v22  ;;  %5209 = vmatprep.subr.bf16.mxu0 %v5893_v2  ;;  %v850_v22 = vld [vmem:[%s10114_s1 + $0xb98] sm:$0xff]  ;;  %v3321_v10 = vsel %vm10118_vm0, %v2928_v52, 0.0  ;;  %v2933_v9 = vmul.f32 %v5771_v29, %v5771_v29  ;;  %v881_v31 = vld [vmem:[%s10114_s1 + $0xc90] sm:$0xff]  ;;  %v2938_v52 = vmul.f32 %v5776_v16, %v5776_v16 }
 0x11d   : > { %1375 = vmatprep.mubr.f32.mxu1 %v786_v19  ;;  %v3312_v39 = vadd.f32 %v3311_v53, %v3310_v61  ;;  %v5768_v19 = vld [vmem:[%s5942_s24 + $0x458] sm:$0xff] }
 0x11e   : > { %2251 = vmatmul.mubr.f32.gmra.mrb[28].mxu0 %v713_v23  ;;  %v2930_v28 = vmul.f32 %v5768_v19, %v5768_v19  ;;  %v5772_v53 = vld [vmem:[%s5942_s24 + $0x478] sm:$0xff]  ;;  %v3331_v61 = vsel %vm10118_vm0, %v2933_v9, 0.0  ;;  %v841_v9 = vld [vmem:[%s10114_s1 + $0xb50] sm:$0xff] }
 0x11f   : > { %v3314_v56 = vadd.f32 %v3313_v46, %v3312_v39  ;;  %2255 = vmatprep.mubr.f32.mxu0 %v730_v62  ;;  %5211 = vmatpush1.bf16.msra.mxu0 %v5210_v15  ;;  %v2934_v55 = vmul.f32 %v5772_v53, %v5772_v53  ;;  %v794_v39 = vld [vmem:[%s10114_s1 + $0x9d8] sm:$0xff] }
 0x120   : > { %1376 = vmatmul.mubr.f32.gmra.mrb[38].mxu1 %v785_v63  ;;  %5212 = vmatprep.subr.bf16.mxu0 %v5893_v2  ;;  %v3325_v60 = vsel %vm10118_vm0, %v2930_v28, 0.0  ;;  %v5770_v63 = vld [vmem:[%s5942_s24 + $0x468] sm:$0xff]  ;;  %v914_v15 = vld [vmem:[%s10114_s1 + $0xd98] sm:$0xff] }
 0x121   : > { %1380 = vmatprep.mubr.f32.mxu1 %v802_v50  ;;  %v3316_v18 = vadd.f32 %v3315_v8, %v3314_v56  ;;  %v2932_v17 = vmul.f32 %v5770_v63, %v5770_v63  ;;  %v3333_v3 = vsel %vm10118_vm0, %v2934_v55, 0.0  ;;  %v897_v56 = vld [vmem:[%s10114_s1 + $0xd10] sm:$0xff]  ;;  %v810_v62 = vld [vmem:[%s10114_s1 + $0xa58] sm:$0xff] }
 0x122   : > { %2256 = vmatmul.mubr.f32.gmra.mrb[30].mxu0 %v729_v26  ;;  %v3341_v26 = vsel %vm10118_vm0, %v2938_v52, 0.0 }
 0x123   : > { %v3318_v1 = vadd.f32 %v3317_v0, %v3316_v18  ;;  %2260 = vmatprep.mubr.f32.mxu0 %v746_v7  ;;  %5214 = vmatpush1.bf16.msra.mxu0 %v5213_v27  ;;  %v3329_v6 = vsel %vm10118_vm0, %v2932_v17, 0.0  ;;  %v3337_v0 = vsel %vm10118_vm0, %v2936_v24, 0.0  ;;  %v5777_v18 = vld [vmem:[%s5942_s24 + $0x4a0] sm:$0xff]  ;;  %v5779_v7 = vld [vmem:[%s5942_s24 + $0x4b0] sm:$0xff] }
 0x124   : > { %1381 = vmatmul.mubr.f32.gmra.mrb[40].mxu1 %v801_v57  ;;  %5215 = vmatprep.subr.bf16.mxu0 %v5893_v2 }
 0x125   : > { %1385 = vmatprep.mubr.f32.mxu1 %v818_v20  ;;  %v3320_v32 = vadd.f32 %v3319_v37, %v3318_v1  ;;  %v2935_v20 = vmul.f32 %v5773_v5, %v5773_v5  ;;  %v2939_v37 = vmul.f32 %v5777_v18, %v5777_v18  ;;  %v930_v1 = vld [vmem:[%s10114_s1 + $0xe18] sm:$0xff]  ;;  %v5788_v18 = vld [vmem:[%s5942_s24 + $0x300] sm:$0xff] }
 0x126   : > { %2261 = vmatmul.mubr.f32.gmra.mrb[32].mxu0 %v745_v41  ;;  %v5780_v41 = vld [vmem:[%s5942_s24 + $0x4b8] sm:$0xff] }
 0x127   : > { %v3322_v40 = vadd.f32 %v3321_v10, %v3320_v32  ;;  %2265 = vmatprep.mubr.f32.mxu0 %v762_v25  ;;  %v3335_v48 = vsel %vm10118_vm0, %v2935_v20, 0.0  ;;  %v826_v10 = vld [vmem:[%s10114_s1 + $0xad8] sm:$0xff]  ;;  %v3343_v28 = vsel %vm10118_vm0, %v2939_v37, 0.0  ;;  %v2941_v32 = vmul.f32 %v5779_v7, %v5779_v7  ;;  %v5781_v25 = vld [vmem:[%s5942_s24 + $0x4c0] sm:$0xff]  ;;  %v857_v20 = vld [vmem:[%s10114_s1 + $0xbd0] sm:$0xff] }
 0x128   : > { %1386 = vmatmul.mubr.f32.gmra.mrb[42].mxu1 %v817_v12  ;;  %v2937_v12 = vmul.f32 %v5775_v58, %v5775_v58  ;;  %v5789_v37 = vld [vmem:[%s5942_s24 + $0x308] sm:$0xff]  ;;  %v5791_v7 = vld [vmem:[%s5942_s24 + $0x500] sm:$0xff] }
 0x129   : > { %1390 = vmatprep.mubr.f32.mxu1 %v834_v13  ;;  %v3324_v50 = vadd.f32 %v3323_v30, %v3322_v40  ;;  %v793_v13 = vld [vmem:[%s10114_s1 + $0x9d0] sm:$0xff]  ;;  %v3347_v17 = vsel %vm10118_vm0, %v2941_v32, 0.0  ;;  %v2951_v32 = vmul.f32 %v5791_v7, %v5791_v7 }
 0x12a   : > { %2266 = vmatmul.mubr.f32.gmra.mrb[34].mxu0 %v761_v45  ;;  %v3339_v51 = vsel %vm10118_vm0, %v2937_v12, 0.0  ;;  %v929_v30 = vld [vmem:[%s10114_s1 + $0xe10] sm:$0xff]  ;;  %v5782_v45 = vld [vmem:[%s5942_s24 + $0x4c8] sm:$0xff] }
 0x12b   : > { %v3326_v33 = vadd.f32 %v3325_v60, %v3324_v50  ;;  %2270 = vmatprep.mubr.f32.mxu0 %v778_v11  ;;  %v842_v60 = vld [vmem:[%s10114_s1 + $0xb58] sm:$0xff]  ;;  %v2943_v50 = vmul.f32 %v5781_v25, %v5781_v25  ;;  %v5783_v11 = vld [vmem:[%s5942_s24 + $0x4d0] sm:$0xff] }
 0x12c   : > { %1391 = vmatmul.mubr.f32.gmra.mrb[44].mxu1 %v833_v43  ;;  %v809_v43 = vld [vmem:[%s10114_s1 + $0xa50] sm:$0xff]  ;;  %v922_v25 = vld [vmem:[%s10114_s1 + $0xdd8] sm:$0xff] }
 0x12d   : > { %1395 = vmatprep.mubr.f32.mxu1 %v850_v22  ;;  %v3328_v57 = vadd.f32 %v3327_v14, %v3326_v33  ;;  %v5778_v22 = vld [vmem:[%s5942_s24 + $0x4a8] sm:$0xff]  ;;  %v945_v14 = vld [vmem:[%s10114_s1 + $0xe90] sm:$0xff]  ;;  %v3351_v55 = vsel %vm10118_vm0, %v2943_v50, 0.0 }
 0x12e   : > { %2271 = vmatmul.mubr.f32.gmra.mrb[36].mxu0 %v777_v47  ;;  %v2940_v27 = vmul.f32 %v5778_v22, %v5778_v22  ;;  %v5784_v47 = vld [vmem:[%s5942_s24 + $0x4d8] sm:$0xff]  ;;  %v873_v12 = vld [vmem:[%s10114_s1 + $0xc50] sm:$0xff] }
 0x12f   : > { %v3330_v46 = vadd.f32 %v3329_v6, %v3328_v57  ;;  %2275 = vmatprep.mubr.f32.mxu0 %v794_v39  ;;  %v858_v6 = vld [vmem:[%s10114_s1 + $0xbd8] sm:$0xff]  ;;  %v2945_v57 = vmul.f32 %v5783_v11, %v5783_v11  ;;  %v5785_v39 = vld [vmem:[%s5942_s24 + $0x4e0] sm:$0xff] }
 0x130   : > { %1396 = vmatmul.mubr.f32.gmra.mrb[46].mxu1 %v849_v38  ;;  %v946_v38 = vld [vmem:[%s10114_s1 + $0xe98] sm:$0xff]  ;;  %v3345_v40 = vsel %vm10118_vm0, %v2940_v27, 0.0 }
 0x131   : > { %1400 = vmatprep.mubr.f32.mxu1 %v866_v42  ;;  %v3332_v8 = vadd.f32 %v3331_v61, %v3330_v46  ;;  %v2942_v42 = vmul.f32 %v5780_v41, %v5780_v41  ;;  %v961_v61 = vld [vmem:[%s10114_s1 + $0xf10] sm:$0xff]  ;;  %v3355_v24 = vsel %vm10118_vm0, %v2945_v57, 0.0  ;;  %v906_v27 = vld [vmem:[%s10114_s1 + $0xd58] sm:$0xff] }
 0x132   : > { %2276 = vmatmul.mubr.f32.gmra.mrb[38].mxu0 %v793_v13  ;;  %v5786_v13 = vld [vmem:[%s5942_s24 + $0x4e8] sm:$0xff]  ;;  %v5793_v41 = vld [vmem:[%s5942_s24 + $0x318] sm:$0xff] }
 0x133   : > { %v3334_v23 = vadd.f32 %v3333_v3, %v3332_v8  ;;  %2280 = vmatprep.mubr.f32.mxu0 %v810_v62  ;;  %v3349_v33 = vsel %vm10118_vm0, %v2942_v42, 0.0  ;;  %v874_v3 = vld [vmem:[%s10114_s1 + $0xc58] sm:$0xff]  ;;  %v2947_v8 = vmul.f32 %v5785_v39, %v5785_v39  ;;  %v5787_v62 = vld [vmem:[%s5942_s24 + $0x4f0] sm:$0xff] }
 0x134   : > { %1401 = vmatmul.mubr.f32.gmra.mrb[48].mxu1 %v865_v54  ;;  %v962_v54 = vld [vmem:[%s10114_s1 + $0xf18] sm:$0xff]  ;;  %v5800_v39 = vld [vmem:[%s5942_s24 + $0x330] sm:$0xff] }
 0x135   : > { %1405 = vmatprep.mubr.f32.mxu1 %v882_v44  ;;  %v3336_v34 = vadd.f32 %v3335_v48, %v3334_v23  ;;  %v2944_v44 = vmul.f32 %v5782_v45, %v5782_v45  ;;  %v977_v48 = vld [vmem:[%s10114_s1 + $0xf90] sm:$0xff]  ;;  %v3359_v52 = vsel %vm10118_vm0, %v2947_v8, 0.0  ;;  %v5798_v57 = vld [vmem:[%s5942_s24 + $0x518] sm:$0xff] }
 0x136   : > { %2281 = vmatmul.mubr.f32.gmra.mrb[40].mxu0 %v809_v43  ;;  %v889_v43 = vld [vmem:[%s10114_s1 + $0xcd0] sm:$0xff]  ;;  %v5801_v8 = vld [vmem:[%s5942_s24 + $0x338] sm:$0xff] }
 0x137   : > { %v3338_v35 = vadd.f32 %v3337_v0, %v3336_v34  ;;  %2285 = vmatprep.mubr.f32.mxu0 %v826_v10  ;;  %v3353_v46 = vsel %vm10118_vm0, %v2944_v44, 0.0  ;;  %v890_v0 = vld [vmem:[%s10114_s1 + $0xcd8] sm:$0xff]  ;;  %v2949_v34 = vmul.f32 %v5787_v62, %v5787_v62  ;;  %v500_v10 = vld [vmem:[%s10114_s1 + $0xa8] sm:$0xff]  ;;  %v921_v45 = vld [vmem:[%s10114_s1 + $0xdd0] sm:$0xff] }
 0x138   : > { %1406 = vmatmul.mubr.f32.gmra.mrb[50].mxu1 %v881_v31  ;;  %v978_v31 = vld [vmem:[%s10114_s1 + $0xf98] sm:$0xff]  ;;  %v532_v44 = vld [vmem:[%s10114_s1 + $0x1a8] sm:$0xff] }
 0x139   : > { %1410 = vmatprep.mubr.f32.mxu1 %v898_v59  ;;  %v3340_v19 = vadd.f32 %v3339_v51, %v3338_v35  ;;  %v2946_v59 = vmul.f32 %v5784_v47, %v5784_v47  ;;  %v483_v51 = vld [vmem:[%s10114_s1 + $0x20] sm:$0xff] }
 0x13a   : > { %2286 = vmatmul.mubr.f32.gmra.mrb[42].mxu0 %v825_v36  ;;  %v905_v36 = vld [vmem:[%s10114_s1 + $0xd50] sm:$0xff] }
 0x13b   : > { %v3342_v49 = vadd.f32 %v3341_v26, %v3340_v19  ;;  %2290 = vmatprep.mubr.f32.mxu0 %v842_v60  ;;  %v3357_v23 = vsel %vm10118_vm0, %v2946_v59, 0.0  ;;  %v5790_v26 = vld [vmem:[%s5942_s24 + $0x4f8] sm:$0xff]  ;;  %v531_v59 = vld [vmem:[%s10114_s1 + $0x1a0] sm:$0xff] }
 0x13c   : > { %1411 = vmatmul.mubr.f32.gmra.mrb[52].mxu1 %v897_v56  ;;  %v484_v56 = vld [vmem:[%s10114_s1 + $0x28] sm:$0xff]  ;;  %v2950_v22 = vmul.f32 %v5790_v26, %v5790_v26  ;;  %v970_v26 = vld [vmem:[%s10114_s1 + $0xf58] sm:$0xff] }
 0x13d   : > { %1415 = vmatprep.mubr.f32.mxu1 %v914_v15  ;;  %v3344_v63 = vadd.f32 %v3343_v28, %v3342_v49  ;;  %v2948_v15 = vmul.f32 %v5786_v13, %v5786_v13  ;;  %v3363_v28 = vsel %vm10118_vm0, %v2949_v34, 0.0  ;;  %v953_v34 = vld [vmem:[%s10114_s1 + $0xed0] sm:$0xff] }
 0x13e   : > { %2291 = vmatmul.mubr.f32.gmra.mrb[44].mxu0 %v841_v9  ;;  %v3365_v60 = vsel %vm10118_vm0, %v2950_v22, 0.0 }
 0x13f   : > { %v3346_v29 = vadd.f32 %v3345_v40, %v3344_v63  ;;  %2295 = vmatprep.mubr.f32.mxu0 %v858_v6  ;;  %v5792_v40 = vld [vmem:[%s5942_s24 + $0x310] sm:$0xff]  ;;  %v5794_v63 = vld [vmem:[%s5942_s24 + $0x508] sm:$0xff]  ;;  %v5796_v6 = vld [vmem:[%s5942_s24 + $0x320] sm:$0xff] }
 0x140   : > { %1416 = vmatmul.mubr.f32.gmra.mrb[54].mxu1 %v913_v21  ;;  %v5024_v21 = vpack.c.bf16 %v5789_v37, %v5788_v18  ;;  %v5027_v42 = vpack.c.bf16 %v5793_v41, %v5792_v40  ;;  %v5804_v18 = vld [vmem:[%s5942_s24 + $0x340] sm:$0xff]  ;;  %v5805_v37 = vld [vmem:[%s5942_s24 + $0x348] sm:$0xff] }
 0x141   : > { %1420 = vmatprep.mubr.f32.mxu1 %v930_v1  ;;  %v3348_v53 = vadd.f32 %v3347_v17, %v3346_v29  ;;  %v3361_v1 = vsel %vm10118_vm0, %v2948_v15, 0.0  ;;  %v2952_v17 = vmul.f32 %v5794_v63, %v5794_v63  ;;  %v5795_v29 = vld [vmem:[%s5942_s24 + $0x510] sm:$0xff]  ;;  %v5810_v41 = vld [vmem:[%s5942_s24 + $0x548] sm:$0xff] }
 0x142   : > { %2296 = vmatmul.mubr.f32.gmra.mrb[46].mxu0 %v857_v20  ;;  %v2953_v9 = vmul.f32 %v5795_v29, %v5795_v29 }
 0x143   : > { %v3350_v5 = vadd.f32 %v3349_v33, %v3348_v53  ;;  %2300 = vmatprep.mubr.f32.mxu0 %v874_v3  ;;  %v5797_v53 = vld [vmem:[%s5942_s24 + $0x328] sm:$0xff]  ;;  %v3369_v11 = vsel %vm10118_vm0, %v2952_v17, 0.0 }
 0x144   : > { %1421 = vmatmul.mubr.f32.gmra.mrb[56].mxu1 %v929_v30  ;;  %v499_v30 = vld [vmem:[%s10114_s1 + $0xa0] sm:$0xff] }
 0x145   : > { %1425 = vmatprep.mubr.f32.mxu1 %v946_v38  ;;  %v3352_v4 = vadd.f32 %v3351_v55, %v3350_v5  ;;  %v516_v38 = vld [vmem:[%s10114_s1 + $0x128] sm:$0xff]  ;;  %v5030_v55 = vpack.c.bf16 %v5797_v53, %v5796_v6  ;;  %v938_v5 = vld [vmem:[%s10114_s1 + $0xe58] sm:$0xff] }
 0x146   : > { %2301 = vmatmul.mubr.f32.gmra.mrb[48].mxu0 %v873_v12  ;;  %v5802_v12 = vld [vmem:[%s5942_s24 + $0x528] sm:$0xff]  ;;  %v5814_v53 = vld [vmem:[%s5942_s24 + $0x558] sm:$0xff] }
 0x147   : > { %v3354_v58 = vadd.f32 %v3353_v46, %v3352_v4  ;;  %2305 = vmatprep.mubr.f32.mxu0 %v890_v0  ;;  %v5799_v46 = vld [vmem:[%s5942_s24 + $0x520] sm:$0xff]  ;;  %v937_v4 = vld [vmem:[%s10114_s1 + $0xe50] sm:$0xff] }
 0x148   : > { %1426 = vmatmul.mubr.f32.gmra.mrb[58].mxu1 %v945_v14  ;;  %v3367_v14 = vsel %vm10118_vm0, %v2951_v32, 0.0  ;;  %v2955_v47 = vmul.f32 %v5799_v46, %v5799_v46  ;;  %v5803_v0 = vld [vmem:[%s5942_s24 + $0x530] sm:$0xff] }
 0x149   : > { %1430 = vmatprep.mubr.f32.mxu1 %v962_v54  ;;  %v3356_v16 = vadd.f32 %v3355_v24, %v3354_v58  ;;  %v515_v54 = vld [vmem:[%s10114_s1 + $0x120] sm:$0xff]  ;;  %v548_v24 = vld [vmem:[%s10114_s1 + $0x228] sm:$0xff]  ;;  %v969_v32 = vld [vmem:[%s10114_s1 + $0xf50] sm:$0xff] }
 0x14a   : > { %2306 = vmatmul.mubr.f32.gmra.mrb[50].mxu0 %v889_v43  ;;  %v3375_v15 = vsel %vm10118_vm0, %v2955_v47, 0.0  ;;  %v5806_v43 = vld [vmem:[%s5942_s24 + $0x538] sm:$0xff]  ;;  %v595_v47 = vld [vmem:[%s10114_s1 + $0x3a0] sm:$0xff] }
 0x14b   : > { %v3358_v35 = vadd.f32 %v3357_v23, %v3356_v16  ;;  %2310 = vmatprep.mubr.f32.mxu0 %v906_v27  ;;  %v954_v23 = vld [vmem:[%s10114_s1 + $0xed8] sm:$0xff]  ;;  %v2957_v16 = vmul.f32 %v5803_v0, %v5803_v0 }
 0x14c   : > { %1431 = vmatmul.mubr.f32.gmra.mrb[60].mxu1 %v961_v61  ;;  %v2954_v61 = vmul.f32 %v5798_v57, %v5798_v57  ;;  %v7628_v57 = vld [vmem:[%s5942_s24 + $0x700] sm:$0xff] }
 0x14d   : > { %1435 = vmatprep.mubr.f32.mxu1 %v978_v31  ;;  %v3360_v19 = vadd.f32 %v3359_v52, %v3358_v35  ;;  %v3371_v31 = vsel %vm10118_vm0, %v2953_v9, 0.0  ;;  %v547_v52 = vld [vmem:[%s10114_s1 + $0x220] sm:$0xff]  ;;  %v3379_v27 = vsel %vm10118_vm0, %v2957_v16, 0.0  ;;  %v985_v9 = vld [vmem:[%s10114_s1 + $0xfd0] sm:$0xff] }
 0x14e   : > { %2311 = vmatmul.mubr.f32.gmra.mrb[52].mxu0 %v905_v36  ;;  %v3373_v58 = vsel %vm10118_vm0, %v2954_v61, 0.0  ;;  %v5809_v36 = vld [vmem:[%s5942_s24 + $0x358] sm:$0xff]  ;;  %v7631_v61 = vld [vmem:[%s5942_s24 + $0x708] sm:$0xff] }
 0x14f   : > { %v3362_v49 = vadd.f32 %v3361_v1, %v3360_v19  ;;  %2315 = vmatprep.mubr.f32.mxu0 %v922_v25  ;;  %v2958_v1 = vmul.f32 %v5806_v43, %v5806_v43  ;;  %v5811_v25 = vld [vmem:[%s5942_s24 + $0x550] sm:$0xff]  ;;  %v5820_v43 = vld [vmem:[%s5942_s24 + $0x578] sm:$0xff] }
 0x150   : > { %1436 = vmatmul.mubr.f32.gmra.mrb[62].mxu1 %v977_v48  ;;  %v5033_v48 = vpack.c.bf16 %v5801_v8, %v5800_v39  ;;  %v5816_v8 = vld [vmem:[%s5942_s24 + $0x568] sm:$0xff] }
 0x151   : > { %1505 = vmatprep.mubr.f32.mxu1 %v484_v56  ;;  %v3364_v50 = vadd.f32 %v3363_v28, %v3362_v49  ;;  %v2956_v56 = vmul.f32 %v5802_v12, %v5802_v12  ;;  %v563_v28 = vld [vmem:[%s10114_s1 + $0x2a0] sm:$0xff]  ;;  %v5808_v49 = vld [vmem:[%s5942_s24 + $0x350] sm:$0xff]  ;;  %v3381_v40 = vsel %vm10118_vm0, %v2958_v1, 0.0  ;;  %v2966_v1 = vmul.f32 %v5820_v43, %v5820_v43 }
 0x152   : > { %2316 = vmatmul.mubr.f32.gmra.mrb[54].mxu0 %v921_v45  ;;  %v5813_v45 = vld [vmem:[%s5942_s24 + $0x368] sm:$0xff]  ;;  %v7653_v12 = vld [vmem:[%s5942_s24 + $0x710] sm:$0xff] }
 0x153   : > { %v3366_v33 = vadd.f32 %v3365_v60, %v3364_v50  ;;  %2320 = vmatprep.mubr.f32.mxu0 %v938_v5  ;;  %v3377_v35 = vsel %vm10118_vm0, %v2956_v56, 0.0  ;;  %v986_v60 = vld [vmem:[%s10114_s1 + $0xfd8] sm:$0xff]  ;;  %v2961_v50 = vmul.f32 %v5811_v25, %v5811_v25  ;;  %v540_v25 = vld [vmem:[%s10114_s1 + $0x1e8] sm:$0xff]  ;;  %v5833_v43 = vld [vmem:[%s5942_s24 + $0x3b0] sm:$0xff] }
 0x154   : > { %1506 = vmatmul.mubr.f32.vlgmr.msra.gmra.mrb[0].mxu1 %v483_v51  ;;  %v564_v51 = vld [vmem:[%s10114_s1 + $0x2a8] sm:$0xff]  ;;  %v7656_v56 = vld [vmem:[%s5942_s24 + $0x718] sm:$0xff] }
 0x155   : > { %5025 = vmatpush1.bf16.msra.mxu1 %v5024_v21  ;;  %1510 = vmatprep.mubr.f32.mxu1 %v500_v10  ;;  %v3368_v20 = vadd.f32 %v3367_v14, %v3366_v33  ;;  %v5036_v21 = vpack.c.bf16 %v5805_v37, %v5804_v18  ;;  %v5807_v10 = vld [vmem:[%s5942_s24 + $0x540] sm:$0xff]  ;;  %v5219_v37 = vpack.c.bf16 %v7656_v56, %v7653_v12 }
 0x156   : > { %5026 = vmatprep.subr.bf16.mxu1 %v5893_v2  ;;  %2321 = vmatmul.mubr.f32.gmra.mrb[56].mxu0 %v937_v4  ;;  %v2959_v19 = vmul.f32 %v5807_v10, %v5807_v10  ;;  %v579_v14 = vld [vmem:[%s10114_s1 + $0x320] sm:$0xff]  ;;  %v5216_v4 = vpack.c.bf16 %v7631_v61, %v7628_v57 }
 0x157   : > { %v3370_v3 = vadd.f32 %v3369_v11, %v3368_v20  ;;  %2325 = vmatprep.mubr.f32.mxu0 %v954_v23  ;;  %v5812_v33 = vld [vmem:[%s5942_s24 + $0x360] sm:$0xff]  ;;  %v492_v11 = vld [vmem:[%s10114_s1 + $0x68] sm:$0xff]  ;;  %v3387_v20 = vsel %vm10118_vm0, %v2961_v50, 0.0  ;;  %v5817_v23 = vld [vmem:[%s5942_s24 + $0x370] sm:$0xff] }
 0x158   : > { %1511 = vmatmul.mubr.f32.gmra.mrb[2].mxu1 %v499_v30  ;;  %v580_v30 = vld [vmem:[%s10114_s1 + $0x328] sm:$0xff]  ;;  %v3383_v17 = vsel %vm10118_vm0, %v2959_v19, 0.0  ;;  %v507_v18 = vld [vmem:[%s10114_s1 + $0xe0] sm:$0xff]  ;;  %v7709_v50 = vld [vmem:[%s5942_s24 + $0x730] sm:$0xff] }
 0x159   : > { %1515 = vmatprep.mubr.f32.mxu1 %v516_v38  ;;  %5028 = vmatpush1.bf16.msra.mxu1 %v5027_v42  ;;  %v3372_v13 = vadd.f32 %v3371_v31, %v3370_v3  ;;  %v5039_v38 = vpack.c.bf16 %v5809_v36, %v5808_v49  ;;  %v2960_v42 = vmul.f32 %v5810_v41, %v5810_v41  ;;  %v5815_v31 = vld [vmem:[%s5942_s24 + $0x560] sm:$0xff]  ;;  %v5822_v19 = vld [vmem:[%s5942_s24 + $0x388] sm:$0xff] }
 0x15a   : > { %5029 = vmatprep.subr.bf16.mxu1 %v5893_v2  ;;  %2326 = vmatmul.mubr.f32.gmra.mrb[58].mxu0 %v953_v34  ;;  %v2963_v46 = vmul.f32 %v5815_v31, %v5815_v31  ;;  %v491_v3 = vld [vmem:[%s10114_s1 + $0x60] sm:$0xff] }
 0x15b   : > { %v3374_v62 = vadd.f32 %v3373_v58, %v3372_v13  ;;  %2330 = vmatprep.mubr.f32.mxu0 %v970_v26  ;;  %v3385_v6 = vsel %vm10118_vm0, %v2960_v42, 0.0  ;;  %v508_v58 = vld [vmem:[%s10114_s1 + $0xe8] sm:$0xff]  ;;  %v5818_v13 = vld [vmem:[%s5942_s24 + $0x378] sm:$0xff]  ;;  %v611_v34 = vld [vmem:[%s10114_s1 + $0x420] sm:$0xff] }
 0x15c   : > { %1516 = vmatmul.mubr.f32.gmra.mrb[4].mxu1 %v515_v54  ;;  %v596_v54 = vld [vmem:[%s10114_s1 + $0x3a8] sm:$0xff]  ;;  %v3391_v16 = vsel %vm10118_vm0, %v2963_v46, 0.0  ;;  %v5821_v10 = vld [vmem:[%s5942_s24 + $0x380] sm:$0xff]  ;;  %v5828_v46 = vld [vmem:[%s5942_s24 + $0x598] sm:$0xff] }
 0x15d   : > { %1520 = vmatprep.mubr.f32.mxu1 %v532_v44  ;;  %5031 = vmatpush1.bf16.msra.mxu1 %v5030_v55  ;;  %v3376_v22 = vadd.f32 %v3375_v15, %v3374_v62  ;;  %v5042_v44 = vpack.c.bf16 %v5813_v45, %v5812_v33  ;;  %v2962_v55 = vmul.f32 %v5814_v53, %v5814_v53  ;;  %v524_v26 = vld [vmem:[%s10114_s1 + $0x168] sm:$0xff]  ;;  %v627_v36 = vld [vmem:[%s10114_s1 + $0x4a0] sm:$0xff] }
 0x15e   : > { %5032 = vmatprep.subr.bf16.mxu1 %v5893_v2  ;;  %2331 = vmatmul.mubr.f32.gmra.mrb[60].mxu0 %v969_v32  ;;  %v5045_v15 = vpack.c.bf16 %v5818_v13, %v5817_v23  ;;  %v644_v42 = vld [vmem:[%s10114_s1 + $0x528] sm:$0xff]  ;;  %v643_v53 = vld [vmem:[%s10114_s1 + $0x520] sm:$0xff] }
 0x15f   : > { %v3378_v7 = vadd.f32 %v3377_v35, %v3376_v22  ;;  %2335 = vmatprep.mubr.f32.mxu0 %v986_v60  ;;  %v3389_v39 = vsel %vm10118_vm0, %v2962_v55, 0.0  ;;  %v7681_v22 = vld [vmem:[%s5942_s24 + $0x720] sm:$0xff]  ;;  %v3397_v60 = vsel %vm10118_vm0, %v2966_v1, 0.0  ;;  %v5834_v1 = vld [vmem:[%s5942_s24 + $0x3b8] sm:$0xff] }
 0x160   : > { %1521 = vmatmul.mubr.f32.gmra.mrb[6].mxu1 %v531_v59  ;;  %v5831_v23 = vld [vmem:[%s5942_s24 + $0x5a0] sm:$0xff] }
 0x161   : > { %1525 = vmatprep.mubr.f32.mxu1 %v548_v24  ;;  %5034 = vmatpush1.bf16.msra.mxu1 %v5033_v48  ;;  %v3380_v63 = vadd.f32 %v3379_v27, %v3378_v7  ;;  %v612_v24 = vld [vmem:[%s10114_s1 + $0x428] sm:$0xff]  ;;  %v2964_v48 = vmul.f32 %v5816_v8, %v5816_v8  ;;  %v2971_v13 = vmul.f32 %v5831_v23, %v5831_v23 }
 0x162   : > { %5035 = vmatprep.subr.bf16.mxu1 %v5893_v2  ;;  %2336 = vmatmul.mubr.f32.gmra.mrb[62].mxu0 %v985_v9  ;;  %v7684_v27 = vld [vmem:[%s5942_s24 + $0x728] sm:$0xff]  ;;  %v5826_v9 = vld [vmem:[%s5942_s24 + $0x398] sm:$0xff] }
 0x163   : > { %v3382_v29 = vadd.f32 %v3381_v40, %v3380_v63  ;;  %2405 = vmatprep.mubr.f32.mxu0 %v492_v11  ;;  %v3393_v35 = vsel %vm10118_vm0, %v2964_v48, 0.0  ;;  %v523_v40 = vld [vmem:[%s10114_s1 + $0x160] sm:$0xff]  ;;  %v5222_v41 = vpack.c.bf16 %v7684_v27, %v7681_v22  ;;  %v5824_v63 = vld [vmem:[%s5942_s24 + $0x588] sm:$0xff] }
 0x164   : > { %1526 = vmatmul.mubr.f32.gmra.mrb[8].mxu1 %v547_v52  ;;  %v5819_v52 = vld [vmem:[%s5942_s24 + $0x570] sm:$0xff]  ;;  %v539_v11 = vld [vmem:[%s10114_s1 + $0x1e0] sm:$0xff] }
 0x165   : > { %1530 = vmatprep.mubr.f32.mxu1 %v564_v51  ;;  %5037 = vmatpush1.bf16.msra.mxu1 %v5036_v21  ;;  %v3384_v5 = vadd.f32 %v3383_v17, %v3382_v29  ;;  %v2965_v62 = vmul.f32 %v5819_v52, %v5819_v52  ;;  %v628_v21 = vld [vmem:[%s10114_s1 + $0x4a8] sm:$0xff]  ;;  %v2968_v17 = vmul.f32 %v5824_v63, %v5824_v63  ;;  %v5825_v29 = vld [vmem:[%s5942_s24 + $0x390] sm:$0xff]  ;;  %v7793_v63 = vld [vmem:[%s5942_s24 + $0x760] sm:$0xff] }
 0x166   : > { %5038 = vmatprep.subr.bf16.mxu1 %v5893_v2  ;;  %2406 = vmatmul.mubr.f32.vlgmr.msra.gmra.mrb[0].mxu0 %v491_v3  ;;  %v7737_v3 = vld [vmem:[%s5942_s24 + $0x740] sm:$0xff] }
 0x167   : > { %v3386_v59 = vadd.f32 %v3385_v6, %v3384_v5  ;;  %5217 = vmatpush1.bf16.msra.mxu0 %v5216_v4  ;;  %2410 = vmatprep.mubr.f32.mxu0 %v508_v58  ;;  %v3395_v32 = vsel %vm10118_vm0, %v2965_v62, 0.0  ;;  %v3401_v31 = vsel %vm10118_vm0, %v2968_v17, 0.0  ;;  %v7740_v4 = vld [vmem:[%s5942_s24 + $0x748] sm:$0xff] }
 0x168   : > { %1531 = vmatmul.mubr.f32.gmra.mrb[10].mxu1 %v563_v28  ;;  %5218 = vmatprep.subr.bf16.mxu0 %v5893_v2  ;;  %v5048_v28 = vpack.c.bf16 %v5822_v19, %v5821_v10  ;;  %v5228_v52 = vpack.c.bf16 %v7740_v4, %v7737_v3  ;;  %v676_v62 = vld [vmem:[%s10114_s1 + $0x628] sm:$0xff]  ;;  %v3407_v19 = vsel %vm10118_vm0, %v2971_v13, 0.0  ;;  %v5843_v13 = vld [vmem:[%s5942_s24 + $0x5d0] sm:$0xff] }
 0x169   : > { %1535 = vmatprep.mubr.f32.mxu1 %v580_v30  ;;  %5040 = vmatpush1.bf16.msra.mxu1 %v5039_v38  ;;  %v3388_v0 = vadd.f32 %v3387_v20, %v3386_v59  ;;  %v5823_v30 = vld [vmem:[%s5942_s24 + $0x580] sm:$0xff]  ;;  %v660_v20 = vld [vmem:[%s10114_s1 + $0x5a8] sm:$0xff] }
 0x16a   : > { %5041 = vmatprep.subr.bf16.mxu1 %v5893_v2  ;;  %v2967_v49 = vmul.f32 %v5823_v30, %v5823_v30  ;;  %2411 = vmatmul.mubr.f32.gmra.mrb[2].mxu0 %v507_v18  ;;  %v556_v59 = vld [vmem:[%s10114_s1 + $0x268] sm:$0xff] }
 0x16b   : > { %v3390_v51 = vadd.f32 %v3389_v39, %v3388_v0  ;;  %2415 = vmatprep.mubr.f32.mxu0 %v524_v26  ;;  %5220 = vmatpush1.bf16.msra.mxu0 %v5219_v37  ;;  %v5830_v39 = vld [vmem:[%s5942_s24 + $0x3a8] sm:$0xff]  ;;  %v5057_v26 = vpack.c.bf16 %v5834_v1, %v5833_v43  ;;  %v7849_v1 = vld [vmem:[%s5942_s24 + $0x780] sm:$0xff] }
 0x16c   : > { %1536 = vmatmul.mubr.f32.gmra.mrb[12].mxu1 %v579_v14  ;;  %5221 = vmatprep.subr.bf16.mxu0 %v5893_v2  ;;  %v7712_v14 = vld [vmem:[%s5942_s24 + $0x738] sm:$0xff]  ;;  %v3399_v45 = vsel %vm10118_vm0, %v2967_v49, 0.0  ;;  %v572_v37 = vld [vmem:[%s10114_s1 + $0x2e8] sm:$0xff]  ;;  %v571_v49 = vld [vmem:[%s10114_s1 + $0x2e0] sm:$0xff] }
 0x16d   : > { %1540 = vmatprep.mubr.f32.mxu1 %v596_v54  ;;  %5043 = vmatpush1.bf16.msra.mxu1 %v5042_v44  ;;  %v3392_v7 = vadd.f32 %v3391_v16, %v3390_v51  ;;  %v5051_v54 = vpack.c.bf16 %v5826_v9, %v5825_v29  ;;  %v5827_v44 = vld [vmem:[%s5942_s24 + $0x590] sm:$0xff]  ;;  %v5225_v5 = vpack.c.bf16 %v7712_v14, %v7709_v50  ;;  %v555_v16 = vld [vmem:[%s10114_s1 + $0x260] sm:$0xff]  ;;  %v5832_v51 = vld [vmem:[%s5942_s24 + $0x5a8] sm:$0xff] }
 0x16e   : > { %5044 = vmatprep.subr.bf16.mxu1 %v5893_v2  ;;  %v2969_v6 = vmul.f32 %v5827_v44, %v5827_v44  ;;  %2416 = vmatmul.mubr.f32.gmra.mrb[4].mxu0 %v523_v40  ;;  %v2972_v18 = vmul.f32 %v5832_v51, %v5832_v51  ;;  %v7796_v17 = vld [vmem:[%s5942_s24 + $0x768] sm:$0xff] }
 0x16f   : > { %v3394_v38 = vadd.f32 %v3393_v35, %v3392_v7  ;;  %2420 = vmatprep.mubr.f32.mxu0 %v540_v25  ;;  %5223 = vmatpush1.bf16.msra.mxu0 %v5222_v41  ;;  %v7768_v35 = vld [vmem:[%s5942_s24 + $0x758] sm:$0xff]  ;;  %v5837_v25 = vld [vmem:[%s5942_s24 + $0x3c0] sm:$0xff]  ;;  %v5838_v29 = vld [vmem:[%s5942_s24 + $0x3c8] sm:$0xff] }
 0x170   : > { %1541 = vmatmul.mubr.f32.gmra.mrb[14].mxu1 %v595_v47  ;;  %v2970_v47 = vmul.f32 %v5828_v46, %v5828_v46  ;;  %5224 = vmatprep.subr.bf16.mxu0 %v5893_v2  ;;  %v3403_v58 = vsel %vm10118_vm0, %v2969_v6, 0.0  ;;  %v3409_v40 = vsel %vm10118_vm0, %v2972_v18, 0.0  ;;  %v5836_v41 = vld [vmem:[%s5942_s24 + $0x5b8] sm:$0xff]  ;;  %v5060_v9 = vpack.c.bf16 %v5838_v29, %v5837_v25  ;;  %v691_v6 = vld [vmem:[%s10114_s1 + $0x6a0] sm:$0xff]  ;;  %v620_v43 = vld [vmem:[%s10114_s1 + $0x468] sm:$0xff] }
 0x171   : > { %1545 = vmatprep.mubr.f32.mxu1 %v612_v24  ;;  %5046 = vmatpush1.bf16.msra.mxu1 %v5045_v15  ;;  %v3396_v33 = vadd.f32 %v3395_v32, %v3394_v38  ;;  %v5829_v24 = vld [vmem:[%s5942_s24 + $0x3a0] sm:$0xff]  ;;  %v692_v38 = vld [vmem:[%s10114_s1 + $0x6a8] sm:$0xff]  ;;  %v5844_v18 = vld [vmem:[%s5942_s24 + $0x5d8] sm:$0xff] }
 0x172   : > { %5047 = vmatprep.subr.bf16.mxu1 %v5893_v2  ;;  %v5054_v8 = vpack.c.bf16 %v5830_v39, %v5829_v24  ;;  %2421 = vmatmul.mubr.f32.gmra.mrb[6].mxu0 %v539_v11  ;;  %v659_v15 = vld [vmem:[%s10114_s1 + $0x5a0] sm:$0xff]  ;;  %v5234_v11 = vpack.c.bf16 %v7796_v17, %v7793_v63  ;;  %v7824_v24 = vld [vmem:[%s5942_s24 + $0x778] sm:$0xff]  ;;  %v5841_v39 = vld [vmem:[%s5942_s24 + $0x3d0] sm:$0xff] }
 0x173   : > { %v3398_v55 = vadd.f32 %v3397_v60, %v3396_v33  ;;  %2425 = vmatprep.mubr.f32.mxu0 %v556_v59  ;;  %5226 = vmatpush1.bf16.msra.mxu0 %v5225_v5  ;;  %v675_v32 = vld [vmem:[%s10114_s1 + $0x620] sm:$0xff]  ;;  %v588_v60 = vld [vmem:[%s10114_s1 + $0x368] sm:$0xff]  ;;  %v7821_v59 = vld [vmem:[%s5942_s24 + $0x770] sm:$0xff] }
 0x174   : > { %1546 = vmatmul.mubr.f32.gmra.mrb[16].mxu1 %v611_v34  ;;  %v3405_v34 = vsel %vm10118_vm0, %v2970_v47, 0.0  ;;  %5227 = vmatprep.subr.bf16.mxu0 %v5893_v2  ;;  %v708_v5 = vld [vmem:[%s10114_s1 + $0x728] sm:$0xff] }
 0x175   : > { %1550 = vmatprep.mubr.f32.mxu1 %v628_v21  ;;  %5049 = vmatpush1.bf16.msra.mxu1 %v5048_v28  ;;  %v3400_v48 = vadd.f32 %v3399_v45, %v3398_v55  ;;  %v7765_v21 = vld [vmem:[%s5942_s24 + $0x750] sm:$0xff]  ;;  %v5839_v45 = vld [vmem:[%s5942_s24 + $0x5c0] sm:$0xff]  ;;  %v604_v47 = vld [vmem:[%s10114_s1 + $0x3e8] sm:$0xff] }
 0x176   : > { %5050 = vmatprep.subr.bf16.mxu1 %v5893_v2  ;;  %v5835_v28 = vld [vmem:[%s5942_s24 + $0x5b0] sm:$0xff]  ;;  %2426 = vmatmul.mubr.f32.gmra.mrb[8].mxu0 %v555_v16  ;;  %v2975_v44 = vmul.f32 %v5839_v45, %v5839_v45  ;;  %v587_v55 = vld [vmem:[%s10114_s1 + $0x360] sm:$0xff]  ;;  %v5848_v25 = vld [vmem:[%s5942_s24 + $0x5e8] sm:$0xff] }
 0x177   : > { %v3402_v0 = vadd.f32 %v3401_v31, %v3400_v48  ;;  %v2973_v7 = vmul.f32 %v5835_v28, %v5835_v28  ;;  %2430 = vmatprep.mubr.f32.mxu0 %v572_v37  ;;  %5229 = vmatpush1.bf16.msra.mxu0 %v5228_v52  ;;  %v5840_v31 = vld [vmem:[%s5942_s24 + $0x5c8] sm:$0xff]  ;;  %v603_v52 = vld [vmem:[%s10114_s1 + $0x3e0] sm:$0xff]  ;;  %v2978_v37 = vmul.f32 %v5844_v18, %v5844_v18  ;;  %v5849_v45 = vld [vmem:[%s5942_s24 + $0x3f0] sm:$0xff] }
 0x178   : > { %1551 = vmatmul.mubr.f32.gmra.mrb[18].mxu1 %v627_v36  ;;  %v5231_v36 = vpack.c.bf16 %v7768_v35, %v7765_v21  ;;  %5230 = vmatprep.subr.bf16.mxu0 %v5893_v2  ;;  %v2976_v46 = vmul.f32 %v5840_v31, %v5840_v31  ;;  %v3415_v23 = vsel %vm10118_vm0, %v2975_v44, 0.0  ;;  %v2980_v29 = vmul.f32 %v5848_v25, %v5848_v25  ;;  %v5850_v44 = vld [vmem:[%s5942_s24 + $0x3f8] sm:$0xff]  ;;  %v651_v18 = vld [vmem:[%s10114_s1 + $0x560] sm:$0xff]  ;;  %v788_v25 = vld [vmem:[%s10114_s1 + $0x9a8] sm:$0xff] }
 0x179   : > { %1555 = vmatprep.mubr.f32.mxu1 %v644_v42  ;;  %5052 = vmatpush1.bf16.msra.mxu1 %v5051_v54  ;;  %v3404_v10 = vadd.f32 %v3403_v58, %v3402_v0  ;;  %v2974_v42 = vmul.f32 %v5836_v41, %v5836_v41  ;;  %v3411_v33 = vsel %vm10118_vm0, %v2973_v7, 0.0  ;;  %v707_v0 = vld [vmem:[%s10114_s1 + $0x720] sm:$0xff]  ;;  %v740_v41 = vld [vmem:[%s10114_s1 + $0x828] sm:$0xff] }
 0x17a   : > { %5053 = vmatprep.subr.bf16.mxu1 %v5893_v2  ;;  %2431 = vmatmul.mubr.f32.gmra.mrb[10].mxu0 %v571_v49  ;;  %v3417_v51 = vsel %vm10118_vm0, %v2976_v46, 0.0  ;;  %v635_v46 = vld [vmem:[%s10114_s1 + $0x4e0] sm:$0xff] }
 0x17b   : > { %v3406_v30 = vadd.f32 %v3405_v34, %v3404_v10  ;;  %2435 = vmatprep.mubr.f32.mxu0 %v588_v60  ;;  %5232 = vmatpush1.bf16.msra.mxu0 %v5231_v36  ;;  %v724_v34 = vld [vmem:[%s10114_s1 + $0x7a8] sm:$0xff]  ;;  %v5845_v10 = vld [vmem:[%s5942_s24 + $0x3e0] sm:$0xff]  ;;  %v3421_v60 = vsel %vm10118_vm0, %v2978_v37, 0.0 }
 0x17c   : > { %1556 = vmatmul.mubr.f32.gmra.mrb[20].mxu1 %v643_v53  ;;  %5233 = vmatprep.subr.bf16.mxu0 %v5893_v2  ;;  %v723_v36 = vld [vmem:[%s10114_s1 + $0x7a0] sm:$0xff]  ;;  %v772_v37 = vld [vmem:[%s10114_s1 + $0x928] sm:$0xff] }
 0x17d   : > { %1560 = vmatprep.mubr.f32.mxu1 %v660_v20  ;;  %5055 = vmatpush1.bf16.msra.mxu1 %v5054_v8  ;;  %v3408_v54 = vadd.f32 %v3407_v19, %v3406_v30  ;;  %v3413_v20 = vsel %vm10118_vm0, %v2974_v42, 0.0  ;;  %v5842_v8 = vld [vmem:[%s5942_s24 + $0x3d8] sm:$0xff]  ;;  %v5846_v19 = vld [vmem:[%s5942_s24 + $0x3e8] sm:$0xff]  ;;  %v5847_v30 = vld [vmem:[%s5942_s24 + $0x5e0] sm:$0xff] }
 0x17e   : > { %5056 = vmatprep.subr.bf16.mxu1 %v5893_v2  ;;  %v5063_v48 = vpack.c.bf16 %v5842_v8, %v5841_v39  ;;  %2436 = vmatmul.mubr.f32.gmra.mrb[12].mxu0 %v587_v55  ;;  %v5066_v28 = vpack.c.bf16 %v5846_v19, %v5845_v10  ;;  %v2979_v49 = vmul.f32 %v5847_v30, %v5847_v30  ;;  %v3425_v8 = vsel %vm10118_vm0, %v2980_v29, 0.0  ;;  %v5854_v19 = vld [vmem:[%s5942_s24 + $0x608] sm:$0xff]  ;;  %v7933_v30 = vld [vmem:[%s5942_s24 + $0x7b8] sm:$0xff] }
 0x17f   : > { %v3410_v53 = vadd.f32 %v3409_v40, %v3408_v54  ;;  %2440 = vmatprep.mubr.f32.mxu0 %v604_v47  ;;  %5235 = vmatpush1.bf16.msra.mxu0 %v5234_v11  ;;  %v619_v40 = vld [vmem:[%s10114_s1 + $0x460] sm:$0xff]  ;;  %v7877_v54 = vld [vmem:[%s5942_s24 + $0x790] sm:$0xff]  ;;  %v756_v47 = vld [vmem:[%s10114_s1 + $0x8a8] sm:$0xff] }
 0x180   : > { %1561 = vmatmul.mubr.f32.gmra.mrb[22].mxu1 %v659_v15  ;;  %v2977_v15 = vmul.f32 %v5843_v13, %v5843_v13  ;;  %5236 = vmatprep.subr.bf16.mxu0 %v5893_v2  ;;  %v3423_v55 = vsel %vm10118_vm0, %v2979_v49, 0.0  ;;  %v5851_v11 = vld [vmem:[%s5942_s24 + $0x5f0] sm:$0xff]  ;;  %v7905_v13 = vld [vmem:[%s5942_s24 + $0x7a0] sm:$0xff] }
 0x181   : > { %1565 = vmatprep.mubr.f32.mxu1 %v676_v62  ;;  %5058 = vmatpush1.bf16.msra.mxu1 %v5057_v26  ;;  %v3412_v58 = vadd.f32 %v3411_v33, %v3410_v53  ;;  %v5237_v62 = vpack.c.bf16 %v7824_v24, %v7821_v59  ;;  %v7852_v26 = vld [vmem:[%s5942_s24 + $0x788] sm:$0xff]  ;;  %v7880_v33 = vld [vmem:[%s5942_s24 + $0x798] sm:$0xff] }
 0x182   : > { %5059 = vmatprep.subr.bf16.mxu1 %v5893_v2  ;;  %2441 = vmatmul.mubr.f32.gmra.mrb[14].mxu0 %v603_v52  ;;  %v5240_v42 = vpack.c.bf16 %v7852_v26, %v7849_v1  ;;  %v5243_v39 = vpack.c.bf16 %v7880_v33, %v7877_v54  ;;  %v5853_v52 = vld [vmem:[%s5942_s24 + $0x600] sm:$0xff] }
 0x183   : > { %v3414_v16 = vadd.f32 %v3413_v20, %v3412_v58  ;;  %2445 = vmatprep.mubr.f32.mxu0 %v620_v43  ;;  %5238 = vmatpush1.bf16.msra.mxu0 %v5237_v62  ;;  %v739_v20 = vld [vmem:[%s10114_s1 + $0x820] sm:$0xff]  ;;  %v2983_v62 = vmul.f32 %v5853_v52, %v5853_v52  ;;  %v7980_v52 = vld [vmem:[%s5942_s24 + $0x7d0] sm:$0xff] }
 0x184   : > { %1566 = vmatmul.mubr.f32.gmra.mrb[24].mxu1 %v675_v32  ;;  %v3419_v32 = vsel %vm10118_vm0, %v2977_v15, 0.0  ;;  %5239 = vmatprep.subr.bf16.mxu0 %v5893_v2  ;;  %v7908_v15 = vld [vmem:[%s5942_s24 + $0x7a8] sm:$0xff] }
 0x185   : > { %1570 = vmatprep.mubr.f32.mxu1 %v692_v38  ;;  %5061 = vmatpush1.bf16.msra.mxu1 %v5060_v9  ;;  %v3416_v7 = vadd.f32 %v3415_v23, %v3414_v16  ;;  %v636_v9 = vld [vmem:[%s10114_s1 + $0x4e8] sm:$0xff]  ;;  %v5246_v43 = vpack.c.bf16 %v7908_v15, %v7905_v13 }
 0x186   : > { %5062 = vmatprep.subr.bf16.mxu1 %v5893_v2  ;;  %2446 = vmatmul.mubr.f32.gmra.mrb[16].mxu0 %v619_v40  ;;  %v652_v23 = vld [vmem:[%s10114_s1 + $0x568] sm:$0xff] }
 0x187   : > { %v3418_v38 = vadd.f32 %v3417_v51, %v3416_v7  ;;  %2450 = vmatprep.mubr.f32.mxu0 %v636_v9  ;;  %5241 = vmatpush1.bf16.msra.mxu0 %v5240_v42  ;;  %v668_v7 = vld [vmem:[%s10114_s1 + $0x5e8] sm:$0xff] }
 0x188   : > { %1571 = vmatmul.mubr.f32.gmra.mrb[26].mxu1 %v691_v6  ;;  %v5069_v6 = vpack.c.bf16 %v5850_v44, %v5849_v45  ;;  %5242 = vmatprep.subr.bf16.mxu0 %v5893_v2  ;;  %v5856_v45 = vld [vmem:[%s5942_s24 + $0x618] sm:$0xff] }
 0x189   : > { %1575 = vmatprep.mubr.f32.mxu1 %v708_v5  ;;  %5064 = vmatpush1.bf16.msra.mxu1 %v5063_v48  ;;  %v3420_v53 = vadd.f32 %v3419_v32, %v3418_v38  ;;  %v2981_v5 = vmul.f32 %v5851_v11, %v5851_v11  ;;  %v5852_v48 = vld [vmem:[%s5942_s24 + $0x5f8] sm:$0xff]  ;;  %v7930_v32 = vld [vmem:[%s5942_s24 + $0x7b0] sm:$0xff]  ;;  %v2986_v44 = vmul.f32 %v5856_v45, %v5856_v45  ;;  %v819_v45 = vld [vmem:[%s10114_s1 + $0xaa0] sm:$0xff] }
 0x18a   : > { %5065 = vmatprep.subr.bf16.mxu1 %v5893_v2  ;;  %v2982_v58 = vmul.f32 %v5852_v48, %v5852_v48  ;;  %2451 = vmatmul.mubr.f32.gmra.mrb[18].mxu0 %v635_v46  ;;  %v5855_v38 = vld [vmem:[%s5942_s24 + $0x610] sm:$0xff]  ;;  %v5249_v29 = vpack.c.bf16 %v7933_v30, %v7930_v32  ;;  %v787_v46 = vld [vmem:[%s10114_s1 + $0x9a0] sm:$0xff] }
 0x18b   : > { %v3422_v31 = vadd.f32 %v3421_v60, %v3420_v53  ;;  %v3427_v16 = vsel %vm10118_vm0, %v2981_v5, 0.0  ;;  %2455 = vmatprep.mubr.f32.mxu0 %v652_v23  ;;  %5244 = vmatpush1.bf16.msra.mxu0 %v5243_v39  ;;  %v2985_v40 = vmul.f32 %v5855_v38, %v5855_v38  ;;  %v667_v60 = vld [vmem:[%s10114_s1 + $0x5e0] sm:$0xff]  ;;  %v5858_v23 = vld [vmem:[%s5942_s24 + $0x628] sm:$0xff] }
 0x18c   : > { %1576 = vmatmul.mubr.f32.gmra.mrb[28].mxu1 %v707_v0  ;;  %v3429_v10 = vsel %vm10118_vm0, %v2982_v58, 0.0  ;;  %5245 = vmatprep.subr.bf16.mxu0 %v5893_v2  ;;  %v7955_v53 = vld [vmem:[%s5942_s24 + $0x7c0] sm:$0xff]  ;;  %v3437_v58 = vsel %vm10118_vm0, %v2986_v44, 0.0 }
 0x18d   : > { %1580 = vmatprep.mubr.f32.mxu1 %v724_v34  ;;  %5067 = vmatpush1.bf16.msra.mxu1 %v5066_v28  ;;  %v3424_v0 = vadd.f32 %v3423_v55, %v3422_v31  ;;  %v755_v34 = vld [vmem:[%s10114_s1 + $0x8a0] sm:$0xff]  ;;  %v2984_v28 = vmul.f32 %v5854_v19, %v5854_v19  ;;  %v7958_v55 = vld [vmem:[%s5942_s24 + $0x7c8] sm:$0xff]  ;;  %v3435_v5 = vsel %vm10118_vm0, %v2985_v40, 0.0 }
 0x18e   : > { %5068 = vmatprep.subr.bf16.mxu1 %v5893_v2  ;;  %2456 = vmatmul.mubr.f32.gmra.mrb[20].mxu0 %v651_v18  ;;  %v683_v39 = vld [vmem:[%s10114_s1 + $0x660] sm:$0xff]  ;;  %v5252_v48 = vpack.c.bf16 %v7958_v55, %v7955_v53  ;;  %v5859_v18 = vld [vmem:[%s5942_s24 + $0x630] sm:$0xff]  ;;  %v716_v40 = vld [vmem:[%s10114_s1 + $0x768] sm:$0xff] }
 0x18f   : > { %v3426_v51 = vadd.f32 %v3425_v8, %v3424_v0  ;;  %2460 = vmatprep.mubr.f32.mxu0 %v668_v7  ;;  %5247 = vmatpush1.bf16.msra.mxu0 %v5246_v43  ;;  %v3433_v9 = vsel %vm10118_vm0, %v2984_v28, 0.0  ;;  %v804_v8 = vld [vmem:[%s10114_s1 + $0xa28] sm:$0xff]  ;;  %v2988_v0 = vmul.f32 %v5858_v23, %v5858_v23  ;;  %v803_v43 = vld [vmem:[%s10114_s1 + $0xa20] sm:$0xff]  ;;  %v5863_v23 = vld [vmem:[%s5942_s24 + $0x650] sm:$0xff] }
 0x190   : > { %1581 = vmatmul.mubr.f32.gmra.mrb[30].mxu1 %v723_v36  ;;  %v3431_v36 = vsel %vm10118_vm0, %v2983_v62, 0.0  ;;  %5248 = vmatprep.subr.bf16.mxu0 %v5893_v2  ;;  %v7983_v62 = vld [vmem:[%s5942_s24 + $0x7d8] sm:$0xff]  ;;  %v699_v19 = vld [vmem:[%s10114_s1 + $0x6e0] sm:$0xff]  ;;  %v820_v28 = vld [vmem:[%s10114_s1 + $0xaa8] sm:$0xff] }
 0x191   : > { %1585 = vmatprep.mubr.f32.mxu1 %v740_v41  ;;  %5070 = vmatpush1.bf16.msra.mxu1 %v5069_v6  ;;  %v3428_v49 = vadd.f32 %v3427_v16, %v3426_v51  ;;  %v771_v41 = vld [vmem:[%s10114_s1 + $0x920] sm:$0xff]  ;;  %v684_v6 = vld [vmem:[%s10114_s1 + $0x668] sm:$0xff]  ;;  %v5255_v7 = vpack.c.bf16 %v7983_v62, %v7980_v52 }
 0x192   : > { %2461 = vmatmul.mubr.f32.gmra.mrb[22].mxu0 %v667_v60  ;;  %v700_v16 = vld [vmem:[%s10114_s1 + $0x6e8] sm:$0xff] }
 0x193   : > { %v3430_v42 = vadd.f32 %v3429_v10, %v3428_v49  ;;  %2465 = vmatprep.mubr.f32.mxu0 %v684_v6  ;;  %5250 = vmatpush1.bf16.msra.mxu0 %v5249_v29  ;;  %v3441_v49 = vsel %vm10118_vm0, %v2988_v0, 0.0  ;;  %v5861_v29 = vld [vmem:[%s5942_s24 + $0x640] sm:$0xff]  ;;  %v2993_v0 = vmul.f32 %v5863_v23, %v5863_v23  ;;  %v5868_v23 = vld [vmem:[%s5942_s24 + $0x678] sm:$0xff] }
 0x194   : > { %1586 = vmatmul.mubr.f32.gmra.mrb[32].mxu1 %v739_v20  ;;  %v5857_v20 = vld [vmem:[%s5942_s24 + $0x620] sm:$0xff]  ;;  %5251 = vmatprep.subr.bf16.mxu0 %v5893_v2 }
 0x195   : > { %1590 = vmatprep.mubr.f32.mxu1 %v756_v47  ;;  %v3432_v11 = vadd.f32 %v3431_v36, %v3430_v42  ;;  %v2987_v31 = vmul.f32 %v5857_v20, %v5857_v20  ;;  %v5860_v36 = vld [vmem:[%s5942_s24 + $0x638] sm:$0xff]  ;;  %v8008_v42 = vld [vmem:[%s5942_s24 + $0x7e8] sm:$0xff]  ;;  %v715_v6 = vld [vmem:[%s10114_s1 + $0x760] sm:$0xff] }
 0x196   : > { %2466 = vmatmul.mubr.f32.gmra.mrb[24].mxu0 %v683_v39  ;;  %v2990_v38 = vmul.f32 %v5860_v36, %v5860_v36  ;;  %v8030_v39 = vld [vmem:[%s5942_s24 + $0x7f0] sm:$0xff]  ;;  %v5865_v36 = vld [vmem:[%s5942_s24 + $0x660] sm:$0xff] }
 0x197   : > { %v3434_v47 = vadd.f32 %v3433_v9, %v3432_v11  ;;  %v3439_v51 = vsel %vm10118_vm0, %v2987_v31, 0.0  ;;  %2470 = vmatprep.mubr.f32.mxu0 %v700_v16  ;;  %5253 = vmatpush1.bf16.msra.mxu0 %v5252_v48  ;;  %v2991_v9 = vmul.f32 %v5861_v29, %v5861_v29  ;;  %v836_v11 = vld [vmem:[%s10114_s1 + $0xb28] sm:$0xff]  ;;  %v835_v16 = vld [vmem:[%s10114_s1 + $0xb20] sm:$0xff] }
 0x198   : > { %1591 = vmatmul.mubr.f32.gmra.mrb[34].mxu1 %v755_v34  ;;  %5254 = vmatprep.subr.bf16.mxu0 %v5893_v2  ;;  %v3445_v20 = vsel %vm10118_vm0, %v2990_v38, 0.0  ;;  %v5862_v31 = vld [vmem:[%s5942_s24 + $0x648] sm:$0xff]  ;;  %v2995_v38 = vmul.f32 %v5865_v36, %v5865_v36 }
 0x199   : > { %1595 = vmatprep.mubr.f32.mxu1 %v772_v37  ;;  %v3436_v34 = vadd.f32 %v3435_v5, %v3434_v47  ;;  %v2989_v37 = vmul.f32 %v5859_v18, %v5859_v18  ;;  %v732_v47 = vld [vmem:[%s10114_s1 + $0x7e8] sm:$0xff] }
 0x19a   : > { %2471 = vmatmul.mubr.f32.gmra.mrb[26].mxu0 %v699_v19  ;;  %v852_v18 = vld [vmem:[%s10114_s1 + $0xba8] sm:$0xff] }
 0x19b   : > { %v3438_v10 = vadd.f32 %v3437_v58, %v3436_v34  ;;  %2475 = vmatprep.mubr.f32.mxu0 %v716_v40  ;;  %5256 = vmatpush1.bf16.msra.mxu0 %v5255_v7  ;;  %v3447_v58 = vsel %vm10118_vm0, %v2991_v9, 0.0  ;;  %v851_v40 = vld [vmem:[%s10114_s1 + $0xba0] sm:$0xff]  ;;  %v5866_v9 = vld [vmem:[%s5942_s24 + $0x668] sm:$0xff] }
 0x19c   : > { %1596 = vmatmul.mubr.f32.gmra.mrb[36].mxu1 %v771_v41  ;;  %v8005_v41 = vld [vmem:[%s5942_s24 + $0x7e0] sm:$0xff]  ;;  %5257 = vmatprep.subr.bf16.mxu0 %v5893_v2 }
 0x19d   : > { %1600 = vmatprep.mubr.f32.mxu1 %v788_v25  ;;  %v3440_v60 = vadd.f32 %v3439_v51, %v3438_v10  ;;  %v3443_v25 = vsel %vm10118_vm0, %v2989_v37, 0.0  ;;  %v5258_v5 = vpack.c.bf16 %v8008_v42, %v8005_v41  ;;  %v731_v51 = vld [vmem:[%s10114_s1 + $0x7e0] sm:$0xff]  ;;  %v5864_v10 = vld [vmem:[%s5942_s24 + $0x658] sm:$0xff] }
 0x19e   : > { %2476 = vmatmul.mubr.f32.gmra.mrb[28].mxu0 %v715_v6  ;;  %v2994_v19 = vmul.f32 %v5864_v10, %v5864_v10 }
 0x19f   : > { %v3442_v44 = vadd.f32 %v3441_v49, %v3440_v60  ;;  %2480 = vmatprep.mubr.f32.mxu0 %v732_v47  ;;  %5259 = vmatpush1.bf16.msra.mxu0 %v5258_v5  ;;  %v3451_v49 = vsel %vm10118_vm0, %v2993_v0, 0.0  ;;  %v5867_v5 = vld [vmem:[%s5942_s24 + $0x670] sm:$0xff]  ;;  %v763_v47 = vld [vmem:[%s10114_s1 + $0x8e0] sm:$0xff]  ;;  %v2998_v0 = vmul.f32 %v5868_v23, %v5868_v23 }
 0x1a0   : > { %1601 = vmatmul.mubr.f32.gmra.mrb[38].mxu1 %v787_v46  ;;  %v2992_v46 = vmul.f32 %v5862_v31, %v5862_v31  ;;  %5260 = vmatprep.subr.bf16.mxu0 %v5893_v2  ;;  %v868_v2 = vld [vmem:[%s10114_s1 + $0xc28] sm:$0xff]  ;;  %v3453_v29 = vsel %vm10118_vm0, %v2994_v19, 0.0  ;;  %v867_v31 = vld [vmem:[%s10114_s1 + $0xc20] sm:$0xff] }
 0x1a1   : > { %1605 = vmatprep.mubr.f32.mxu1 %v804_v8  ;;  %v8033_v8 = vld [vmem:[%s5942_s24 + $0x7f8] sm:$0xff]  ;;  %v3444_v48 = vadd.f32 %v3443_v25, %v3442_v44  ;;  %v747_v25 = vld [vmem:[%s10114_s1 + $0x860] sm:$0xff]  ;;  %v764_v44 = vld [vmem:[%s10114_s1 + $0x8e8] sm:$0xff] }
 0x1a2   : > { %v5261_v37 = vpack.c.bf16 %v8033_v8, %v8030_v39  ;;  %2481 = vmatmul.mubr.f32.gmra.mrb[30].mxu0 %v731_v51  ;;  %v779_v19 = vld [vmem:[%s10114_s1 + $0x960] sm:$0xff] }
 0x1a3   : > { %v3446_v34 = vadd.f32 %v3445_v20, %v3444_v48  ;;  %v2997_v20 = vmul.f32 %v5867_v5, %v5867_v5  ;;  %v884_v48 = vld [vmem:[%s10114_s1 + $0xca8] sm:$0xff] }
 0x1a4   : > { %1606 = vmatmul.mubr.f32.gmra.mrb[40].mxu1 %v803_v43  ;;  %v3449_v43 = vsel %vm10118_vm0, %v2992_v46, 0.0  ;;  %5262 = vmatpush1.bf16.msra.mxu0 %v5261_v37 }
 0x1a5   : > { %1610 = vmatprep.mubr.f32.mxu1 %v820_v28  ;;  %v748_v28 = vld [vmem:[%s10114_s1 + $0x868] sm:$0xff]  ;;  %v3448_v7 = vadd.f32 %v3447_v58, %v3446_v34  ;;  %v3459_v51 = vsel %vm10118_vm0, %v2997_v20, 0.0 }
 0x1a6   : > { %2485 = vmatprep.mubr.f32.mxu0 %v748_v28  ;;  %v900_v28 = vld [vmem:[%s10114_s1 + $0xd28] sm:$0xff] }
 0x1a7   : > { %v3450_v60 = vadd.f32 %v3449_v43, %v3448_v7  ;;  %2486 = vmatmul.mubr.f32.gmra.mrb[32].mxu0 %v747_v25  ;;  %v883_v43 = vld [vmem:[%s10114_s1 + $0xca0] sm:$0xff]  ;;  %v3461_v7 = vsel %vm10118_vm0, %v2998_v0, 0.0  ;;  %v5871_v25 = vld [vmem:[%s5942_s24 + $0x690] sm:$0xff]  ;;  %v812_v20 = vld [vmem:[%s10114_s1 + $0xa68] sm:$0xff] }
 0x1a8   : > { %1611 = vmatmul.mubr.f32.gmra.mrb[42].mxu1 %v819_v45  ;;  %v2996_v45 = vmul.f32 %v5866_v9, %v5866_v9  ;;  %2490 = vmatprep.mubr.f32.mxu0 %v764_v44  ;;  %v916_v44 = vld [vmem:[%s10114_s1 + $0xda8] sm:$0xff]  ;;  %v811_v0 = vld [vmem:[%s10114_s1 + $0xa60] sm:$0xff] }
 0x1a9   : > { %1615 = vmatprep.mubr.f32.mxu1 %v836_v11  ;;  %v3452_v6 = vadd.f32 %v3451_v49, %v3450_v60  ;;  %v3455_v11 = vsel %vm10118_vm0, %v2995_v38, 0.0  ;;  %v5870_v49 = vld [vmem:[%s5942_s24 + $0x688] sm:$0xff] }
 0x1aa   : > { %v3457_v58 = vsel %vm10118_vm0, %v2996_v45, 0.0  ;;  %v3000_v36 = vmul.f32 %v5870_v49, %v5870_v49  ;;  %v796_v38 = vld [vmem:[%s10114_s1 + $0x9e8] sm:$0xff]  ;;  %v795_v45 = vld [vmem:[%s10114_s1 + $0x9e0] sm:$0xff] }
 0x1ab   : > { %v3454_v46 = vadd.f32 %v3453_v29, %v3452_v6  ;;  %2491 = vmatmul.mubr.f32.gmra.mrb[34].mxu0 %v763_v47  ;;  %v899_v29 = vld [vmem:[%s10114_s1 + $0xd20] sm:$0xff] }
 0x1ac   : > { %1616 = vmatmul.mubr.f32.gmra.mrb[44].mxu1 %v835_v16  ;;  %v780_v16 = vld [vmem:[%s10114_s1 + $0x968] sm:$0xff]  ;;  %v3465_v6 = vsel %vm10118_vm0, %v3000_v36, 0.0  ;;  %v5873_v47 = vld [vmem:[%s5942_s24 + $0x6a0] sm:$0xff] }
 0x1ad   : > { %1620 = vmatprep.mubr.f32.mxu1 %v852_v18  ;;  %v3456_v34 = vadd.f32 %v3455_v11, %v3454_v46  ;;  %v5869_v18 = vld [vmem:[%s5942_s24 + $0x680] sm:$0xff]  ;;  %2495 = vmatprep.mubr.f32.mxu0 %v780_v16  ;;  %v5872_v11 = vld [vmem:[%s5942_s24 + $0x698] sm:$0xff]  ;;  %v932_v16 = vld [vmem:[%s10114_s1 + $0xe28] sm:$0xff] }
 0x1ae   : > { %v2999_v37 = vmul.f32 %v5869_v18, %v5869_v18  ;;  %v3002_v5 = vmul.f32 %v5872_v11, %v5872_v11  ;;  %v827_v36 = vld [vmem:[%s10114_s1 + $0xae0] sm:$0xff] }
 0x1af   : > { %v3458_v10 = vadd.f32 %v3457_v58, %v3456_v34  ;;  %2496 = vmatmul.mubr.f32.gmra.mrb[36].mxu0 %v779_v19  ;;  %v915_v58 = vld [vmem:[%s10114_s1 + $0xda0] sm:$0xff]  ;;  %v5875_v19 = vld [vmem:[%s5942_s24 + $0x6b0] sm:$0xff] }
 0x1b0   : > { %1621 = vmatmul.mubr.f32.gmra.mrb[46].mxu1 %v851_v40  ;;  %v3463_v60 = vsel %vm10118_vm0, %v2999_v37, 0.0  ;;  %2500 = vmatprep.mubr.f32.mxu0 %v796_v38  ;;  %v3469_v34 = vsel %vm10118_vm0, %v3002_v5, 0.0  ;;  %v828_v37 = vld [vmem:[%s10114_s1 + $0xae8] sm:$0xff]  ;;  %v843_v5 = vld [vmem:[%s10114_s1 + $0xb60] sm:$0xff] }
 0x1b1   : > { %1625 = vmatprep.mubr.f32.mxu1 %v868_v2  ;;  %v3460_v40 = vadd.f32 %v3459_v51, %v3458_v10  ;;  %v3001_v2 = vmul.f32 %v5871_v25, %v5871_v25  ;;  %v5874_v51 = vld [vmem:[%s5942_s24 + $0x6a8] sm:$0xff] }
 0x1b2   : > { %v3004_v18 = vmul.f32 %v5874_v51, %v5874_v51  ;;  %v948_v38 = vld [vmem:[%s10114_s1 + $0xea8] sm:$0xff] }
 0x1b3   : > { %v3462_v9 = vadd.f32 %v3461_v7, %v3460_v40  ;;  %v3467_v46 = vsel %vm10118_vm0, %v3001_v2, 0.0  ;;  %2501 = vmatmul.mubr.f32.gmra.mrb[38].mxu0 %v795_v45  ;;  %v931_v7 = vld [vmem:[%s10114_s1 + $0xe20] sm:$0xff]  ;;  %v844_v2 = vld [vmem:[%s10114_s1 + $0xb68] sm:$0xff] }
 0x1b4   : > { %1626 = vmatmul.mubr.f32.gmra.mrb[48].mxu1 %v867_v31  ;;  %2505 = vmatprep.mubr.f32.mxu0 %v812_v20  ;;  %v3473_v40 = vsel %vm10118_vm0, %v3004_v18, 0.0  ;;  %v5877_v45 = vld [vmem:[%s5942_s24 + $0x6c0] sm:$0xff]  ;;  %v964_v20 = vld [vmem:[%s10114_s1 + $0xf28] sm:$0xff] }
 0x1b5   : > { %1630 = vmatprep.mubr.f32.mxu1 %v884_v48  ;;  %v3464_v31 = vadd.f32 %v3463_v60, %v3462_v9  ;;  %v3003_v48 = vmul.f32 %v5873_v47, %v5873_v47  ;;  %v5876_v60 = vld [vmem:[%s5942_s24 + $0x6b8] sm:$0xff]  ;;  %v859_v18 = vld [vmem:[%s10114_s1 + $0xbe0] sm:$0xff] }
 0x1b6   : > { %v3006_v25 = vmul.f32 %v5876_v60, %v5876_v60 }
 0x1b7   : > { %v3466_v23 = vadd.f32 %v3465_v6, %v3464_v31  ;;  %v3471_v10 = vsel %vm10118_vm0, %v3003_v48, 0.0  ;;  %2506 = vmatmul.mubr.f32.gmra.mrb[40].mxu0 %v811_v0  ;;  %v947_v6 = vld [vmem:[%s10114_s1 + $0xea0] sm:$0xff]  ;;  %v860_v48 = vld [vmem:[%s10114_s1 + $0xbe8] sm:$0xff]  ;;  %v5879_v0 = vld [vmem:[%s5942_s24 + $0x6d0] sm:$0xff] }
 0x1b8   : > { %1631 = vmatmul.mubr.f32.gmra.mrb[50].mxu1 %v883_v43  ;;  %2510 = vmatprep.mubr.f32.mxu0 %v828_v37  ;;  %v3477_v31 = vsel %vm10118_vm0, %v3006_v25, 0.0  ;;  %v980_v37 = vld [vmem:[%s10114_s1 + $0xfa8] sm:$0xff]  ;;  %v875_v25 = vld [vmem:[%s10114_s1 + $0xc60] sm:$0xff] }
 0x1b9   : > { %1635 = vmatprep.mubr.f32.mxu1 %v900_v28  ;;  %v3468_v43 = vadd.f32 %v3467_v46, %v3466_v23  ;;  %v3005_v28 = vmul.f32 %v5875_v19, %v5875_v19  ;;  %v5878_v46 = vld [vmem:[%s5942_s24 + $0x6c8] sm:$0xff] }
 0x1ba   : > { %v3008_v47 = vmul.f32 %v5878_v46, %v5878_v46 }
 0x1bb   : > { %v3470_v49 = vadd.f32 %v3469_v34, %v3468_v43  ;;  %v3475_v9 = vsel %vm10118_vm0, %v3005_v28, 0.0  ;;  %2511 = vmatmul.mubr.f32.gmra.mrb[42].mxu0 %v827_v36  ;;  %v963_v34 = vld [vmem:[%s10114_s1 + $0xf20] sm:$0xff]  ;;  %v876_v28 = vld [vmem:[%s10114_s1 + $0xc68] sm:$0xff] }
 0x1bc   : > { %1636 = vmatmul.mubr.f32.gmra.mrb[52].mxu1 %v899_v29  ;;  %2515 = vmatprep.mubr.f32.mxu0 %v844_v2  ;;  %v3481_v43 = vsel %vm10118_vm0, %v3008_v47, 0.0  ;;  %v5881_v36 = vld [vmem:[%s5942_s24 + $0x6e0] sm:$0xff]  ;;  %v486_v2 = vld [vmem:[%s10114_s1 + $0x38] sm:$0xff] }
 0x1bd   : > { %1640 = vmatprep.mubr.f32.mxu1 %v916_v44  ;;  %v3472_v29 = vadd.f32 %v3471_v10, %v3470_v49  ;;  %v3007_v44 = vmul.f32 %v5877_v45, %v5877_v45  ;;  %v5880_v10 = vld [vmem:[%s5942_s24 + $0x6d8] sm:$0xff]  ;;  %v891_v47 = vld [vmem:[%s10114_s1 + $0xce0] sm:$0xff] }
 0x1be   : > { %v3010_v19 = vmul.f32 %v5880_v10, %v5880_v10  ;;  %v907_v10 = vld [vmem:[%s10114_s1 + $0xd60] sm:$0xff] }
 0x1bf   : > { %v3474_v11 = vadd.f32 %v3473_v40, %v3472_v29  ;;  %v3479_v23 = vsel %vm10118_vm0, %v3007_v44, 0.0  ;;  %2516 = vmatmul.mubr.f32.gmra.mrb[44].mxu0 %v843_v5  ;;  %v979_v40 = vld [vmem:[%s10114_s1 + $0xfa0] sm:$0xff]  ;;  %v892_v44 = vld [vmem:[%s10114_s1 + $0xce8] sm:$0xff]  ;;  %v5883_v5 = vld [vmem:[%s5942_s24 + $0x6f0] sm:$0xff] }
 0x1c0   : > { %1641 = vmatmul.mubr.f32.gmra.mrb[54].mxu1 %v915_v58  ;;  %2520 = vmatprep.mubr.f32.mxu0 %v860_v48  ;;  %v3485_v29 = vsel %vm10118_vm0, %v3010_v19, 0.0  ;;  %v502_v48 = vld [vmem:[%s10114_s1 + $0xb8] sm:$0xff] }
 0x1c1   : > { %1645 = vmatprep.mubr.f32.mxu1 %v932_v16  ;;  %v3476_v58 = vadd.f32 %v3475_v9, %v3474_v11  ;;  %v3009_v16 = vmul.f32 %v5879_v0, %v5879_v0  ;;  %v5882_v9 = vld [vmem:[%s5942_s24 + $0x6e8] sm:$0xff]  ;;  %v518_v19 = vld [vmem:[%s10114_s1 + $0x138] sm:$0xff] }
 0x1c2   : > { %v3012_v45 = vmul.f32 %v5882_v9, %v5882_v9 }
 0x1c3   : > { %v3478_v51 = vadd.f32 %v3477_v31, %v3476_v58  ;;  %v3483_v49 = vsel %vm10118_vm0, %v3009_v16, 0.0  ;;  %2521 = vmatmul.mubr.f32.gmra.mrb[46].mxu0 %v859_v18  ;;  %v485_v31 = vld [vmem:[%s10114_s1 + $0x30] sm:$0xff]  ;;  %v908_v16 = vld [vmem:[%s10114_s1 + $0xd68] sm:$0xff]  ;;  %v3015_v18 = vmul.f32 %v7628_v57, %v7628_v57  ;;  %v3016_v57 = vmul.f32 %v7631_v61, %v7631_v61  ;;  %v923_v61 = vld [vmem:[%s10114_s1 + $0xde0] sm:$0xff] }
 0x1c4   : > { %1646 = vmatmul.mubr.f32.gmra.mrb[56].mxu1 %v931_v7  ;;  %2525 = vmatprep.mubr.f32.mxu0 %v876_v28  ;;  %v3489_v58 = vsel %vm10118_vm0, %v3012_v45, 0.0 }
 0x1c5   : > { %1650 = vmatprep.mubr.f32.mxu1 %v948_v38  ;;  %v3480_v7 = vadd.f32 %v3479_v23, %v3478_v51  ;;  %v3011_v38 = vmul.f32 %v5881_v36, %v5881_v36  ;;  %v5884_v23 = vld [vmem:[%s5942_s24 + $0x6f8] sm:$0xff]  ;;  %v3495_v36 = vsel %vm10118_vm0, %v3015_v18, 0.0 }
 0x1c6   : > { %v3014_v0 = vmul.f32 %v5884_v23, %v5884_v23 }
 0x1c7   : > { %v3482_v60 = vadd.f32 %v3481_v43, %v3480_v7  ;;  %v3487_v11 = vsel %vm10118_vm0, %v3011_v38, 0.0  ;;  %2526 = vmatmul.mubr.f32.gmra.mrb[48].mxu0 %v875_v25  ;;  %v924_v7 = vld [vmem:[%s10114_s1 + $0xde8] sm:$0xff]  ;;  %v3017_v38 = vmul.f32 %v7653_v12, %v7653_v12  ;;  %v534_v25 = vld [vmem:[%s10114_s1 + $0x1b8] sm:$0xff]  ;;  %v3018_v12 = vmul.f32 %v7656_v56, %v7656_v56  ;;  %v939_v56 = vld [vmem:[%s10114_s1 + $0xe60] sm:$0xff] }
 0x1c8   : > { %1651 = vmatmul.mubr.f32.gmra.mrb[58].mxu1 %v947_v6  ;;  %2530 = vmatprep.mubr.f32.mxu0 %v892_v44  ;;  %v3493_v28 = vsel %vm10118_vm0, %v3014_v0, 0.0  ;;  %v3019_v44 = vmul.f32 %v7681_v22, %v7681_v22  ;;  %v3020_v22 = vmul.f32 %v7684_v27, %v7684_v27  ;;  %v955_v27 = vld [vmem:[%s10114_s1 + $0xee0] sm:$0xff]  ;;  %v566_v0 = vld [vmem:[%s10114_s1 + $0x2b8] sm:$0xff] }
 0x1c9   : > { %1655 = vmatprep.mubr.f32.mxu1 %v964_v20  ;;  %v3484_v6 = vadd.f32 %v3483_v49, %v3482_v60  ;;  %v3013_v20 = vmul.f32 %v5883_v5, %v5883_v5  ;;  %v3499_v45 = vsel %vm10118_vm0, %v3017_v38, 0.0  ;;  %v550_v5 = vld [vmem:[%s10114_s1 + $0x238] sm:$0xff]  ;;  %v581_v38 = vld [vmem:[%s10114_s1 + $0x330] sm:$0xff] }
 0x1cb   : > { %v3486_v46 = vadd.f32 %v3485_v29, %v3484_v6  ;;  %v3491_v51 = vsel %vm10118_vm0, %v3013_v20, 0.0  ;;  %2531 = vmatmul.mubr.f32.gmra.mrb[50].mxu0 %v891_v47  ;;  %v940_v29 = vld [vmem:[%s10114_s1 + $0xe68] sm:$0xff]  ;;  %v533_v6 = vld [vmem:[%s10114_s1 + $0x1b0] sm:$0xff]  ;;  %v3501_v20 = vsel %vm10118_vm0, %v3018_v12, 0.0  ;;  %v3503_v47 = vsel %vm10118_vm0, %v3019_v44, 0.0  ;;  %v614_v44 = vld [vmem:[%s10114_s1 + $0x438] sm:$0xff] }
 0x1cc   : > { %1656 = vmatmul.mubr.f32.gmra.mrb[60].mxu1 %v963_v34  ;;  %2535 = vmatprep.mubr.f32.mxu0 %v908_v16  ;;  %v3505_v16 = vsel %vm10118_vm0, %v3020_v22, 0.0  ;;  %v613_v22 = vld [vmem:[%s10114_s1 + $0x430] sm:$0xff] }
 0x1cd   : > { %1660 = vmatprep.mubr.f32.mxu1 %v980_v37  ;;  %v3488_v34 = vadd.f32 %v3487_v11, %v3486_v46  ;;  %v501_v37 = vld [vmem:[%s10114_s1 + $0xb0] sm:$0xff] }
 0x1cf   : > { %v3490_v43 = vadd.f32 %v3489_v58, %v3488_v34  ;;  %2536 = vmatmul.mubr.f32.gmra.mrb[52].mxu0 %v907_v10  ;;  %v549_v58 = vld [vmem:[%s10114_s1 + $0x230] sm:$0xff]  ;;  %v972_v34 = vld [vmem:[%s10114_s1 + $0xf68] sm:$0xff] }
 0x1d0   : > { %1661 = vmatmul.mubr.f32.gmra.mrb[62].mxu1 %v979_v40  ;;  %v517_v40 = vld [vmem:[%s10114_s1 + $0x130] sm:$0xff]  ;;  %2540 = vmatprep.mubr.f32.mxu0 %v924_v7 }
 0x1d1   : > { %1730 = vmatprep.mubr.f32.mxu1 %v486_v2  ;;  %v3492_v49 = vadd.f32 %v3491_v51, %v3490_v43  ;;  %v3497_v2 = vsel %vm10118_vm0, %v3016_v57, 0.0  ;;  %v565_v43 = vld [vmem:[%s10114_s1 + $0x2b0] sm:$0xff]  ;;  %v988_v57 = vld [vmem:[%s10114_s1 + $0xfe8] sm:$0xff] }
 0x1d3   : > { %v3494_v60 = vadd.f32 %v3493_v28, %v3492_v49  ;;  %2541 = vmatmul.mubr.f32.gmra.mrb[54].mxu0 %v923_v61 }
 0x1d4   : > { %1731 = vmatmul.mubr.f32.vlgmr.msra.gmra.mrb[0].mxu1 %v485_v31  ;;  %2545 = vmatprep.mubr.f32.mxu0 %v940_v29  ;;  %v956_v31 = vld [vmem:[%s10114_s1 + $0xee8] sm:$0xff]  ;;  %v3027_v29 = vmul.f32 %v7793_v63, %v7793_v63  ;;  %v3028_v63 = vmul.f32 %v7796_v17, %v7796_v17  ;;  %v509_v17 = vld [vmem:[%s10114_s1 + $0xf0] sm:$0xff] }
 0x1d5   : > { %1735 = vmatprep.mubr.f32.mxu1 %v502_v48  ;;  %v3496_v9 = vadd.f32 %v3495_v36, %v3494_v60  ;;  %v3021_v48 = vmul.f32 %v7709_v50, %v7709_v50  ;;  %v3022_v50 = vmul.f32 %v7712_v14, %v7712_v14  ;;  %v971_v14 = vld [vmem:[%s10114_s1 + $0xf60] sm:$0xff]  ;;  %v3025_v36 = vmul.f32 %v7765_v21, %v7765_v21  ;;  %v598_v60 = vld [vmem:[%s10114_s1 + $0x3b8] sm:$0xff] }
 0x1d6   : > { %v3026_v21 = vmul.f32 %v7768_v35, %v7768_v35  ;;  %v493_v35 = vld [vmem:[%s10114_s1 + $0x70] sm:$0xff] }
 0x1d7   : > { %v3498_v11 = vadd.f32 %v3497_v2, %v3496_v9  ;;  %2546 = vmatmul.mubr.f32.gmra.mrb[56].mxu0 %v939_v56  ;;  %v3507_v18 = vsel %vm10118_vm0, %v3021_v48, 0.0  ;;  %v3509_v28 = vsel %vm10118_vm0, %v3022_v50, 0.0  ;;  %v3515_v12 = vsel %vm10118_vm0, %v3025_v36, 0.0  ;;  %v597_v9 = vld [vmem:[%s10114_s1 + $0x3b0] sm:$0xff]  ;;  %v526_v48 = vld [vmem:[%s10114_s1 + $0x178] sm:$0xff] }
 0x1d8   : > { %1736 = vmatmul.mubr.f32.gmra.mrb[2].mxu1 %v501_v37  ;;  %2550 = vmatprep.mubr.f32.mxu0 %v956_v31  ;;  %v3023_v37 = vmul.f32 %v7737_v3, %v7737_v3  ;;  %v3024_v3 = vmul.f32 %v7740_v4, %v7740_v4  ;;  %v987_v4 = vld [vmem:[%s10114_s1 + $0xfe0] sm:$0xff]  ;;  %v646_v50 = vld [vmem:[%s10114_s1 + $0x538] sm:$0xff]  ;;  %v661_v36 = vld [vmem:[%s10114_s1 + $0x5b0] sm:$0xff] }
 0x1d9   : > { %1740 = vmatprep.mubr.f32.mxu1 %v518_v19  ;;  %v3500_v46 = vadd.f32 %v3499_v45, %v3498_v11  ;;  %v582_v19 = vld [vmem:[%s10114_s1 + $0x338] sm:$0xff] }
 0x1da   : > { %v3511_v49 = vsel %vm10118_vm0, %v3023_v37, 0.0  ;;  %v3513_v61 = vsel %vm10118_vm0, %v3024_v3, 0.0  ;;  %v510_v11 = vld [vmem:[%s10114_s1 + $0xf8] sm:$0xff] }
 0x1db   : > { %v3502_v23 = vadd.f32 %v3501_v20, %v3500_v46  ;;  %2551 = vmatmul.mubr.f32.gmra.mrb[58].mxu0 %v955_v27  ;;  %v3029_v20 = vmul.f32 %v7821_v59, %v7821_v59  ;;  %v630_v46 = vld [vmem:[%s10114_s1 + $0x4b8] sm:$0xff]  ;;  %v3030_v59 = vmul.f32 %v7824_v24, %v7824_v24  ;;  %v3031_v27 = vmul.f32 %v7849_v1, %v7849_v1  ;;  %v525_v24 = vld [vmem:[%s10114_s1 + $0x170] sm:$0xff] }
 0x1dc   : > { %1741 = vmatmul.mubr.f32.gmra.mrb[4].mxu1 %v517_v40  ;;  %2555 = vmatprep.mubr.f32.mxu0 %v972_v34  ;;  %v3032_v1 = vmul.f32 %v7852_v26, %v7852_v26  ;;  %v541_v26 = vld [vmem:[%s10114_s1 + $0x1f0] sm:$0xff]  ;;  %v558_v3 = vld [vmem:[%s10114_s1 + $0x278] sm:$0xff] }
 0x1dd   : > { %1745 = vmatprep.mubr.f32.mxu1 %v534_v25  ;;  %v3504_v51 = vadd.f32 %v3503_v47, %v3502_v23  ;;  %v494_v25 = vld [vmem:[%s10114_s1 + $0x78] sm:$0xff]  ;;  %v3521_v47 = vsel %vm10118_vm0, %v3028_v63, 0.0  ;;  %v3523_v23 = vsel %vm10118_vm0, %v3029_v20, 0.0  ;;  %v3525_v34 = vsel %vm10118_vm0, %v3030_v59, 0.0  ;;  %v693_v63 = vld [vmem:[%s10114_s1 + $0x6b0] sm:$0xff] }
 0x1de   : > { %v3527_v37 = vsel %vm10118_vm0, %v3031_v27, 0.0  ;;  %v606_v20 = vld [vmem:[%s10114_s1 + $0x3f8] sm:$0xff] }
 0x1df   : > { %v3506_v10 = vadd.f32 %v3505_v16, %v3504_v51  ;;  %2556 = vmatmul.mubr.f32.gmra.mrb[60].mxu0 %v971_v14  ;;  %v542_v51 = vld [vmem:[%s10114_s1 + $0x1f8] sm:$0xff] }
 0x1e0   : > { %1746 = vmatmul.mubr.f32.gmra.mrb[6].mxu1 %v533_v6  ;;  %2560 = vmatprep.mubr.f32.mxu0 %v988_v57  ;;  %v3517_v6 = vsel %vm10118_vm0, %v3026_v21, 0.0  ;;  %v726_v59 = vld [vmem:[%s10114_s1 + $0x7b8] sm:$0xff] }
 0x1e1   : > { %1750 = vmatprep.mubr.f32.mxu1 %v550_v5  ;;  %v3508_v7 = vadd.f32 %v3507_v18, %v3506_v10  ;;  %v3519_v5 = vsel %vm10118_vm0, %v3027_v29, 0.0  ;;  %v645_v10 = vld [vmem:[%s10114_s1 + $0x530] sm:$0xff]  ;;  %v694_v29 = vld [vmem:[%s10114_s1 + $0x6b8] sm:$0xff] }
 0x1e3   : > { %v3510_v40 = vadd.f32 %v3509_v28, %v3508_v7  ;;  %2561 = vmatmul.mubr.f32.gmra.mrb[62].mxu0 %v987_v4  ;;  %v3529_v28 = vsel %vm10118_vm0, %v3032_v1, 0.0  ;;  %v638_v1 = vld [vmem:[%s10114_s1 + $0x4f8] sm:$0xff] }
 0x1e4   : > { %1751 = vmatmul.mubr.f32.gmra.mrb[8].mxu1 %v549_v58  ;;  %2630 = vmatprep.mubr.f32.mxu0 %v494_v25  ;;  %v3037_v25 = vmul.f32 %v7930_v32, %v7930_v32  ;;  %v3038_v32 = vmul.f32 %v7933_v30, %v7933_v30  ;;  %v589_v30 = vld [vmem:[%s10114_s1 + $0x370] sm:$0xff] }
 0x1e5   : > { %1755 = vmatprep.mubr.f32.mxu1 %v566_v0  ;;  %v3512_v2 = vadd.f32 %v3511_v49, %v3510_v40  ;;  %v629_v0 = vld [vmem:[%s10114_s1 + $0x4b0] sm:$0xff]  ;;  %v3035_v49 = vmul.f32 %v7905_v13, %v7905_v13  ;;  %v678_v40 = vld [vmem:[%s10114_s1 + $0x638] sm:$0xff]  ;;  %v3036_v13 = vmul.f32 %v7908_v15, %v7908_v15 }
 0x1e6   : > { %v573_v15 = vld [vmem:[%s10114_s1 + $0x2f0] sm:$0xff] }
 0x1e7   : > { %v3514_v45 = vadd.f32 %v3513_v61, %v3512_v2  ;;  %2631 = vmatmul.mubr.f32.vlgmr.msra.gmra.mrb[0].mxu0 %v493_v35  ;;  %v3535_v21 = vsel %vm10118_vm0, %v3035_v49, 0.0  ;;  %v677_v2 = vld [vmem:[%s10114_s1 + $0x630] sm:$0xff] }
 0x1e8   : > { %1756 = vmatmul.mubr.f32.gmra.mrb[10].mxu1 %v565_v43  ;;  %2635 = vmatprep.mubr.f32.mxu0 %v510_v11  ;;  %v3033_v43 = vmul.f32 %v7877_v54, %v7877_v54  ;;  %v3034_v54 = vmul.f32 %v7880_v33, %v7880_v33  ;;  %v557_v33 = vld [vmem:[%s10114_s1 + $0x270] sm:$0xff] }
 0x1e9   : > { %1760 = vmatprep.mubr.f32.mxu1 %v582_v19  ;;  %v3516_v56 = vadd.f32 %v3515_v12, %v3514_v45  ;;  %v662_v19 = vld [vmem:[%s10114_s1 + $0x5b8] sm:$0xff] }
 0x1ea   : > { %v3531_v7 = vsel %vm10118_vm0, %v3033_v43, 0.0  ;;  %v3533_v4 = vsel %vm10118_vm0, %v3034_v54, 0.0  ;;  %v590_v45 = vld [vmem:[%s10114_s1 + $0x378] sm:$0xff]  ;;  %v741_v43 = vld [vmem:[%s10114_s1 + $0x830] sm:$0xff] }
 0x1eb   : > { %v3518_v31 = vadd.f32 %v3517_v6, %v3516_v56  ;;  %2636 = vmatmul.mubr.f32.gmra.mrb[2].mxu0 %v509_v17  ;;  %v3039_v6 = vmul.f32 %v7955_v53, %v7955_v53  ;;  %v710_v56 = vld [vmem:[%s10114_s1 + $0x738] sm:$0xff]  ;;  %v3040_v53 = vmul.f32 %v7958_v55, %v7958_v55  ;;  %v3041_v17 = vmul.f32 %v7980_v52, %v7980_v52  ;;  %v605_v55 = vld [vmem:[%s10114_s1 + $0x3f0] sm:$0xff] }
 0x1ec   : > { %1761 = vmatmul.mubr.f32.gmra.mrb[12].mxu1 %v581_v38  ;;  %2640 = vmatprep.mubr.f32.mxu0 %v526_v48  ;;  %v3042_v52 = vmul.f32 %v7983_v62, %v7983_v62  ;;  %v621_v62 = vld [vmem:[%s10114_s1 + $0x470] sm:$0xff] }
 0x1ed   : > { %1765 = vmatprep.mubr.f32.mxu1 %v598_v60  ;;  %v3520_v58 = vadd.f32 %v3519_v5, %v3518_v31  ;;  %v574_v60 = vld [vmem:[%s10114_s1 + $0x2f8] sm:$0xff]  ;;  %v3541_v5 = vsel %vm10118_vm0, %v3038_v32, 0.0  ;;  %v3543_v31 = vsel %vm10118_vm0, %v3039_v6, 0.0  ;;  %v3545_v48 = vsel %vm10118_vm0, %v3040_v53, 0.0  ;;  %v821_v32 = vld [vmem:[%s10114_s1 + $0xab0] sm:$0xff] }
 0x1ee   : > { %v3547_v27 = vsel %vm10118_vm0, %v3041_v17, 0.0  ;;  %v837_v6 = vld [vmem:[%s10114_s1 + $0xb30] sm:$0xff]  ;;  %v870_v53 = vld [vmem:[%s10114_s1 + $0xc38] sm:$0xff] }
 0x1ef   : > { %v3522_v16 = vadd.f32 %v3521_v47, %v3520_v58  ;;  %2641 = vmatmul.mubr.f32.gmra.mrb[4].mxu0 %v525_v24  ;;  %v622_v58 = vld [vmem:[%s10114_s1 + $0x478] sm:$0xff] }
 0x1f0   : > { %1766 = vmatmul.mubr.f32.gmra.mrb[14].mxu1 %v597_v9  ;;  %2645 = vmatprep.mubr.f32.mxu0 %v542_v51  ;;  %v3537_v9 = vsel %vm10118_vm0, %v3036_v13, 0.0  ;;  %v790_v13 = vld [vmem:[%s10114_s1 + $0x9b8] sm:$0xff] }
 0x1f1   : > { %1770 = vmatprep.mubr.f32.mxu1 %v614_v44  ;;  %v3524_v18 = vadd.f32 %v3523_v23, %v3522_v16  ;;  %v3539_v44 = vsel %vm10118_vm0, %v3037_v25, 0.0  ;;  %v725_v16 = vld [vmem:[%s10114_s1 + $0x7b0] sm:$0xff]  ;;  %v806_v25 = vld [vmem:[%s10114_s1 + $0xa38] sm:$0xff] }
 0x1f2   : > { %v886_v17 = vld [vmem:[%s10114_s1 + $0xcb8] sm:$0xff] }
 0x1f3   : > { %v3526_v14 = vadd.f32 %v3525_v34, %v3524_v18  ;;  %2646 = vmatmul.mubr.f32.gmra.mrb[6].mxu0 %v541_v26  ;;  %v3549_v34 = vsel %vm10118_vm0, %v3042_v52, 0.0  ;;  %v901_v52 = vld [vmem:[%s10114_s1 + $0xd30] sm:$0xff] }
 0x1f4   : > { %1771 = vmatmul.mubr.f32.gmra.mrb[16].mxu1 %v613_v22  ;;  %2650 = vmatprep.mubr.f32.mxu0 %v558_v3  ;;  %v757_v3 = vld [vmem:[%s10114_s1 + $0x8b0] sm:$0xff] }
 0x1f5   : > { %1775 = vmatprep.mubr.f32.mxu1 %v630_v46  ;;  %v3528_v57 = vadd.f32 %v3527_v37, %v3526_v14  ;;  %v709_v46 = vld [vmem:[%s10114_s1 + $0x730] sm:$0xff]  ;;  %v3045_v37 = vmul.f32 %v8030_v39, %v8030_v39  ;;  %v758_v14 = vld [vmem:[%s10114_s1 + $0x8b8] sm:$0xff]  ;;  %v3046_v39 = vmul.f32 %v8033_v8, %v8033_v8 }
 0x1f6   : > { %v653_v8 = vld [vmem:[%s10114_s1 + $0x570] sm:$0xff] }
 0x1f7   : > { %v3530_v38 = vadd.f32 %v3529_v28, %v3528_v57  ;;  %2651 = vmatmul.mubr.f32.gmra.mrb[8].mxu0 %v557_v33  ;;  %v3555_v54 = vsel %vm10118_vm0, %v3045_v37, 0.0  ;;  %v3557_v49 = vsel %vm10118_vm0, %v3046_v39, 0.0  ;;  %v773_v33 = vld [vmem:[%s10114_s1 + $0x930] sm:$0xff]  ;;  %v966_v37 = vld [vmem:[%s10114_s1 + $0xf38] sm:$0xff] }
 0x1f8   : > { %1776 = vmatmul.mubr.f32.gmra.mrb[18].mxu1 %v629_v0  ;;  %2655 = vmatprep.mubr.f32.mxu0 %v574_v60  ;;  %v3043_v0 = vmul.f32 %v8005_v41, %v8005_v41  ;;  %v3044_v41 = vmul.f32 %v8008_v42, %v8008_v42  ;;  %v637_v42 = vld [vmem:[%s10114_s1 + $0x4f0] sm:$0xff]  ;;  %v686_v60 = vld [vmem:[%s10114_s1 + $0x678] sm:$0xff] }
 0x1f9   : > { %1780 = vmatprep.mubr.f32.mxu1 %v646_v50  ;;  %v3532_v61 = vadd.f32 %v3531_v7, %v3530_v38  ;;  %v742_v50 = vld [vmem:[%s10114_s1 + $0x838] sm:$0xff]  ;;  %v981_v39 = vld [vmem:[%s10114_s1 + $0xfb0] sm:$0xff] }
 0x1fa   : > { %v3551_v18 = vsel %vm10118_vm0, %v3043_v0, 0.0  ;;  %v3553_v26 = vsel %vm10118_vm0, %v3044_v41, 0.0  ;;  %v774_v7 = vld [vmem:[%s10114_s1 + $0x938] sm:$0xff]  ;;  %v917_v0 = vld [vmem:[%s10114_s1 + $0xdb0] sm:$0xff] }
 0x1fb   : > { %v3534_v12 = vadd.f32 %v3533_v4, %v3532_v61  ;;  %2656 = vmatmul.mubr.f32.gmra.mrb[10].mxu0 %v573_v15  ;;  %v669_v4 = vld [vmem:[%s10114_s1 + $0x5f0] sm:$0xff]  ;;  %v950_v41 = vld [vmem:[%s10114_s1 + $0xeb8] sm:$0xff] }
 0x1fc   : > { %1781 = vmatmul.mubr.f32.gmra.mrb[20].mxu1 %v645_v10  ;;  %2660 = vmatprep.mubr.f32.mxu0 %v590_v45  ;;  %v789_v61 = vld [vmem:[%s10114_s1 + $0x9b0] sm:$0xff] }
 0x1fd   : > { %1785 = vmatprep.mubr.f32.mxu1 %v662_v19  ;;  %v3536_v35 = vadd.f32 %v3535_v21, %v3534_v12  ;;  %v654_v19 = vld [vmem:[%s10114_s1 + $0x578] sm:$0xff]  ;;  %v685_v21 = vld [vmem:[%s10114_s1 + $0x670] sm:$0xff] }
 0x1fe   : > { %v805_v12 = vld [vmem:[%s10114_s1 + $0xa30] sm:$0xff] }
 0x1ff   : > { %v3538_v11 = vadd.f32 %v3537_v9, %v3536_v35  ;;  %2661 = vmatmul.mubr.f32.gmra.mrb[12].mxu0 %v589_v30  ;;  %v701_v15 = vld [vmem:[%s10114_s1 + $0x6f0] sm:$0xff]  ;;  %v718_v9 = vld [vmem:[%s10114_s1 + $0x778] sm:$0xff] }
 0x200   : > { %1786 = vmatmul.mubr.f32.gmra.mrb[22].mxu1 %v661_v36  ;;  %2665 = vmatprep.mubr.f32.mxu0 %v606_v20  ;;  %v670_v36 = vld [vmem:[%s10114_s1 + $0x5f8] sm:$0xff]  ;;  %v717_v45 = vld [vmem:[%s10114_s1 + $0x770] sm:$0xff] }
 0x201   : > { %1790 = vmatprep.mubr.f32.mxu1 %v678_v40  ;;  %v3540_v22 = vadd.f32 %v3539_v44, %v3538_v11  ;;  %v838_v35 = vld [vmem:[%s10114_s1 + $0xb38] sm:$0xff] }
 0x202   : > { %v734_v44 = vld [vmem:[%s10114_s1 + $0x7f8] sm:$0xff] }
 0x203   : > { %v3542_v47 = vadd.f32 %v3541_v5, %v3540_v22  ;;  %2666 = vmatmul.mubr.f32.gmra.mrb[14].mxu0 %v605_v55  ;;  %v854_v11 = vld [vmem:[%s10114_s1 + $0xbb8] sm:$0xff]  ;;  %v749_v5 = vld [vmem:[%s10114_s1 + $0x870] sm:$0xff] }
 0x204   : > { %1791 = vmatmul.mubr.f32.gmra.mrb[24].mxu1 %v677_v2  ;;  %2670 = vmatprep.mubr.f32.mxu0 %v622_v58  ;;  %v702_v2 = vld [vmem:[%s10114_s1 + $0x6f8] sm:$0xff]  ;;  %v869_v22 = vld [vmem:[%s10114_s1 + $0xc30] sm:$0xff] }
 0x205   : > { %1795 = vmatprep.mubr.f32.mxu1 %v694_v29  ;;  %v3544_v23 = vadd.f32 %v3543_v31, %v3542_v47  ;;  %v822_v29 = vld [vmem:[%s10114_s1 + $0xab8] sm:$0xff]  ;;  %v765_v31 = vld [vmem:[%s10114_s1 + $0x8f0] sm:$0xff] }
 0x206   : > { %v750_v30 = vld [vmem:[%s10114_s1 + $0x878] sm:$0xff]  ;;  %v885_v47 = vld [vmem:[%s10114_s1 + $0xcb0] sm:$0xff] }
 0x207   : > { %v3546_v24 = vadd.f32 %v3545_v48, %v3544_v23  ;;  %2671 = vmatmul.mubr.f32.gmra.mrb[16].mxu0 %v621_v62  ;;  %v766_v20 = vld [vmem:[%s10114_s1 + $0x8f8] sm:$0xff]  ;;  %v781_v55 = vld [vmem:[%s10114_s1 + $0x970] sm:$0xff] }
 0x208   : > { %1796 = vmatmul.mubr.f32.gmra.mrb[26].mxu1 %v693_v63  ;;  %2675 = vmatprep.mubr.f32.mxu0 %v638_v1  ;;  %v733_v63 = vld [vmem:[%s10114_s1 + $0x7f0] sm:$0xff]  ;;  %v798_v48 = vld [vmem:[%s10114_s1 + $0x9f8] sm:$0xff] }
 0x209   : > { %1800 = vmatprep.mubr.f32.mxu1 %v710_v56  ;;  %v3548_v51 = vadd.f32 %v3547_v27, %v3546_v24  ;;  %v853_v56 = vld [vmem:[%s10114_s1 + $0xbb0] sm:$0xff]  ;;  %v918_v23 = vld [vmem:[%s10114_s1 + $0xdb8] sm:$0xff] }
 0x20a   : > { %v797_v58 = vld [vmem:[%s10114_s1 + $0x9f0] sm:$0xff]  ;;  %v814_v27 = vld [vmem:[%s10114_s1 + $0xa78] sm:$0xff] }
 0x20b   : > { %v3550_v10 = vadd.f32 %v3549_v34, %v3548_v51  ;;  %2676 = vmatmul.mubr.f32.gmra.mrb[18].mxu0 %v637_v42  ;;  %v934_v24 = vld [vmem:[%s10114_s1 + $0xe38] sm:$0xff]  ;;  %v829_v34 = vld [vmem:[%s10114_s1 + $0xaf0] sm:$0xff] }
 0x20c   : > { %1801 = vmatmul.mubr.f32.gmra.mrb[28].mxu1 %v709_v46  ;;  %2680 = vmatprep.mubr.f32.mxu0 %v654_v19  ;;  %v782_v46 = vld [vmem:[%s10114_s1 + $0x978] sm:$0xff]  ;;  %v949_v51 = vld [vmem:[%s10114_s1 + $0xeb0] sm:$0xff] }
 0x20d   : > { %1805 = vmatprep.mubr.f32.mxu1 %v726_v59  ;;  %v3552_v28 = vadd.f32 %v3551_v18, %v3550_v10  ;;  %v902_v59 = vld [vmem:[%s10114_s1 + $0xd38] sm:$0xff]  ;;  %v845_v18 = vld [vmem:[%s10114_s1 + $0xb70] sm:$0xff] }
 0x20e   : > { %v830_v62 = vld [vmem:[%s10114_s1 + $0xaf8] sm:$0xff]  ;;  %v965_v10 = vld [vmem:[%s10114_s1 + $0xf30] sm:$0xff] }
 0x20f   : > { %v3554_v57 = vadd.f32 %v3553_v26, %v3552_v28  ;;  %2681 = vmatmul.mubr.f32.gmra.mrb[20].mxu0 %v653_v8  ;;  %v846_v1 = vld [vmem:[%s10114_s1 + $0xb78] sm:$0xff]  ;;  %v861_v42 = vld [vmem:[%s10114_s1 + $0xbf0] sm:$0xff] }
 0x210   : > { %1806 = vmatmul.mubr.f32.gmra.mrb[30].mxu1 %v725_v16  ;;  %2685 = vmatprep.mubr.f32.mxu0 %v670_v36  ;;  %v813_v16 = vld [vmem:[%s10114_s1 + $0xa70] sm:$0xff]  ;;  %v878_v26 = vld [vmem:[%s10114_s1 + $0xc78] sm:$0xff] }
 0x211   : > { %1810 = vmatprep.mubr.f32.mxu1 %v742_v50  ;;  %v3556_v38 = vadd.f32 %v3555_v54, %v3554_v57  ;;  %v933_v50 = vld [vmem:[%s10114_s1 + $0xe30] sm:$0xff]  ;;  %v894_v28 = vld [vmem:[%s10114_s1 + $0xcf8] sm:$0xff] }
 0x212   : > { %v877_v19 = vld [vmem:[%s10114_s1 + $0xc70] sm:$0xff]  ;;  %v926_v8 = vld [vmem:[%s10114_s1 + $0xdf8] sm:$0xff] }
 0x213   : > { %v8519_v40 = vadd.f32 %v3557_v49, %v3556_v38  ;;  %2686 = vmatmul.mubr.f32.gmra.mrb[22].mxu0 %v669_v4  ;;  %v893_v54 = vld [vmem:[%s10114_s1 + $0xcf0] sm:$0xff]  ;;  %v942_v49 = vld [vmem:[%s10114_s1 + $0xe78] sm:$0xff] }
 0x214   : > { %1811 = vmatmul.mubr.f32.gmra.mrb[32].mxu1 %v741_v43  ;;  %2690 = vmatprep.mubr.f32.mxu0 %v686_v60  ;;  %v862_v43 = vld [vmem:[%s10114_s1 + $0xbf8] sm:$0xff]  ;;  %v909_v57 = vld [vmem:[%s10114_s1 + $0xd70] sm:$0xff] }
 0x215   : > { %1815 = vmatprep.mubr.f32.mxu1 %v758_v14  ;;  %v982_v14 = vld [vmem:[%s10114_s1 + $0xfb8] sm:$0xff]  ;;  %v941_v36 = vld [vmem:[%s10114_s1 + $0xe70] sm:$0xff] }
 0x216   : > { %v958_v38 = vld [vmem:[%s10114_s1 + $0xef8] sm:$0xff] }
 0x217   : > { %2691 = vmatmul.mubr.f32.gmra.mrb[24].mxu0 %v685_v21  ;;  %v974_v4 = vld [vmem:[%s10114_s1 + $0xf78] sm:$0xff]  ;;  %v3559_v21 = vrot.slane %v8519_v40, 4 }
 0x218   : > { %1816 = vmatmul.mubr.f32.gmra.mrb[34].mxu1 %v757_v3  ;;  %2695 = vmatprep.mubr.f32.mxu0 %v702_v2  ;;  %v910_v3 = vld [vmem:[%s10114_s1 + $0xd78] sm:$0xff] }
 0x219   : > { %1820 = vmatprep.mubr.f32.mxu1 %v774_v7  ;;  %v925_v7 = vld [vmem:[%s10114_s1 + $0xdf0] sm:$0xff]  ;;  %v990_v60 = vld [vmem:[%s10114_s1 + $0xff8] sm:$0xff] }
 0x21b   : > { %2696 = vmatmul.mubr.f32.gmra.mrb[26].mxu0 %v701_v15 }
 0x21c   : > { %1821 = vmatmul.mubr.f32.gmra.mrb[36].mxu1 %v773_v33  ;;  %2700 = vmatprep.mubr.f32.mxu0 %v718_v9  ;;  %v957_v33 = vld [vmem:[%s10114_s1 + $0xef0] sm:$0xff] }
 0x21d   : > { %1825 = vmatprep.mubr.f32.mxu1 %v790_v13  ;;  %v973_v13 = vld [vmem:[%s10114_s1 + $0xf70] sm:$0xff] }
 0x21f   : > { %2701 = vmatmul.mubr.f32.gmra.mrb[28].mxu0 %v717_v45 }
 0x220   : > { %1826 = vmatmul.mubr.f32.gmra.mrb[38].mxu1 %v789_v61  ;;  %2705 = vmatprep.mubr.f32.mxu0 %v734_v44  ;;  %v989_v61 = vld [vmem:[%s10114_s1 + $0xff0] sm:$0xff] }
 0x221   : > { %1830 = vmatprep.mubr.f32.mxu1 %v806_v25  ;;  %v3560_v25 = vadd.f32 %v3559_v21, %v8519_v40 }
 0x223   : > { %2706 = vmatmul.mubr.f32.gmra.mrb[30].mxu0 %v733_v63  ;;  %v3561_v2 = vrot.slane %v3560_v25, 2 }
 0x224   : > { %1831 = vmatmul.mubr.f32.gmra.mrb[40].mxu1 %v805_v12  ;;  %2710 = vmatprep.mubr.f32.mxu0 %v750_v30 }
 0x225   : > { %1835 = vmatprep.mubr.f32.mxu1 %v822_v29  ;;  %v3562_v29 = vadd.f32 %v3561_v2, %v3560_v25 }
 0x227   : > { %2711 = vmatmul.mubr.f32.gmra.mrb[32].mxu0 %v749_v5  ;;  %v3563_v45 = vrot.slane %v3562_v29, 1 }
 0x228   : > { %1836 = vmatmul.mubr.f32.gmra.mrb[42].mxu1 %v821_v32  ;;  %2715 = vmatprep.mubr.f32.mxu0 %v766_v20 }
 0x229   : > { %1840 = vmatprep.mubr.f32.mxu1 %v838_v35 }
 0x22b   : > { %2716 = vmatmul.mubr.f32.gmra.mrb[34].mxu0 %v765_v31 }
 0x22c   : > { %1841 = vmatmul.mubr.f32.gmra.mrb[44].mxu1 %v837_v6  ;;  %2720 = vmatprep.mubr.f32.mxu0 %v782_v46  ;;  %v3564_v6 = vadd.f32 %v3563_v45, %v3562_v29 }
 0x22d   : > { %1845 = vmatprep.mubr.f32.mxu1 %v854_v11 }
 0x22e   : > { %v3565_v30 = vmax.f32 %v3564_v6, 1e-24 }
 0x22f   : > { %2721 = vmatmul.mubr.f32.gmra.mrb[36].mxu0 %v781_v55 }
 0x230   : > { %1846 = vmatmul.mubr.f32.gmra.mrb[46].mxu1 %v853_v56  ;;  %2725 = vmatprep.mubr.f32.mxu0 %v798_v48  ;;  %5689 = vrsqrt.f32 %v3565_v30 }
 0x231   : > { %1850 = vmatprep.mubr.f32.mxu1 %v870_v53 }
 0x233   : > { %2726 = vmatmul.mubr.f32.gmra.mrb[38].mxu0 %v797_v58 }
 0x234   : > { %1851 = vmatmul.mubr.f32.gmra.mrb[48].mxu1 %v869_v22  ;;  %2730 = vmatprep.mubr.f32.mxu0 %v814_v27 }
 0x235   : > { %1855 = vmatprep.mubr.f32.mxu1 %v886_v17 }
 0x237   : > { %2731 = vmatmul.mubr.f32.gmra.mrb[40].mxu0 %v813_v16 }
 0x238   : > { %1856 = vmatmul.mubr.f32.gmra.mrb[50].mxu1 %v885_v47  ;;  %2735 = vmatprep.mubr.f32.mxu0 %v830_v62 }
 0x239   : > { %1860 = vmatprep.mubr.f32.mxu1 %v902_v59 }
 0x23a   : > { %v8724_v17 = vpop.eup %5689 }
 0x23b   : > { %2736 = vmatmul.mubr.f32.gmra.mrb[42].mxu0 %v829_v34 }
 0x23c   : > { %1861 = vmatmul.mubr.f32.gmra.mrb[52].mxu1 %v901_v52  ;;  %2740 = vmatprep.mubr.f32.mxu0 %v846_v1 }
 0x23d   : > { %1865 = vmatprep.mubr.f32.mxu1 %v918_v23 }
 0x23f   : > { %2741 = vmatmul.mubr.f32.gmra.mrb[44].mxu0 %v845_v18 }
 0x240   : > { %1866 = vmatmul.mubr.f32.gmra.mrb[54].mxu1 %v917_v0  ;;  %2745 = vmatprep.mubr.f32.mxu0 %v862_v43 }
 0x241   : > { %1870 = vmatprep.mubr.f32.mxu1 %v934_v24 }
 0x243   : > { %2746 = vmatmul.mubr.f32.gmra.mrb[46].mxu0 %v861_v42 }
 0x244   : > { %1871 = vmatmul.mubr.f32.gmra.mrb[56].mxu1 %v933_v50  ;;  %2750 = vmatprep.mubr.f32.mxu0 %v878_v26 }
 0x245   : > { %1875 = vmatprep.mubr.f32.mxu1 %v950_v41 }
 0x247   : > { %2751 = vmatmul.mubr.f32.gmra.mrb[48].mxu0 %v877_v19 }
 0x248   : > { %1876 = vmatmul.mubr.f32.gmra.mrb[58].mxu1 %v949_v51  ;;  %2755 = vmatprep.mubr.f32.mxu0 %v894_v28 }
 0x249   : > { %1880 = vmatprep.mubr.f32.mxu1 %v966_v37 }
 0x24b   : > { %2756 = vmatmul.mubr.f32.gmra.mrb[50].mxu0 %v893_v54 }
 0x24c   : > { %1881 = vmatmul.mubr.f32.gmra.mrb[60].mxu1 %v965_v10  ;;  %2760 = vmatprep.mubr.f32.mxu0 %v910_v3 }
 0x24d   : > { %1885 = vmatprep.mubr.f32.mxu1 %v982_v14 }
 0x24f   : > { %2761 = vmatmul.mubr.f32.gmra.mrb[52].mxu0 %v909_v57 }
 0x250   : > { %1886 = vmatmul.mubr.f32.gmra.mrb[62].mxu1 %v981_v39  ;;  %2765 = vmatprep.mubr.f32.mxu0 %v926_v8 }
 0x253   : > { %2766 = vmatmul.mubr.f32.gmra.mrb[54].mxu0 %v925_v7 }
 0x254   : > { %2770 = vmatprep.mubr.f32.mxu0 %v942_v49 }
 0x257   : > { %2771 = vmatmul.mubr.f32.gmra.mrb[56].mxu0 %v941_v36 }
 0x258   : > { %2775 = vmatprep.mubr.f32.mxu0 %v958_v38 }
 0x25b   : > { %2776 = vmatmul.mubr.f32.gmra.mrb[58].mxu0 %v957_v33 }
 0x25c   : > { %2780 = vmatprep.mubr.f32.mxu0 %v974_v4 }
 0x25f   : > { %2781 = vmatmul.mubr.f32.gmra.mrb[60].mxu0 %v973_v13 }
 0x260   : > { %2785 = vmatprep.mubr.f32.mxu0 %v990_v60 }
 0x263   : > { %2786 = vmatmul.mubr.f32.gmra.mrb[62].mxu0 %v989_v61 }
 0x2a7   : > { %v1732_v12 = vpop.f32.mrb[0].mxu1 }
 0x2a8   : > { %v1734_v15 = vpop.f32.mrb[1].mxu1 }
 0x2ab   : > { %v1737_v9 = vpop.f32.mrb[2].mxu1 }
 0x2ac   : > { %v1739_v32 = vpop.f32.mrb[3].mxu1 }
 0x2af   : > { %v1742_v35 = vpop.f32.mrb[4].mxu1 }
 0x2b0   : > { %v1744_v44 = vpop.f32.mrb[5].mxu1 }
 0x2b3   : > { %v1747_v63 = vpop.f32.mrb[6].mxu1 }
 0x2b4   : > { %v1749_v11 = vpop.f32.mrb[7].mxu1 }
 0x2b7   : > { %v1752_v56 = vpop.f32.mrb[8].mxu1 }
 0x2b8   : > { %v1754_v5 = vpop.f32.mrb[9].mxu1 }
 0x2ba   : > { %v2632_v46 = vpop.f32.mrb[0].mxu0 }
 0x2bb   : > { %v1757_v53 = vpop.f32.mrb[10].mxu1  ;;  %v5263_v55 = vadd.f32 %v2632_v46, %v1732_v12  ;;  %v2634_v59 = vpop.f32.mrb[1].mxu0 }
 0x2bc   : > { %v1759_v20 = vpop.f32.mrb[11].mxu1 }
 0x2bd   : > { %v8727_v48 = vmul.f32 %v8724_v17, %v5263_v55 }
 0x2be   : > { %v2637_v58 = vpop.f32.mrb[2].mxu0 }
 0x2bf   : > { %v1762_v22 = vpop.f32.mrb[12].mxu1  ;;  %v5264_v27 = vadd.f32 %v2637_v58, %v1737_v9  ;;  %v2639_v0 = vpop.f32.mrb[3].mxu0  ;;  %v3599_v7 = vsel %vm10118_vm0, %v8727_v48, -inf }
 0x2c0   : > { %v1764_v40 = vpop.f32.mrb[13].mxu1 }
 0x2c1   : > { %v8730_v16 = vmul.f32 %v8724_v17, %v5264_v27 }
 0x2c2   : > { %v2642_v62 = vpop.f32.mrb[4].mxu0 }
 0x2c3   : > { %v1767_v31 = vpop.f32.mrb[14].mxu1  ;;  %v5265_v34 = vadd.f32 %v2642_v62, %v1742_v35  ;;  %v2644_v41 = vpop.f32.mrb[5].mxu0  ;;  %v3600_v21 = vsel %vm10118_vm0, %v8730_v16, -inf }
 0x2c4   : > { %v1769_v47 = vpop.f32.mrb[15].mxu1 }
 0x2c5   : > { %v8733_v1 = vmul.f32 %v8724_v17, %v5265_v34 }
 0x2c6   : > { %v2647_v18 = vpop.f32.mrb[6].mxu0 }
 0x2c7   : > { %v1772_v52 = vpop.f32.mrb[16].mxu1  ;;  %v5266_v43 = vadd.f32 %v2647_v18, %v1747_v63  ;;  %v2649_v10 = vpop.f32.mrb[7].mxu0  ;;  %v3601_v35 = vsel %vm10118_vm0, %v8733_v1, -inf }
 0x2c8   : > { %v1774_v23 = vpop.f32.mrb[17].mxu1 }
 0x2c9   : > { %v8736_v42 = vmul.f32 %v8724_v17, %v5266_v43 }
 0x2ca   : > { %v2652_v26 = vpop.f32.mrb[8].mxu0 }
 0x2cb   : > { %v1777_v24 = vpop.f32.mrb[18].mxu1  ;;  %v5267_v19 = vadd.f32 %v2652_v26, %v1752_v56  ;;  %v2654_v28 = vpop.f32.mrb[9].mxu0  ;;  %v3602_v20 = vsel %vm10118_vm0, %v8736_v42, -inf }
 0x2cc   : > { %v1779_v50 = vpop.f32.mrb[19].mxu1 }
 0x2cd   : > { %v8739_v54 = vmul.f32 %v8724_v17, %v5267_v19 }
 0x2ce   : > { %v2657_v57 = vpop.f32.mrb[10].mxu0 }
 0x2cf   : > { %v1782_v51 = vpop.f32.mrb[20].mxu1  ;;  %v3603_v49 = vsel %vm10118_vm0, %v8739_v54, -inf  ;;  %v5268_v36 = vadd.f32 %v2657_v57, %v1757_v53  ;;  %v2659_v38 = vpop.f32.mrb[11].mxu0 }
 0x2d0   : > { %v1784_v37 = vpop.f32.mrb[21].mxu1  ;;  %v3604_v33 = vmax.f32 %v3599_v7, %v3603_v49 }
 0x2d1   : > { %v8748_v4 = vmul.f32 %v8724_v17, %v5268_v36 }
 0x2d2   : > { %v2662_v60 = vpop.f32.mrb[12].mxu0 }
 0x2d3   : > { %v1787_v14 = vpop.f32.mrb[22].mxu1  ;;  %v3605_v25 = vsel %vm10118_vm0, %v8748_v4, -inf  ;;  %v5269_v2 = vadd.f32 %v2662_v60, %v1762_v22  ;;  %v2664_v12 = vpop.f32.mrb[13].mxu0 }
 0x2d4   : > { %v1789_v39 = vpop.f32.mrb[23].mxu1  ;;  %v3606_v15 = vmax.f32 %v3600_v21, %v3605_v25 }
 0x2d5   : > { %v8757_v29 = vmul.f32 %v8724_v17, %v5269_v2 }
 0x2d6   : > { %v2667_v32 = vpop.f32.mrb[14].mxu0 }
 0x2d7   : > { %v8741_v3 = vpop.f32.mrb[24].mxu1  ;;  %v3607_v44 = vsel %vm10118_vm0, %v8757_v29, -inf  ;;  %v5270_v6 = vadd.f32 %v2667_v32, %v1767_v31  ;;  %v2669_v63 = vpop.f32.mrb[15].mxu0 }
 0x2d8   : > { %v1794_v8 = vpop.f32.mrb[25].mxu1  ;;  %v3608_v11 = vmax.f32 %v3601_v35, %v3607_v44 }
 0x2d9   : > { %v8764_v30 = vmul.f32 %v8724_v17, %v5270_v6 }
 0x2da   : > { %v2672_v5 = vpop.f32.mrb[16].mxu0 }
 0x2db   : > { %v8750_v13 = vpop.f32.mrb[26].mxu1  ;;  %v3609_v22 = vsel %vm10118_vm0, %v8764_v30, -inf  ;;  %v5271_v40 = vadd.f32 %v2672_v5, %v1772_v52  ;;  %v2674_v46 = vpop.f32.mrb[17].mxu0 }
 0x2dc   : > { %v1799_v61 = vpop.f32.mrb[27].mxu1  ;;  %v3610_v47 = vmax.f32 %v3602_v20, %v3609_v22 }
 0x2dd   : > { %v8771_v55 = vmul.f32 %v8724_v17, %v5271_v40 }
 0x2de   : > { %v2677_v59 = vpop.f32.mrb[18].mxu0 }
 0x2df   : > { %v1802_v9 = vpop.f32.mrb[28].mxu1  ;;  %v3611_v23 = vsel %vm10118_vm0, %v8771_v55, -inf  ;;  %v5272_v27 = vadd.f32 %v2677_v59, %v1777_v24  ;;  %v2679_v0 = vpop.f32.mrb[19].mxu0 }
 0x2e0   : > { %v1804_v45 = vpop.f32.mrb[29].mxu1  ;;  %v8775_v62 = vmax.f32 %v3604_v33, %v3611_v23 }
 0x2e1   : > { %v8778_v50 = vmul.f32 %v8724_v17, %v5272_v27 }
 0x2e2   : > { %v2682_v52 = vpop.f32.mrb[20].mxu0 }
 0x2e3   : > { %v1807_v56 = vpop.f32.mrb[30].mxu1  ;;  %v3613_v18 = vsel %vm10118_vm0, %v8778_v50, -inf  ;;  %v5273_v37 = vadd.f32 %v2682_v52, %v1782_v51  ;;  %v2684_v43 = vpop.f32.mrb[21].mxu0 }
 0x2e4   : > { %v1809_v53 = vpop.f32.mrb[31].mxu1  ;;  %v8782_v10 = vmax.f32 %v3606_v15, %v3613_v18 }
 0x2e5   : > { %v8785_v26 = vmul.f32 %v8724_v17, %v5273_v37 }
 0x2e6   : > { %v2687_v39 = vpop.f32.mrb[22].mxu0 }
 0x2e7   : > { %v1812_v31 = vpop.f32.mrb[32].mxu1  ;;  %v3615_v28 = vsel %vm10118_vm0, %v8785_v26, -inf  ;;  %v5274_v57 = vadd.f32 %v2687_v39, %v1787_v14  ;;  %v2689_v8 = vpop.f32.mrb[23].mxu0 }
 0x2e8   : > { %v1814_v58 = vpop.f32.mrb[33].mxu1  ;;  %v8789_v7 = vmax.f32 %v3608_v11, %v3615_v28 }
 0x2e9   : > { %v8792_v49 = vmul.f32 %v8724_v17, %v5274_v57 }
 0x2ea   : > { %v2692_v36 = vpop.f32.mrb[24].mxu0 }
 0x2eb   : > { %v1817_v34 = vpop.f32.mrb[34].mxu1  ;;  %v3617_v33 = vsel %vm10118_vm0, %v8792_v49, -inf  ;;  %v5275_v60 = vadd.f32 %v2692_v36, %v8741_v3  ;;  %v2694_v61 = vpop.f32.mrb[25].mxu0 }
 0x2ec   : > { %v1819_v41 = vpop.f32.mrb[35].mxu1  ;;  %v8797_v21 = vmax.f32 %v3610_v47, %v3617_v33 }
 0x2ed   : > { %v8800_v25 = vmul.f32 %v8724_v17, %v5275_v60 }
 0x2ee   : > { %v2697_v2 = vpop.f32.mrb[26].mxu0 }
 0x2ef   : > { %v1822_v24 = vpop.f32.mrb[36].mxu1  ;;  %v3619_v15 = vsel %vm10118_vm0, %v8800_v25, -inf  ;;  %v5276_v32 = vadd.f32 %v2697_v2, %v8750_v13  ;;  %v2699_v45 = vpop.f32.mrb[27].mxu0 }
 0x2f0   : > { %v1824_v19 = vpop.f32.mrb[37].mxu1  ;;  %v3620_v35 = vmax.f32 %v8775_v62, %v3619_v15 }
 0x2f1   : > { %v8807_v44 = vmul.f32 %v8724_v17, %v5276_v32 }
 0x2f2   : > { %v2702_v6 = vpop.f32.mrb[28].mxu0 }
 0x2f3   : > { %v1827_v51 = vpop.f32.mrb[38].mxu1  ;;  %v3621_v11 = vsel %vm10118_vm0, %v8807_v44, -inf  ;;  %v5277_v5 = vadd.f32 %v2702_v6, %v1802_v9  ;;  %v2704_v53 = vpop.f32.mrb[29].mxu0 }
 0x2f4   : > { %v1829_v38 = vpop.f32.mrb[39].mxu1  ;;  %v3622_v20 = vmax.f32 %v8782_v10, %v3621_v11 }
 0x2f5   : > { %v8813_v22 = vmul.f32 %v8724_v17, %v5277_v5 }
 0x2f6   : > { %v2707_v40 = vpop.f32.mrb[30].mxu0 }
 0x2f7   : > { %v1832_v14 = vpop.f32.mrb[40].mxu1  ;;  %v3623_v47 = vsel %vm10118_vm0, %v8813_v22, -inf  ;;  %v5278_v59 = vadd.f32 %v2707_v40, %v1807_v56  ;;  %v2709_v58 = vpop.f32.mrb[31].mxu0 }
 0x2f8   : > { %v1834_v12 = vpop.f32.mrb[41].mxu1  ;;  %v3624_v23 = vmax.f32 %v8789_v7, %v3623_v47 }
 0x2f9   : > { %v8819_v27 = vmul.f32 %v8724_v17, %v5278_v59 }
 0x2fa   : > { %v2712_v0 = vpop.f32.mrb[32].mxu0 }
 0x2fb   : > { %v1837_v3 = vpop.f32.mrb[42].mxu1  ;;  %v3625_v52 = vsel %vm10118_vm0, %v8819_v27, -inf  ;;  %v5279_v41 = vadd.f32 %v2712_v0, %v1812_v31  ;;  %v2714_v18 = vpop.f32.mrb[33].mxu0 }
 0x2fc   : > { %v1839_v63 = vpop.f32.mrb[43].mxu1  ;;  %v3626_v37 = vmax.f32 %v8797_v21, %v3625_v52 }
 0x2fd   : > { %v8825_v43 = vmul.f32 %v8724_v17, %v5279_v41 }
 0x2fe   : > { %v2717_v10 = vpop.f32.mrb[34].mxu0 }
 0x2ff   : > { %v1842_v13 = vpop.f32.mrb[44].mxu1  ;;  %v3627_v19 = vsel %vm10118_vm0, %v8825_v43, -inf  ;;  %v5280_v28 = vadd.f32 %v2717_v10, %v1817_v34  ;;  %v2719_v57 = vpop.f32.mrb[35].mxu0 }
 0x300   : > { %v1844_v46 = vpop.f32.mrb[45].mxu1  ;;  %v8829_v8 = vmax.f32 %v3620_v35, %v3627_v19 }
 0x301   : > { %v8832_v7 = vmul.f32 %v8724_v17, %v5280_v28 }
 0x302   : > { %v2722_v36 = vpop.f32.mrb[36].mxu0 }
 0x303   : > { %v1847_v9 = vpop.f32.mrb[46].mxu1  ;;  %v3629_v33 = vsel %vm10118_vm0, %v8832_v7, -inf  ;;  %v5281_v60 = vadd.f32 %v2722_v36, %v1822_v24  ;;  %v2724_v61 = vpop.f32.mrb[37].mxu0 }
 0x304   : > { %v1849_v62 = vpop.f32.mrb[47].mxu1  ;;  %v8836_v21 = vmax.f32 %v3622_v20, %v3629_v33 }
 0x305   : > { %v8839_v2 = vmul.f32 %v8724_v17, %v5281_v60 }
 0x306   : > { %v2727_v12 = vpop.f32.mrb[38].mxu0 }
 0x307   : > { %v1852_v56 = vpop.f32.mrb[48].mxu1  ;;  %v3631_v32 = vsel %vm10118_vm0, %v8839_v2, -inf  ;;  %v5282_v45 = vadd.f32 %v2727_v12, %v1827_v51  ;;  %v2729_v35 = vpop.f32.mrb[39].mxu0 }
 0x308   : > { %v1854_v39 = vpop.f32.mrb[49].mxu1  ;;  %v8843_v6 = vmax.f32 %v3624_v23, %v3631_v32 }
 0x309   : > { %v8846_v63 = vmul.f32 %v8724_v17, %v5282_v45 }
 0x30a   : > { %v2732_v11 = vpop.f32.mrb[40].mxu0 }
 0x30b   : > { %v1857_v31 = vpop.f32.mrb[50].mxu1  ;;  %v3633_v53 = vsel %vm10118_vm0, %v8846_v63, -inf  ;;  %v5283_v20 = vadd.f32 %v2732_v11, %v1832_v14  ;;  %v2734_v40 = vpop.f32.mrb[41].mxu0 }
 0x30c   : > { %v1859_v38 = vpop.f32.mrb[51].mxu1  ;;  %v3634_v46 = vmax.f32 %v3626_v37, %v3633_v53 }
 0x30d   : > { %v8851_v47 = vmul.f32 %v8724_v17, %v5283_v20 }
 0x30e   : > { %v2737_v51 = vpop.f32.mrb[42].mxu0 }
 0x30f   : > { %v1862_v34 = vpop.f32.mrb[52].mxu1  ;;  %v3635_v23 = vsel %vm10118_vm0, %v8851_v47, -inf  ;;  %v5284_v0 = vadd.f32 %v2737_v51, %v1837_v3  ;;  %v2739_v62 = vpop.f32.mrb[43].mxu0 }
 0x310   : > { %v1864_v15 = vpop.f32.mrb[53].mxu1  ;;  %v3636_v52 = vmax.f32 %v8829_v8, %v3635_v23 }
 0x311   : > { %v8857_v41 = vmul.f32 %v8724_v17, %v5284_v0 }
 0x312   : > { %v2742_v14 = vpop.f32.mrb[44].mxu0 }
 0x313   : > { %v1867_v24 = vpop.f32.mrb[54].mxu1  ;;  %v3637_v37 = vsel %vm10118_vm0, %v8857_v41, -inf  ;;  %v5285_v39 = vadd.f32 %v2742_v14, %v1842_v13  ;;  %v2744_v19 = vpop.f32.mrb[45].mxu0 }
 0x314   : > { %v1869_v5 = vpop.f32.mrb[55].mxu1  ;;  %v3638_v28 = vmax.f32 %v8836_v21, %v3637_v37 }
 0x315   : > { %v8863_v57 = vmul.f32 %v8724_v17, %v5285_v39 }
 0x316   : > { %v2747_v36 = vpop.f32.mrb[46].mxu0 }
 0x317   : > { %v1872_v59 = vpop.f32.mrb[56].mxu1  ;;  %v5286_v8 = vadd.f32 %v2747_v36, %v1847_v9  ;;  %v2749_v33 = vpop.f32.mrb[47].mxu0 }
 0x318   : > { %v1874_v58 = vpop.f32.mrb[57].mxu1 }
 0x319   : > { %v8866_v60 = vmul.f32 %v8724_v17, %v5286_v8 }
 0x31a   : > { %v2752_v12 = vpop.f32.mrb[48].mxu0 }
 0x31b   : > { %v1877_v18 = vpop.f32.mrb[58].mxu1  ;;  %v5287_v32 = vadd.f32 %v2752_v12, %v1852_v56  ;;  %v2754_v45 = vpop.f32.mrb[49].mxu0  ;;  %v3641_v56 = vsel %vm10118_vm0, %v8866_v60, -inf }
 0x31c   : > { %v1879_v10 = vpop.f32.mrb[59].mxu1 }
 0x31d   : > { %v8869_v13 = vmul.f32 %v8724_v17, %v5287_v32 }
 0x31e   : > { %v2757_v21 = vpop.f32.mrb[50].mxu0 }
 0x31f   : > { %v1882_v3 = vpop.f32.mrb[60].mxu1  ;;  %v5288_v35 = vadd.f32 %v2757_v21, %v1857_v31  ;;  %v2759_v11 = vpop.f32.mrb[51].mxu0  ;;  %v3642_v31 = vmax.f32 %v3634_v46, %v3641_v56  ;;  %v3643_v36 = vsel %vm10118_vm0, %v8869_v13, -inf  ;;  %v3639_v46 = vsel %vm10118_vm0, %v8863_v57, -inf }
 0x320   : > { %v1884_v38 = vpop.f32.mrb[61].mxu1  ;;  %v3644_v12 = vmax.f32 %v3636_v52, %v3643_v36  ;;  %v3640_v11 = vmax.f32 %v8843_v6, %v3639_v46 }
 0x321   : > { %v8872_v5 = vmul.f32 %v8724_v17, %v5288_v35 }
 0x322   : > { %v2762_v53 = vpop.f32.mrb[52].mxu0 }
 0x323   : > { %v1887_v61 = vpop.f32.mrb[62].mxu1  ;;  %v5289_v9 = vadd.f32 %v2762_v53, %v1862_v34  ;;  %v2764_v20 = vpop.f32.mrb[53].mxu0 }
 0x324   : > { %v1889_v15 = vpop.f32.mrb[63].mxu1 }
 0x325   : > { %v8875_v40 = vmul.f32 %v8724_v17, %v5289_v9 }
 0x326   : > { %v2767_v51 = vpop.f32.mrb[54].mxu0 }
 0x327   : > { %v5290_v58 = vadd.f32 %v2767_v51, %v1867_v24  ;;  %v2769_v23 = vpop.f32.mrb[55].mxu0  ;;  %v3645_v24 = vsel %vm10118_vm0, %v8872_v5, -inf  ;;  %v3647_v45 = vsel %vm10118_vm0, %v8875_v40, -inf }
 0x328   : > { %v3646_v15 = vmax.f32 %v3638_v28, %v3645_v24  ;;  %v3648_v51 = vmax.f32 %v3640_v11, %v3647_v45 }
 0x329   : > { %v8880_v0 = vmul.f32 %v8724_v17, %v5290_v58 }
 0x32a   : > { %v2772_v62 = vpop.f32.mrb[56].mxu0 }
 0x32b   : > { %v3649_v14 = vsel %vm10118_vm0, %v8880_v0, -inf  ;;  %v5291_v10 = vadd.f32 %v2772_v62, %v1872_v59  ;;  %v2774_v34 = vpop.f32.mrb[57].mxu0 }
 0x32c   : > { %v3650_v37 = vmax.f32 %v3642_v31, %v3649_v14  ;;  %v3668_v34 = vlaneseq }
 0x32d   : > { %v8885_v39 = vmul.f32 %v8724_v17, %v5291_v10 }
 0x32e   : > { %v2777_v19 = vpop.f32.mrb[58].mxu0  ;;  %v8913_v24 = vshrl.u32 %v3668_v34, 7 }
 0x32f   : > { %v5292_v38 = vadd.f32 %v2777_v19, %v1877_v18  ;;  %v2779_v8 = vpop.f32.mrb[59].mxu0  ;;  %v3651_v59 = vsel %vm10118_vm0, %v8885_v39, -inf }
 0x330   : > { %v3652_v53 = vmax.f32 %v3644_v12, %v3651_v59  ;;  %v8919_v46 = vadd.s32 24, %v8913_v24  ;;  %v8928_v59 = vadd.s32 80, %v8913_v24  ;;  %v8937_v45 = vadd.s32 120, %v8913_v24 }
 0x331   : > { %v8896_v33 = vmul.f32 %v8724_v17, %v5292_v38  ;;  %v8949_v11 = vadd.s32 184, %v8913_v24 }
 0x332   : > { %v2782_v32 = vpop.f32.mrb[60].mxu0  ;;  %10145 = vst [vmem:[#allocation4_spill] sm:$0xff] %v8919_v46  ;;  %10148 = vst [vmem:[#allocation7_spill] sm:$0xff] %v8928_v59 }
 0x333   : > { %v3653_v21 = vsel %vm10118_vm0, %v8896_v33, -inf  ;;  %v5293_v18 = vadd.f32 %v2782_v32, %v1882_v3  ;;  %v2784_v35 = vpop.f32.mrb[61].mxu0  ;;  %v8934_v32 = vadd.s32 112, %v8913_v24  ;;  %10151 = vst [vmem:[#allocation10_spill] sm:$0xff] %v8937_v45  ;;  %10155 = vst [vmem:[#allocation14_spill] sm:$0xff] %v8949_v11 }
 0x334   : > { %v3654_v9 = vmax.f32 %v3646_v15, %v3653_v21  ;;  %v8931_v15 = vadd.s32 88, %v8913_v24  ;;  %v8940_v21 = vadd.s32 144, %v8913_v24  ;;  %v8946_v35 = vadd.s32 176, %v8913_v24 }
 0x335   : > { %v8904_v20 = vmul.f32 %v8724_v17, %v5293_v18  ;;  %10150 = vst [vmem:[#allocation9_spill] sm:$0xff] %v8934_v32  ;;  %v8943_v18 = vadd.s32 152, %v8913_v24 }
 0x336   : > { %v3659_v56 = vmax.f32 %v3652_v53, %v3654_v9  ;;  %v2787_v52 = vpop.f32.mrb[62].mxu0  ;;  %10149 = vst [vmem:[#allocation8_spill] sm:$0xff] %v8931_v15  ;;  %10152 = vst [vmem:[#allocation11_spill] sm:$0xff] %v8940_v21  ;;  %v8954_v9 = vadd.s32 208, %v8913_v24 }
 0x337   : > { %v3655_v28 = vsel %vm10118_vm0, %v8904_v20, -inf  ;;  %v5294_v58 = vadd.f32 %v2787_v52, %v1887_v61  ;;  %v2789_v23 = vpop.f32.mrb[63].mxu0  ;;  %v8916_v61 = vadd.s32 16, %v8913_v24  ;;  %10153 = vst [vmem:[#allocation12_spill] sm:$0xff] %v8943_v18  ;;  %10154 = vst [vmem:[#allocation13_spill] sm:$0xff] %v8946_v35  ;;  %v8963_v52 = vadd.s32 248, %v8913_v24 }
 0x338   : > { %v3656_v31 = vmax.f32 %v3648_v51, %v3655_v28  ;;  %10156 = vst [vmem:[#allocation15_spill] sm:$0xff] %v8954_v9  ;;  %v8957_v51 = vadd.s32 216, %v8913_v24 }
 0x339   : > { %v8909_v62 = vmul.f32 %v8724_v17, %v5294_v58  ;;  %10144 = vst [vmem:[#allocation3_spill] sm:$0xff] %v8916_v61  ;;  %v8922_v17 = vadd.s32 48, %v8913_v24  ;;  %10159 = vst [vmem:[#allocation18_spill] sm:$0xff] %v8963_v52 }
 0x33a   : > { %10157 = vst [vmem:[#allocation16_spill] sm:$0xff] %v8957_v51 }
 0x33b   : > { %10143 = vst [vmem:[#allocation2_spill] sm:$0xff] %v8909_v62  ;;  %v3657_v6 = vsel %vm10118_vm0, %v8909_v62, -inf  ;;  %10146 = vst [vmem:[#allocation5_spill] sm:$0xff] %v8922_v17 }
 0x33c   : > { %v3658_v3 = vmax.f32 %v3650_v37, %v3657_v6  ;;  %v8925_v37 = vadd.s32 56, %v8913_v24 }
 0x33e   : > { %v3660_v14 = vmax.f32 %v3656_v31, %v3658_v3  ;;  %10147 = vst [vmem:[#allocation6_spill] sm:$0xff] %v8925_v37 }
 0x340   : > { %v3661_v10 = vmax.f32 %v3659_v56, %v3660_v14  ;;  %v8960_v56 = vadd.s32 240, %v8913_v24 }
 0x342   : > { %v3662_v19 = vrot.slane %v3661_v10, 4  ;;  %10158 = vst [vmem:[#allocation17_spill] sm:$0xff] %v8960_v56 }
 0x344   : > { %v3663_v36 = vmax.f32 %v3661_v10, %v3662_v19 }
 0x346   : > { %v3664_v38 = vrot.slane %v3663_v36, 2 }
 0x348   : > { %v3665_v8 = vmax.f32 %v3663_v36, %v3664_v38 }
 0x34a   : > { %v3666_v12 = vrot.slane %v3665_v8, 1 }
 0x34c   : > { %v8951_v53 = vmax.f32 %v3665_v8, %v3666_v12 }
 0x34e   : > { %vm3703_vm1 = vcmp.eq.f32.partialorder %v8733_v1, %v8951_v53  ;;  %vm3704_vm2 = vcmp.eq.f32.partialorder %v8736_v42, %v8951_v53  ;;  %vm3707_vm3 = vcmp.eq.f32.partialorder %v8757_v29, %v8951_v53  ;;  %vm3708_vm4 = vcmp.eq.f32.partialorder %v8764_v30, %v8951_v53 }
 0x34f   : > { %vm3711_vm5 = vcmp.eq.f32.partialorder %v8785_v26, %v8951_v53  ;;  %vm3712_vm6 = vcmp.eq.f32.partialorder %v8792_v49, %v8951_v53  ;;  %vm3715_vm7 = vcmp.eq.f32.partialorder %v8813_v22, %v8951_v53  ;;  %vm3716_vm8 = vcmp.eq.f32.partialorder %v8819_v27, %v8951_v53 }
 0x350   : > { %vm3719_vm9 = vcmp.eq.f32.partialorder %v8839_v2, %v8951_v53  ;;  %vm3720_vm10 = vcmp.eq.f32.partialorder %v8846_v63, %v8951_v53  ;;  %vm3723_vm11 = vcmp.eq.f32.partialorder %v8863_v57, %v8951_v53  ;;  %vm3724_vm12 = vcmp.eq.f32.partialorder %v8866_v60, %v8951_v53 }
 0x351   : > { %vm3727_vm13 = vcmp.eq.f32.partialorder %v8875_v40, %v8951_v53  ;;  %vm3728_vm14 = vcmp.eq.f32.partialorder %v8880_v0, %v8951_v53  ;;  %vm3731_vm15 = vcmp.eq.f32.partialorder %v8904_v20, %v8951_v53  ;;  %vm3732_vm0 = vcmp.eq.f32.partialorder %v8909_v62, %v8951_v53 }
 0x352   : > { %v3735_v28 = vsel %vm3703_vm1, %v8916_v61, 256  ;;  %v3736_v58 = vsel %vm3704_vm2, %v8919_v46, 256  ;;  %v3739_v23 = vsel %vm3707_vm3, %v8922_v17, 256  ;;  %v3740_v31 = vsel %vm3708_vm4, %v8925_v37, 256 }
 0x353   : > { %v3743_v6 = vsel %vm3711_vm5, %v8928_v59, 256  ;;  %v3744_v3 = vsel %vm3712_vm6, %v8931_v15, 256  ;;  %v3747_v14 = vsel %vm3715_vm7, %v8934_v32, 256  ;;  %v3748_v10 = vsel %vm3716_vm8, %v8937_v45, 256 }
 0x354   : > { %v3751_v34 = vsel %vm3719_vm9, %v8940_v21, 256  ;;  %v3752_v19 = vsel %vm3720_vm10, %v8943_v18, 256  ;;  %v3755_v36 = vsel %vm3723_vm11, %v8946_v35, 256  ;;  %v3756_v38 = vsel %vm3724_vm12, %v8949_v11, 256 }
 0x355   : > { %v3759_v8 = vsel %vm3727_vm13, %v8954_v9, 256  ;;  %v3760_v12 = vsel %vm3728_vm14, %v8957_v51, 256  ;;  %v3763_v45 = vsel %vm3731_vm15, %v8960_v56, 256  ;;  %v3764_v32 = vsel %vm3732_vm0, %v8963_v52, 256 }
 0x356   : > { %vm10160_vm1 = vcmask 523264  }
 0x357   : > { %v3767_v11 = vsel %vm10160_vm1, %v3735_v28, 2147483647  ;;  %vm10161_vm2 = vmmov %vm10160_vm1 }
 0x358   : > { %v3768_v35 = vsel %vm10161_vm2, %v3736_v58, 2147483647  ;;  %vm10162_vm3 = vmmov %vm10160_vm1 }
 0x359   : > { %v3775_v9 = vsel %vm10162_vm3, %v3739_v23, 2147483647  ;;  %vm10163_vm5 = vmmov %vm10160_vm1 }
 0x35a   : > { %vm3776_vm4 = vcmp.lt.s32.totalorder %v3767_v11, %v3775_v9  ;;  %v3778_v51 = vsel %vm10163_vm5, %v3740_v31, 2147483647  ;;  %vm10164_vm6 = vmmov %vm10160_vm1 }
 0x35b   : > { %v3787_v15 = vsel %vm10164_vm6, %v3743_v6, 2147483647  ;;  %vm10165_vm7 = vmmov %vm10160_vm1  ;;  %v3777_v59 = vsel %vm3776_vm4, %v3767_v11, %v3775_v9  ;;  %vm3779_vm8 = vcmp.lt.s32.totalorder %v3768_v35, %v3778_v51 }
 0x35c   : > { %v3790_v56 = vsel %vm10165_vm7, %v3744_v3, 2147483647  ;;  %vm10166_vm9 = vmmov %vm10160_vm1  ;;  %v3780_v21 = vsel %vm3779_vm8, %v3768_v35, %v3778_v51  ;;  %vm3788_vm10 = vcmp.lt.s32.totalorder %v3777_v59, %v3787_v15 }
 0x35d   : > { %v3799_v52 = vsel %vm10166_vm9, %v3747_v14, 2147483647  ;;  %vm10167_vm0 = vmmov %vm10160_vm1  ;;  %v3789_v18 = vsel %vm3788_vm10, %v3777_v59, %v3787_v15  ;;  %vm3791_vm13 = vcmp.lt.s32.totalorder %v3780_v21, %v3790_v56  ;;  %v4382_v59 = vsub.f32 %v8730_v16, %v8951_v53 }
 0x35e   : > { %v3802_v28 = vsel %vm10167_vm0, %v3748_v10, 2147483647  ;;  %vm10168_vm11 = vmmov %vm10167_vm0  ;;  %v3792_v37 = vsel %vm3791_vm13, %v3780_v21, %v3790_v56  ;;  %vm3800_vm1 = vcmp.lt.s32.totalorder %v3789_v18, %v3799_v52  ;;  %v4383_v15 = vsub.f32 %v8733_v1, %v8951_v53 }
 0x35f   : > { %v3811_v58 = vsel %vm10168_vm11, %v3751_v34, 2147483647  ;;  %vm10169_vm12 = vmmov %vm10167_vm0  ;;  %v3801_v3 = vsel %vm3800_vm1, %v3789_v18, %v3799_v52  ;;  %vm3803_vm4 = vcmp.lt.s32.totalorder %v3792_v37, %v3802_v28  ;;  %v4384_v56 = vsub.f32 %v8736_v42, %v8951_v53 }
 0x360   : > { %v3814_v23 = vsel %vm10169_vm12, %v3752_v19, 2147483647  ;;  %vm10170_vm14 = vmmov %vm10167_vm0  ;;  %v3804_v14 = vsel %vm3803_vm4, %v3792_v37, %v3802_v28  ;;  %vm3812_vm7 = vcmp.lt.s32.totalorder %v3801_v3, %v3811_v58  ;;  %v4385_v18 = vsub.f32 %v8739_v54, %v8951_v53 }
 0x361   : > { %v3823_v31 = vsel %vm10170_vm14, %v3755_v36, 2147483647  ;;  %vm10171_vm15 = vmmov %vm10167_vm0  ;;  %v3813_v21 = vsel %vm3812_vm7, %v3801_v3, %v3811_v58  ;;  %vm3815_vm8 = vcmp.lt.s32.totalorder %v3804_v14, %v3814_v23  ;;  %v4386_v37 = vsub.f32 %v8748_v4, %v8951_v53 }
 0x362   : > { %v3826_v6 = vsel %vm10171_vm15, %v3756_v38, 2147483647  ;;  %vm10172_vm2 = vmmov %vm10167_vm0  ;;  %v3816_v52 = vsel %vm3815_vm8, %v3804_v14, %v3814_v23  ;;  %vm3824_vm9 = vcmp.lt.s32.totalorder %v3813_v21, %v3823_v31  ;;  %v4388_v1 = vsub.f32 %v8764_v30, %v8951_v53 }
 0x363   : > { %v3835_v11 = vsel %vm10172_vm2, %v3759_v8, 2147483647  ;;  %vm10173_vm3 = vmmov %vm10167_vm0  ;;  %v4389_v10 = vsub.f32 %v8771_v55, %v8951_v53  ;;  %v4390_v34 = vsub.f32 %v8778_v50, %v8951_v53  ;;  %v4391_v19 = vsub.f32 %v8785_v26, %v8951_v53 }
 0x364   : > { %v3838_v9 = vsel %vm10173_vm3, %v3760_v12, 2147483647  ;;  %vm10174_vm5 = vmmov %vm10167_vm0  ;;  %v4393_v38 = vsub.f32 %v8800_v25, %v8951_v53  ;;  %v4419_v3 = vmul.f32 1.442695, %v4384_v56  ;;  %vm3701_vm15 = vcmp.eq.f32.partialorder %v8727_v48, %v8951_v53 }
 0x365   : > { %v3847_v35 = vsel %vm10174_vm5, %v3763_v45, 2147483647  ;;  %vm10175_vm6 = vmmov %vm10167_vm0  ;;  %v3825_v45 = vsel %vm3824_vm9, %v3813_v21, %v3823_v31  ;;  %vm3827_vm0 = vcmp.lt.s32.totalorder %v3816_v52, %v3826_v6  ;;  %v9135_v21 = vadd.s32 32, %v8913_v24 }
 0x366   : > { %v3850_v51 = vsel %vm10175_vm6, %v3764_v32, 2147483647  ;;  %v4387_v32 = vsub.f32 %v8757_v29, %v8951_v53  ;;  %v3828_v42 = vsel %vm3827_vm0, %v3816_v52, %v3826_v6  ;;  %vm3836_vm10 = vcmp.lt.s32.totalorder %v3825_v45, %v3835_v11 }
 0x367   : > { %v3837_v36 = vsel %vm3836_vm10, %v3825_v45, %v3835_v11  ;;  %vm3839_vm11 = vcmp.lt.s32.totalorder %v3828_v42, %v3838_v9  ;;  %v4392_v29 = vsub.f32 %v8792_v49, %v8951_v53  ;;  %v10176_v45 = vsub.f32 %v8727_v48, %v8951_v53 }
 0x368   : > { %v3840_v30 = vsel %vm3839_vm11, %v3828_v42, %v3838_v9  ;;  %vm3848_vm12 = vcmp.lt.s32.totalorder %v3837_v36, %v3847_v35  ;;  %v9138_v52 = vadd.s32 40, %v8913_v24  ;;  %v9147_v56 = vadd.s32 96, %v8913_v24 }
 0x369   : > { %v3849_v28 = vsel %vm3848_vm12, %v3837_v36, %v3847_v35  ;;  %vm3851_vm13 = vcmp.lt.s32.totalorder %v3840_v30, %v3850_v51  ;;  %v4413_v42 = vmul.f32 1.442695, %v10176_v45  ;;  %v4415_v36 = vmul.f32 1.442695, %v4382_v59 }
 0x36a   : > { %v3852_v31 = vsel %vm3851_vm13, %v3840_v30, %v3850_v51  ;;  %v4417_v30 = vmul.f32 1.442695, %v4383_v15  ;;  %v9141_v45 = vadd.s32 64, %v8913_v24  ;;  %v9144_v59 = vadd.s32 72, %v8913_v24 }
 0x36b   : > { %vm3855_vm14 = vcmp.lt.s32.totalorder %v3849_v28, %v3852_v31  ;;  %5691 = vpow2.f32 %v4413_v42  ;;  %v4425_v15 = vmul.f32 1.442695, %v4387_v32  ;;  %v9159_v42 = vadd.s32 160, %v8913_v24 }
 0x36c   : > { %v9121_v14 = vsel %vm3855_vm14, %v3849_v28, %v3852_v31  ;;  %5693 = vpow2.f32 %v4415_v36  ;;  %v4421_v28 = vmul.f32 1.442695, %v4385_v18  ;;  %v4423_v31 = vmul.f32 1.442695, %v4386_v37 }
 0x36d   : > { %5695 = vpow2.f32 %v4417_v30  ;;  %v9150_v18 = vadd.s32 104, %v8913_v24  ;;  %v9153_v37 = vadd.s32 128, %v8913_v24  ;;  %v9162_v36 = vadd.s32 168, %v8913_v24 }
 0x36e   : > { %5697 = vpow2.f32 %v4419_v3  ;;  %v9156_v3 = vadd.s32 136, %v8913_v24  ;;  %v4427_v32 = vmul.f32 1.442695, %v4388_v1  ;;  %v9165_v30 = vadd.s32 192, %v8913_v24 }
 0x36f   : > { %5699 = vpow2.f32 %v4421_v28  ;;  %v9168_v28 = vadd.s32 200, %v8913_v24  ;;  %v9171_v51 = vadd.s32 224, %v8913_v24  ;;  %v4429_v35 = vmul.f32 1.442695, %v4389_v10 }
 0x370   : > { %5701 = vpow2.f32 %v4423_v31  ;;  %vm3702_vm1 = vcmp.eq.f32.partialorder %v8730_v16, %v8951_v53  ;;  %vm3705_vm2 = vcmp.eq.f32.partialorder %v8739_v54, %v8951_v53  ;;  %vm3706_vm3 = vcmp.eq.f32.partialorder %v8748_v4, %v8951_v53 }
 0x371   : > { %5703 = vpow2.f32 %v4425_v15  ;;  %v4431_v31 = vmul.f32 1.442695, %v4390_v34  ;;  %vm3709_vm4 = vcmp.eq.f32.partialorder %v8771_v55, %v8951_v53  ;;  %vm3710_vm5 = vcmp.eq.f32.partialorder %v8778_v50, %v8951_v53 }
 0x372   : > { %vm3713_vm6 = vcmp.eq.f32.partialorder %v8800_v25, %v8951_v53  ;;  %5705 = vpow2.f32 %v4427_v32  ;;  %vm10179_vm7 = vcmask 523264   ;;  %vm3714_vm8 = vcmp.eq.f32.partialorder %v8807_v44, %v8951_v53 }
 0x373   : > { %vm3717_vm9 = vcmp.eq.f32.partialorder %v8825_v43, %v8951_v53  ;;  %v4433_v9 = vmul.f32 1.442695, %v4391_v19  ;;  %vm10181_vm0 = vmmov %vm10179_vm7  ;;  %vm3718_vm10 = vcmp.eq.f32.partialorder %v8832_v7, %v8951_v53  ;;  %vm3721_vm11 = vcmp.eq.f32.partialorder %v8851_v47, %v8951_v53 }
 0x374   : > { %5707 = vpow2.f32 %v4429_v35  ;;  %v4435_v6 = vmul.f32 1.442695, %v4392_v29  ;;  %v9214_v26 = vadd.s32 232, %v8913_v24  ;;  %v4403_v19 = vsub.f32 %v8863_v57, %v8951_v53  ;;  %vm10183_vm13 = vmmov %vm10181_vm0 }
 0x375   : > { %v9179_v1 = vpop.eup %5691  ;;  %v9221_v12 = vadd.s32 8, %v8913_v24  ;;  %v4404_v49 = vsub.f32 %v8866_v60, %v8951_v53  ;;  %5709 = vpow2.f32 %v4431_v31  ;;  %v4437_v29 = vmul.f32 1.442695, %v4393_v38  ;;  %vm10185_vm14 = vmmov %vm10181_vm0 }
 0x376   : > { %10177 = vst [vmem:[#allocation19_spill] sm:$0xff] %v9179_v1  ;;  %v9187_v10 = vpop.eup %5693  ;;  %v4477_v15 = vsel %vm10179_vm7, %v9179_v1, 0.0  ;;  %v4405_v57 = vsub.f32 %v8869_v13, %v8951_v53  ;;  %5711 = vpow2.f32 %v4433_v9  ;;  %v4407_v60 = vsub.f32 %v8875_v40, %v8951_v53  ;;  %vm10190_vm7 = vmmov %vm10181_vm0 }
 0x377   : > { %10178 = vst [vmem:[#allocation20_spill] sm:$0xff] %v9187_v10  ;;  %v9195_v34 = vpop.eup %5695  ;;  %v4478_v11 = vsel %vm10181_vm0, %v9187_v10, 0.0  ;;  %5713 = vpow2.f32 %v4435_v6  ;;  %v10187_v38 = vsub.f32 %v8807_v44, %v8951_v53  ;;  %v10188_v9 = vsub.f32 %v8813_v22, %v8951_v53 }
 0x378   : > { %10180 = vst [vmem:[#allocation21_spill] sm:$0xff] %v9195_v34  ;;  %v9206_v32 = vpop.eup %5697  ;;  %v4479_v23 = vadd.f32 %v4478_v11, %v4477_v15  ;;  %v4480_v58 = vsel %vm10183_vm13, %v9195_v34, 0.0  ;;  %v4406_v15 = vsub.f32 %v8872_v5, %v8951_v53  ;;  %5715 = vpow2.f32 %v4437_v29  ;;  %vm10197_vm13 = vmmov %vm10181_vm0 }
 0x379   : > { %10182 = vst [vmem:[#allocation22_spill] sm:$0xff] %v9206_v32  ;;  %v9223_v35 = vpop.eup %5699  ;;  %v4482_v8 = vsel %vm10185_vm14, %v9206_v32, 0.0  ;;  %v4441_v1 = vmul.f32 1.442695, %v10188_v9  ;;  %v10189_v32 = vsub.f32 %v8819_v27, %v8951_v53  ;;  %v10193_v27 = vsub.f32 %v8839_v2, %v8951_v53  ;;  %vm10199_vm14 = vmmov %vm10181_vm0 }
 0x37a   : > { %10184 = vst [vmem:[#allocation23_spill] sm:$0xff] %v9223_v35  ;;  %v4481_v11 = vadd.f32 %v4480_v58, %v4479_v23  ;;  %v9236_v34 = vpop.eup %5701  ;;  %v4439_v58 = vmul.f32 1.442695, %v10187_v38  ;;  %v4484_v40 = vsel %vm10190_vm7, %v9223_v35, 0.0  ;;  %v10192_v38 = vsub.f32 %v8832_v7, %v8951_v53 }
 0x37b   : > { %10186 = vst [vmem:[#allocation24_spill] sm:$0xff] %v9236_v34  ;;  %v4443_v10 = vmul.f32 1.442695, %v10189_v32  ;;  %v9253_v6 = vpop.eup %5703  ;;  %v4449_v32 = vmul.f32 1.442695, %v10193_v27  ;;  %v10194_v35 = vsub.f32 %v8846_v63, %v8951_v53  ;;  %v4486_v17 = vsel %vm10181_vm0, %v9236_v34, 0.0 }
 0x37c   : > { %v4483_v23 = vadd.f32 %v4482_v8, %v4481_v11  ;;  %v10191_v8 = vsub.f32 %v8825_v43, %v8951_v53  ;;  %v4447_v31 = vmul.f32 1.442695, %v10192_v38  ;;  %5717 = vpow2.f32 %v4439_v58 }
 0x37d   : > { %v4451_v29 = vmul.f32 1.442695, %v10194_v35  ;;  %v10196_v38 = vsub.f32 %v8857_v41, %v8951_v53  ;;  %5719 = vpow2.f32 %v4441_v1  ;;  %v4457_v27 = vmul.f32 1.442695, %v4403_v19 }
 0x37e   : > { %v4445_v11 = vmul.f32 1.442695, %v10191_v8  ;;  %v4485_v22 = vadd.f32 %v4484_v40, %v4483_v23  ;;  %v9271_v8 = vpop.eup %5705  ;;  %v10195_v23 = vsub.f32 %v8851_v47, %v8951_v53  ;;  %v4459_v46 = vmul.f32 1.442695, %v4404_v49 }
 0x37f   : > { %v4455_v9 = vmul.f32 1.442695, %v10196_v38  ;;  %v4488_v63 = vsel %vm10197_vm13, %v9253_v6, 0.0  ;;  %v9281_v35 = vpop.eup %5707  ;;  %5721 = vpow2.f32 %v4443_v10  ;;  %v4461_v34 = vmul.f32 1.442695, %v4405_v57 }
 0x380   : > { %v4453_v40 = vmul.f32 1.442695, %v10195_v23  ;;  %v4487_v2 = vadd.f32 %v4486_v17, %v4485_v22  ;;  %v4463_v58 = vmul.f32 1.442695, %v4406_v15  ;;  %5723 = vpow2.f32 %v4445_v11  ;;  %v9292_v1 = vpop.eup %5709 }
 0x381   : > { %v9283_v62 = vmul.f32 1.442695, %v4407_v60  ;;  %v10198_v23 = vsub.f32 %v8880_v0, %v8951_v53  ;;  %v4490_v17 = vsel %vm10199_vm14, %v9271_v8, 0.0  ;;  %5725 = vpow2.f32 %v4447_v31  ;;  %v9298_v10 = vpop.eup %5711  ;;  %vm10200_vm14 = vmmov %vm10197_vm13 }
 0x382   : > { %v4489_v61 = vadd.f32 %v4488_v63, %v4487_v2  ;;  %vm3725_vm7 = vcmp.eq.f32.partialorder %v8869_v13, %v8951_v53  ;;  %vm3726_vm0 = vcmp.eq.f32.partialorder %v8872_v5, %v8951_v53  ;;  %5727 = vpow2.f32 %v4449_v32  ;;  %v9308_v49 = vpop.eup %5713 }
 0x383   : > { %v9288_v38 = vmul.f32 1.442695, %v10198_v23  ;;  %v4492_v0 = vsel %vm10197_vm13, %v9281_v35, 0.0  ;;  %vm3729_vm12 = vcmp.eq.f32.partialorder %v8885_v39, %v8951_v53  ;;  %5729 = vpow2.f32 %v4451_v29  ;;  %v9328_v11 = vpop.eup %5715 }
 0x384   : > { %v4491_v19 = vadd.f32 %v4490_v17, %v4489_v61  ;;  %v3733_v61 = vsel %vm3701_vm15, %v8913_v24, 256  ;;  %v3737_v15 = vsel %vm3705_vm2, %v9135_v21, 256  ;;  %v3738_v60 = vsel %vm3706_vm3, %v9138_v52, 256  ;;  %vm10201_vm2 = vmmov %vm10197_vm13 }
 0x385   : > { %5731 = vpow2.f32 %v4453_v40  ;;  %v4494_v31 = vsel %vm10200_vm14, %v9292_v1, 0.0  ;;  %v3741_v48 = vsel %vm3709_vm4, %v9141_v45, 256  ;;  %v3742_v54 = vsel %vm3710_vm5, %v9144_v59, 256  ;;  %vm10202_vm3 = vmmov %vm10201_vm2 }
 0x386   : > { %v4493_v57 = vadd.f32 %v4492_v0, %v4491_v19  ;;  %5733 = vpow2.f32 %v4455_v9  ;;  %vm3730_vm15 = vcmp.eq.f32.partialorder %v8896_v33, %v8951_v53  ;;  %v3745_v4 = vsel %vm3713_vm6, %v9147_v56, 256  ;;  %v9348_v29 = vpop.eup %5717  ;;  %vm10203_vm4 = vmmov %vm10201_vm2 }
 0x387   : > { %v3746_v55 = vsel %vm3714_vm8, %v9150_v18, 256  ;;  %5735 = vpow2.f32 %v4457_v27  ;;  %v4496_v50 = vsel %vm10201_vm2, %v9298_v10, 0.0  ;;  %v4498_v9 = vsel %vm10202_vm3, %v9308_v49, 0.0  ;;  %vm10204_vm5 = vmmov %vm10201_vm2  ;;  %v9356_v27 = vpop.eup %5719 }
 0x388   : > { %v4495_v22 = vadd.f32 %v4494_v31, %v4493_v57  ;;  %v3749_v32 = vsel %vm3717_vm9, %v9153_v37, 256  ;;  %v3750_v44 = vsel %vm3718_vm10, %v9156_v3, 256  ;;  %v3765_v40 = vsel %vm10203_vm4, %v3733_v61, 2147483647  ;;  %10205 = vst [vmem:[#allocation25_spill] sm:$0xff] %v9356_v27  ;;  %vm10206_vm6 = vmmov %vm10201_vm2 }
 0x389   : > { %v3769_v2 = vsel %vm10204_vm5, %v3737_v15, 2147483647  ;;  %5737 = vpow2.f32 %v4459_v46  ;;  %v4500_v63 = vsel %vm10206_vm6, %v9328_v11, 0.0  ;;  %v3753_v43 = vsel %vm3721_vm11, %v9159_v42, 256  ;;  %v9368_v23 = vpop.eup %5721  ;;  %vm10208_vm9 = vmmov %vm10201_vm2 }
 0x38a   : > { %v4497_v25 = vadd.f32 %v4496_v50, %v4495_v22  ;;  %v3734_v7 = vsel %vm3702_vm1, %v9221_v12, 256  ;;  %5739 = vpow2.f32 %v4461_v34  ;;  %vm10207_vm8 = vcmp.eq.f32.partialorder %v8857_v41, %v8951_v53  ;;  %v9375_v0 = vpop.eup %5723  ;;  %vm10209_vm10 = vmmov %vm10201_vm2 }
 0x38b   : > { %v3754_v46 = vsel %vm10207_vm8, %v9162_v36, 256  ;;  %v3772_v19 = vsel %vm10208_vm9, %v3738_v60, 2147483647  ;;  %v4502_v47 = vsel %vm10209_vm10, %v9348_v29, 0.0  ;;  %v3757_v16 = vsel %vm3725_vm7, %v9165_v30, 256  ;;  %v9387_v41 = vpop.eup %5725  ;;  %vm10210_vm11 = vmmov %vm10201_vm2 }
 0x38c   : > { %v4499_v17 = vadd.f32 %v4498_v9, %v4497_v25  ;;  %v3758_v34 = vsel %vm3726_vm0, %v9168_v28, 256  ;;  %vm3770_vm1 = vcmp.lt.s32.totalorder %v3765_v40, %v3769_v2  ;;  %5741 = vpow2.f32 %v4463_v58  ;;  %vm10211_vm13 = vmmov %vm10201_vm2  ;;  %v9392_v60 = vpop.eup %5727 }
 0x38d   : > { %v4504_v57 = vsel %vm10210_vm11, %v9356_v27, 0.0  ;;  %v3766_v15 = vsel %vm10211_vm13, %v3734_v7, 2147483647  ;;  %v3761_v13 = vsel %vm3729_vm12, %v9171_v51, 256  ;;  %vm10212_vm7 = vmmov %vm10201_vm2  ;;  %v3771_v31 = vsel %vm3770_vm1, %v3765_v40, %v3769_v2  ;;  %v9399_v22 = vpop.eup %5729 }
 0x38e   : > { %v4501_v61 = vadd.f32 %v4500_v63, %v4499_v17  ;;  %v3781_v5 = vsel %vm10212_vm7, %v3741_v48, 2147483647  ;;  %vm3773_vm0 = vcmp.lt.s32.totalorder %v3766_v15, %v3772_v19  ;;  %vm10213_vm14 = vmmov %vm10201_vm2  ;;  %v4506_v63 = vsel %vm10202_vm3, %v9368_v23, 0.0 }
 0x38f   : > { %v3784_v50 = vsel %vm10213_vm14, %v3742_v54, 2147483647  ;;  %v3774_v9 = vsel %vm3773_vm0, %v3766_v15, %v3772_v19  ;;  %vm3782_vm2 = vcmp.lt.s32.totalorder %v3771_v31, %v3781_v5  ;;  %v9402_v25 = vpop.eup %5731  ;;  %vm10214_vm4 = vmmov %vm10202_vm3  ;;  %v3762_v54 = vsel %vm3730_vm15, %v9214_v26, 256 }
 0x390   : > { %v4503_v58 = vadd.f32 %v4502_v47, %v4501_v61  ;;  %v3793_v7 = vsel %vm10214_vm4, %v3745_v4, 2147483647  ;;  %v3783_v17 = vsel %vm3782_vm2, %v3771_v31, %v3781_v5  ;;  %vm3785_vm12 = vcmp.lt.s32.totalorder %v3774_v9, %v3784_v50  ;;  %v9407_v27 = vpop.eup %5733  ;;  %vm10215_vm5 = vmmov %vm10202_vm3 }
 0x391   : > { %v3796_v40 = vsel %vm10215_vm5, %v3746_v55, 2147483647  ;;  %v3786_v2 = vsel %vm3785_vm12, %v3774_v9, %v3784_v50  ;;  %vm3794_vm6 = vcmp.lt.s32.totalorder %v3783_v17, %v3793_v7  ;;  %v9410_v47 = vpop.eup %5735  ;;  %vm10216_vm8 = vmmov %vm10202_vm3  ;;  %5743 = vpow2.f32 %v9283_v62 }
 0x392   : > { %v4505_v48 = vadd.f32 %v4504_v57, %v4503_v58  ;;  %v3805_v19 = vsel %vm10216_vm8, %v3749_v32, 2147483647  ;;  %v3795_v61 = vsel %vm3794_vm6, %v3783_v17, %v3793_v7  ;;  %vm3797_vm9 = vcmp.lt.s32.totalorder %v3786_v2, %v3796_v40  ;;  %vm10217_vm10 = vmmov %vm10202_vm3 }
 0x393   : > { %v3808_v15 = vsel %vm10217_vm10, %v3750_v44, 2147483647  ;;  %v3798_v5 = vsel %vm3797_vm9, %v3786_v2, %v3796_v40  ;;  %vm3806_vm1 = vcmp.lt.s32.totalorder %v3795_v61, %v3805_v19  ;;  %v9418_v57 = vpop.eup %5737  ;;  %vm10218_vm11 = vmmov %vm10202_vm3  ;;  %5745 = vpow2.f32 %v9288_v38 }
 0x394   : > { %v4507_v4 = vadd.f32 %v4506_v63, %v4505_v48  ;;  %v4508_v55 = vsel %vm10218_vm11, %v9375_v0, 0.0  ;;  %vm10219_vm13 = vmmov %vm10202_vm3  ;;  %v3807_v58 = vsel %vm3806_vm1, %v3795_v61, %v3805_v19  ;;  %vm3809_vm7 = vcmp.lt.s32.totalorder %v3798_v5, %v3808_v15  ;;  %v9423_v50 = vpop.eup %5739 }
 0x395   : > { %v3817_v31 = vsel %vm10219_vm13, %v3753_v43, 2147483647  ;;  %vm10220_vm15 = vmmov %vm10202_vm3  ;;  %v3810_v7 = vsel %vm3809_vm7, %v3798_v5, %v3808_v15 }
 0x396   : > { %v4509_v9 = vadd.f32 %v4508_v55, %v4507_v4  ;;  %v3820_v32 = vsel %vm10220_vm15, %v3754_v46, 2147483647  ;;  %vm3818_vm0 = vcmp.lt.s32.totalorder %v3807_v58, %v3817_v31  ;;  %vm10221_vm14 = vmmov %vm10202_vm3  ;;  %v9429_v48 = vpop.eup %5741 }
 0x397   : > { %v4510_v44 = vsel %vm10221_vm14, %v9387_v41, 0.0  ;;  %vm10222_vm2 = vmmov %vm10202_vm3  ;;  %v3819_v17 = vsel %vm3818_vm0, %v3807_v58, %v3817_v31  ;;  %vm3821_vm3 = vcmp.lt.s32.totalorder %v3810_v7, %v3820_v32 }
 0x398   : > { %v3829_v63 = vsel %vm10222_vm2, %v3757_v16, 2147483647  ;;  %v4511_v40 = vadd.f32 %v4510_v44, %v4509_v9  ;;  %vm10223_vm4 = vmmov %vm10222_vm2  ;;  %v3822_v2 = vsel %vm3821_vm3, %v3810_v7, %v3820_v32 }
 0x399   : > { %v3832_v43 = vsel %vm10223_vm4, %v3758_v34, 2147483647  ;;  %vm3830_vm12 = vcmp.lt.s32.totalorder %v3819_v17, %v3829_v63  ;;  %vm10224_vm5 = vmmov %vm10222_vm2  ;;  %v10228_v34 = vsub.f32 %v8885_v39, %v8951_v53  ;;  %v10232_v39 = vsub.f32 %v8904_v20, %v8951_v53 }
 0x39a   : > { %v4512_v19 = vsel %vm10224_vm5, %v9392_v60, 0.0  ;;  %vm10225_vm6 = vmmov %vm10222_vm2  ;;  %v3831_v61 = vsel %vm3830_vm12, %v3819_v17, %v3829_v63  ;;  %vm3833_vm8 = vcmp.lt.s32.totalorder %v3822_v2, %v3832_v43 }
 0x39b   : > { %v3841_v46 = vsel %vm10225_vm6, %v3761_v13, 2147483647  ;;  %v4513_v4 = vadd.f32 %v4512_v19, %v4511_v40  ;;  %vm10226_vm9 = vmmov %vm10222_vm2  ;;  %v3834_v16 = vsel %vm3833_vm8, %v3822_v2, %v3832_v43  ;;  %v4469_v31 = vmul.f32 1.442695, %v10228_v34  ;;  %v10234_v43 = vld [vmem:[#allocation2_spill] sm:$0xff] }
 0x39c   : > { %v3844_v15 = vsel %vm10226_vm9, %v3762_v54, 2147483647  ;;  %vm3842_vm10 = vcmp.lt.s32.totalorder %v3831_v61, %v3841_v46  ;;  %vm10227_vm1 = vmmov %vm10222_vm2  ;;  %v10230_v54 = vsub.f32 %v8896_v33, %v8951_v53  ;;  %v4473_v63 = vmul.f32 1.442695, %v10232_v39 }
 0x39d   : > { %v4514_v5 = vsel %vm10227_vm1, %v9399_v22, 0.0  ;;  %v3843_v55 = vsel %vm3842_vm10, %v3831_v61, %v3841_v46  ;;  %vm3845_vm11 = vcmp.lt.s32.totalorder %v3834_v16, %v3844_v15  ;;  %vm10229_vm13 = vmmov %vm10227_vm1  ;;  %5747 = vpow2.f32 %v4469_v31 }
 0x39e   : > { %v4515_v58 = vadd.f32 %v4514_v5, %v4513_v4  ;;  %v3846_v13 = vsel %vm3845_vm11, %v3834_v16, %v3844_v15  ;;  %v4516_v9 = vsel %vm10229_vm13, %v9402_v25, 0.0  ;;  %v4471_v32 = vmul.f32 1.442695, %v10230_v54  ;;  %vm10231_vm15 = vmmov %vm10227_vm1  ;;  %v9464_v16 = vpop.eup %5743 }
 0x39f   : > { %vm3853_vm7 = vcmp.lt.s32.totalorder %v3843_v55, %v3846_v13  ;;  %v4518_v62 = vsel %vm10231_vm15, %v9407_v27, 0.0  ;;  %vm10233_vm14 = vmmov %vm10227_vm1  ;;  %v10235_v2 = vsub.f32 %v10234_v43, %v8951_v53 }
 0x3a0   : > { %v4517_v7 = vadd.f32 %v4516_v9, %v4515_v58  ;;  %v3854_v44 = vsel %vm3853_vm7, %v3843_v55, %v3846_v13  ;;  %v4520_v38 = vsel %vm10233_vm14, %v9410_v47, 0.0  ;;  %5749 = vpow2.f32 %v4471_v32  ;;  %vm10236_vm2 = vmmov %vm10227_vm1  ;;  %v9468_v55 = vpop.eup %5745 }
 0x3a1   : > { %vm3857_vm0 = vcmp.lt.s32.totalorder %v3854_v44, %v9121_v14  ;;  %v4475_v19 = vmul.f32 1.442695, %v10235_v2  ;;  %v4522_v61 = vsel %vm10236_vm2, %v9418_v57, 0.0  ;;  %5751 = vpow2.f32 %v4473_v63  ;;  %vm10237_vm4 = vmmov %vm10227_vm1  ;;  %v10242_v63 = vld [vmem:[#allocation3_spill] sm:$0xff] }
 0x3a2   : > { %v4519_v17 = vadd.f32 %v4518_v62, %v4517_v7  ;;  %v3858_v40 = vsel %vm3857_vm0, %v3854_v44, %v9121_v14  ;;  %v4524_v14 = vsel %vm10237_vm4, %v9423_v50, 0.0  ;;  %vm10238_vm12 = vmmov %vm10227_vm1 }
 0x3a3   : > { %v3859_v33 = vrot.slane %v3858_v40, 4  ;;  %5753 = vpow2.f32 %v4475_v19  ;;  %v4526_v53 = vsel %vm10238_vm12, %v9429_v48, 0.0  ;;  %vm10239_vm6 = vmmov %vm10227_vm1 }
 0x3a4   : > { %v4521_v46 = vadd.f32 %v4520_v38, %v4519_v17  ;;  %v4528_v58 = vsel %vm10239_vm6, %v9464_v16, 0.0  ;;  %vm10240_vm8 = vmmov %vm10227_vm1  ;;  %v5894_v38 = vmov 0  }
 0x3a5   : > { %vm3860_vm3 = vcmp.lt.s32.totalorder %v3858_v40, %v3859_v33  ;;  %v4530_v32 = vsel %vm10240_vm8, %v9468_v55, 0.0  ;;  %vm10241_vm10 = vmmov %vm10227_vm1 }
 0x3a6   : > { %v4523_v20 = vadd.f32 %v4522_v61, %v4521_v46  ;;  %v3861_v4 = vsel %vm3860_vm3, %v3858_v40, %v3859_v33  ;;  %vm10243_vm7 = vmmov %vm10236_vm2 }
 0x3a7   : > { %v3862_v15 = vrot.slane %v3861_v4, 2  ;;  %v9472_v9 = vpop.eup %5747  ;;  %vm10244_vm15 = vmmov %vm10236_vm2 }
 0x3a8   : > { %v4525_v5 = vadd.f32 %v4524_v14, %v4523_v20  ;;  %v4532_v39 = vsel %vm10241_vm10, %v9472_v9, 0.0  ;;  %vm10245_vm0 = vmmov %vm10236_vm2  ;;  %v10246_v14 = vld [vmem:[#allocation4_spill] sm:$0xff] }
 0x3a9   : > { %vm3863_vm5 = vcmp.lt.s32.totalorder %v3861_v4, %v3862_v15  ;;  %vm10247_vm2 = vmmov %vm10245_vm0 }
 0x3aa   : > { %v4527_v34 = vadd.f32 %v4526_v53, %v4525_v5  ;;  %v3864_v31 = vsel %vm3863_vm5, %v3861_v4, %v3862_v15  ;;  %v9476_v7 = vpop.eup %5749  ;;  %vm10248_vm3 = vmmov %vm10245_vm0 }
 0x3ab   : > { %v3865_v13 = vrot.slane %v3864_v31, 1  ;;  %v9488_v17 = vpop.eup %5751  ;;  %v4534_v19 = vsel %vm10243_vm7, %v9476_v7, 0.0  ;;  %vm10249_vm4 = vmmov %vm10245_vm0 }
 0x3ac   : > { %v4529_v54 = vadd.f32 %v4528_v58, %v4527_v34  ;;  %v4536_v15 = vsel %vm10247_vm2, %v9488_v17, 0.0  ;;  %vm10250_vm5 = vmmov %vm10245_vm0 }
 0x3ad   : > { %vm3866_vm9 = vcmp.lt.s32.totalorder %v3864_v31, %v3865_v13  ;;  %v9497_v46 = vpop.eup %5753  ;;  %vm10251_vm8 = vmmov %vm10245_vm0 }
 0x3ae   : > { %v4531_v44 = vadd.f32 %v4530_v32, %v4529_v54  ;;  %v9478_v62 = vsel %vm3866_vm9, %v3864_v31, %v3865_v13  ;;  %v4538_v54 = vsel %vm10249_vm4, %v9497_v46, 0.0  ;;  %vm10255_vm7 = vmmov %vm10245_vm0 }
 0x3af   : > { %vm3869_vm1 = vcmp.eq.s32.totalorder %v9221_v12, %v9478_v62  ;;  %vm3868_vm11 = vcmp.eq.s32.totalorder %v8913_v24, %v9478_v62  ;;  %vm3870_vm13 = vcmp.eq.s32.totalorder %v10242_v63, %v9478_v62  ;;  %vm3871_vm14 = vcmp.eq.s32.totalorder %v10246_v14, %v9478_v62  ;;  %v10252_v14 = vld [vmem:[#allocation5_spill] sm:$0xff] }
 0x3b0   : > { %v4533_v40 = vadd.f32 %v4532_v39, %v4531_v44  ;;  %v3901_v33 = vsel %vm3869_vm1, 1, %v5894_v38  ;;  %v3900_v43 = vsel %vm3868_vm11, 1, %v5894_v38  ;;  %v3902_v2 = vsel %vm3870_vm13, 1, %v5894_v38  ;;  %vm10253_vm1 = vmmov %vm10245_vm0 }
 0x3b1   : > { %v3945_v12 = vsel %vm10244_vm15, %v3901_v33, 0  ;;  %v3932_v24 = vsel %vm10245_vm0, %v3900_v43, 0  ;;  %v3958_v53 = vsel %vm10248_vm3, %v3902_v2, 0  ;;  %v3903_v32 = vsel %vm3871_vm14, 1, %v5894_v38  ;;  %vm10256_vm15 = vmmov %vm10245_vm0 }
 0x3b2   : > { %v4535_v61 = vadd.f32 %v4534_v19, %v4533_v40  ;;  %v3946_v20 = vand.u32 65535, %v3945_v12  ;;  %v3933_v4 = vand.u32 65535, %v3932_v24  ;;  %v3947_v5 = vshrl.u32 %v3945_v12, 16  ;;  %vm10257_vm14 = vmmov %vm10253_vm1 }
 0x3b3   : > { %v3934_v13 = vshrl.u32 %v3932_v24, 16  ;;  %v3960_v39 = vshrl.u32 %v3958_v53, 16  ;;  %vm3872_vm12 = vcmp.eq.s32.totalorder %v9135_v21, %v9478_v62  ;;  %v3959_v33 = vand.u32 65535, %v3958_v53 }
 0x3b4   : > { %v4537_v34 = vadd.f32 %v4536_v15, %v4535_v61  ;;  %v3948_v31 = vcvt.s32.f32 %v3946_v20  ;;  %v3935_v58 = vcvt.s32.f32 %v3933_v4  ;;  %v3949_v63 = vcvt.s32.f32 %v3947_v5 }
 0x3b5   : > { %v3936_v40 = vcvt.s32.f32 %v3934_v13  ;;  %v3971_v43 = vsel %vm10250_vm5, %v3903_v32, 0  ;;  %v3904_v2 = vsel %vm3872_vm12, 1, %v5894_v38  ;;  %vm3873_vm6 = vcmp.eq.s32.totalorder %v9138_v52, %v9478_v62  ;;  %v10254_v13 = vld [vmem:[#allocation6_spill] sm:$0xff]  ;;  %vm10260_vm12 = vmmov %vm10253_vm1 }
 0x3b6   : > { %v4539_v44 = vadd.f32 %v4538_v54, %v4537_v34  ;;  %3950 = vadd.xlane.f32.xlu1 %v3948_v31  ;;  %3937 = vadd.xlane.f32.xlu0 %v3935_v58  ;;  %v3973_v19 = vshrl.u32 %v3971_v43, 16  ;;  %v3962_v12 = vcvt.s32.f32 %v3960_v39  ;;  %v3961_v24 = vcvt.s32.f32 %v3959_v33 }
 0x3b7   : > { %v3972_v61 = vand.u32 65535, %v3971_v43  ;;  %v3984_v20 = vsel %vm10251_vm8, %v3904_v2, 0  ;;  %v3905_v21 = vsel %vm3873_vm6, 1, %v5894_v38  ;;  %vm3874_vm9 = vcmp.eq.s32.totalorder %v10252_v14, %v9478_v62 }
 0x3b8   : > { %v3975_v4 = vcvt.s32.f32 %v3973_v19  ;;  %vm3877_vm10 = vcmp.eq.s32.totalorder %v9144_v59, %v9478_v62  ;;  %v3986_v5 = vshrl.u32 %v3984_v20, 16  ;;  %v3985_v52 = vand.u32 65535, %v3984_v20 }
 0x3b9   : > { %v3974_v15 = vcvt.s32.f32 %v3972_v61  ;;  %v3997_v53 = vsel %vm10253_vm1, %v3905_v21, 0  ;;  %v4540_v34 = vrot.slane %v4539_v44, 4  ;;  %v3906_v31 = vsel %vm3874_vm9, 1, %v5894_v38 }
 0x3ba   : > { %3952 = vadd.xlane.f32.xlu1 %v3949_v63  ;;  %3939 = vadd.xlane.f32.xlu0 %v3936_v40  ;;  %v3999_v58 = vshrl.u32 %v3997_v53, 16  ;;  %vm3875_vm11 = vcmp.eq.s32.totalorder %v10254_v13, %v9478_v62  ;;  %v3988_v54 = vcvt.s32.f32 %v3986_v5  ;;  %v3987_v32 = vcvt.s32.f32 %v3985_v52 }
 0x3bb   : > { %v3998_v39 = vand.u32 65535, %v3997_v53  ;;  %vm3876_vm13 = vcmp.eq.s32.totalorder %v9141_v45, %v9478_v62  ;;  %v4541_v63 = vadd.f32 %v4540_v34, %v4539_v44  ;;  %v4010_v40 = vsel %vm10255_vm7, %v3906_v31, 0  ;;  %v10259_v31 = vld [vmem:[#allocation7_spill] sm:$0xff] }
 0x3bc   : > { %v3907_v33 = vsel %vm3875_vm11, 1, %v5894_v38  ;;  %v3908_v43 = vsel %vm3876_vm13, 1, %v5894_v38  ;;  %v4001_v2 = vcvt.s32.f32 %v3999_v58  ;;  %vm3884_vm0 = vcmp.eq.s32.totalorder %v9153_v37, %v9478_v62  ;;  %v10258_v37 = vld [vmem:[#allocation11_spill] sm:$0xff]  ;;  %vm10264_vm13 = vmmov %vm10253_vm1 }
 0x3bd   : > { %v4000_v19 = vcvt.s32.f32 %v3998_v39  ;;  %v4542_v61 = vrot.slane %v4541_v63, 2  ;;  %v4023_v20 = vsel %vm10256_vm15, %v3907_v33, 0  ;;  %v4036_v45 = vsel %vm10257_vm14, %v3908_v43, 0  ;;  %v10261_v39 = vld [vmem:[#allocation8_spill] sm:$0xff] }
 0x3be   : > { %3965 = vadd.xlane.f32.xlu1 %v3962_v12  ;;  %3963 = vadd.xlane.f32.xlu0 %v3961_v24  ;;  %v4012_v12 = vshrl.u32 %v4010_v40, 16  ;;  %v4011_v24 = vand.u32 65535, %v4010_v40  ;;  %v9533_v44 = vsel %vm3884_vm0, 1, %v5894_v38  ;;  %v4025_v14 = vshrl.u32 %v4023_v20, 16  ;;  %v10262_v33 = vld [vmem:[#allocation12_spill] sm:$0xff] }
 0x3bf   : > { %v4543_v5 = vadd.f32 %v4542_v61, %v4541_v63  ;;  %v4038_v52 = vshrl.u32 %v4036_v45, 16  ;;  %v3909_v53 = vsel %vm3877_vm10, 1, %v5894_v38  ;;  %vm3885_vm2 = vcmp.eq.s32.totalorder %v9156_v3, %v9478_v62 }
 0x3c0   : > { %v4014_v21 = vcvt.s32.f32 %v4012_v12  ;;  %vm3886_vm3 = vcmp.eq.s32.totalorder %v10258_v37, %v9478_v62  ;;  %v4037_v34 = vand.u32 65535, %v4036_v45  ;;  %vm3878_vm4 = vcmp.eq.s32.totalorder %v10259_v31, %v9478_v62  ;;  %v10263_v45 = vld [vmem:[#allocation13_spill] sm:$0xff] }
 0x3c1   : > { %v9546_v58 = vsel %vm3885_vm2, 1, %v5894_v38  ;;  %v9549_v13 = vsel %vm3886_vm3, 1, %v5894_v38  ;;  %v4027_v59 = vcvt.s32.f32 %v4025_v14  ;;  %vm3879_vm5 = vcmp.eq.s32.totalorder %v10261_v39, %v9478_v62  ;;  %v10265_v14 = vld [vmem:[#allocation14_spill] sm:$0xff]  ;;  %vm10267_vm3 = vmmov %vm10253_vm1 }
 0x3c2   : > { %3978 = vadd.xlane.f32.xlu1 %v3975_v4  ;;  %3976 = vadd.xlane.f32.xlu0 %v3974_v15  ;;  %v4013_v4 = vcvt.s32.f32 %v4011_v24  ;;  %v4024_v15 = vand.u32 65535, %v4023_v20  ;;  %v4544_v3 = vrot.slane %v4543_v5, 1  ;;  %v4040_v63 = vcvt.s32.f32 %v4038_v52 }
 0x3c3   : > { %v3910_v40 = vsel %vm3878_vm4, 1, %v5894_v38  ;;  %vm3887_vm6 = vcmp.eq.s32.totalorder %v10262_v33, %v9478_v62  ;;  %vm3888_vm8 = vcmp.eq.s32.totalorder %v9159_v42, %v9478_v62  ;;  %vm3889_vm9 = vcmp.eq.s32.totalorder %v9162_v36, %v9478_v62 }
 0x3c4   : > { %v4039_v43 = vcvt.s32.f32 %v4037_v34  ;;  %v3911_v12 = vsel %vm3879_vm5, 1, %v5894_v38  ;;  %v9563_v24 = vsel %vm3887_vm6, 1, %v5894_v38  ;;  %v9566_v61 = vsel %vm3888_vm8, 1, %v5894_v38  ;;  %vm10270_vm5 = vmmov %vm10253_vm1 }
 0x3c5   : > { %v9569_v20 = vsel %vm3889_vm9, 1, %v5894_v38  ;;  %vm3890_vm10 = vcmp.eq.s32.totalorder %v10263_v45, %v9478_v62  ;;  %v4545_v42 = vadd.f32 %v4544_v3, %v4543_v5  ;;  %v4062_v36 = vsel %vm10253_vm1, %v3910_v40, 0 }
 0x3c6   : > { %3991 = vadd.xlane.f32.xlu1 %v3988_v54  ;;  %3989 = vadd.xlane.f32.xlu0 %v3987_v32  ;;  %v4026_v54 = vcvt.s32.f32 %v4024_v15  ;;  %v4049_v32 = vsel %vm10260_vm12, %v3909_v53, 0  ;;  %vm3880_vm11 = vcmp.eq.s32.totalorder %v9147_v56, %v9478_v62  ;;  %vm3891_vm7 = vcmp.eq.s32.totalorder %v10265_v14, %v9478_v62  ;;  %v10266_v56 = vld [vmem:[#allocation15_spill] sm:$0xff] }
 0x3c7   : > { %v4064_v53 = vshrl.u32 %v4062_v36, 16  ;;  %v4063_v37 = vand.u32 65535, %v4062_v36  ;;  %5755 = vrcp.f32 %v4545_v42  ;;  %v3912_v5 = vsel %vm3880_vm11, 1, %v5894_v38  ;;  %v10271_v36 = vld [vmem:[#allocation17_spill] sm:$0xff] }
 0x3c8   : > { %vm3881_vm15 = vcmp.eq.s32.totalorder %v9150_v18, %v9478_v62  ;;  %v9586_v34 = vsel %vm3891_vm7, 1, %v5894_v38  ;;  %vm3892_vm0 = vcmp.eq.s32.totalorder %v9165_v30, %v9478_v62  ;;  %vm3893_vm14 = vcmp.eq.s32.totalorder %v9168_v28, %v9478_v62  ;;  %vm10278_vm7 = vmmov %vm10267_vm3 }
 0x3c9   : > { %vm3894_vm2 = vcmp.eq.s32.totalorder %v10266_v56, %v9478_v62  ;;  %v4066_v18 = vcvt.s32.f32 %v4064_v53  ;;  %v4088_v39 = vsel %vm10267_vm3, %v3912_v5, 0  ;;  %v9599_v3 = vsel %vm3893_vm14, 1, %v5894_v38  ;;  %v10273_v53 = vld [vmem:[#allocation10_spill] sm:$0xff] }
 0x3ca   : > { %4004 = vadd.xlane.f32.xlu1 %v4001_v2  ;;  %4002 = vadd.xlane.f32.xlu0 %v4000_v19  ;;  %v4051_v2 = vshrl.u32 %v4049_v32, 16  ;;  %v4050_v19 = vand.u32 65535, %v4049_v32  ;;  %v4065_v32 = vcvt.s32.f32 %v4063_v37  ;;  %v3913_v30 = vsel %vm3881_vm15, 1, %v5894_v38  ;;  %vm10280_vm15 = vmmov %vm10267_vm3 }
 0x3cb   : > { %v9605_v28 = vsel %vm3894_vm2, 1, %v5894_v38  ;;  %v4090_v33 = vshrl.u32 %v4088_v39, 16  ;;  %vm3896_vm6 = vcmp.eq.s32.totalorder %v9171_v51, %v9478_v62  ;;  %vm3898_vm8 = vcmp.eq.s32.totalorder %v10271_v36, %v9478_v62 }
 0x3cc   : > { %v4053_v15 = vcvt.s32.f32 %v4051_v2  ;;  %v4052_v52 = vcvt.s32.f32 %v4050_v19  ;;  %v4089_v19 = vand.u32 65535, %v4088_v39  ;;  %vm3897_vm9 = vcmp.eq.s32.totalorder %v9214_v26, %v9478_v62  ;;  %v10275_v39 = vld [vmem:[#allocation20_spill] sm:$0xff] }
 0x3cd   : > { %v9629_v51 = vsel %vm3898_vm8, 1, %v5894_v38  ;;  %v9635_v56 = vsel %vm3897_vm9, 1, %v5894_v38 }
 0x3ce   : > { %4017 = vadd.xlane.f32.xlu1 %v4014_v21  ;;  %4015 = vadd.xlane.f32.xlu0 %v4013_v4  ;;  %v9575_v21 = vsel %vm3890_vm10, 1, %v5894_v38  ;;  %v4075_v4 = vsel %vm10264_vm13, %v3911_v12, 0  ;;  %v4101_v12 = vsel %vm10270_vm5, %v3913_v30, 0  ;;  %vm10272_vm10 = vmmov %vm10253_vm1  ;;  %vm3883_vm1 = vcmp.eq.s32.totalorder %v10273_v53, %v9478_v62 }
 0x3cf   : > { %v4077_v31 = vshrl.u32 %v4075_v4, 16  ;;  %v4091_v26 = vcvt.s32.f32 %v4089_v19  ;;  %v4103_v37 = vshrl.u32 %v4101_v12, 16  ;;  %v4102_v5 = vand.u32 65535, %v4101_v12  ;;  %vm10277_vm13 = vmmov %vm10267_vm3 }
 0x3d1   : > { %v4079_v40 = vcvt.s32.f32 %v4077_v31  ;;  %v9623_v14 = vpop.eup %5755  ;;  %v3915_v31 = vsel %vm3883_vm1, 1, %v5894_v38 }
 0x3d2   : > { %4030 = vadd.xlane.f32.xlu1 %v4027_v59  ;;  %4028 = vadd.xlane.f32.xlu0 %v4026_v54  ;;  %v4076_v59 = vand.u32 65535, %v4075_v4  ;;  %v9595_v54 = vsel %vm3892_vm0, 1, %v5894_v38  ;;  %v9621_v4 = vsel %vm3896_vm6, 1, %v5894_v38  ;;  %v9648_v30 = vmul.f32 %v9623_v14, %v10275_v39  ;;  %vm10281_vm0 = vmmov %vm10267_vm3 }
 0x3d3   : > { %v4127_v19 = vsel %vm10277_vm13, %v3915_v31, 0  ;;  %vm10283_vm14 = vmmov %vm10281_vm0  ;;  %v9718_v39 = vmul.f32 %v9623_v14, %v9308_v49  ;;  %v9737_v49 = vmul.f32 %v9623_v14, %v9368_v23 }
 0x3d4   : > { %v4078_v2 = vcvt.s32.f32 %v4076_v59  ;;  %4580 = vst.msk [vmem:[%s9642_s23 + $0x8] sm:$0xff] %vm10278_vm7, %v9648_v30  ;;  %v4129_v31 = vshrl.u32 %v4127_v19, 16  ;;  %vm10286_vm2 = vmmov %vm10281_vm0 }
 0x3d5   : > { %vm10287_vm3 = vmmov %vm10281_vm0 }
 0x3d6   : > { %4043 = vadd.xlane.f32.xlu1 %v4040_v63  ;;  %4041 = vadd.xlane.f32.xlu0 %v4039_v43  ;;  %v10268_v63 = vld [vmem:[#allocation9_spill] sm:$0xff]  ;;  %v10269_v43 = vld [vmem:[#allocation16_spill] sm:$0xff]  ;;  %vm10290_vm5 = vmmov %vm10281_vm0 }
 0x3d7   : > { %vm3882_vm4 = vcmp.eq.s32.totalorder %v10268_v63, %v9478_v62  ;;  %vm3895_vm12 = vcmp.eq.s32.totalorder %v10269_v43, %v9478_v62  ;;  %v4105_v63 = vcvt.s32.f32 %v4103_v37  ;;  %v10276_v43 = vld [vmem:[#allocation19_spill] sm:$0xff]  ;;  %vm10291_vm6 = vmmov %vm10281_vm0 }
 0x3d8   : > { %v3914_v45 = vsel %vm3882_vm4, 1, %v5894_v38  ;;  %v9612_v42 = vsel %vm3895_vm12, 1, %v5894_v38  ;;  %vm10288_vm4 = vmmov %vm10281_vm0 }
 0x3d9   : > { %vm10289_vm12 = vmmov %vm10281_vm0 }
 0x3da   : > { %4056 = vadd.xlane.f32.xlu1 %v4053_v15  ;;  %4054 = vadd.xlane.f32.xlu0 %v4052_v52  ;;  %v4092_v15 = vcvt.s32.f32 %v4090_v33  ;;  %v4114_v52 = vsel %vm10272_vm10, %v3914_v45, 0  ;;  %v10282_v45 = vld [vmem:[#allocation21_spill] sm:$0xff]  ;;  %vm10292_vm8 = vmmov %vm10281_vm0 }
 0x3db   : > { %v4116_v59 = vshrl.u32 %v4114_v52, 16  ;;  %v9672_v36 = vmul.f32 %v9623_v14, %v10282_v45  ;;  %vm10293_vm9 = vmmov %vm10281_vm0 }
 0x3dc   : > { %4590 = vst.msk [vmem:[%s9642_s23 + $0x58] sm:$0xff] %vm10293_vm9, %v9718_v39  ;;  %vm10294_vm10 = vmmov %vm10281_vm0 }
 0x3dd   : > { %4581 = vst.msk [vmem:[%s9642_s23 + $0x10] sm:$0xff] %vm10286_vm2, %v9672_v36  ;;  %vm10296_vm1 = vmmov %vm10281_vm0 }
 0x3de   : > { %4069 = vadd.xlane.f32.xlu1 %v4066_v18  ;;  %4067 = vadd.xlane.f32.xlu0 %v4065_v32  ;;  %v4115_v18 = vand.u32 65535, %v4114_v52  ;;  %v10274_v32 = vld [vmem:[#allocation18_spill] sm:$0xff]  ;;  %v10284_v52 = vld [vmem:[#allocation24_spill] sm:$0xff]  ;;  %v4153_v23 = vsel %vm10296_vm1, %v9546_v58, 0  ;;  %vm10298_vm13 = vmmov %vm10281_vm0  ;;  %v9772_v58 = vmul.f32 %v9623_v14, %v9375_v0  ;;  %v9791_v0 = vmul.f32 %v9623_v14, %v9402_v25 }
 0x3df   : > { %vm3899_vm11 = vcmp.eq.s32.totalorder %v10274_v32, %v9478_v62  ;;  %v10279_v62 = vld [vmem:[#allocation22_spill] sm:$0xff]  ;;  %v9679_v53 = vmul.f32 %v9623_v14, %v10284_v52  ;;  %v9694_v32 = vmul.f32 %v9623_v14, %v9253_v6  ;;  %vm10299_vm7 = vmmov %vm10281_vm0  ;;  %v4155_v52 = vshrl.u32 %v4153_v23, 16 }
 0x3e0   : > { %v9651_v33 = vsel %vm3899_vm11, 1, %v5894_v38  ;;  %v9663_v12 = vmul.f32 %v9623_v14, %v10279_v62  ;;  %v4140_v38 = vsel %vm10280_vm15, %v9533_v44, 0  ;;  %v9687_v44 = vmul.f32 %v9623_v14, %v9271_v8  ;;  %vm10297_vm11 = vmmov %vm10281_vm0  ;;  %4594 = vst.msk [vmem:[%s9642_s23 + $0x78] sm:$0xff] %vm10299_vm7, %v9737_v49 }
 0x3e1   : > { %4584 = vst.msk [vmem:[%s9642_s23 + $0x28] sm:$0xff] %vm10287_vm3, %v9679_v53  ;;  %v9707_v8 = vmul.f32 %v9623_v14, %v9292_v1  ;;  %v4142_v6 = vshrl.u32 %v4140_v38, 16  ;;  %v9722_v1 = vmul.f32 %v9623_v14, %v9298_v10  ;;  %vm10300_vm15 = vmmov %vm10281_vm0  ;;  %v9823_v25 = vmul.f32 %v9623_v14, %v9429_v48 }
 0x3e2   : > { %4082 = vadd.xlane.f32.xlu1 %v4079_v40  ;;  %4080 = vadd.xlane.f32.xlu0 %v4078_v2  ;;  %v4104_v40 = vcvt.s32.f32 %v4102_v5  ;;  %v9655_v2 = vmul.f32 %v9623_v14, %v10276_v43  ;;  %4582 = vst.msk [vmem:[%s9642_s23 + $0x18] sm:$0xff] %vm10283_vm14, %v9663_v12  ;;  %v4117_v5 = vcvt.s32.f32 %v4115_v18  ;;  %v9714_v18 = vmul.f32 %v9623_v14, %v9281_v35  ;;  %vm10301_vm14 = vmmov %vm10281_vm0 }
 0x3e3   : > { %4586 = vst.msk [vmem:[%s9642_s23 + $0x38] sm:$0xff] %vm10289_vm12, %v9687_v44  ;;  %v9733_v35 = vmul.f32 %v9623_v14, %v9328_v11  ;;  %v4131_v43 = vcvt.s32.f32 %v4129_v31  ;;  %v4144_v62 = vcvt.s32.f32 %v4142_v6  ;;  %vm10302_vm2 = vmmov %vm10281_vm0  ;;  %v9838_v48 = vmul.f32 %v9623_v14, %v9464_v16 }
 0x3e4   : > { %4579 = vst.msk [vmem:[%s9642_s23] sm:$0xff] %vm10281_vm0, %v9655_v2  ;;  %vm10303_vm3 = vmmov %vm10281_vm0  ;;  %v4157_v16 = vcvt.s32.f32 %v4155_v52 }
 0x3e5   : > { %4585 = vst.msk [vmem:[%s9642_s23 + $0x30] sm:$0xff] %vm10290_vm5, %v9694_v32  ;;  %vm10305_vm12 = vmmov %vm10281_vm0 }
 0x3e6   : > { %4095 = vadd.xlane.f32.xlu1 %v4092_v15  ;;  %4093 = vadd.xlane.f32.xlu0 %v4091_v26  ;;  %v4118_v15 = vcvt.s32.f32 %v4116_v59  ;;  %v10285_v26 = vld [vmem:[#allocation23_spill] sm:$0xff]  ;;  %v4128_v59 = vand.u32 65535, %v4127_v19  ;;  %4588 = vst.msk [vmem:[%s9642_s23 + $0x48] sm:$0xff] %vm10291_vm6, %v9707_v8  ;;  %v9765_v19 = vmul.f32 %v9623_v14, %v9387_v41  ;;  %v9780_v41 = vmul.f32 %v9623_v14, %v9392_v60  ;;  %vm10306_vm5 = vmmov %vm10281_vm0 }
 0x3e7   : > { %v9683_v37 = vmul.f32 %v9623_v14, %v10285_v26  ;;  %4587 = vst.msk [vmem:[%s9642_s23 + $0x40] sm:$0xff] %vm10292_vm8, %v9714_v18  ;;  %v4154_v60 = vand.u32 65535, %v4153_v23  ;;  %v4166_v26 = vsel %vm10301_vm14, %v9549_v13, 0  ;;  %vm10307_vm6 = vmmov %vm10281_vm0 }
 0x3e8   : > { %v4130_v10 = vcvt.s32.f32 %v4128_v59  ;;  %4589 = vst.msk [vmem:[%s9642_s23 + $0x50] sm:$0xff] %vm10294_vm10, %v9722_v1  ;;  %vm10308_vm8 = vmmov %vm10281_vm0  ;;  %v4168_v13 = vshrl.u32 %v4166_v26, 16  ;;  %v4167_v59 = vand.u32 65535, %v4166_v26 }
 0x3e9   : > { %4583 = vst.msk [vmem:[%s9642_s23 + $0x20] sm:$0xff] %vm10288_vm4, %v9683_v37  ;;  %vm10304_vm4 = vmmov %vm10281_vm0  ;;  %v4156_v31 = vcvt.s32.f32 %v4154_v60 }
 0x3ea   : > { %4108 = vadd.xlane.f32.xlu1 %v4105_v63  ;;  %4106 = vadd.xlane.f32.xlu0 %v4104_v40  ;;  %v4141_v63 = vand.u32 65535, %v4140_v38  ;;  %v9729_v40 = vmul.f32 %v9623_v14, %v9348_v29  ;;  %v10295_v29 = vld [vmem:[#allocation25_spill] sm:$0xff]  ;;  %4591 = vst.msk [vmem:[%s9642_s23 + $0x60] sm:$0xff] %vm10298_vm13, %v9733_v35  ;;  %v9776_v38 = vmul.f32 %v9623_v14, %v9399_v22  ;;  %vm10309_vm9 = vmmov %vm10281_vm0 }
 0x3eb   : > { %v9750_v11 = vmul.f32 %v9623_v14, %v10295_v29  ;;  %4596 = vst.msk [vmem:[%s9642_s23 + $0x88] sm:$0xff] %vm10281_vm0, %v9765_v19  ;;  %v9795_v22 = vmul.f32 %v9623_v14, %v9418_v57  ;;  %v9834_v57 = vmul.f32 %v9623_v14, %v9468_v55  ;;  %v9853_v55 = vmul.f32 %v9623_v14, %v9497_v46  ;;  %vm10310_vm10 = vmmov %vm10281_vm0 }
 0x3ec   : > { %4592 = vst.msk [vmem:[%s9642_s23 + $0x68] sm:$0xff] %vm10297_vm11, %v9729_v40  ;;  %v4143_v45 = vcvt.s32.f32 %v4141_v63  ;;  %vm10311_vm1 = vmmov %vm10281_vm0  ;;  %v4170_v46 = vcvt.s32.f32 %v4168_v13 }
 0x3ed   : > { %4593 = vst.msk [vmem:[%s9642_s23 + $0x70] sm:$0xff] %vm10300_vm15, %v9750_v11  ;;  %vm10312_vm11 = vmmov %vm10281_vm0 }
 0x3ee   : > { %4121 = vadd.xlane.f32.xlu1 %v4118_v15  ;;  %4119 = vadd.xlane.f32.xlu0 %v4117_v5  ;;  %v9787_v15 = vmul.f32 %v9623_v14, %v9407_v27  ;;  %4595 = vst.msk [vmem:[%s9642_s23 + $0x80] sm:$0xff] %vm10302_vm2, %v9772_v58  ;;  %v9810_v27 = vmul.f32 %v9623_v14, %v9410_v47  ;;  %vm10313_vm13 = vmmov %vm10281_vm0 }
 0x3ef   : > { %4598 = vst.msk [vmem:[%s9642_s23 + $0x98] sm:$0xff] %vm10303_vm3, %v9776_v38  ;;  %v9830_v47 = vmul.f32 %v9623_v14, %v9423_v50  ;;  %v9845_v5 = vmul.f32 %v9623_v14, %v9476_v7  ;;  %v9849_v50 = vmul.f32 %v9623_v14, %v9472_v9  ;;  %v9866_v9 = vmul.f32 %v9623_v14, %v9488_v17  ;;  %vm10314_vm7 = vmmov %vm10281_vm0 }
 0x3f0   : > { %4597 = vst.msk [vmem:[%s9642_s23 + $0x90] sm:$0xff] %vm10304_vm4, %v9780_v41  ;;  %v4179_v7 = vsel %vm10313_vm13, %v9563_v24, 0  ;;  %vm10315_vm15 = vmmov %vm10281_vm0  ;;  %v4169_v17 = vcvt.s32.f32 %v4167_v59 }
 0x3f1   : > { %4600 = vst.msk [vmem:[%s9642_s23 + $0xa8] sm:$0xff] %vm10305_vm12, %v9787_v15  ;;  %vm10316_vm14 = vmmov %vm10281_vm0  ;;  %v4181_v14 = vshrl.u32 %v4179_v7, 16  ;;  %v4180_v6 = vand.u32 65535, %v4179_v7 }
 0x3f2   : > { %4134 = vadd.xlane.f32.xlu1 %v4131_v43  ;;  %4132 = vadd.xlane.f32.xlu0 %v4130_v10  ;;  %4599 = vst.msk [vmem:[%s9642_s23 + $0xa0] sm:$0xff] %vm10306_vm5, %v9791_v0  ;;  %vm10317_vm2 = vmmov %vm10281_vm0 }
 0x3f3   : > { %4602 = vst.msk [vmem:[%s9642_s23 + $0xb8] sm:$0xff] %vm10307_vm6, %v9795_v22  ;;  %v4192_v24 = vsel %vm10317_vm2, %v9566_v61, 0  ;;  %v4183_v63 = vcvt.s32.f32 %v4181_v14  ;;  %v4182_v43 = vcvt.s32.f32 %v4180_v6  ;;  %vm10318_vm3 = vmmov %vm10281_vm0 }
 0x3f4   : > { %4601 = vst.msk [vmem:[%s9642_s23 + $0xb0] sm:$0xff] %vm10308_vm8, %v9810_v27  ;;  %v4194_v10 = vshrl.u32 %v4192_v24, 16  ;;  %v4193_v29 = vand.u32 65535, %v4192_v24  ;;  %v4205_v23 = vsel %vm10318_vm3, %v9569_v20, 0  ;;  %vm10319_vm4 = vmmov %vm10281_vm0 }
 0x3f5   : > { %4604 = vst.msk [vmem:[%s9642_s23 + $0xc8] sm:$0xff] %vm10309_vm9, %v9823_v25  ;;  %v4207_v52 = vshrl.u32 %v4205_v23, 16  ;;  %v4206_v60 = vand.u32 65535, %v4205_v23  ;;  %v4218_v26 = vsel %vm10319_vm4, %v9575_v21, 0  ;;  %vm10320_vm12 = vmmov %vm10281_vm0 }
 0x3f6   : > { %4147 = vadd.xlane.f32.xlu1 %v4144_v62  ;;  %4145 = vadd.xlane.f32.xlu0 %v4143_v45  ;;  %4603 = vst.msk [vmem:[%s9642_s23 + $0xc0] sm:$0xff] %vm10310_vm10, %v9830_v47  ;;  %v4196_v62 = vcvt.s32.f32 %v4194_v10  ;;  %v4195_v45 = vcvt.s32.f32 %v4193_v29  ;;  %v4231_v59 = vsel %vm10320_vm12, %v9586_v34, 0  ;;  %vm10321_vm5 = vmmov %vm10281_vm0 }
 0x3f7   : > { %4606 = vst.msk [vmem:[%s9642_s23 + $0xd8] sm:$0xff] %vm10311_vm1, %v9834_v57  ;;  %v4209_v61 = vcvt.s32.f32 %v4207_v52  ;;  %v4208_v13 = vcvt.s32.f32 %v4206_v60  ;;  %v4244_v14 = vsel %vm10321_vm5, %v9595_v54, 0  ;;  %vm10322_vm6 = vmmov %vm10281_vm0 }
 0x3f8   : > { %4605 = vst.msk [vmem:[%s9642_s23 + $0xd0] sm:$0xff] %vm10312_vm11, %v9838_v48  ;;  %v4246_v24 = vshrl.u32 %v4244_v14, 16  ;;  %vm10323_vm8 = vmmov %vm10281_vm0 }
 0x3f9   : > { %4608 = vst.msk [vmem:[%s9642_s23 + $0xe8] sm:$0xff] %vm10314_vm7, %v9845_v5  ;;  %vm10324_vm9 = vmmov %vm10281_vm0 }
 0x3fa   : > { %4607 = vst.msk [vmem:[%s9642_s23 + $0xe0] sm:$0xff] %vm10315_vm15, %v9849_v50  ;;  %4160 = vadd.xlane.f32.xlu1 %v4157_v16  ;;  %4158 = vadd.xlane.f32.xlu0 %v4156_v31  ;;  %v4220_v16 = vshrl.u32 %v4218_v26, 16  ;;  %v4219_v31 = vand.u32 65535, %v4218_v26  ;;  %v4248_v34 = vcvt.s32.f32 %v4246_v24  ;;  %v4283_v26 = vsel %vm10324_vm9, %v9612_v42, 0  ;;  %vm10325_vm10 = vmmov %vm10281_vm0 }
 0x3fb   : > { %4610 = vst.msk [vmem:[%s9642_s23 + $0xf8] sm:$0xff] %vm10281_vm0, %v9853_v55  ;;  %vm10326_vm1 = vmmov %vm10281_vm0 }
 0x3fc   : > { %4609 = vst.msk [vmem:[%s9642_s23 + $0xf0] sm:$0xff] %vm10316_vm14, %v9866_v9  ;;  %v4222_v20 = vcvt.s32.f32 %v4220_v16  ;;  %v4221_v7 = vcvt.s32.f32 %v4219_v31  ;;  %v4284_v16 = vand.u32 65535, %v4283_v26  ;;  %v4296_v31 = vsel %vm10325_vm10, %v9621_v4, 0  ;;  %vm10327_vm11 = vmmov %vm10281_vm0 }
 0x3fd   : > { %v4309_v42 = vsel %vm10327_vm11, %v9635_v56, 0  ;;  %vm10328_vm13 = vmmov %vm10281_vm0  ;;  %vm4348_vm10 = vcmask 7168  }
 0x3fe   : > { %4173 = vadd.xlane.f32.xlu1 %v4170_v46  ;;  %4171 = vadd.xlane.f32.xlu0 %v4169_v17  ;;  %v4233_v46 = vshrl.u32 %v4231_v59, 16  ;;  %v4232_v17 = vand.u32 65535, %v4231_v59  ;;  %v4286_v59 = vcvt.s32.f32 %v4284_v16  ;;  %v4335_v4 = vsel %vm10328_vm13, %v9651_v33, 0  ;;  %vm10329_vm7 = vmmov %vm10281_vm0 }
 0x3ff   : > { %v4336_v56 = vand.u32 65535, %v4335_v4  ;;  %v4614_v33 = vsel %vm10329_vm7, %v9648_v30, 0.0  ;;  %vm10330_vm15 = vmmov %vm10281_vm0 }
 0x400   : > { %v4235_v21 = vcvt.s32.f32 %v4233_v46  ;;  %v4234_v6 = vcvt.s32.f32 %v4232_v17  ;;  %v4322_v46 = vsel %vm10326_vm1, %v9629_v51, 0  ;;  %vm10331_vm14 = vmmov %vm10281_vm0 }
 0x401   : > { %vm10332_vm2 = vmmov %vm10281_vm0 }
 0x402   : > { %4186 = vadd.xlane.f32.xlu1 %v4183_v63  ;;  %4184 = vadd.xlane.f32.xlu0 %v4182_v43  ;;  %v4245_v63 = vand.u32 65535, %v4244_v14  ;;  %v4257_v43 = vsel %vm10322_vm6, %v9599_v3, 0  ;;  %vm10333_vm3 = vmmov %vm10281_vm0 }
 0x403   : > { %v4259_v29 = vshrl.u32 %v4257_v43, 16  ;;  %v4258_v23 = vand.u32 65535, %v4257_v43  ;;  %v4310_v43 = vand.u32 65535, %v4309_v42  ;;  %vm10334_vm4 = vmmov %vm10281_vm0 }
 0x404   : > { %v4247_v10 = vcvt.s32.f32 %v4245_v63  ;;  %v4632_v30 = vsel %vm10334_vm4, %v9687_v44, 0.0  ;;  %vm10335_vm12 = vmmov %vm10281_vm0 }
 0x405   : > { %v4261_v54 = vcvt.s32.f32 %v4259_v29  ;;  %v4312_v51 = vcvt.s32.f32 %v4310_v43  ;;  %v4323_v29 = vand.u32 65535, %v4322_v46  ;;  %vm10336_vm5 = vmmov %vm10281_vm0 }
 0x406   : > { %4199 = vadd.xlane.f32.xlu1 %v4196_v62  ;;  %4197 = vadd.xlane.f32.xlu0 %v4195_v45  ;;  %v4270_v62 = vsel %vm10323_vm8, %v9605_v28, 0  ;;  %v4260_v45 = vcvt.s32.f32 %v4258_v23  ;;  %v4338_v23 = vcvt.s32.f32 %v4336_v56  ;;  %vm10337_vm6 = vmmov %vm10281_vm0 }
 0x407   : > { %v4272_v52 = vshrl.u32 %v4270_v62, 16  ;;  %v4271_v60 = vand.u32 65535, %v4270_v62  ;;  %v4325_v62 = vcvt.s32.f32 %v4323_v29  ;;  %vm10338_vm8 = vmmov %vm10281_vm0 }
 0x408   : > { %vm10339_vm9 = vmmov %vm10281_vm0 }
 0x409   : > { %v4274_v3 = vcvt.s32.f32 %v4272_v52  ;;  %v4617_v52 = vsel %vm10331_vm14, %v9672_v36, 0.0  ;;  %v4641_v16 = vsel %vm10339_vm9, %v9722_v1, 0.0  ;;  %vm10340_vm1 = vmmov %vm10281_vm0 }
 0x40a   : > { %4212 = vadd.xlane.f32.xlu1 %v4209_v61  ;;  %4210 = vadd.xlane.f32.xlu0 %v4208_v13  ;;  %v4273_v61 = vcvt.s32.f32 %v4271_v60  ;;  %v4285_v13 = vshrl.u32 %v4283_v26, 16  ;;  %v4626_v60 = vsel %vm10332_vm2, %v9679_v53, 0.0  ;;  %v4623_v26 = vsel %vm10333_vm3, %v9683_v37, 0.0  ;;  %vm10341_vm11 = vmmov %vm10281_vm0 }
 0x40b   : > { %v4635_v53 = vsel %vm10337_vm6, %v9714_v18, 0.0  ;;  %vm10342_vm13 = vmmov %vm10281_vm0 }
 0x40c   : > { %v4287_v28 = vcvt.s32.f32 %v4285_v13  ;;  %vm10343_vm7 = vmmov %vm10281_vm0 }
 0x40d   : > { %vm10345_vm14 = vmmov %vm10281_vm0 }
 0x40e   : > { %4225 = vadd.xlane.f32.xlu1 %v4222_v20  ;;  %4223 = vadd.xlane.f32.xlu0 %v4221_v7  ;;  %v4298_v20 = vshrl.u32 %v4296_v31, 16  ;;  %v4297_v7 = vand.u32 65535, %v4296_v31  ;;  %vm10346_vm2 = vmmov %vm10281_vm0 }
 0x40f   : > { %vm10347_vm3 = vmmov %vm10281_vm0 }
 0x410   : > { %v4300_v17 = vcvt.s32.f32 %v4298_v20  ;;  %v4299_v14 = vcvt.s32.f32 %v4297_v7  ;;  %vm10348_vm4 = vmmov %vm10281_vm0 }
 0x411   : > { %vm10351_vm6 = vmmov %vm10281_vm0 }
 0x412   : > { %4238 = vadd.xlane.f32.xlu1 %v4235_v21  ;;  %4236 = vadd.xlane.f32.xlu0 %v4234_v6  ;;  %v4324_v21 = vshrl.u32 %v4322_v46, 16  ;;  %v4311_v6 = vshrl.u32 %v4309_v42, 16  ;;  %v4650_v46 = vsel %vm10340_vm1, %v9729_v40, 0.0  ;;  %v4647_v42 = vsel %vm10341_vm11, %v9733_v35, 0.0  ;;  %vm10353_vm9 = vmmov %vm10281_vm0 }
 0x413   : > { %v4653_v40 = vsel %vm10343_vm7, %v9750_v11, 0.0  ;;  %vm10354_vm1 = vmmov %vm10281_vm0 }
 0x414   : > { %v4326_v24 = vcvt.s32.f32 %v4324_v21  ;;  %v4313_v63 = vcvt.s32.f32 %v4311_v6  ;;  %vm10355_vm11 = vmmov %vm10281_vm0 }
 0x415   : > { %vm10357_vm7 = vmmov %vm10281_vm0 }
 0x416   : > { %4251 = vadd.xlane.f32.xlu1 %v4248_v34  ;;  %4249 = vadd.xlane.f32.xlu0 %v4247_v10  ;;  %v4337_v34 = vshrl.u32 %v4335_v4, 16 }
 0x418   : > { %v4339_v10 = vcvt.s32.f32 %v4337_v34 }
 0x41a   : > { %4264 = vadd.xlane.f32.xlu1 %v4261_v54  ;;  %4262 = vadd.xlane.f32.xlu0 %v4260_v45  ;;  %v4611_v54 = vsel %vm10330_vm15, %v9655_v2, 0.0  ;;  %v4620_v45 = vsel %vm10281_vm0, %v9663_v12, 0.0  ;;  %v4629_v2 = vsel %vm10335_vm12, %v9694_v32, 0.0  ;;  %v4644_v32 = vsel %vm10338_vm8, %v9718_v39, 0.0  ;;  %vm10344_vm15 = vmmov %vm10281_vm0 }
 0x41b   : > { %v4662_v29 = vsel %vm10344_vm15, %v9765_v19, 0.0  ;;  %v4665_v19 = vsel %vm10346_vm2, %v9780_v41, 0.0  ;;  %vm10349_vm12 = vmmov %vm10281_vm0 }
 0x41c   : > { %vm10352_vm8 = vmmov %vm10281_vm0 }
 0x41d   : > { %vm10358_vm15 = vmmov %vm10281_vm0 }
 0x41e   : > { %4277 = vadd.xlane.f32.xlu1 %v4274_v3  ;;  %4275 = vadd.xlane.f32.xlu0 %v4273_v61  ;;  %v4638_v3 = vsel %vm10336_vm5, %v9707_v8, 0.0  ;;  %vm10350_vm5 = vmmov %vm10281_vm0 }
 0x422   : > { %4290 = vadd.xlane.f32.xlu1 %v4287_v28  ;;  %4288 = vadd.xlane.f32.xlu0 %v4286_v59 }
 0x426   : > { %4303 = vadd.xlane.f32.xlu1 %v4300_v17  ;;  %4301 = vadd.xlane.f32.xlu0 %v4299_v14 }
 0x42a   : > { %4329 = vadd.xlane.f32.xlu1 %v4326_v24  ;;  %4316 = vadd.xlane.f32.xlu0 %v4313_v63  ;;  %v4656_v63 = vsel %vm10342_vm13, %v9737_v49, 0.0  ;;  %v4659_v49 = vsel %vm10281_vm0, %v9772_v58, 0.0  ;;  %vm10356_vm13 = vmmov %vm10281_vm0 }
 0x42e   : > { %4314 = vadd.xlane.f32.xlu1 %v4312_v51  ;;  %4342 = vadd.xlane.f32.xlu0 %v4339_v10 }
 0x432   : > { %4340 = vadd.xlane.f32.xlu1 %v4338_v23  ;;  %4327 = vadd.xlane.f32.xlu0 %v4325_v62 }
 0x436   : > { %4615 = vadd.xlane.f32.xlu1 %v4614_v33  ;;  %4612 = vadd.xlane.f32.xlu0 %v4611_v54 }
 0x43a   : > { %4621 = vadd.xlane.f32.xlu1 %v4620_v45  ;;  %4618 = vadd.xlane.f32.xlu0 %v4617_v52  ;;  %v4668_v52 = vsel %vm10345_vm14, %v9776_v38, 0.0  ;;  %v4671_v38 = vsel %vm10348_vm4, %v9791_v0, 0.0 }
 0x43e   : > { %4627 = vadd.xlane.f32.xlu1 %v4626_v60  ;;  %4624 = vadd.xlane.f32.xlu0 %v4623_v26 }
 0x442   : > { %4633 = vadd.xlane.f32.xlu1 %v4632_v30  ;;  %4630 = vadd.xlane.f32.xlu0 %v4629_v2 }
 0x443   : > { %v3951_v12 = vpop.xlane.xlu1 %3950  ;;  %v3938_v36 = vpop.xlane.xlu0 %3937 }
 0x444   : > { %v3954_v31 = vcvt.f32.s32 %v3951_v12  ;;  %v3941_v28 = vcvt.f32.s32 %v3938_v36  ;;  %v4674_v36 = vsel %vm10347_vm3, %v9787_v15, 0.0  ;;  %v4677_v15 = vsel %vm10350_vm5, %v9810_v27, 0.0 }
 0x446   : > { %4639 = vadd.xlane.f32.xlu1 %v4638_v3  ;;  %4636 = vadd.xlane.f32.xlu0 %v4635_v53 }
 0x447   : > { %v3953_v37 = vpop.xlane.xlu1 %3952  ;;  %v3940_v61 = vpop.xlane.xlu0 %3939 }
 0x448   : > { %v3955_v13 = vcvt.f32.s32 %v3953_v37  ;;  %v3942_v44 = vcvt.f32.s32 %v3940_v61 }
 0x44a   : > { %v3956_v59 = vshll.u32 %v3955_v13, 16  ;;  %v3943_v8 = vshll.u32 %v3942_v44, 16  ;;  %4645 = vadd.xlane.f32.xlu1 %v4644_v32  ;;  %4642 = vadd.xlane.f32.xlu0 %v4641_v16  ;;  %v4680_v44 = vsel %vm10349_vm12, %v9795_v22, 0.0  ;;  %v4683_v22 = vsel %vm10352_vm8, %v9830_v47, 0.0 }
 0x44b   : > { %v3966_v18 = vpop.xlane.xlu1 %3965  ;;  %v3964_v20 = vpop.xlane.xlu0 %3963 }
 0x44c   : > { %v3957_v39 = vadd.s32 %v3956_v59, %v3954_v31  ;;  %v3944_v7 = vadd.s32 %v3943_v8, %v3941_v28  ;;  %v3968_v1 = vcvt.f32.s32 %v3966_v18  ;;  %v3967_v14 = vcvt.f32.s32 %v3964_v20 }
 0x44d   : > { %v4686_v8 = vsel %vm10351_vm6, %v9823_v25, 0.0  ;;  %v4689_v25 = vsel %vm10354_vm1, %v9838_v48, 0.0 }
 0x44e   : > { %4350 = vst.msk [vmem:[%s9934_s26 + $0x8] sm:$0xff] %vm4348_vm10, %v3957_v39  ;;  %4349 = vst.msk [vmem:[%s9934_s26] sm:$0xff] %vm4348_vm10, %v3944_v7  ;;  %v3969_v17 = vshll.u32 %v3968_v1, 16  ;;  %4651 = vadd.xlane.f32.xlu1 %v4650_v46  ;;  %4648 = vadd.xlane.f32.xlu0 %v4647_v42  ;;  %v4692_v46 = vsel %vm10353_vm9, %v9834_v57, 0.0  ;;  %v4695_v57 = vsel %vm10356_vm13, %v9849_v50, 0.0 }
 0x44f   : > { %v3979_v21 = vpop.xlane.xlu1 %3978  ;;  %v3977_v6 = vpop.xlane.xlu0 %3976 }
 0x450   : > { %v3970_v4 = vadd.s32 %v3969_v17, %v3967_v14  ;;  %v3981_v24 = vcvt.f32.s32 %v3979_v21  ;;  %v3980_v43 = vcvt.f32.s32 %v3977_v6 }
 0x452   : > { %4351 = vst.msk [vmem:[%s9934_s26 + $0x10] sm:$0xff] %vm4348_vm10, %v3970_v4  ;;  %v3982_v35 = vshll.u32 %v3981_v24, 16  ;;  %4657 = vadd.xlane.f32.xlu1 %v4656_v63  ;;  %4654 = vadd.xlane.f32.xlu0 %v4653_v40  ;;  %v4698_v4 = vsel %vm10355_vm11, %v9845_v5, 0.0  ;;  %v4701_v5 = vsel %vm10358_vm15, %v9866_v9, 0.0 }
 0x453   : > { %v3992_v34 = vpop.xlane.xlu1 %3991  ;;  %v3990_v51 = vpop.xlane.xlu0 %3989 }
 0x454   : > { %v3983_v10 = vadd.s32 %v3982_v35, %v3980_v43  ;;  %v3994_v56 = vcvt.f32.s32 %v3992_v34  ;;  %v3993_v23 = vcvt.f32.s32 %v3990_v51  ;;  %v4704_v34 = vsel %vm10357_vm7, %v9853_v55, 0.0 }
 0x456   : > { %4352 = vst.msk [vmem:[%s9934_s26 + $0x18] sm:$0xff] %vm4348_vm10, %v3983_v10  ;;  %v3995_v11 = vshll.u32 %v3994_v56, 16  ;;  %4663 = vadd.xlane.f32.xlu1 %v4662_v29  ;;  %4660 = vadd.xlane.f32.xlu0 %v4659_v49 }
 0x457   : > { %v4005_v62 = vpop.xlane.xlu1 %4004  ;;  %v4003_v33 = vpop.xlane.xlu0 %4002 }
 0x458   : > { %v3996_v54 = vadd.s32 %v3995_v11, %v3993_v23  ;;  %v4007_v45 = vcvt.f32.s32 %v4005_v62  ;;  %v4006_v60 = vcvt.f32.s32 %v4003_v33 }
 0x45a   : > { %4353 = vst.msk [vmem:[%s9934_s26 + $0x20] sm:$0xff] %vm4348_vm10, %v3996_v54  ;;  %v4008_v58 = vshll.u32 %v4007_v45, 16  ;;  %4669 = vadd.xlane.f32.xlu1 %v4668_v52  ;;  %4666 = vadd.xlane.f32.xlu0 %v4665_v19 }
 0x45b   : > { %v4018_v26 = vpop.xlane.xlu1 %4017  ;;  %v4016_v30 = vpop.xlane.xlu0 %4015 }
 0x45c   : > { %v4009_v2 = vadd.s32 %v4008_v58, %v4006_v60  ;;  %v4020_v12 = vcvt.f32.s32 %v4018_v26  ;;  %v4019_v3 = vcvt.f32.s32 %v4016_v30 }
 0x45e   : > { %4354 = vst.msk [vmem:[%s9934_s26 + $0x28] sm:$0xff] %vm4348_vm10, %v4009_v2  ;;  %v4021_v41 = vshll.u32 %v4020_v12, 16  ;;  %4675 = vadd.xlane.f32.xlu1 %v4674_v36  ;;  %4672 = vadd.xlane.f32.xlu0 %v4671_v38 }
 0x45f   : > { %v4031_v53 = vpop.xlane.xlu1 %4030  ;;  %v4029_v37 = vpop.xlane.xlu0 %4028 }
 0x460   : > { %v4022_v61 = vadd.s32 %v4021_v41, %v4019_v3  ;;  %v4033_v13 = vcvt.f32.s32 %v4031_v53  ;;  %v4032_v32 = vcvt.f32.s32 %v4029_v37 }
 0x462   : > { %4355 = vst.msk [vmem:[%s9934_s26 + $0x30] sm:$0xff] %vm4348_vm10, %v4022_v61  ;;  %v4034_v0 = vshll.u32 %v4033_v13, 16  ;;  %4681 = vadd.xlane.f32.xlu1 %v4680_v44  ;;  %4678 = vadd.xlane.f32.xlu0 %v4677_v15 }
 0x463   : > { %v4044_v16 = vpop.xlane.xlu1 %4043  ;;  %v4042_v31 = vpop.xlane.xlu0 %4041 }
 0x464   : > { %v4035_v28 = vadd.s32 %v4034_v0, %v4032_v32  ;;  %v4046_v59 = vcvt.f32.s32 %v4044_v16  ;;  %v4045_v18 = vcvt.f32.s32 %v4042_v31 }
 0x466   : > { %4356 = vst.msk [vmem:[%s9934_s26 + $0x38] sm:$0xff] %vm4348_vm10, %v4035_v28  ;;  %v4047_v27 = vshll.u32 %v4046_v59, 16  ;;  %4687 = vadd.xlane.f32.xlu1 %v4686_v8  ;;  %4684 = vadd.xlane.f32.xlu0 %v4683_v22 }
 0x467   : > { %v4057_v20 = vpop.xlane.xlu1 %4056  ;;  %v4055_v39 = vpop.xlane.xlu0 %4054 }
 0x468   : > { %v4048_v7 = vadd.s32 %v4047_v27, %v4045_v18  ;;  %v4059_v1 = vcvt.f32.s32 %v4057_v20  ;;  %v4058_v42 = vcvt.f32.s32 %v4055_v39 }
 0x46a   : > { %4357 = vst.msk [vmem:[%s9934_s26 + $0x40] sm:$0xff] %vm4348_vm10, %v4048_v7  ;;  %v4060_v47 = vshll.u32 %v4059_v1, 16  ;;  %4693 = vadd.xlane.f32.xlu1 %v4692_v46  ;;  %4690 = vadd.xlane.f32.xlu0 %v4689_v25 }
 0x46b   : > { %v4070_v17 = vpop.xlane.xlu1 %4069  ;;  %v4068_v14 = vpop.xlane.xlu0 %4067 }
 0x46c   : > { %v4061_v21 = vadd.s32 %v4060_v47, %v4058_v42  ;;  %v4072_v6 = vcvt.f32.s32 %v4070_v17  ;;  %v4071_v24 = vcvt.f32.s32 %v4068_v14 }
 0x46e   : > { %4358 = vst.msk [vmem:[%s9934_s26 + $0x48] sm:$0xff] %vm4348_vm10, %v4061_v21  ;;  %v4073_v48 = vshll.u32 %v4072_v6, 16  ;;  %4699 = vadd.xlane.f32.xlu1 %v4698_v4  ;;  %4696 = vadd.xlane.f32.xlu0 %v4695_v57 }
 0x46f   : > { %v4083_v63 = vpop.xlane.xlu1 %4082  ;;  %v4081_v40 = vpop.xlane.xlu0 %4080 }
 0x470   : > { %v4074_v35 = vadd.s32 %v4073_v48, %v4071_v24  ;;  %v4085_v43 = vcvt.f32.s32 %v4083_v63  ;;  %v4084_v51 = vcvt.f32.s32 %v4081_v40 }
 0x472   : > { %4359 = vst.msk [vmem:[%s9934_s26 + $0x50] sm:$0xff] %vm4348_vm10, %v4074_v35  ;;  %v4086_v50 = vshll.u32 %v4085_v43, 16  ;;  %4705 = vadd.xlane.f32.xlu1 %v4704_v34  ;;  %4702 = vadd.xlane.f32.xlu0 %v4701_v5 }
 0x473   : > { %v4096_v10 = vpop.xlane.xlu1 %4095  ;;  %v4094_v56 = vpop.xlane.xlu0 %4093 }
 0x474   : > { %v4087_v29 = vadd.s32 %v4086_v50, %v4084_v51  ;;  %v4098_v49 = vcvt.f32.s32 %v4096_v10  ;;  %v4097_v23 = vcvt.f32.s32 %v4094_v56 }
 0x476   : > { %4360 = vst.msk [vmem:[%s9934_s26 + $0x58] sm:$0xff] %vm4348_vm10, %v4087_v29  ;;  %v4099_v11 = vshll.u32 %v4098_v49, 16 }
 0x477   : > { %v4109_v55 = vpop.xlane.xlu1 %4108  ;;  %v4107_v62 = vpop.xlane.xlu0 %4106 }
 0x478   : > { %v4100_v33 = vadd.s32 %v4099_v11, %v4097_v23  ;;  %v4111_v9 = vcvt.f32.s32 %v4109_v55  ;;  %v4110_v45 = vcvt.f32.s32 %v4107_v62 }
 0x47a   : > { %4361 = vst.msk [vmem:[%s9934_s26 + $0x60] sm:$0xff] %vm4348_vm10, %v4100_v33  ;;  %v4112_v54 = vshll.u32 %v4111_v9, 16 }
 0x47b   : > { %v4122_v52 = vpop.xlane.xlu1 %4121  ;;  %v4120_v19 = vpop.xlane.xlu0 %4119 }
 0x47c   : > { %v4113_v58 = vadd.s32 %v4112_v54, %v4110_v45  ;;  %v4124_v60 = vcvt.f32.s32 %v4122_v52  ;;  %v4123_v30 = vcvt.f32.s32 %v4120_v19 }
 0x47e   : > { %4362 = vst.msk [vmem:[%s9934_s26 + $0x68] sm:$0xff] %vm4348_vm10, %v4113_v58  ;;  %v4125_v26 = vshll.u32 %v4124_v60, 16 }
 0x47f   : > { %v4135_v2 = vpop.xlane.xlu1 %4134  ;;  %v4133_v12 = vpop.xlane.xlu0 %4132 }
 0x480   : > { %v4126_v36 = vadd.s32 %v4125_v26, %v4123_v30  ;;  %v4137_v38 = vcvt.f32.s32 %v4135_v2  ;;  %v4136_v3 = vcvt.f32.s32 %v4133_v12 }
 0x482   : > { %4363 = vst.msk [vmem:[%s9934_s26 + $0x70] sm:$0xff] %vm4348_vm10, %v4126_v36  ;;  %v4138_v41 = vshll.u32 %v4137_v38, 16 }
 0x483   : > { %v4148_v53 = vpop.xlane.xlu1 %4147  ;;  %v4146_v37 = vpop.xlane.xlu0 %4145 }
 0x484   : > { %v4139_v61 = vadd.s32 %v4138_v41, %v4136_v3  ;;  %v4150_v13 = vcvt.f32.s32 %v4148_v53  ;;  %v4149_v15 = vcvt.f32.s32 %v4146_v37 }
 0x486   : > { %4364 = vst.msk [vmem:[%s9934_s26 + $0x78] sm:$0xff] %vm4348_vm10, %v4139_v61  ;;  %v4151_v44 = vshll.u32 %v4150_v13, 16 }
 0x487   : > { %v4161_v0 = vpop.xlane.xlu1 %4160  ;;  %v4159_v32 = vpop.xlane.xlu0 %4158 }
 0x488   : > { %v4152_v16 = vadd.s32 %v4151_v44, %v4149_v15  ;;  %v4163_v31 = vcvt.f32.s32 %v4161_v0  ;;  %v4162_v59 = vcvt.f32.s32 %v4159_v32 }
 0x48a   : > { %4365 = vst.msk [vmem:[%s9934_s26 + $0x80] sm:$0xff] %vm4348_vm10, %v4152_v16  ;;  %v4164_v28 = vshll.u32 %v4163_v31, 16 }
 0x48b   : > { %v4174_v8 = vpop.xlane.xlu1 %4173  ;;  %v4172_v22 = vpop.xlane.xlu0 %4171 }
 0x48c   : > { %v4165_v27 = vadd.s32 %v4164_v28, %v4162_v59  ;;  %v4176_v18 = vcvt.f32.s32 %v4174_v8  ;;  %v4175_v39 = vcvt.f32.s32 %v4172_v22 }
 0x48e   : > { %4366 = vst.msk [vmem:[%s9934_s26 + $0x88] sm:$0xff] %vm4348_vm10, %v4165_v27  ;;  %v4177_v20 = vshll.u32 %v4176_v18, 16 }
 0x48f   : > { %v4187_v7 = vpop.xlane.xlu1 %4186  ;;  %v4185_v1 = vpop.xlane.xlu0 %4184 }
 0x490   : > { %v4178_v46 = vadd.s32 %v4177_v20, %v4175_v39  ;;  %v4189_v25 = vcvt.f32.s32 %v4187_v7  ;;  %v4188_v42 = vcvt.f32.s32 %v4185_v1 }
 0x492   : > { %4367 = vst.msk [vmem:[%s9934_s26 + $0x90] sm:$0xff] %vm4348_vm10, %v4178_v46  ;;  %v4190_v47 = vshll.u32 %v4189_v25, 16 }
 0x493   : > { %v4200_v17 = vpop.xlane.xlu1 %4199  ;;  %v4198_v14 = vpop.xlane.xlu0 %4197 }
 0x494   : > { %v4191_v21 = vadd.s32 %v4190_v47, %v4188_v42  ;;  %v4202_v6 = vcvt.f32.s32 %v4200_v17  ;;  %v4201_v57 = vcvt.f32.s32 %v4198_v14 }
 0x496   : > { %4368 = vst.msk [vmem:[%s9934_s26 + $0x98] sm:$0xff] %vm4348_vm10, %v4191_v21  ;;  %v4203_v4 = vshll.u32 %v4202_v6, 16 }
 0x497   : > { %v4213_v48 = vpop.xlane.xlu1 %4212  ;;  %v4211_v24 = vpop.xlane.xlu0 %4210 }
 0x498   : > { %v4204_v63 = vadd.s32 %v4203_v4, %v4201_v57  ;;  %v4215_v40 = vcvt.f32.s32 %v4213_v48  ;;  %v4214_v43 = vcvt.f32.s32 %v4211_v24 }
 0x49a   : > { %4369 = vst.msk [vmem:[%s9934_s26 + $0xa0] sm:$0xff] %vm4348_vm10, %v4204_v63  ;;  %v4216_v35 = vshll.u32 %v4215_v40, 16 }
 0x49b   : > { %v4226_v34 = vpop.xlane.xlu1 %4225  ;;  %v4224_v5 = vpop.xlane.xlu0 %4223 }
 0x49c   : > { %v4217_v50 = vadd.s32 %v4216_v35, %v4214_v43  ;;  %v4228_v51 = vcvt.f32.s32 %v4226_v34  ;;  %v4227_v56 = vcvt.f32.s32 %v4224_v5 }
 0x49e   : > { %4370 = vst.msk [vmem:[%s9934_s26 + $0xa8] sm:$0xff] %vm4348_vm10, %v4217_v50  ;;  %v4229_v10 = vshll.u32 %v4228_v51, 16 }
 0x49f   : > { %v4239_v29 = vpop.xlane.xlu1 %4238  ;;  %v4237_v49 = vpop.xlane.xlu0 %4236 }
 0x4a0   : > { %v4230_v11 = vadd.s32 %v4229_v10, %v4227_v56  ;;  %v4241_v23 = vcvt.f32.s32 %v4239_v29  ;;  %v4240_v62 = vcvt.f32.s32 %v4237_v49 }
 0x4a2   : > { %4371 = vst.msk [vmem:[%s9934_s26 + $0xb0] sm:$0xff] %vm4348_vm10, %v4230_v11  ;;  %v4242_v55 = vshll.u32 %v4241_v23, 16 }
 0x4a3   : > { %v4252_v33 = vpop.xlane.xlu1 %4251  ;;  %v4250_v9 = vpop.xlane.xlu0 %4249 }
 0x4a4   : > { %v4243_v54 = vadd.s32 %v4242_v55, %v4240_v62  ;;  %v4254_v45 = vcvt.f32.s32 %v4252_v33  ;;  %v4253_v19 = vcvt.f32.s32 %v4250_v9 }
 0x4a6   : > { %4372 = vst.msk [vmem:[%s9934_s26 + $0xb8] sm:$0xff] %vm4348_vm10, %v4243_v54  ;;  %v4255_v52 = vshll.u32 %v4254_v45, 16 }
 0x4a7   : > { %v4265_v58 = vpop.xlane.xlu1 %4264  ;;  %v4263_v60 = vpop.xlane.xlu0 %4262 }
 0x4a8   : > { %v4256_v26 = vadd.s32 %v4255_v52, %v4253_v19  ;;  %v4267_v30 = vcvt.f32.s32 %v4265_v58  ;;  %v4266_v12 = vcvt.f32.s32 %v4263_v60 }
 0x4aa   : > { %4373 = vst.msk [vmem:[%s9934_s26 + $0xc0] sm:$0xff] %vm4348_vm10, %v4256_v26  ;;  %v4268_v2 = vshll.u32 %v4267_v30, 16 }
 0x4ab   : > { %v4278_v36 = vpop.xlane.xlu1 %4277  ;;  %v4276_v38 = vpop.xlane.xlu0 %4275 }
 0x4ac   : > { %v4269_v41 = vadd.s32 %v4268_v2, %v4266_v12  ;;  %v4280_v3 = vcvt.f32.s32 %v4278_v36  ;;  %v4279_v37 = vcvt.f32.s32 %v4276_v38 }
 0x4ae   : > { %4374 = vst.msk [vmem:[%s9934_s26 + $0xc8] sm:$0xff] %vm4348_vm10, %v4269_v41  ;;  %v4281_v53 = vshll.u32 %v4280_v3, 16 }
 0x4af   : > { %v4291_v61 = vpop.xlane.xlu1 %4290  ;;  %v4289_v13 = vpop.xlane.xlu0 %4288 }
 0x4b0   : > { %v4282_v44 = vadd.s32 %v4281_v53, %v4279_v37  ;;  %v4293_v15 = vcvt.f32.s32 %v4291_v61  ;;  %v4292_v32 = vcvt.f32.s32 %v4289_v13 }
 0x4b2   : > { %4375 = vst.msk [vmem:[%s9934_s26 + $0xd0] sm:$0xff] %vm4348_vm10, %v4282_v44  ;;  %v4294_v0 = vshll.u32 %v4293_v15, 16 }
 0x4b3   : > { %v4304_v16 = vpop.xlane.xlu1 %4303  ;;  %v4302_v31 = vpop.xlane.xlu0 %4301 }
 0x4b4   : > { %v4295_v28 = vadd.s32 %v4294_v0, %v4292_v32  ;;  %v4306_v59 = vcvt.f32.s32 %v4304_v16  ;;  %v4305_v22 = vcvt.f32.s32 %v4302_v31 }
 0x4b6   : > { %4376 = vst.msk [vmem:[%s9934_s26 + $0xd8] sm:$0xff] %vm4348_vm10, %v4295_v28  ;;  %v4307_v8 = vshll.u32 %v4306_v59, 16 }
 0x4b7   : > { %v4330_v27 = vpop.xlane.xlu1 %4329  ;;  %v4317_v18 = vpop.xlane.xlu0 %4316 }
 0x4b8   : > { %v4308_v20 = vadd.s32 %v4307_v8, %v4305_v22  ;;  %v4319_v39 = vcvt.f32.s32 %v4317_v18  ;;  %v4332_v46 = vcvt.f32.s32 %v4330_v27 }
 0x4ba   : > { %4377 = vst.msk [vmem:[%s9934_s26 + $0xe0] sm:$0xff] %vm4348_vm10, %v4308_v20  ;;  %v4320_v25 = vshll.u32 %v4319_v39, 16  ;;  %v4333_v6 = vshll.u32 %v4332_v46, 16 }
 0x4bb   : > { %v4315_v7 = vpop.xlane.xlu1 %4314  ;;  %v4343_v1 = vpop.xlane.xlu0 %4342 }
 0x4bc   : > { %v4318_v47 = vcvt.f32.s32 %v4315_v7  ;;  %v4345_v42 = vcvt.f32.s32 %v4343_v1 }
 0x4be   : > { %v4321_v17 = vadd.s32 %v4320_v25, %v4318_v47  ;;  %v4346_v4 = vshll.u32 %v4345_v42, 16 }
 0x4bf   : > { %v4341_v14 = vpop.xlane.xlu1 %4340  ;;  %v4328_v21 = vpop.xlane.xlu0 %4327 }
 0x4c0   : > { %4378 = vst.msk [vmem:[%s9934_s26 + $0xe8] sm:$0xff] %vm4348_vm10, %v4321_v17  ;;  %v4344_v57 = vcvt.f32.s32 %v4341_v14  ;;  %v4331_v48 = vcvt.f32.s32 %v4328_v21 }
 0x4c2   : > { %v4347_v24 = vadd.s32 %v4346_v4, %v4344_v57  ;;  %v4334_v63 = vadd.s32 %v4333_v6, %v4331_v48 }
 0x4c3   : > { %v4616_v40 = vpop.xlane.xlu1 %4615  ;;  %v4613_v35 = vpop.xlane.xlu0 %4612 }
 0x4c4   : > { %4380 = vst.msk [vmem:[%s9934_s26 + $0xf8] sm:$0xff] %vm4348_vm10, %v4347_v24  ;;  %4379 = vst.msk [vmem:[%s9934_s26 + $0xf0] sm:$0xff] %vm4348_vm10, %v4334_v63 }
 0x4c5   : > { %4708 = vst.msk [vmem:[%s10040_s29 + $0x8] sm:$0xff] %vm4348_vm10, %v4616_v40  ;;  %4707 = vst.msk [vmem:[%s10040_s29] sm:$0xff] %vm4348_vm10, %v4613_v35 }
 0x4c7   : > { %v4622_v43 = vpop.xlane.xlu1 %4621  ;;  %v4619_v34 = vpop.xlane.xlu0 %4618 }
 0x4c8   : > { %4710 = vst.msk [vmem:[%s10040_s29 + $0x18] sm:$0xff] %vm4348_vm10, %v4622_v43  ;;  %4709 = vst.msk [vmem:[%s10040_s29 + $0x10] sm:$0xff] %vm4348_vm10, %v4619_v34 }
 0x4cb   : > { %v4628_v5 = vpop.xlane.xlu1 %4627  ;;  %v4625_v50 = vpop.xlane.xlu0 %4624 }
 0x4cc   : > { %4712 = vst.msk [vmem:[%s10040_s29 + $0x28] sm:$0xff] %vm4348_vm10, %v4628_v5  ;;  %4711 = vst.msk [vmem:[%s10040_s29 + $0x20] sm:$0xff] %vm4348_vm10, %v4625_v50 }
 0x4cf   : > { %v4634_v51 = vpop.xlane.xlu1 %4633  ;;  %v4631_v10 = vpop.xlane.xlu0 %4630 }
 0x4d0   : > { %4714 = vst.msk [vmem:[%s10040_s29 + $0x38] sm:$0xff] %vm4348_vm10, %v4634_v51  ;;  %4713 = vst.msk [vmem:[%s10040_s29 + $0x30] sm:$0xff] %vm4348_vm10, %v4631_v10 }
 0x4d3   : > { %v4640_v56 = vpop.xlane.xlu1 %4639  ;;  %v4637_v29 = vpop.xlane.xlu0 %4636 }
 0x4d4   : > { %4716 = vst.msk [vmem:[%s10040_s29 + $0x48] sm:$0xff] %vm4348_vm10, %v4640_v56  ;;  %4715 = vst.msk [vmem:[%s10040_s29 + $0x40] sm:$0xff] %vm4348_vm10, %v4637_v29 }
 0x4d7   : > { %v4646_v49 = vpop.xlane.xlu1 %4645  ;;  %v4643_v11 = vpop.xlane.xlu0 %4642 }
 0x4d8   : > { %4718 = vst.msk [vmem:[%s10040_s29 + $0x58] sm:$0xff] %vm4348_vm10, %v4646_v49  ;;  %4717 = vst.msk [vmem:[%s10040_s29 + $0x50] sm:$0xff] %vm4348_vm10, %v4643_v11 }
 0x4db   : > { %v4652_v23 = vpop.xlane.xlu1 %4651  ;;  %v4649_v55 = vpop.xlane.xlu0 %4648 }
 0x4dc   : > { %4720 = vst.msk [vmem:[%s10040_s29 + $0x68] sm:$0xff] %vm4348_vm10, %v4652_v23  ;;  %4719 = vst.msk [vmem:[%s10040_s29 + $0x60] sm:$0xff] %vm4348_vm10, %v4649_v55 }
 0x4df   : > { %v4658_v62 = vpop.xlane.xlu1 %4657  ;;  %v4655_v33 = vpop.xlane.xlu0 %4654 }
 0x4e0   : > { %4722 = vst.msk [vmem:[%s10040_s29 + $0x78] sm:$0xff] %vm4348_vm10, %v4658_v62  ;;  %4721 = vst.msk [vmem:[%s10040_s29 + $0x70] sm:$0xff] %vm4348_vm10, %v4655_v33 }
 0x4e3   : > { %v4664_v9 = vpop.xlane.xlu1 %4663  ;;  %v4661_v54 = vpop.xlane.xlu0 %4660 }
 0x4e4   : > { %4724 = vst.msk [vmem:[%s10040_s29 + $0x88] sm:$0xff] %vm4348_vm10, %v4664_v9  ;;  %4723 = vst.msk [vmem:[%s10040_s29 + $0x80] sm:$0xff] %vm4348_vm10, %v4661_v54 }
 0x4e7   : > { %v4670_v45 = vpop.xlane.xlu1 %4669  ;;  %v4667_v52 = vpop.xlane.xlu0 %4666 }
 0x4e8   : > { %4726 = vst.msk [vmem:[%s10040_s29 + $0x98] sm:$0xff] %vm4348_vm10, %v4670_v45  ;;  %4725 = vst.msk [vmem:[%s10040_s29 + $0x90] sm:$0xff] %vm4348_vm10, %v4667_v52 }
 0x4eb   : > { %v4676_v19 = vpop.xlane.xlu1 %4675  ;;  %v4673_v58 = vpop.xlane.xlu0 %4672 }
 0x4ec   : > { %4728 = vst.msk [vmem:[%s10040_s29 + $0xa8] sm:$0xff] %vm4348_vm10, %v4676_v19  ;;  %4727 = vst.msk [vmem:[%s10040_s29 + $0xa0] sm:$0xff] %vm4348_vm10, %v4673_v58 }
 0x4ef   : > { %v4682_v60 = vpop.xlane.xlu1 %4681  ;;  %v4679_v26 = vpop.xlane.xlu0 %4678 }
 0x4f0   : > { %4730 = vst.msk [vmem:[%s10040_s29 + $0xb8] sm:$0xff] %vm4348_vm10, %v4682_v60  ;;  %4729 = vst.msk [vmem:[%s10040_s29 + $0xb0] sm:$0xff] %vm4348_vm10, %v4679_v26 }
 0x4f3   : > { %v4688_v30 = vpop.xlane.xlu1 %4687  ;;  %v4685_v2 = vpop.xlane.xlu0 %4684 }
 0x4f4   : > { %4732 = vst.msk [vmem:[%s10040_s29 + $0xc8] sm:$0xff] %vm4348_vm10, %v4688_v30  ;;  %4731 = vst.msk [vmem:[%s10040_s29 + $0xc0] sm:$0xff] %vm4348_vm10, %v4685_v2 }
 0x4f7   : > { %v4694_v12 = vpop.xlane.xlu1 %4693  ;;  %v4691_v36 = vpop.xlane.xlu0 %4690 }
 0x4f8   : > { %4734 = vst.msk [vmem:[%s10040_s29 + $0xd8] sm:$0xff] %vm4348_vm10, %v4694_v12  ;;  %4733 = vst.msk [vmem:[%s10040_s29 + $0xd0] sm:$0xff] %vm4348_vm10, %v4691_v36 }
 0x4fb   : > { %v4700_v38 = vpop.xlane.xlu1 %4699  ;;  %v4697_v41 = vpop.xlane.xlu0 %4696 }
 0x4fc   : > { %4736 = vst.msk [vmem:[%s10040_s29 + $0xe8] sm:$0xff] %vm4348_vm10, %v4700_v38  ;;  %4735 = vst.msk [vmem:[%s10040_s29 + $0xe0] sm:$0xff] %vm4348_vm10, %v4697_v41 }
 0x4ff   : > { %v4706_v3 = vpop.xlane.xlu1 %4705  ;;  %v4703_v53 = vpop.xlane.xlu0 %4702 }
 0x500   : > { %4738 = vst.msk [vmem:[%s10040_s29 + $0xf8] sm:$0xff] %vm4348_vm10, %v4706_v3  ;;  %4737 = vst.msk [vmem:[%s10040_s29 + $0xf0] sm:$0xff] %vm4348_vm10, %v4703_v53 }
 0x501 PF: > { %s15_s15 = sadd.s32 1, %s5891_s15  }
 0x502   : > { %p12_p4 = scmp.ge.s32.totalorder %s15_s15, 4  }
 0x504   :  { %14 = sbr.rel (!%p12_p4) target bundleno = 1 (0x1), region = 82 }

</bundles_post_ra>
